<compile_context>
chip_gen: v6e
topology: v6e:2x2x1
jax: 0.10.0
libtpu: 0.0.40
codegen_flags: <defaults>
</compile_context>

<pallas_src>
import functools

import jax
import jax.numpy as jnp
from jax import lax
from jax.experimental import pallas as pl
from jax.experimental.pallas import tpu as pltpu


def _round_up(x, m):
    return ((x + m - 1) // m) * m


# ----------------------------- fused Pallas kernel ------------------------- #
def _upblock_kernel(x1p_ref, x2p_ref, wh_ref, bh_ref, w1_ref, b1_ref,
                    w2t_ref, b2_ref, o_ref,
                    a0_ref, pad1_ref, pad2_ref,
                    *, dil, C2, Cout, H2, W2,
                    Wp0, Wp1, Wp2, Ho1, Wo1, Ho2, Wo2):
    f32 = jnp.float32
    bf16 = jnp.bfloat16

    # ---------- stage 0: halfChanelConv (3x3, pad=1, dilation=1) + ReLU -----
    # x1p_ref: zero-padded, flattened upsampled x1, shape (Hp0*Wp0, Cin), bf16.
    a0_ref[...] = x1p_ref[...].astype(f32)
    L0 = (H2 - 1) * Wp0 + W2                       # junk-row-layout length
    acc = jnp.zeros((L0, Cout), f32)
    for t in range(9):                             # static unroll, 9 taps
        off = (t // 3) * Wp0 + (t % 3)             # dilation 1 here
        sl = a0_ref[off:off + L0, :].astype(bf16)  # (L0, Cin) bf16 MXU operand
        acc = acc + jnp.dot(sl, wh_ref[t], preferred_element_type=f32)
    h_val = jnp.maximum(acc + bh_ref[...], 0.0)    # (L0, Cout), f32

    # ---------- concat([x2, h], channel) into conv1's padded grid -----------
    pad1_ref[...] = jnp.zeros_like(pad1_ref)
    pad1_ref[:, 0:C2] = x2p_ref[...].astype(f32)   # x2 pre-padded by wrapper
    for r in range(H2):                            # interior rows, pad = 1
        dst = (r + 1) * Wp1 + 1
        pad1_ref[dst:dst + W2, C2:C2 + Cout] = h_val[r * Wp0:r * Wp0 + W2, :]

    # ---------- stage 1: conv1 (3x3, pad=1, dilation=dil) + ReLU ------------
    L1 = (Ho1 - 1) * Wp1 + Wo1
    acc = jnp.zeros((L1, Cout), f32)
    for t in range(9):
        off = (t // 3) * dil * Wp1 + (t % 3) * dil
        sl = pad1_ref[off:off + L1, :].astype(bf16)
        acc = acc + jnp.dot(sl, w1_ref[t], preferred_element_type=f32)
    y1 = jnp.maximum(acc + b1_ref[...], 0.0)       # (L1, Cout), f32

    # ---------- re-pad for conv2 (pad = 1) ----------------------------------
    pad2_ref[...] = jnp.zeros_like(pad2_ref)
    for r in range(Ho1):
        dst = (r + 1) * Wp2 + 1
        pad2_ref[dst:dst + Wo1, :] = y1[r * Wp1:r * Wp1 + Wo1, :]

    # ---------- stage 2: conv2 (3x3, pad=1, dilation=dil) + ReLU ------------
    # Accumulate channel-major (Cout, L2) so the final store is lane-dense.
    L2 = (Ho2 - 1) * Wp2 + Wo2
    acc = jnp.zeros((Cout, L2), f32)
    for t in range(9):
        off = (t // 3) * dil * Wp2 + (t % 3) * dil
        sl = pad2_ref[off:off + L2, :].astype(bf16)            # (L2, Cmid)
        # w2t_ref[t] is the per-tap transposed weight (Cout, Cmid); contract
        # the last dims of both operands (the standard q @ k.T pattern).
        acc = acc + lax.dot_general(
            w2t_ref[t], sl, (((1,), (1,)), ((), ())),
            preferred_element_type=f32)                        # (Cout, L2)
    y2 = jnp.maximum(acc + b2_ref[...], 0.0)                   # (Cout, L2)

    # ---------- lane-dense output: (Cout, Ho2*Wo2) --------------------------
    for r in range(Ho2):
        o_ref[:, r * Wo2:(r + 1) * Wo2] = y2[:, r * Wp2:r * Wp2 + Wo2]


# ------------------------------ host-side glue ----------------------------- #
def nearest_upsample_nchw(x, out_h, out_w):
    """F.interpolate(mode='nearest'); broadcast+reshape for integer factors."""
    N, C, H, W = x.shape
    if out_h == H and out_w == W:
        return x
    if out_h % H == 0 and out_w % W == 0:
        fh, fw = out_h // H, out_w // W
        y = jnp.broadcast_to(x[:, :, :, None, :, None], (N, C, H, fh, W, fw))
        return y.reshape(N, C, out_h, out_w)
    hi = (jnp.arange(out_h) * H) // out_h
    wi = (jnp.arange(out_w) * W) // out_w
    return x[:, :, hi][:, :, :, wi]


def _pad_flatten_bf16(x_nchw, hp, wp):
    """NCHW -> zero-padded (pad 1 top/left) NHWC -> (N, hp*wp, C), bf16."""
    N, C, H, W = x_nchw.shape
    x = jnp.transpose(x_nchw, (0, 2, 3, 1))
    x = jnp.pad(x, ((0, 0), (1, hp - H - 1), (1, wp - W - 1), (0, 0)))
    return x.reshape(N, hp * wp, C).astype(jnp.bfloat16)


def upblock_forward(x1_nchw, x2_nchw, packed, dilation):
    """Fused UpBlock forward.  NCHW in, NCHW out (matches the nn.Module)."""
    N, Cin, _, _ = x1_nchw.shape
    _, C2, H2, W2 = x2_nchw.shape
    Cout = packed["wh"].shape[-1]
    d = int(dilation)
    assert C2 + Cout == Cin, "x2 channels + outchannels must equal inchannels"

    # Static geometry: every conv uses padding=1; conv1/conv2 use dilation=d.
    # Wp is rounded up to a multiple of 8 so per-row slices are sublane-aligned
    # (extra zero columns are never read by valid outputs).
    Hp0, Wp0 = H2 + 2, _round_up(W2 + 2, 8)
    Hp1, Wp1 = H2 + 2, _round_up(W2 + 2, 8)
    Ho1, Wo1 = H2 + 2 - 2 * d, W2 + 2 - 2 * d
    Hp2, Wp2 = Ho1 + 2, _round_up(Wo1 + 2, 8)
    Ho2, Wo2 = Ho1 + 2 - 2 * d, Wo1 + 2 - 2 * d
    assert Ho1 > 0 and Wo1 > 0 and Ho2 > 0 and Wo2 > 0

    x1u = nearest_upsample_nchw(x1_nchw.astype(jnp.float32), H2, W2)
    x1p = _pad_flatten_bf16(x1u, Hp0, Wp0)                      # (N, Hp0*Wp0, Cin)
    x2p = _pad_flatten_bf16(x2_nchw.astype(jnp.float32), Hp1, Wp1)  # (N, Hp1*Wp1, C2)

    kernel = functools.partial(
        _upblock_kernel, dil=d, C2=C2, Cout=Cout, H2=H2, W2=W2,
        Wp0=Wp0, Wp1=Wp1, Wp2=Wp2, Ho1=Ho1, Wo1=Wo1, Ho2=Ho2, Wo2=Wo2)

    out_flat = pl.pallas_call(
        kernel,
        out_shape=jax.ShapeDtypeStruct((N, Cout, Ho2 * Wo2), jnp.float32),
        grid=(N,),
        in_specs=[
            pl.BlockSpec((None, Hp0 * Wp0, Cin), lambda i: (i, 0, 0)),  # x1 (padded)
            pl.BlockSpec((None, Hp1 * Wp1, C2), lambda i: (i, 0, 0)),   # x2 (padded)
            pl.BlockSpec((9, Cin, Cout), lambda i: (0, 0, 0)),          # w_half taps
            pl.BlockSpec((1, Cout), lambda i: (0, 0)),                  # b_half
            pl.BlockSpec((9, Cin, Cout), lambda i: (0, 0, 0)),          # w1 taps
            pl.BlockSpec((1, Cout), lambda i: (0, 0)),                  # b1
            pl.BlockSpec((9, Cout, Cout), lambda i: (0, 0, 0)),         # w2 taps (T)
            pl.BlockSpec((Cout, 1), lambda i: (0, 0)),                  # b2
        ],
        out_specs=pl.BlockSpec((None, Cout, Ho2 * Wo2), lambda i: (i, 0, 0)),
        scratch_shapes=[
            pltpu.VMEM((Hp0 * Wp0, Cin), jnp.float32),   # padded upsampled x1
            pltpu.VMEM((Hp1 * Wp1, Cin), jnp.float32),   # padded concat(x2, h)
            pltpu.VMEM((Hp2 * Wp2, Cout), jnp.float32),  # padded conv1 output
        ],
        compiler_params=pltpu.CompilerParams(
            dimension_semantics=("parallel",),           # batch across cores
            vmem_limit_bytes=32 * 1024 * 1024,           # safe on v5e/v6e/v7x
        ),
    )(x1p, x2p, packed["wh"], packed["bh"], packed["w1"], packed["b1"],
      packed["w2t"], packed["b2"])

    # (N, Cout, Ho2*Wo2) -> NCHW for free (row-major reshape, no transpose).
    return out_flat.reshape(N, Cout, Ho2, Wo2)


# ------------------------------ parameters --------------------------------- #
def init_upblock_params(key, inchannels, outchannels):
    """kaiming_normal_ weights + PyTorch-default uniform biases (HWIO)."""
    def init_conv(k, cin, cout):
        kw_, kb_ = jax.random.split(k)
        std = (2.0 / (cin * 9)) ** 0.5                 # kaiming_normal_, fan_in
        w = jax.random.normal(kw_, (3, 3, cin, cout), jnp.float32) * std
        bound = 1.0 / (cin * 9) ** 0.5
        b = jax.random.uniform(kb_, (cout,), jnp.float32, -bound, bound)
        return w, b

    k0, k1, k2 = jax.random.split(key, 3)
    w_half, b_half = init_conv(k0, inchannels, outchannels)
    w1, b1 = init_conv(k1, inchannels, outchannels)
    w2, b2 = init_conv(k2, outchannels, outchannels)
    return dict(w_half=w_half, b_half=b_half, w1=w1, b1=b1, w2=w2, b2=b2)


def pack_upblock_params(params):
    """Reshape / per-tap transpose / cast weights once (not per call)."""
    w_half, w1, w2 = params["w_half"], params["w1"], params["w2"]
    cin, cout = w_half.shape[2], w_half.shape[3]
    return dict(
        wh=w_half.reshape(9, cin, cout).astype(jnp.bfloat16),
        w1=w1.reshape(9, cin, cout).astype(jnp.bfloat16),
        # per-tap transposed so conv2 can accumulate channel-major (Cout, L)
        w2t=w2.reshape(9, cout, cout).transpose(0, 2, 1).astype(jnp.bfloat16),
        bh=params["b_half"].reshape(1, cout).astype(jnp.float32),
        b1=params["b1"].reshape(1, cout).astype(jnp.float32),
        b2=params["b2"].reshape(cout, 1).astype(jnp.float32),
    )


# --------------------------- pure-JAX reference ----------------------------- #
def upblock_forward_ref(x1_nchw, x2_nchw, params, dilation, match_bf16):
    """Reference via lax.conv.  If match_bf16, round conv operands to bf16
    (f32 math) to mirror the kernel's bf16-operand / f32-accumulate path."""
    def rnd(a):
        return a.astype(jnp.bfloat16).astype(jnp.float32) if match_bf16 else a

    def conv(x, w, b, dil):
        y = lax.conv_general_dilated(
            rnd(x), rnd(w), window_strides=(1, 1), padding=[(1, 1), (1, 1)],
            rhs_dilation=(dil, dil),
            dimension_numbers=("NHWC", "HWIO", "NHWC"),
            precision=lax.Precision.HIGHEST)
        return jnp.maximum(y + b, 0.0)

    H2, W2 = x2_nchw.shape[2], x2_nchw.shape[3]
    x1u = nearest_upsample_nchw(x1_nchw.astype(jnp.float32), H2, W2)
    x1u = jnp.transpose(x1u, (0, 2, 3, 1))
    x2n = jnp.transpose(x2_nchw.astype(jnp.float32), (0, 2, 3, 1))
    h = conv(x1u, params["w_half"], params["b_half"], 1)
    x = jnp.concatenate([x2n, h], axis=-1)
    x = conv(x, params["w1"], params["b1"], dilation)
    x = conv(x, params["w2"], params["b2"], dilation)
    return jnp.transpose(x, (0, 3, 1, 2))


# ----------------------------------- main ----------------------------------- #
if __name__ == "__main__":
    inchannels, outchannels, dilation = 8, 4, 1
    N = 2

    key = jax.random.PRNGKey(0)
    kp, kx1, kx2 = jax.random.split(key, 3)

    params = init_upblock_params(kp, inchannels, outchannels)
    packed = pack_upblock_params(params)

    # x1: low-res feature map with `inchannels` channels (to be upsampled)
    # x2: high-res skip connection with `inchannels - outchannels` channels
    x1 = jax.random.normal(kx1, (N, inchannels, 8, 8), jnp.float32)
    x2 = jax.random.normal(kx2, (N, inchannels - outchannels, 16, 16),
                           jnp.float32)

    fwd = jax.jit(upblock_forward, static_argnums=(3,))
    out = jax.block_until_ready(fwd(x1, x2, packed, dilation))

    ref_match = jax.block_until_ready(
        upblock_forward_ref(x1, x2, params, dilation, True))
    ref_f32 = jax.block_until_ready(
        upblock_forward_ref(x1, x2, params, dilation, False))

    assert out.shape == ref_f32.shape == (N, outchannels, 16, 16), out.shape
    assert jnp.allclose(out, ref_match, atol=1e-2, rtol=1e-2), \
        "mismatch vs bf16-operand-matched reference"
    assert jnp.allclose(out, ref_f32, atol=1e-1, rtol=1e-1), \
        "mismatch vs f32 reference"

    print("KERNEL_OK")
</pallas_src>

<mosaic_0001>
module attributes {stable_mosaic.version = 11 : i64} {
  func.func @_upblock_kernel(%arg0: i32, %arg1: memref<1x432x8xbf16, #tpu.memory_space<vmem>>, %arg2: memref<1x432x4xbf16, #tpu.memory_space<vmem>>, %arg3: memref<9x8x4xbf16, #tpu.memory_space<vmem>>, %arg4: memref<1x4xf32, #tpu.memory_space<vmem>>, %arg5: memref<9x8x4xbf16, #tpu.memory_space<vmem>>, %arg6: memref<1x4xf32, #tpu.memory_space<vmem>>, %arg7: memref<9x4x4xbf16, #tpu.memory_space<vmem>>, %arg8: memref<4x1xf32, #tpu.memory_space<vmem>>, %arg9: memref<1x4x256xf32, #tpu.memory_space<vmem>>, %arg10: memref<432x8xf32, #tpu.memory_space<vmem>>, %arg11: memref<432x8xf32, #tpu.memory_space<vmem>>, %arg12: memref<432x4xf32, #tpu.memory_space<vmem>>) attributes {dimension_semantics = [#tpu.dimension_semantics<parallel>], iteration_bounds = array<i64: 2>, scalar_prefetch = 0 : i64, scratch_operands = 3 : i64, tpu.core_type = #tpu.core_type<tc>, window_params = [{transform_indices = @transform_0, window_bounds = array<i64: 1, 432, 8>}, {transform_indices = @transform_1, window_bounds = array<i64: 1, 432, 4>}, {pipeline_mode = #tpu.pipeline_mode<synchronous>, transform_indices = @transform_2, window_bounds = array<i64: 9, 8, 4>}, {pipeline_mode = #tpu.pipeline_mode<synchronous>, transform_indices = @transform_3, window_bounds = array<i64: 1, 4>}, {pipeline_mode = #tpu.pipeline_mode<synchronous>, transform_indices = @transform_4, window_bounds = array<i64: 9, 8, 4>}, {pipeline_mode = #tpu.pipeline_mode<synchronous>, transform_indices = @transform_5, window_bounds = array<i64: 1, 4>}, {pipeline_mode = #tpu.pipeline_mode<synchronous>, transform_indices = @transform_6, window_bounds = array<i64: 9, 4, 4>}, {pipeline_mode = #tpu.pipeline_mode<synchronous>, transform_indices = @transform_7, window_bounds = array<i64: 4, 1>}, {transform_indices = @transform_8, window_bounds = array<i64: 1, 4, 256>}]} {
    %c0 = arith.constant 0 : index
    %c0_0 = arith.constant 0 : index
    %c0_1 = arith.constant 0 : index
    %0 = vector.load %arg1[%c0, %c0_0, %c0_1] : memref<1x432x8xbf16, #tpu.memory_space<vmem>>, vector<1x432x8xbf16>
    %1 = vector.shape_cast %0 : vector<1x432x8xbf16> to vector<432x8xbf16>
    %2 = arith.extf %1 : vector<432x8xbf16> to vector<432x8xf32>
    %c0_2 = arith.constant 0 : index
    %c0_3 = arith.constant 0 : index
    %3 = vector.load %arg10[%c0_2, %c0_3] : memref<432x8xf32, #tpu.memory_space<vmem>>, vector<432x8xf32>
    tpu.vector_store %arg10[%c0_2, %c0_3], %2 {strides = array<i32>} : memref<432x8xf32, #tpu.memory_space<vmem>>, vector<432x8xf32>,
    %cst = arith.constant 0.000000e+00 : f32
    %4 = vector.broadcast %cst : f32 to vector<376x4xf32>
    %c0_4 = arith.constant 0 : index
    %c0_5 = arith.constant 0 : index
    %5 = vector.load %arg10[%c0_4, %c0_5] : memref<432x8xf32, #tpu.memory_space<vmem>>, vector<376x8xf32>
    %6 = arith.truncf %5 : vector<376x8xf32> to vector<376x8xbf16>
    %c0_6 = arith.constant 0 : index
    %c0_7 = arith.constant 0 : index
    %c0_8 = arith.constant 0 : index
    %7 = vector.load %arg3[%c0_6, %c0_7, %c0_8] : memref<9x8x4xbf16, #tpu.memory_space<vmem>>, vector<1x8x4xbf16>
    %8 = vector.shape_cast %7 : vector<1x8x4xbf16> to vector<8x4xbf16>
    %cst_9 = arith.constant dense<0.000000e+00> : vector<376x4xf32>
    %9 = tpu.matmul %6, %8, %cst_9 {dimension_numbers = #tpu.dot_dimension_numbers<[1], [0], [0], [1], [0, 0, 1, 1], [], []>} : vector<376x8xbf16>, vector<8x4xbf16>, vector<376x4xf32> -> vector<376x4xf32>
    %10 = arith.addf %4, %9 : vector<376x4xf32>
    %c1 = arith.constant 1 : index
    %c0_10 = arith.constant 0 : index
    %11 = vector.load %arg10[%c1, %c0_10] : memref<432x8xf32, #tpu.memory_space<vmem>>, vector<376x8xf32>
    %12 = arith.truncf %11 : vector<376x8xf32> to vector<376x8xbf16>
    %c1_11 = arith.constant 1 : index
    %c0_12 = arith.constant 0 : index
    %c0_13 = arith.constant 0 : index
    %13 = vector.load %arg3[%c1_11, %c0_12, %c0_13] : memref<9x8x4xbf16, #tpu.memory_space<vmem>>, vector<1x8x4xbf16>
    %14 = vector.shape_cast %13 : vector<1x8x4xbf16> to vector<8x4xbf16>
    %cst_14 = arith.constant dense<0.000000e+00> : vector<376x4xf32>
    %15 = tpu.matmul %12, %14, %cst_14 {dimension_numbers = #tpu.dot_dimension_numbers<[1], [0], [0], [1], [0, 0, 1, 1], [], []>} : vector<376x8xbf16>, vector<8x4xbf16>, vector<376x4xf32> -> vector<376x4xf32>
    %16 = arith.addf %10, %15 : vector<376x4xf32>
    %c2 = arith.constant 2 : index
    %c0_15 = arith.constant 0 : index
    %17 = vector.load %arg10[%c2, %c0_15] : memref<432x8xf32, #tpu.memory_space<vmem>>, vector<376x8xf32>
    %18 = arith.truncf %17 : vector<376x8xf32> to vector<376x8xbf16>
    %c2_16 = arith.constant 2 : index
    %c0_17 = arith.constant 0 : index
    %c0_18 = arith.constant 0 : index
    %19 = vector.load %arg3[%c2_16, %c0_17, %c0_18] : memref<9x8x4xbf16, #tpu.memory_space<vmem>>, vector<1x8x4xbf16>
    %20 = vector.shape_cast %19 : vector<1x8x4xbf16> to vector<8x4xbf16>
    %cst_19 = arith.constant dense<0.000000e+00> : vector<376x4xf32>
    %21 = tpu.matmul %18, %20, %cst_19 {dimension_numbers = #tpu.dot_dimension_numbers<[1], [0], [0], [1], [0, 0, 1, 1], [], []>} : vector<376x8xbf16>, vector<8x4xbf16>, vector<376x4xf32> -> vector<376x4xf32>
    %22 = arith.addf %16, %21 : vector<376x4xf32>
    %c24 = arith.constant 24 : index
    %c0_20 = arith.constant 0 : index
    %23 = vector.load %arg10[%c24, %c0_20] : memref<432x8xf32, #tpu.memory_space<vmem>>, vector<376x8xf32>
    %24 = arith.truncf %23 : vector<376x8xf32> to vector<376x8xbf16>
    %c3 = arith.constant 3 : index
    %c0_21 = arith.constant 0 : index
    %c0_22 = arith.constant 0 : index
    %25 = vector.load %arg3[%c3, %c0_21, %c0_22] : memref<9x8x4xbf16, #tpu.memory_space<vmem>>, vector<1x8x4xbf16>
    %26 = vector.shape_cast %25 : vector<1x8x4xbf16> to vector<8x4xbf16>
    %cst_23 = arith.constant dense<0.000000e+00> : vector<376x4xf32>
    %27 = tpu.matmul %24, %26, %cst_23 {dimension_numbers = #tpu.dot_dimension_numbers<[1], [0], [0], [1], [0, 0, 1, 1], [], []>} : vector<376x8xbf16>, vector<8x4xbf16>, vector<376x4xf32> -> vector<376x4xf32>
    %28 = arith.addf %22, %27 : vector<376x4xf32>
    %c25 = arith.constant 25 : index
    %c0_24 = arith.constant 0 : index
    %29 = vector.load %arg10[%c25, %c0_24] : memref<432x8xf32, #tpu.memory_space<vmem>>, vector<376x8xf32>
    %30 = arith.truncf %29 : vector<376x8xf32> to vector<376x8xbf16>
    %c4 = arith.constant 4 : index
    %c0_25 = arith.constant 0 : index
    %c0_26 = arith.constant 0 : index
    %31 = vector.load %arg3[%c4, %c0_25, %c0_26] : memref<9x8x4xbf16, #tpu.memory_space<vmem>>, vector<1x8x4xbf16>
    %32 = vector.shape_cast %31 : vector<1x8x4xbf16> to vector<8x4xbf16>
    %cst_27 = arith.constant dense<0.000000e+00> : vector<376x4xf32>
    %33 = tpu.matmul %30, %32, %cst_27 {dimension_numbers = #tpu.dot_dimension_numbers<[1], [0], [0], [1], [0, 0, 1, 1], [], []>} : vector<376x8xbf16>, vector<8x4xbf16>, vector<376x4xf32> -> vector<376x4xf32>
    %34 = arith.addf %28, %33 : vector<376x4xf32>
    %c26 = arith.constant 26 : index
    %c0_28 = arith.constant 0 : index
    %35 = vector.load %arg10[%c26, %c0_28] : memref<432x8xf32, #tpu.memory_space<vmem>>, vector<376x8xf32>
    %36 = arith.truncf %35 : vector<376x8xf32> to vector<376x8xbf16>
    %c5 = arith.constant 5 : index
    %c0_29 = arith.constant 0 : index
    %c0_30 = arith.constant 0 : index
    %37 = vector.load %arg3[%c5, %c0_29, %c0_30] : memref<9x8x4xbf16, #tpu.memory_space<vmem>>, vector<1x8x4xbf16>
    %38 = vector.shape_cast %37 : vector<1x8x4xbf16> to vector<8x4xbf16>
    %cst_31 = arith.constant dense<0.000000e+00> : vector<376x4xf32>
    %39 = tpu.matmul %36, %38, %cst_31 {dimension_numbers = #tpu.dot_dimension_numbers<[1], [0], [0], [1], [0, 0, 1, 1], [], []>} : vector<376x8xbf16>, vector<8x4xbf16>, vector<376x4xf32> -> vector<376x4xf32>
    %40 = arith.addf %34, %39 : vector<376x4xf32>
    %c48 = arith.constant 48 : index
    %c0_32 = arith.constant 0 : index
    %41 = vector.load %arg10[%c48, %c0_32] : memref<432x8xf32, #tpu.memory_space<vmem>>, vector<376x8xf32>
    %42 = arith.truncf %41 : vector<376x8xf32> to vector<376x8xbf16>
    %c6 = arith.constant 6 : index
    %c0_33 = arith.constant 0 : index
    %c0_34 = arith.constant 0 : index
    %43 = vector.load %arg3[%c6, %c0_33, %c0_34] : memref<9x8x4xbf16, #tpu.memory_space<vmem>>, vector<1x8x4xbf16>
    %44 = vector.shape_cast %43 : vector<1x8x4xbf16> to vector<8x4xbf16>
    %cst_35 = arith.constant dense<0.000000e+00> : vector<376x4xf32>
    %45 = tpu.matmul %42, %44, %cst_35 {dimension_numbers = #tpu.dot_dimension_numbers<[1], [0], [0], [1], [0, 0, 1, 1], [], []>} : vector<376x8xbf16>, vector<8x4xbf16>, vector<376x4xf32> -> vector<376x4xf32>
    %46 = arith.addf %40, %45 : vector<376x4xf32>
    %c49 = arith.constant 49 : index
    %c0_36 = arith.constant 0 : index
    %47 = vector.load %arg10[%c49, %c0_36] : memref<432x8xf32, #tpu.memory_space<vmem>>, vector<376x8xf32>
    %48 = arith.truncf %47 : vector<376x8xf32> to vector<376x8xbf16>
    %c7 = arith.constant 7 : index
    %c0_37 = arith.constant 0 : index
    %c0_38 = arith.constant 0 : index
    %49 = vector.load %arg3[%c7, %c0_37, %c0_38] : memref<9x8x4xbf16, #tpu.memory_space<vmem>>, vector<1x8x4xbf16>
    %50 = vector.shape_cast %49 : vector<1x8x4xbf16> to vector<8x4xbf16>
    %cst_39 = arith.constant dense<0.000000e+00> : vector<376x4xf32>
    %51 = tpu.matmul %48, %50, %cst_39 {dimension_numbers = #tpu.dot_dimension_numbers<[1], [0], [0], [1], [0, 0, 1, 1], [], []>} : vector<376x8xbf16>, vector<8x4xbf16>, vector<376x4xf32> -> vector<376x4xf32>
    %52 = arith.addf %46, %51 : vector<376x4xf32>
    %c50 = arith.constant 50 : index
    %c0_40 = arith.constant 0 : index
    %53 = vector.load %arg10[%c50, %c0_40] : memref<432x8xf32, #tpu.memory_space<vmem>>, vector<376x8xf32>
    %54 = arith.truncf %53 : vector<376x8xf32> to vector<376x8xbf16>
    %c8 = arith.constant 8 : index
    %c0_41 = arith.constant 0 : index
    %c0_42 = arith.constant 0 : index
    %55 = vector.load %arg3[%c8, %c0_41, %c0_42] : memref<9x8x4xbf16, #tpu.memory_space<vmem>>, vector<1x8x4xbf16>
    %56 = vector.shape_cast %55 : vector<1x8x4xbf16> to vector<8x4xbf16>
    %cst_43 = arith.constant dense<0.000000e+00> : vector<376x4xf32>
    %57 = tpu.matmul %54, %56, %cst_43 {dimension_numbers = #tpu.dot_dimension_numbers<[1], [0], [0], [1], [0, 0, 1, 1], [], []>} : vector<376x8xbf16>, vector<8x4xbf16>, vector<376x4xf32> -> vector<376x4xf32>
    %58 = arith.addf %52, %57 : vector<376x4xf32>
    %c0_44 = arith.constant 0 : index
    %c0_45 = arith.constant 0 : index
    %59 = vector.load %arg4[%c0_44, %c0_45] : memref<1x4xf32, #tpu.memory_space<vmem>>, vector<1x4xf32>
    %60 = vector.broadcast %59 : vector<1x4xf32> to vector<376x4xf32>
    %61 = arith.addf %58, %60 : vector<376x4xf32>
    %cst_46 = arith.constant 0.000000e+00 : f32
    %62 = vector.broadcast %cst_46 : f32 to vector<376x4xf32>
    %63 = arith.maximumf %61, %62 : vector<376x4xf32>
    %cst_47 = arith.constant 0.000000e+00 : f32
    %64 = vector.broadcast %cst_47 : f32 to vector<432x8xf32>
    %c0_48 = arith.constant 0 : index
    %c0_49 = arith.constant 0 : index
    %65 = vector.load %arg11[%c0_48, %c0_49] : memref<432x8xf32, #tpu.memory_space<vmem>>, vector<432x8xf32>
    tpu.vector_store %arg11[%c0_48, %c0_49], %64 {strides = array<i32>} : memref<432x8xf32, #tpu.memory_space<vmem>>, vector<432x8xf32>,
    %c0_50 = arith.constant 0 : index
    %c0_51 = arith.constant 0 : index
    %c0_52 = arith.constant 0 : index
    %66 = vector.load %arg2[%c0_50, %c0_51, %c0_52] : memref<1x432x4xbf16, #tpu.memory_space<vmem>>, vector<1x432x4xbf16>
    %67 = vector.shape_cast %66 : vector<1x432x4xbf16> to vector<432x4xbf16>
    %68 = arith.extf %67 : vector<432x4xbf16> to vector<432x4xf32>
    %c0_53 = arith.constant 0 : index
    %c0_54 = arith.constant 0 : index
    %69 = vector.load %arg11[%c0_53, %c0_54] : memref<432x8xf32, #tpu.memory_space<vmem>>, vector<432x4xf32>
    tpu.vector_store %arg11[%c0_53, %c0_54], %68 {strides = array<i32>} : memref<432x8xf32, #tpu.memory_space<vmem>>, vector<432x4xf32>,
    %70 = vector.extract_strided_slice %63 {offsets = [0, 0], sizes = [16, 4], strides = [1, 1]} : vector<376x4xf32> to vector<16x4xf32>
    %c25_55 = arith.constant 25 : index
    %c4_56 = arith.constant 4 : index
    %71 = vector.load %arg11[%c25_55, %c4_56] : memref<432x8xf32, #tpu.memory_space<vmem>>, vector<16x4xf32>
    tpu.vector_store %arg11[%c25_55, %c4_56], %70 {strides = array<i32>} : memref<432x8xf32, #tpu.memory_space<vmem>>, vector<16x4xf32>,
    %72 = vector.extract_strided_slice %63 {offsets = [24, 0], sizes = [16, 4], strides = [1, 1]} : vector<376x4xf32> to vector<16x4xf32>
    %c49_57 = arith.constant 49 : index
    %c4_58 = arith.constant 4 : index
    %73 = vector.load %arg11[%c49_57, %c4_58] : memref<432x8xf32, #tpu.memory_space<vmem>>, vector<16x4xf32>
    tpu.vector_store %arg11[%c49_57, %c4_58], %72 {strides = array<i32>} : memref<432x8xf32, #tpu.memory_space<vmem>>, vector<16x4xf32>,
    %74 = vector.extract_strided_slice %63 {offsets = [48, 0], sizes = [16, 4], strides = [1, 1]} : vector<376x4xf32> to vector<16x4xf32>
    %c73 = arith.constant 73 : index
    %c4_59 = arith.constant 4 : index
    %75 = vector.load %arg11[%c73, %c4_59] : memref<432x8xf32, #tpu.memory_space<vmem>>, vector<16x4xf32>
    tpu.vector_store %arg11[%c73, %c4_59], %74 {strides = array<i32>} : memref<432x8xf32, #tpu.memory_space<vmem>>, vector<16x4xf32>,
    %76 = vector.extract_strided_slice %63 {offsets = [72, 0], sizes = [16, 4], strides = [1, 1]} : vector<376x4xf32> to vector<16x4xf32>
    %c97 = arith.constant 97 : index
    %c4_60 = arith.constant 4 : index
    %77 = vector.load %arg11[%c97, %c4_60] : memref<432x8xf32, #tpu.memory_space<vmem>>, vector<16x4xf32>
    tpu.vector_store %arg11[%c97, %c4_60], %76 {strides = array<i32>} : memref<432x8xf32, #tpu.memory_space<vmem>>, vector<16x4xf32>,
    %78 = vector.extract_strided_slice %63 {offsets = [96, 0], sizes = [16, 4], strides = [1, 1]} : vector<376x4xf32> to vector<16x4xf32>
    %c121 = arith.constant 121 : index
    %c4_61 = arith.constant 4 : index
    %79 = vector.load %arg11[%c121, %c4_61] : memref<432x8xf32, #tpu.memory_space<vmem>>, vector<16x4xf32>
    tpu.vector_store %arg11[%c121, %c4_61], %78 {strides = array<i32>} : memref<432x8xf32, #tpu.memory_space<vmem>>, vector<16x4xf32>,
    %80 = vector.extract_strided_slice %63 {offsets = [120, 0], sizes = [16, 4], strides = [1, 1]} : vector<376x4xf32> to vector<16x4xf32>
    %c145 = arith.constant 145 : index
    %c4_62 = arith.constant 4 : index
    %81 = vector.load %arg11[%c145, %c4_62] : memref<432x8xf32, #tpu.memory_space<vmem>>, vector<16x4xf32>
    tpu.vector_store %arg11[%c145, %c4_62], %80 {strides = array<i32>} : memref<432x8xf32, #tpu.memory_space<vmem>>, vector<16x4xf32>,
    %82 = vector.extract_strided_slice %63 {offsets = [144, 0], sizes = [16, 4], strides = [1, 1]} : vector<376x4xf32> to vector<16x4xf32>
    %c169 = arith.constant 169 : index
    %c4_63 = arith.constant 4 : index
    %83 = vector.load %arg11[%c169, %c4_63] : memref<432x8xf32, #tpu.memory_space<vmem>>, vector<16x4xf32>
    tpu.vector_store %arg11[%c169, %c4_63], %82 {strides = array<i32>} : memref<432x8xf32, #tpu.memory_space<vmem>>, vector<16x4xf32>,
    %84 = vector.extract_strided_slice %63 {offsets = [168, 0], sizes = [16, 4], strides = [1, 1]} : vector<376x4xf32> to vector<16x4xf32>
    %c193 = arith.constant 193 : index
    %c4_64 = arith.constant 4 : index
    %85 = vector.load %arg11[%c193, %c4_64] : memref<432x8xf32, #tpu.memory_space<vmem>>, vector<16x4xf32>
    tpu.vector_store %arg11[%c193, %c4_64], %84 {strides = array<i32>} : memref<432x8xf32, #tpu.memory_space<vmem>>, vector<16x4xf32>,
    %86 = vector.extract_strided_slice %63 {offsets = [192, 0], sizes = [16, 4], strides = [1, 1]} : vector<376x4xf32> to vector<16x4xf32>
    %c217 = arith.constant 217 : index
    %c4_65 = arith.constant 4 : index
    %87 = vector.load %arg11[%c217, %c4_65] : memref<432x8xf32, #tpu.memory_space<vmem>>, vector<16x4xf32>
    tpu.vector_store %arg11[%c217, %c4_65], %86 {strides = array<i32>} : memref<432x8xf32, #tpu.memory_space<vmem>>, vector<16x4xf32>,
    %88 = vector.extract_strided_slice %63 {offsets = [216, 0], sizes = [16, 4], strides = [1, 1]} : vector<376x4xf32> to vector<16x4xf32>
    %c241 = arith.constant 241 : index
    %c4_66 = arith.constant 4 : index
    %89 = vector.load %arg11[%c241, %c4_66] : memref<432x8xf32, #tpu.memory_space<vmem>>, vector<16x4xf32>
    tpu.vector_store %arg11[%c241, %c4_66], %88 {strides = array<i32>} : memref<432x8xf32, #tpu.memory_space<vmem>>, vector<16x4xf32>,
    %90 = vector.extract_strided_slice %63 {offsets = [240, 0], sizes = [16, 4], strides = [1, 1]} : vector<376x4xf32> to vector<16x4xf32>
    %c265 = arith.constant 265 : index
    %c4_67 = arith.constant 4 : index
    %91 = vector.load %arg11[%c265, %c4_67] : memref<432x8xf32, #tpu.memory_space<vmem>>, vector<16x4xf32>
    tpu.vector_store %arg11[%c265, %c4_67], %90 {strides = array<i32>} : memref<432x8xf32, #tpu.memory_space<vmem>>, vector<16x4xf32>,
    %92 = vector.extract_strided_slice %63 {offsets = [264, 0], sizes = [16, 4], strides = [1, 1]} : vector<376x4xf32> to vector<16x4xf32>
    %c289 = arith.constant 289 : index
    %c4_68 = arith.constant 4 : index
    %93 = vector.load %arg11[%c289, %c4_68] : memref<432x8xf32, #tpu.memory_space<vmem>>, vector<16x4xf32>
    tpu.vector_store %arg11[%c289, %c4_68], %92 {strides = array<i32>} : memref<432x8xf32, #tpu.memory_space<vmem>>, vector<16x4xf32>,
    %94 = vector.extract_strided_slice %63 {offsets = [288, 0], sizes = [16, 4], strides = [1, 1]} : vector<376x4xf32> to vector<16x4xf32>
    %c313 = arith.constant 313 : index
    %c4_69 = arith.constant 4 : index
    %95 = vector.load %arg11[%c313, %c4_69] : memref<432x8xf32, #tpu.memory_space<vmem>>, vector<16x4xf32>
    tpu.vector_store %arg11[%c313, %c4_69], %94 {strides = array<i32>} : memref<432x8xf32, #tpu.memory_space<vmem>>, vector<16x4xf32>,
    %96 = vector.extract_strided_slice %63 {offsets = [312, 0], sizes = [16, 4], strides = [1, 1]} : vector<376x4xf32> to vector<16x4xf32>
    %c337 = arith.constant 337 : index
    %c4_70 = arith.constant 4 : index
    %97 = vector.load %arg11[%c337, %c4_70] : memref<432x8xf32, #tpu.memory_space<vmem>>, vector<16x4xf32>
    tpu.vector_store %arg11[%c337, %c4_70], %96 {strides = array<i32>} : memref<432x8xf32, #tpu.memory_space<vmem>>, vector<16x4xf32>,
    %98 = vector.extract_strided_slice %63 {offsets = [336, 0], sizes = [16, 4], strides = [1, 1]} : vector<376x4xf32> to vector<16x4xf32>
    %c361 = arith.constant 361 : index
    %c4_71 = arith.constant 4 : index
    %99 = vector.load %arg11[%c361, %c4_71] : memref<432x8xf32, #tpu.memory_space<vmem>>, vector<16x4xf32>
    tpu.vector_store %arg11[%c361, %c4_71], %98 {strides = array<i32>} : memref<432x8xf32, #tpu.memory_space<vmem>>, vector<16x4xf32>,
    %100 = vector.extract_strided_slice %63 {offsets = [360, 0], sizes = [16, 4], strides = [1, 1]} : vector<376x4xf32> to vector<16x4xf32>
    %c385 = arith.constant 385 : index
    %c4_72 = arith.constant 4 : index
    %101 = vector.load %arg11[%c385, %c4_72] : memref<432x8xf32, #tpu.memory_space<vmem>>, vector<16x4xf32>
    tpu.vector_store %arg11[%c385, %c4_72], %100 {strides = array<i32>} : memref<432x8xf32, #tpu.memory_space<vmem>>, vector<16x4xf32>,
    %cst_73 = arith.constant 0.000000e+00 : f32
    %102 = vector.broadcast %cst_73 : f32 to vector<376x4xf32>
    %c0_74 = arith.constant 0 : index
    %c0_75 = arith.constant 0 : index
    %103 = vector.load %arg11[%c0_74, %c0_75] : memref<432x8xf32, #tpu.memory_space<vmem>>, vector<376x8xf32>
    %104 = arith.truncf %103 : vector<376x8xf32> to vector<376x8xbf16>
    %c0_76 = arith.constant 0 : index
    %c0_77 = arith.constant 0 : index
    %c0_78 = arith.constant 0 : index
    %105 = vector.load %arg5[%c0_76, %c0_77, %c0_78] : memref<9x8x4xbf16, #tpu.memory_space<vmem>>, vector<1x8x4xbf16>
    %106 = vector.shape_cast %105 : vector<1x8x4xbf16> to vector<8x4xbf16>
    %cst_79 = arith.constant dense<0.000000e+00> : vector<376x4xf32>
    %107 = tpu.matmul %104, %106, %cst_79 {dimension_numbers = #tpu.dot_dimension_numbers<[1], [0], [0], [1], [0, 0, 1, 1], [], []>} : vector<376x8xbf16>, vector<8x4xbf16>, vector<376x4xf32> -> vector<376x4xf32>
    %108 = arith.addf %102, %107 : vector<376x4xf32>
    %c1_80 = arith.constant 1 : index
    %c0_81 = arith.constant 0 : index
    %109 = vector.load %arg11[%c1_80, %c0_81] : memref<432x8xf32, #tpu.memory_space<vmem>>, vector<376x8xf32>
    %110 = arith.truncf %109 : vector<376x8xf32> to vector<376x8xbf16>
    %c1_82 = arith.constant 1 : index
    %c0_83 = arith.constant 0 : index
    %c0_84 = arith.constant 0 : index
    %111 = vector.load %arg5[%c1_82, %c0_83, %c0_84] : memref<9x8x4xbf16, #tpu.memory_space<vmem>>, vector<1x8x4xbf16>
    %112 = vector.shape_cast %111 : vector<1x8x4xbf16> to vector<8x4xbf16>
    %cst_85 = arith.constant dense<0.000000e+00> : vector<376x4xf32>
    %113 = tpu.matmul %110, %112, %cst_85 {dimension_numbers = #tpu.dot_dimension_numbers<[1], [0], [0], [1], [0, 0, 1, 1], [], []>} : vector<376x8xbf16>, vector<8x4xbf16>, vector<376x4xf32> -> vector<376x4xf32>
    %114 = arith.addf %108, %113 : vector<376x4xf32>
    %c2_86 = arith.constant 2 : index
    %c0_87 = arith.constant 0 : index
    %115 = vector.load %arg11[%c2_86, %c0_87] : memref<432x8xf32, #tpu.memory_space<vmem>>, vector<376x8xf32>
    %116 = arith.truncf %115 : vector<376x8xf32> to vector<376x8xbf16>
    %c2_88 = arith.constant 2 : index
    %c0_89 = arith.constant 0 : index
    %c0_90 = arith.constant 0 : index
    %117 = vector.load %arg5[%c2_88, %c0_89, %c0_90] : memref<9x8x4xbf16, #tpu.memory_space<vmem>>, vector<1x8x4xbf16>
    %118 = vector.shape_cast %117 : vector<1x8x4xbf16> to vector<8x4xbf16>
    %cst_91 = arith.constant dense<0.000000e+00> : vector<376x4xf32>
    %119 = tpu.matmul %116, %118, %cst_91 {dimension_numbers = #tpu.dot_dimension_numbers<[1], [0], [0], [1], [0, 0, 1, 1], [], []>} : vector<376x8xbf16>, vector<8x4xbf16>, vector<376x4xf32> -> vector<376x4xf32>
    %120 = arith.addf %114, %119 : vector<376x4xf32>
    %c24_92 = arith.constant 24 : index
    %c0_93 = arith.constant 0 : index
    %121 = vector.load %arg11[%c24_92, %c0_93] : memref<432x8xf32, #tpu.memory_space<vmem>>, vector<376x8xf32>
    %122 = arith.truncf %121 : vector<376x8xf32> to vector<376x8xbf16>
    %c3_94 = arith.constant 3 : index
    %c0_95 = arith.constant 0 : index
    %c0_96 = arith.constant 0 : index
    %123 = vector.load %arg5[%c3_94, %c0_95, %c0_96] : memref<9x8x4xbf16, #tpu.memory_space<vmem>>, vector<1x8x4xbf16>
    %124 = vector.shape_cast %123 : vector<1x8x4xbf16> to vector<8x4xbf16>
    %cst_97 = arith.constant dense<0.000000e+00> : vector<376x4xf32>
    %125 = tpu.matmul %122, %124, %cst_97 {dimension_numbers = #tpu.dot_dimension_numbers<[1], [0], [0], [1], [0, 0, 1, 1], [], []>} : vector<376x8xbf16>, vector<8x4xbf16>, vector<376x4xf32> -> vector<376x4xf32>
    %126 = arith.addf %120, %125 : vector<376x4xf32>
    %c25_98 = arith.constant 25 : index
    %c0_99 = arith.constant 0 : index
    %127 = vector.load %arg11[%c25_98, %c0_99] : memref<432x8xf32, #tpu.memory_space<vmem>>, vector<376x8xf32>
    %128 = arith.truncf %127 : vector<376x8xf32> to vector<376x8xbf16>
    %c4_100 = arith.constant 4 : index
    %c0_101 = arith.constant 0 : index
    %c0_102 = arith.constant 0 : index
    %129 = vector.load %arg5[%c4_100, %c0_101, %c0_102] : memref<9x8x4xbf16, #tpu.memory_space<vmem>>, vector<1x8x4xbf16>
    %130 = vector.shape_cast %129 : vector<1x8x4xbf16> to vector<8x4xbf16>
    %cst_103 = arith.constant dense<0.000000e+00> : vector<376x4xf32>
    %131 = tpu.matmul %128, %130, %cst_103 {dimension_numbers = #tpu.dot_dimension_numbers<[1], [0], [0], [1], [0, 0, 1, 1], [], []>} : vector<376x8xbf16>, vector<8x4xbf16>, vector<376x4xf32> -> vector<376x4xf32>
    %132 = arith.addf %126, %131 : vector<376x4xf32>
    %c26_104 = arith.constant 26 : index
    %c0_105 = arith.constant 0 : index
    %133 = vector.load %arg11[%c26_104, %c0_105] : memref<432x8xf32, #tpu.memory_space<vmem>>, vector<376x8xf32>
    %134 = arith.truncf %133 : vector<376x8xf32> to vector<376x8xbf16>
    %c5_106 = arith.constant 5 : index
    %c0_107 = arith.constant 0 : index
    %c0_108 = arith.constant 0 : index
    %135 = vector.load %arg5[%c5_106, %c0_107, %c0_108] : memref<9x8x4xbf16, #tpu.memory_space<vmem>>, vector<1x8x4xbf16>
    %136 = vector.shape_cast %135 : vector<1x8x4xbf16> to vector<8x4xbf16>
    %cst_109 = arith.constant dense<0.000000e+00> : vector<376x4xf32>
    %137 = tpu.matmul %134, %136, %cst_109 {dimension_numbers = #tpu.dot_dimension_numbers<[1], [0], [0], [1], [0, 0, 1, 1], [], []>} : vector<376x8xbf16>, vector<8x4xbf16>, vector<376x4xf32> -> vector<376x4xf32>
    %138 = arith.addf %132, %137 : vector<376x4xf32>
    %c48_110 = arith.constant 48 : index
    %c0_111 = arith.constant 0 : index
    %139 = vector.load %arg11[%c48_110, %c0_111] : memref<432x8xf32, #tpu.memory_space<vmem>>, vector<376x8xf32>
    %140 = arith.truncf %139 : vector<376x8xf32> to vector<376x8xbf16>
    %c6_112 = arith.constant 6 : index
    %c0_113 = arith.constant 0 : index
    %c0_114 = arith.constant 0 : index
    %141 = vector.load %arg5[%c6_112, %c0_113, %c0_114] : memref<9x8x4xbf16, #tpu.memory_space<vmem>>, vector<1x8x4xbf16>
    %142 = vector.shape_cast %141 : vector<1x8x4xbf16> to vector<8x4xbf16>
    %cst_115 = arith.constant dense<0.000000e+00> : vector<376x4xf32>
    %143 = tpu.matmul %140, %142, %cst_115 {dimension_numbers = #tpu.dot_dimension_numbers<[1], [0], [0], [1], [0, 0, 1, 1], [], []>} : vector<376x8xbf16>, vector<8x4xbf16>, vector<376x4xf32> -> vector<376x4xf32>
    %144 = arith.addf %138, %143 : vector<376x4xf32>
    %c49_116 = arith.constant 49 : index
    %c0_117 = arith.constant 0 : index
    %145 = vector.load %arg11[%c49_116, %c0_117] : memref<432x8xf32, #tpu.memory_space<vmem>>, vector<376x8xf32>
    %146 = arith.truncf %145 : vector<376x8xf32> to vector<376x8xbf16>
    %c7_118 = arith.constant 7 : index
    %c0_119 = arith.constant 0 : index
    %c0_120 = arith.constant 0 : index
    %147 = vector.load %arg5[%c7_118, %c0_119, %c0_120] : memref<9x8x4xbf16, #tpu.memory_space<vmem>>, vector<1x8x4xbf16>
    %148 = vector.shape_cast %147 : vector<1x8x4xbf16> to vector<8x4xbf16>
    %cst_121 = arith.constant dense<0.000000e+00> : vector<376x4xf32>
    %149 = tpu.matmul %146, %148, %cst_121 {dimension_numbers = #tpu.dot_dimension_numbers<[1], [0], [0], [1], [0, 0, 1, 1], [], []>} : vector<376x8xbf16>, vector<8x4xbf16>, vector<376x4xf32> -> vector<376x4xf32>
    %150 = arith.addf %144, %149 : vector<376x4xf32>
    %c50_122 = arith.constant 50 : index
    %c0_123 = arith.constant 0 : index
    %151 = vector.load %arg11[%c50_122, %c0_123] : memref<432x8xf32, #tpu.memory_space<vmem>>, vector<376x8xf32>
    %152 = arith.truncf %151 : vector<376x8xf32> to vector<376x8xbf16>
    %c8_124 = arith.constant 8 : index
    %c0_125 = arith.constant 0 : index
    %c0_126 = arith.constant 0 : index
    %153 = vector.load %arg5[%c8_124, %c0_125, %c0_126] : memref<9x8x4xbf16, #tpu.memory_space<vmem>>, vector<1x8x4xbf16>
    %154 = vector.shape_cast %153 : vector<1x8x4xbf16> to vector<8x4xbf16>
    %cst_127 = arith.constant dense<0.000000e+00> : vector<376x4xf32>
    %155 = tpu.matmul %152, %154, %cst_127 {dimension_numbers = #tpu.dot_dimension_numbers<[1], [0], [0], [1], [0, 0, 1, 1], [], []>} : vector<376x8xbf16>, vector<8x4xbf16>, vector<376x4xf32> -> vector<376x4xf32>
    %156 = arith.addf %150, %155 : vector<376x4xf32>
    %c0_128 = arith.constant 0 : index
    %c0_129 = arith.constant 0 : index
    %157 = vector.load %arg6[%c0_128, %c0_129] : memref<1x4xf32, #tpu.memory_space<vmem>>, vector<1x4xf32>
    %158 = vector.broadcast %157 : vector<1x4xf32> to vector<376x4xf32>
    %159 = arith.addf %156, %158 : vector<376x4xf32>
    %cst_130 = arith.constant 0.000000e+00 : f32
    %160 = vector.broadcast %cst_130 : f32 to vector<376x4xf32>
    %161 = arith.maximumf %159, %160 : vector<376x4xf32>
    %cst_131 = arith.constant 0.000000e+00 : f32
    %162 = vector.broadcast %cst_131 : f32 to vector<432x4xf32>
    %c0_132 = arith.constant 0 : index
    %c0_133 = arith.constant 0 : index
    %163 = vector.load %arg12[%c0_132, %c0_133] : memref<432x4xf32, #tpu.memory_space<vmem>>, vector<432x4xf32>
    tpu.vector_store %arg12[%c0_132, %c0_133], %162 {strides = array<i32>} : memref<432x4xf32, #tpu.memory_space<vmem>>, vector<432x4xf32>,
    %164 = vector.extract_strided_slice %161 {offsets = [0, 0], sizes = [16, 4], strides = [1, 1]} : vector<376x4xf32> to vector<16x4xf32>
    %c25_134 = arith.constant 25 : index
    %c0_135 = arith.constant 0 : index
    %165 = vector.load %arg12[%c25_134, %c0_135] : memref<432x4xf32, #tpu.memory_space<vmem>>, vector<16x4xf32>
    tpu.vector_store %arg12[%c25_134, %c0_135], %164 {strides = array<i32>} : memref<432x4xf32, #tpu.memory_space<vmem>>, vector<16x4xf32>,
    %166 = vector.extract_strided_slice %161 {offsets = [24, 0], sizes = [16, 4], strides = [1, 1]} : vector<376x4xf32> to vector<16x4xf32>
    %c49_136 = arith.constant 49 : index
    %c0_137 = arith.constant 0 : index
    %167 = vector.load %arg12[%c49_136, %c0_137] : memref<432x4xf32, #tpu.memory_space<vmem>>, vector<16x4xf32>
    tpu.vector_store %arg12[%c49_136, %c0_137], %166 {strides = array<i32>} : memref<432x4xf32, #tpu.memory_space<vmem>>, vector<16x4xf32>,
    %168 = vector.extract_strided_slice %161 {offsets = [48, 0], sizes = [16, 4], strides = [1, 1]} : vector<376x4xf32> to vector<16x4xf32>
    %c73_138 = arith.constant 73 : index
    %c0_139 = arith.constant 0 : index
    %169 = vector.load %arg12[%c73_138, %c0_139] : memref<432x4xf32, #tpu.memory_space<vmem>>, vector<16x4xf32>
    tpu.vector_store %arg12[%c73_138, %c0_139], %168 {strides = array<i32>} : memref<432x4xf32, #tpu.memory_space<vmem>>, vector<16x4xf32>,
    %170 = vector.extract_strided_slice %161 {offsets = [72, 0], sizes = [16, 4], strides = [1, 1]} : vector<376x4xf32> to vector<16x4xf32>
    %c97_140 = arith.constant 97 : index
    %c0_141 = arith.constant 0 : index
    %171 = vector.load %arg12[%c97_140, %c0_141] : memref<432x4xf32, #tpu.memory_space<vmem>>, vector<16x4xf32>
    tpu.vector_store %arg12[%c97_140, %c0_141], %170 {strides = array<i32>} : memref<432x4xf32, #tpu.memory_space<vmem>>, vector<16x4xf32>,
    %172 = vector.extract_strided_slice %161 {offsets = [96, 0], sizes = [16, 4], strides = [1, 1]} : vector<376x4xf32> to vector<16x4xf32>
    %c121_142 = arith.constant 121 : index
    %c0_143 = arith.constant 0 : index
    %173 = vector.load %arg12[%c121_142, %c0_143] : memref<432x4xf32, #tpu.memory_space<vmem>>, vector<16x4xf32>
    tpu.vector_store %arg12[%c121_142, %c0_143], %172 {strides = array<i32>} : memref<432x4xf32, #tpu.memory_space<vmem>>, vector<16x4xf32>,
    %174 = vector.extract_strided_slice %161 {offsets = [120, 0], sizes = [16, 4], strides = [1, 1]} : vector<376x4xf32> to vector<16x4xf32>
    %c145_144 = arith.constant 145 : index
    %c0_145 = arith.constant 0 : index
    %175 = vector.load %arg12[%c145_144, %c0_145] : memref<432x4xf32, #tpu.memory_space<vmem>>, vector<16x4xf32>
    tpu.vector_store %arg12[%c145_144, %c0_145], %174 {strides = array<i32>} : memref<432x4xf32, #tpu.memory_space<vmem>>, vector<16x4xf32>,
    %176 = vector.extract_strided_slice %161 {offsets = [144, 0], sizes = [16, 4], strides = [1, 1]} : vector<376x4xf32> to vector<16x4xf32>
    %c169_146 = arith.constant 169 : index
    %c0_147 = arith.constant 0 : index
    %177 = vector.load %arg12[%c169_146, %c0_147] : memref<432x4xf32, #tpu.memory_space<vmem>>, vector<16x4xf32>
    tpu.vector_store %arg12[%c169_146, %c0_147], %176 {strides = array<i32>} : memref<432x4xf32, #tpu.memory_space<vmem>>, vector<16x4xf32>,
    %178 = vector.extract_strided_slice %161 {offsets = [168, 0], sizes = [16, 4], strides = [1, 1]} : vector<376x4xf32> to vector<16x4xf32>
    %c193_148 = arith.constant 193 : index
    %c0_149 = arith.constant 0 : index
    %179 = vector.load %arg12[%c193_148, %c0_149] : memref<432x4xf32, #tpu.memory_space<vmem>>, vector<16x4xf32>
    tpu.vector_store %arg12[%c193_148, %c0_149], %178 {strides = array<i32>} : memref<432x4xf32, #tpu.memory_space<vmem>>, vector<16x4xf32>,
    %180 = vector.extract_strided_slice %161 {offsets = [192, 0], sizes = [16, 4], strides = [1, 1]} : vector<376x4xf32> to vector<16x4xf32>
    %c217_150 = arith.constant 217 : index
    %c0_151 = arith.constant 0 : index
    %181 = vector.load %arg12[%c217_150, %c0_151] : memref<432x4xf32, #tpu.memory_space<vmem>>, vector<16x4xf32>
    tpu.vector_store %arg12[%c217_150, %c0_151], %180 {strides = array<i32>} : memref<432x4xf32, #tpu.memory_space<vmem>>, vector<16x4xf32>,
    %182 = vector.extract_strided_slice %161 {offsets = [216, 0], sizes = [16, 4], strides = [1, 1]} : vector<376x4xf32> to vector<16x4xf32>
    %c241_152 = arith.constant 241 : index
    %c0_153 = arith.constant 0 : index
    %183 = vector.load %arg12[%c241_152, %c0_153] : memref<432x4xf32, #tpu.memory_space<vmem>>, vector<16x4xf32>
    tpu.vector_store %arg12[%c241_152, %c0_153], %182 {strides = array<i32>} : memref<432x4xf32, #tpu.memory_space<vmem>>, vector<16x4xf32>,
    %184 = vector.extract_strided_slice %161 {offsets = [240, 0], sizes = [16, 4], strides = [1, 1]} : vector<376x4xf32> to vector<16x4xf32>
    %c265_154 = arith.constant 265 : index
    %c0_155 = arith.constant 0 : index
    %185 = vector.load %arg12[%c265_154, %c0_155] : memref<432x4xf32, #tpu.memory_space<vmem>>, vector<16x4xf32>
    tpu.vector_store %arg12[%c265_154, %c0_155], %184 {strides = array<i32>} : memref<432x4xf32, #tpu.memory_space<vmem>>, vector<16x4xf32>,
    %186 = vector.extract_strided_slice %161 {offsets = [264, 0], sizes = [16, 4], strides = [1, 1]} : vector<376x4xf32> to vector<16x4xf32>
    %c289_156 = arith.constant 289 : index
    %c0_157 = arith.constant 0 : index
    %187 = vector.load %arg12[%c289_156, %c0_157] : memref<432x4xf32, #tpu.memory_space<vmem>>, vector<16x4xf32>
    tpu.vector_store %arg12[%c289_156, %c0_157], %186 {strides = array<i32>} : memref<432x4xf32, #tpu.memory_space<vmem>>, vector<16x4xf32>,
    %188 = vector.extract_strided_slice %161 {offsets = [288, 0], sizes = [16, 4], strides = [1, 1]} : vector<376x4xf32> to vector<16x4xf32>
    %c313_158 = arith.constant 313 : index
    %c0_159 = arith.constant 0 : index
    %189 = vector.load %arg12[%c313_158, %c0_159] : memref<432x4xf32, #tpu.memory_space<vmem>>, vector<16x4xf32>
    tpu.vector_store %arg12[%c313_158, %c0_159], %188 {strides = array<i32>} : memref<432x4xf32, #tpu.memory_space<vmem>>, vector<16x4xf32>,
    %190 = vector.extract_strided_slice %161 {offsets = [312, 0], sizes = [16, 4], strides = [1, 1]} : vector<376x4xf32> to vector<16x4xf32>
    %c337_160 = arith.constant 337 : index
    %c0_161 = arith.constant 0 : index
    %191 = vector.load %arg12[%c337_160, %c0_161] : memref<432x4xf32, #tpu.memory_space<vmem>>, vector<16x4xf32>
    tpu.vector_store %arg12[%c337_160, %c0_161], %190 {strides = array<i32>} : memref<432x4xf32, #tpu.memory_space<vmem>>, vector<16x4xf32>,
    %192 = vector.extract_strided_slice %161 {offsets = [336, 0], sizes = [16, 4], strides = [1, 1]} : vector<376x4xf32> to vector<16x4xf32>
    %c361_162 = arith.constant 361 : index
    %c0_163 = arith.constant 0 : index
    %193 = vector.load %arg12[%c361_162, %c0_163] : memref<432x4xf32, #tpu.memory_space<vmem>>, vector<16x4xf32>
    tpu.vector_store %arg12[%c361_162, %c0_163], %192 {strides = array<i32>} : memref<432x4xf32, #tpu.memory_space<vmem>>, vector<16x4xf32>,
    %194 = vector.extract_strided_slice %161 {offsets = [360, 0], sizes = [16, 4], strides = [1, 1]} : vector<376x4xf32> to vector<16x4xf32>
    %c385_164 = arith.constant 385 : index
    %c0_165 = arith.constant 0 : index
    %195 = vector.load %arg12[%c385_164, %c0_165] : memref<432x4xf32, #tpu.memory_space<vmem>>, vector<16x4xf32>
    tpu.vector_store %arg12[%c385_164, %c0_165], %194 {strides = array<i32>} : memref<432x4xf32, #tpu.memory_space<vmem>>, vector<16x4xf32>,
    %cst_166 = arith.constant 0.000000e+00 : f32
    %196 = vector.broadcast %cst_166 : f32 to vector<4x376xf32>
    %c0_167 = arith.constant 0 : index
    %c0_168 = arith.constant 0 : index
    %197 = vector.load %arg12[%c0_167, %c0_168] : memref<432x4xf32, #tpu.memory_space<vmem>>, vector<376x4xf32>
    %198 = arith.truncf %197 : vector<376x4xf32> to vector<376x4xbf16>
    %c0_169 = arith.constant 0 : index
    %c0_170 = arith.constant 0 : index
    %c0_171 = arith.constant 0 : index
    %199 = vector.load %arg7[%c0_169, %c0_170, %c0_171] : memref<9x4x4xbf16, #tpu.memory_space<vmem>>, vector<1x4x4xbf16>
    %200 = vector.shape_cast %199 : vector<1x4x4xbf16> to vector<4x4xbf16>
    %cst_172 = arith.constant dense<0.000000e+00> : vector<4x376xf32>
    %201 = tpu.matmul %200, %198, %cst_172 {dimension_numbers = #tpu.dot_dimension_numbers<[1], [1], [0], [0], [0, 0, 1, 0], [], []>} : vector<4x4xbf16>, vector<376x4xbf16>, vector<4x376xf32> -> vector<4x376xf32>
    %202 = arith.addf %196, %201 : vector<4x376xf32>
    %c1_173 = arith.constant 1 : index
    %c0_174 = arith.constant 0 : index
    %203 = vector.load %arg12[%c1_173, %c0_174] : memref<432x4xf32, #tpu.memory_space<vmem>>, vector<376x4xf32>
    %204 = arith.truncf %203 : vector<376x4xf32> to vector<376x4xbf16>
    %c1_175 = arith.constant 1 : index
    %c0_176 = arith.constant 0 : index
    %c0_177 = arith.constant 0 : index
    %205 = vector.load %arg7[%c1_175, %c0_176, %c0_177] : memref<9x4x4xbf16, #tpu.memory_space<vmem>>, vector<1x4x4xbf16>
    %206 = vector.shape_cast %205 : vector<1x4x4xbf16> to vector<4x4xbf16>
    %cst_178 = arith.constant dense<0.000000e+00> : vector<4x376xf32>
    %207 = tpu.matmul %206, %204, %cst_178 {dimension_numbers = #tpu.dot_dimension_numbers<[1], [1], [0], [0], [0, 0, 1, 0], [], []>} : vector<4x4xbf16>, vector<376x4xbf16>, vector<4x376xf32> -> vector<4x376xf32>
    %208 = arith.addf %202, %207 : vector<4x376xf32>
    %c2_179 = arith.constant 2 : index
    %c0_180 = arith.constant 0 : index
    %209 = vector.load %arg12[%c2_179, %c0_180] : memref<432x4xf32, #tpu.memory_space<vmem>>, vector<376x4xf32>
    %210 = arith.truncf %209 : vector<376x4xf32> to vector<376x4xbf16>
    %c2_181 = arith.constant 2 : index
    %c0_182 = arith.constant 0 : index
    %c0_183 = arith.constant 0 : index
    %211 = vector.load %arg7[%c2_181, %c0_182, %c0_183] : memref<9x4x4xbf16, #tpu.memory_space<vmem>>, vector<1x4x4xbf16>
    %212 = vector.shape_cast %211 : vector<1x4x4xbf16> to vector<4x4xbf16>
    %cst_184 = arith.constant dense<0.000000e+00> : vector<4x376xf32>
    %213 = tpu.matmul %212, %210, %cst_184 {dimension_numbers = #tpu.dot_dimension_numbers<[1], [1], [0], [0], [0, 0, 1, 0], [], []>} : vector<4x4xbf16>, vector<376x4xbf16>, vector<4x376xf32> -> vector<4x376xf32>
    %214 = arith.addf %208, %213 : vector<4x376xf32>
    %c24_185 = arith.constant 24 : index
    %c0_186 = arith.constant 0 : index
    %215 = vector.load %arg12[%c24_185, %c0_186] : memref<432x4xf32, #tpu.memory_space<vmem>>, vector<376x4xf32>
    %216 = arith.truncf %215 : vector<376x4xf32> to vector<376x4xbf16>
    %c3_187 = arith.constant 3 : index
    %c0_188 = arith.constant 0 : index
    %c0_189 = arith.constant 0 : index
    %217 = vector.load %arg7[%c3_187, %c0_188, %c0_189] : memref<9x4x4xbf16, #tpu.memory_space<vmem>>, vector<1x4x4xbf16>
    %218 = vector.shape_cast %217 : vector<1x4x4xbf16> to vector<4x4xbf16>
    %cst_190 = arith.constant dense<0.000000e+00> : vector<4x376xf32>
    %219 = tpu.matmul %218, %216, %cst_190 {dimension_numbers = #tpu.dot_dimension_numbers<[1], [1], [0], [0], [0, 0, 1, 0], [], []>} : vector<4x4xbf16>, vector<376x4xbf16>, vector<4x376xf32> -> vector<4x376xf32>
    %220 = arith.addf %214, %219 : vector<4x376xf32>
    %c25_191 = arith.constant 25 : index
    %c0_192 = arith.constant 0 : index
    %221 = vector.load %arg12[%c25_191, %c0_192] : memref<432x4xf32, #tpu.memory_space<vmem>>, vector<376x4xf32>
    %222 = arith.truncf %221 : vector<376x4xf32> to vector<376x4xbf16>
    %c4_193 = arith.constant 4 : index
    %c0_194 = arith.constant 0 : index
    %c0_195 = arith.constant 0 : index
    %223 = vector.load %arg7[%c4_193, %c0_194, %c0_195] : memref<9x4x4xbf16, #tpu.memory_space<vmem>>, vector<1x4x4xbf16>
    %224 = vector.shape_cast %223 : vector<1x4x4xbf16> to vector<4x4xbf16>
    %cst_196 = arith.constant dense<0.000000e+00> : vector<4x376xf32>
    %225 = tpu.matmul %224, %222, %cst_196 {dimension_numbers = #tpu.dot_dimension_numbers<[1], [1], [0], [0], [0, 0, 1, 0], [], []>} : vector<4x4xbf16>, vector<376x4xbf16>, vector<4x376xf32> -> vector<4x376xf32>
    %226 = arith.addf %220, %225 : vector<4x376xf32>
    %c26_197 = arith.constant 26 : index
    %c0_198 = arith.constant 0 : index
    %227 = vector.load %arg12[%c26_197, %c0_198] : memref<432x4xf32, #tpu.memory_space<vmem>>, vector<376x4xf32>
    %228 = arith.truncf %227 : vector<376x4xf32> to vector<376x4xbf16>
    %c5_199 = arith.constant 5 : index
    %c0_200 = arith.constant 0 : index
    %c0_201 = arith.constant 0 : index
    %229 = vector.load %arg7[%c5_199, %c0_200, %c0_201] : memref<9x4x4xbf16, #tpu.memory_space<vmem>>, vector<1x4x4xbf16>
    %230 = vector.shape_cast %229 : vector<1x4x4xbf16> to vector<4x4xbf16>
    %cst_202 = arith.constant dense<0.000000e+00> : vector<4x376xf32>
    %231 = tpu.matmul %230, %228, %cst_202 {dimension_numbers = #tpu.dot_dimension_numbers<[1], [1], [0], [0], [0, 0, 1, 0], [], []>} : vector<4x4xbf16>, vector<376x4xbf16>, vector<4x376xf32> -> vector<4x376xf32>
    %232 = arith.addf %226, %231 : vector<4x376xf32>
    %c48_203 = arith.constant 48 : index
    %c0_204 = arith.constant 0 : index
    %233 = vector.load %arg12[%c48_203, %c0_204] : memref<432x4xf32, #tpu.memory_space<vmem>>, vector<376x4xf32>
    %234 = arith.truncf %233 : vector<376x4xf32> to vector<376x4xbf16>
    %c6_205 = arith.constant 6 : index
    %c0_206 = arith.constant 0 : index
    %c0_207 = arith.constant 0 : index
    %235 = vector.load %arg7[%c6_205, %c0_206, %c0_207] : memref<9x4x4xbf16, #tpu.memory_space<vmem>>, vector<1x4x4xbf16>
    %236 = vector.shape_cast %235 : vector<1x4x4xbf16> to vector<4x4xbf16>
    %cst_208 = arith.constant dense<0.000000e+00> : vector<4x376xf32>
    %237 = tpu.matmul %236, %234, %cst_208 {dimension_numbers = #tpu.dot_dimension_numbers<[1], [1], [0], [0], [0, 0, 1, 0], [], []>} : vector<4x4xbf16>, vector<376x4xbf16>, vector<4x376xf32> -> vector<4x376xf32>
    %238 = arith.addf %232, %237 : vector<4x376xf32>
    %c49_209 = arith.constant 49 : index
    %c0_210 = arith.constant 0 : index
    %239 = vector.load %arg12[%c49_209, %c0_210] : memref<432x4xf32, #tpu.memory_space<vmem>>, vector<376x4xf32>
    %240 = arith.truncf %239 : vector<376x4xf32> to vector<376x4xbf16>
    %c7_211 = arith.constant 7 : index
    %c0_212 = arith.constant 0 : index
    %c0_213 = arith.constant 0 : index
    %241 = vector.load %arg7[%c7_211, %c0_212, %c0_213] : memref<9x4x4xbf16, #tpu.memory_space<vmem>>, vector<1x4x4xbf16>
    %242 = vector.shape_cast %241 : vector<1x4x4xbf16> to vector<4x4xbf16>
    %cst_214 = arith.constant dense<0.000000e+00> : vector<4x376xf32>
    %243 = tpu.matmul %242, %240, %cst_214 {dimension_numbers = #tpu.dot_dimension_numbers<[1], [1], [0], [0], [0, 0, 1, 0], [], []>} : vector<4x4xbf16>, vector<376x4xbf16>, vector<4x376xf32> -> vector<4x376xf32>
    %244 = arith.addf %238, %243 : vector<4x376xf32>
    %c50_215 = arith.constant 50 : index
    %c0_216 = arith.constant 0 : index
    %245 = vector.load %arg12[%c50_215, %c0_216] : memref<432x4xf32, #tpu.memory_space<vmem>>, vector<376x4xf32>
    %246 = arith.truncf %245 : vector<376x4xf32> to vector<376x4xbf16>
    %c8_217 = arith.constant 8 : index
    %c0_218 = arith.constant 0 : index
    %c0_219 = arith.constant 0 : index
    %247 = vector.load %arg7[%c8_217, %c0_218, %c0_219] : memref<9x4x4xbf16, #tpu.memory_space<vmem>>, vector<1x4x4xbf16>
    %248 = vector.shape_cast %247 : vector<1x4x4xbf16> to vector<4x4xbf16>
    %cst_220 = arith.constant dense<0.000000e+00> : vector<4x376xf32>
    %249 = tpu.matmul %248, %246, %cst_220 {dimension_numbers = #tpu.dot_dimension_numbers<[1], [1], [0], [0], [0, 0, 1, 0], [], []>} : vector<4x4xbf16>, vector<376x4xbf16>, vector<4x376xf32> -> vector<4x376xf32>
    %250 = arith.addf %244, %249 : vector<4x376xf32>
    %c0_221 = arith.constant 0 : index
    %c0_222 = arith.constant 0 : index
    %251 = vector.load %arg8[%c0_221, %c0_222] : memref<4x1xf32, #tpu.memory_space<vmem>>, vector<4x1xf32>
    %252 = vector.broadcast %251 : vector<4x1xf32> to vector<4x376xf32>
    %253 = arith.addf %250, %252 : vector<4x376xf32>
    %cst_223 = arith.constant 0.000000e+00 : f32
    %254 = vector.broadcast %cst_223 : f32 to vector<4x376xf32>
    %255 = arith.maximumf %253, %254 : vector<4x376xf32>
    %256 = vector.extract_strided_slice %255 {offsets = [0, 0], sizes = [4, 16], strides = [1, 1]} : vector<4x376xf32> to vector<4x16xf32>
    %c0_224 = arith.constant 0 : index
    %c0_225 = arith.constant 0 : index
    %c0_226 = arith.constant 0 : index
    %257 = vector.load %arg9[%c0_224, %c0_225, %c0_226] : memref<1x4x256xf32, #tpu.memory_space<vmem>>, vector<1x4x16xf32>
    %258 = vector.shape_cast %257 : vector<1x4x16xf32> to vector<4x16xf32>
    %259 = vector.shape_cast %256 : vector<4x16xf32> to vector<1x4x16xf32>
    tpu.vector_store %arg9[%c0_224, %c0_225, %c0_226], %259 {strides = array<i32>} : memref<1x4x256xf32, #tpu.memory_space<vmem>>, vector<1x4x16xf32>,
    %260 = vector.extract_strided_slice %255 {offsets = [0, 24], sizes = [4, 16], strides = [1, 1]} : vector<4x376xf32> to vector<4x16xf32>
    %c0_227 = arith.constant 0 : index
    %c0_228 = arith.constant 0 : index
    %c16 = arith.constant 16 : index
    %261 = vector.load %arg9[%c0_227, %c0_228, %c16] : memref<1x4x256xf32, #tpu.memory_space<vmem>>, vector<1x4x16xf32>
    %262 = vector.shape_cast %261 : vector<1x4x16xf32> to vector<4x16xf32>
    %263 = vector.shape_cast %260 : vector<4x16xf32> to vector<1x4x16xf32>
    tpu.vector_store %arg9[%c0_227, %c0_228, %c16], %263 {strides = array<i32>} : memref<1x4x256xf32, #tpu.memory_space<vmem>>, vector<1x4x16xf32>,
    %264 = vector.extract_strided_slice %255 {offsets = [0, 48], sizes = [4, 16], strides = [1, 1]} : vector<4x376xf32> to vector<4x16xf32>
    %c0_229 = arith.constant 0 : index
    %c0_230 = arith.constant 0 : index
    %c32 = arith.constant 32 : index
    %265 = vector.load %arg9[%c0_229, %c0_230, %c32] : memref<1x4x256xf32, #tpu.memory_space<vmem>>, vector<1x4x16xf32>
    %266 = vector.shape_cast %265 : vector<1x4x16xf32> to vector<4x16xf32>
    %267 = vector.shape_cast %264 : vector<4x16xf32> to vector<1x4x16xf32>
    tpu.vector_store %arg9[%c0_229, %c0_230, %c32], %267 {strides = array<i32>} : memref<1x4x256xf32, #tpu.memory_space<vmem>>, vector<1x4x16xf32>,
    %268 = vector.extract_strided_slice %255 {offsets = [0, 72], sizes = [4, 16], strides = [1, 1]} : vector<4x376xf32> to vector<4x16xf32>
    %c0_231 = arith.constant 0 : index
    %c0_232 = arith.constant 0 : index
    %c48_233 = arith.constant 48 : index
    %269 = vector.load %arg9[%c0_231, %c0_232, %c48_233] : memref<1x4x256xf32, #tpu.memory_space<vmem>>, vector<1x4x16xf32>
    %270 = vector.shape_cast %269 : vector<1x4x16xf32> to vector<4x16xf32>
    %271 = vector.shape_cast %268 : vector<4x16xf32> to vector<1x4x16xf32>
    tpu.vector_store %arg9[%c0_231, %c0_232, %c48_233], %271 {strides = array<i32>} : memref<1x4x256xf32, #tpu.memory_space<vmem>>, vector<1x4x16xf32>,
    %272 = vector.extract_strided_slice %255 {offsets = [0, 96], sizes = [4, 16], strides = [1, 1]} : vector<4x376xf32> to vector<4x16xf32>
    %c0_234 = arith.constant 0 : index
    %c0_235 = arith.constant 0 : index
    %c64 = arith.constant 64 : index
    %273 = vector.load %arg9[%c0_234, %c0_235, %c64] : memref<1x4x256xf32, #tpu.memory_space<vmem>>, vector<1x4x16xf32>
    %274 = vector.shape_cast %273 : vector<1x4x16xf32> to vector<4x16xf32>
    %275 = vector.shape_cast %272 : vector<4x16xf32> to vector<1x4x16xf32>
    tpu.vector_store %arg9[%c0_234, %c0_235, %c64], %275 {strides = array<i32>} : memref<1x4x256xf32, #tpu.memory_space<vmem>>, vector<1x4x16xf32>,
    %276 = vector.extract_strided_slice %255 {offsets = [0, 120], sizes = [4, 16], strides = [1, 1]} : vector<4x376xf32> to vector<4x16xf32>
    %c0_236 = arith.constant 0 : index
    %c0_237 = arith.constant 0 : index
    %c80 = arith.constant 80 : index
    %277 = vector.load %arg9[%c0_236, %c0_237, %c80] : memref<1x4x256xf32, #tpu.memory_space<vmem>>, vector<1x4x16xf32>
    %278 = vector.shape_cast %277 : vector<1x4x16xf32> to vector<4x16xf32>
    %279 = vector.shape_cast %276 : vector<4x16xf32> to vector<1x4x16xf32>
    tpu.vector_store %arg9[%c0_236, %c0_237, %c80], %279 {strides = array<i32>} : memref<1x4x256xf32, #tpu.memory_space<vmem>>, vector<1x4x16xf32>,
    %280 = vector.extract_strided_slice %255 {offsets = [0, 144], sizes = [4, 16], strides = [1, 1]} : vector<4x376xf32> to vector<4x16xf32>
    %c0_238 = arith.constant 0 : index
    %c0_239 = arith.constant 0 : index
    %c96 = arith.constant 96 : index
    %281 = vector.load %arg9[%c0_238, %c0_239, %c96] : memref<1x4x256xf32, #tpu.memory_space<vmem>>, vector<1x4x16xf32>
    %282 = vector.shape_cast %281 : vector<1x4x16xf32> to vector<4x16xf32>
    %283 = vector.shape_cast %280 : vector<4x16xf32> to vector<1x4x16xf32>
    tpu.vector_store %arg9[%c0_238, %c0_239, %c96], %283 {strides = array<i32>} : memref<1x4x256xf32, #tpu.memory_space<vmem>>, vector<1x4x16xf32>,
    %284 = vector.extract_strided_slice %255 {offsets = [0, 168], sizes = [4, 16], strides = [1, 1]} : vector<4x376xf32> to vector<4x16xf32>
    %c0_240 = arith.constant 0 : index
    %c0_241 = arith.constant 0 : index
    %c112 = arith.constant 112 : index
    %285 = vector.load %arg9[%c0_240, %c0_241, %c112] : memref<1x4x256xf32, #tpu.memory_space<vmem>>, vector<1x4x16xf32>
    %286 = vector.shape_cast %285 : vector<1x4x16xf32> to vector<4x16xf32>
    %287 = vector.shape_cast %284 : vector<4x16xf32> to vector<1x4x16xf32>
    tpu.vector_store %arg9[%c0_240, %c0_241, %c112], %287 {strides = array<i32>} : memref<1x4x256xf32, #tpu.memory_space<vmem>>, vector<1x4x16xf32>,
    %288 = vector.extract_strided_slice %255 {offsets = [0, 192], sizes = [4, 16], strides = [1, 1]} : vector<4x376xf32> to vector<4x16xf32>
    %c0_242 = arith.constant 0 : index
    %c0_243 = arith.constant 0 : index
    %c128 = arith.constant 128 : index
    %289 = vector.load %arg9[%c0_242, %c0_243, %c128] : memref<1x4x256xf32, #tpu.memory_space<vmem>>, vector<1x4x16xf32>
    %290 = vector.shape_cast %289 : vector<1x4x16xf32> to vector<4x16xf32>
    %291 = vector.shape_cast %288 : vector<4x16xf32> to vector<1x4x16xf32>
    tpu.vector_store %arg9[%c0_242, %c0_243, %c128], %291 {strides = array<i32>} : memref<1x4x256xf32, #tpu.memory_space<vmem>>, vector<1x4x16xf32>,
    %292 = vector.extract_strided_slice %255 {offsets = [0, 216], sizes = [4, 16], strides = [1, 1]} : vector<4x376xf32> to vector<4x16xf32>
    %c0_244 = arith.constant 0 : index
    %c0_245 = arith.constant 0 : index
    %c144 = arith.constant 144 : index
    %293 = vector.load %arg9[%c0_244, %c0_245, %c144] : memref<1x4x256xf32, #tpu.memory_space<vmem>>, vector<1x4x16xf32>
    %294 = vector.shape_cast %293 : vector<1x4x16xf32> to vector<4x16xf32>
    %295 = vector.shape_cast %292 : vector<4x16xf32> to vector<1x4x16xf32>
    tpu.vector_store %arg9[%c0_244, %c0_245, %c144], %295 {strides = array<i32>} : memref<1x4x256xf32, #tpu.memory_space<vmem>>, vector<1x4x16xf32>,
    %296 = vector.extract_strided_slice %255 {offsets = [0, 240], sizes = [4, 16], strides = [1, 1]} : vector<4x376xf32> to vector<4x16xf32>
    %c0_246 = arith.constant 0 : index
    %c0_247 = arith.constant 0 : index
    %c160 = arith.constant 160 : index
    %297 = vector.load %arg9[%c0_246, %c0_247, %c160] : memref<1x4x256xf32, #tpu.memory_space<vmem>>, vector<1x4x16xf32>
    %298 = vector.shape_cast %297 : vector<1x4x16xf32> to vector<4x16xf32>
    %299 = vector.shape_cast %296 : vector<4x16xf32> to vector<1x4x16xf32>
    tpu.vector_store %arg9[%c0_246, %c0_247, %c160], %299 {strides = array<i32>} : memref<1x4x256xf32, #tpu.memory_space<vmem>>, vector<1x4x16xf32>,
    %300 = vector.extract_strided_slice %255 {offsets = [0, 264], sizes = [4, 16], strides = [1, 1]} : vector<4x376xf32> to vector<4x16xf32>
    %c0_248 = arith.constant 0 : index
    %c0_249 = arith.constant 0 : index
    %c176 = arith.constant 176 : index
    %301 = vector.load %arg9[%c0_248, %c0_249, %c176] : memref<1x4x256xf32, #tpu.memory_space<vmem>>, vector<1x4x16xf32>
    %302 = vector.shape_cast %301 : vector<1x4x16xf32> to vector<4x16xf32>
    %303 = vector.shape_cast %300 : vector<4x16xf32> to vector<1x4x16xf32>
    tpu.vector_store %arg9[%c0_248, %c0_249, %c176], %303 {strides = array<i32>} : memref<1x4x256xf32, #tpu.memory_space<vmem>>, vector<1x4x16xf32>,
    %304 = vector.extract_strided_slice %255 {offsets = [0, 288], sizes = [4, 16], strides = [1, 1]} : vector<4x376xf32> to vector<4x16xf32>
    %c0_250 = arith.constant 0 : index
    %c0_251 = arith.constant 0 : index
    %c192 = arith.constant 192 : index
    %305 = vector.load %arg9[%c0_250, %c0_251, %c192] : memref<1x4x256xf32, #tpu.memory_space<vmem>>, vector<1x4x16xf32>
    %306 = vector.shape_cast %305 : vector<1x4x16xf32> to vector<4x16xf32>
    %307 = vector.shape_cast %304 : vector<4x16xf32> to vector<1x4x16xf32>
    tpu.vector_store %arg9[%c0_250, %c0_251, %c192], %307 {strides = array<i32>} : memref<1x4x256xf32, #tpu.memory_space<vmem>>, vector<1x4x16xf32>,
    %308 = vector.extract_strided_slice %255 {offsets = [0, 312], sizes = [4, 16], strides = [1, 1]} : vector<4x376xf32> to vector<4x16xf32>
    %c0_252 = arith.constant 0 : index
    %c0_253 = arith.constant 0 : index
    %c208 = arith.constant 208 : index
    %309 = vector.load %arg9[%c0_252, %c0_253, %c208] : memref<1x4x256xf32, #tpu.memory_space<vmem>>, vector<1x4x16xf32>
    %310 = vector.shape_cast %309 : vector<1x4x16xf32> to vector<4x16xf32>
    %311 = vector.shape_cast %308 : vector<4x16xf32> to vector<1x4x16xf32>
    tpu.vector_store %arg9[%c0_252, %c0_253, %c208], %311 {strides = array<i32>} : memref<1x4x256xf32, #tpu.memory_space<vmem>>, vector<1x4x16xf32>,
    %312 = vector.extract_strided_slice %255 {offsets = [0, 336], sizes = [4, 16], strides = [1, 1]} : vector<4x376xf32> to vector<4x16xf32>
    %c0_254 = arith.constant 0 : index
    %c0_255 = arith.constant 0 : index
    %c224 = arith.constant 224 : index
    %313 = vector.load %arg9[%c0_254, %c0_255, %c224] : memref<1x4x256xf32, #tpu.memory_space<vmem>>, vector<1x4x16xf32>
    %314 = vector.shape_cast %313 : vector<1x4x16xf32> to vector<4x16xf32>
    %315 = vector.shape_cast %312 : vector<4x16xf32> to vector<1x4x16xf32>
    tpu.vector_store %arg9[%c0_254, %c0_255, %c224], %315 {strides = array<i32>} : memref<1x4x256xf32, #tpu.memory_space<vmem>>, vector<1x4x16xf32>,
    %316 = vector.extract_strided_slice %255 {offsets = [0, 360], sizes = [4, 16], strides = [1, 1]} : vector<4x376xf32> to vector<4x16xf32>
    %c0_256 = arith.constant 0 : index
    %c0_257 = arith.constant 0 : index
    %c240 = arith.constant 240 : index
    %317 = vector.load %arg9[%c0_256, %c0_257, %c240] : memref<1x4x256xf32, #tpu.memory_space<vmem>>, vector<1x4x16xf32>
    %318 = vector.shape_cast %317 : vector<1x4x16xf32> to vector<4x16xf32>
    %319 = vector.shape_cast %316 : vector<4x16xf32> to vector<1x4x16xf32>
    tpu.vector_store %arg9[%c0_256, %c0_257, %c240], %319 {strides = array<i32>} : memref<1x4x256xf32, #tpu.memory_space<vmem>>, vector<1x4x16xf32>,
    return
  }
  func.func @transform_0(%arg0: i32) -> (i32, i32, i32) {
    %c0_i32 = arith.constant 0 : i32
    %c0_i32_0 = arith.constant 0 : i32
    %c0_i32_1 = arith.constant 0 : i32
    return %arg0, %c0_i32, %c0_i32_0 : i32, i32, i32
  }
  func.func @transform_1(%arg0: i32) -> (i32, i32, i32) {
    %c0_i32 = arith.constant 0 : i32
    %c0_i32_0 = arith.constant 0 : i32
    %c0_i32_1 = arith.constant 0 : i32
    return %arg0, %c0_i32, %c0_i32_0 : i32, i32, i32
  }
  func.func @transform_2(%arg0: i32) -> (i32, i32, i32) {
    %c0_i32 = arith.constant 0 : i32
    %c0_i32_0 = arith.constant 0 : i32
    %c0_i32_1 = arith.constant 0 : i32
    %c0_i32_2 = arith.constant 0 : i32
    return %c0_i32, %c0_i32_0, %c0_i32_1 : i32, i32, i32
  }
  func.func @transform_3(%arg0: i32) -> (i32, i32) {
    %c0_i32 = arith.constant 0 : i32
    %c0_i32_0 = arith.constant 0 : i32
    %c0_i32_1 = arith.constant 0 : i32
    return %c0_i32, %c0_i32_0 : i32, i32
  }
  func.func @transform_4(%arg0: i32) -> (i32, i32, i32) {
    %c0_i32 = arith.constant 0 : i32
    %c0_i32_0 = arith.constant 0 : i32
    %c0_i32_1 = arith.constant 0 : i32
    %c0_i32_2 = arith.constant 0 : i32
    return %c0_i32, %c0_i32_0, %c0_i32_1 : i32, i32, i32
  }
  func.func @transform_5(%arg0: i32) -> (i32, i32) {
    %c0_i32 = arith.constant 0 : i32
    %c0_i32_0 = arith.constant 0 : i32
    %c0_i32_1 = arith.constant 0 : i32
    return %c0_i32, %c0_i32_0 : i32, i32
  }
  func.func @transform_6(%arg0: i32) -> (i32, i32, i32) {
    %c0_i32 = arith.constant 0 : i32
    %c0_i32_0 = arith.constant 0 : i32
    %c0_i32_1 = arith.constant 0 : i32
    %c0_i32_2 = arith.constant 0 : i32
    return %c0_i32, %c0_i32_0, %c0_i32_1 : i32, i32, i32
  }
  func.func @transform_7(%arg0: i32) -> (i32, i32) {
    %c0_i32 = arith.constant 0 : i32
    %c0_i32_0 = arith.constant 0 : i32
    %c0_i32_1 = arith.constant 0 : i32
    return %c0_i32, %c0_i32_0 : i32, i32
  }
  func.func @transform_8(%arg0: i32) -> (i32, i32, i32) {
    %c0_i32 = arith.constant 0 : i32
    %c0_i32_0 = arith.constant 0 : i32
    %c0_i32_1 = arith.constant 0 : i32
    return %arg0, %c0_i32, %c0_i32_0 : i32, i32, i32
  }
}

</mosaic_0001>

<bundles_post_ra>
// kernel: upblock_forward.1
= control target key start
LH: loop header
LB: loop body
LE: loop exit
PB: predicated region body
PF: predicated region fallthrough
CT: control target
= control target key end

     0   :  { %s12932_s27 = smov 0   ;;  %s17494_s0 = inlined_call_operand.vmem [shape: bf16[2,432,8], index: 0, kind: input, shape index: {}]   ;;  %s17495_s1 = inlined_call_operand.vmem [shape: bf16[2,432,4], index: 1, kind: input, shape index: {}]   ;;  %s17496_s2 = inlined_call_operand.vmem [shape: bf16[9,8,4], index: 2, kind: input, shape index: {}]   ;;  %s17497_s3 = inlined_call_operand.vmem [shape: f32[1,4], index: 3, kind: input, shape index: {}]   ;;  %s17498_s4 = inlined_call_operand.vmem [shape: bf16[9,8,4], index: 4, kind: input, shape index: {}]   ;;  %s17499_s5 = inlined_call_operand.vmem [shape: f32[1,4], index: 5, kind: input, shape index: {}]   ;;  %s17500_s6 = inlined_call_operand.vmem [shape: bf16[9,4,4], index: 6, kind: input, shape index: {}]   ;;  %s17501_s7 = inlined_call_operand.vmem [shape: f32[4,1], index: 7, kind: input, shape index: {}]   ;;  %s17502_s8 = inlined_call_operand.vmem [shape: f32[2,4,256], index: 8, kind: output, shape index: {}]  }
   0x1 LB: > { %s10205_s28 = sadd.s32 4294967295, %s12866_s27   ;;  %p10209_p0 = scmp.ge.s32.totalorder %s12866_s27, 1  ;;  %s12866_s27 = sphi %s12932_s27, %s18_s27  }
   0x2   : > { %p272_p1 = scmp.lt.s32.totalorder %s12866_s27, 3 }
   0x4   : > { %p273_p2 = pnand %p10209_p0, %p272_p1 }
   0x6   : > { %276 = sbr.rel (%p273_p2) target bundleno = 2359 (0x937), region = 52 }
   0xb   : > { %v10214_v0 = vld [vmem:[%s17496_s2 + $0x4] sm:$0xf]  ;;  %vm707_vm0 = vcmask 1043456   ;;  %v561_v1 = vld [vmem:[%s17496_s2] sm:$0xf]  ;;  %p311_p3 = scmp.lt.s32.totalorder %s10205_s28, 1 }
   0xc   : > { %12734 = vmatprep.subr.msk.bf16.mxu0 %vm707_vm0, %v10214_v0  ;;  %12735 = vmatprep.subr.msk.bf16.mxu1 %vm707_vm0, %v561_v1  ;;  %v709_v2 = vsel %vm707_vm0, %v10214_v0, 0  ;;  %v993_v3 = vsel %vm707_vm0, %v561_v1, 0  ;;  %v10263_v4 = vld [vmem:[%s17496_s2 + $0x8] sm:$0xf]  ;;  %v12958_v5 = vld [vmem:[%s17496_s2 + $0xc] sm:$0xf] }
   0xd   : > { %11655 = vmatpush3.bf16.msra.mxu0 %v709_v2  ;;  %11705 = vmatpush3.bf16.msra.mxu1 %v993_v3  ;;  %s18433_s28 = smov (!%p311_p3, %s10205_s28), 1  ;;  %vm435_vm1 = vcmask 64512   ;;  %v12975_v9 = vsel %vm707_vm0, %v10263_v4, 0  ;;  %vm4160_vm2 = vcmask 31744   ;;  %vm4223_vm3 = vcmask 64544   ;;  %s12872_s19 = smov 104  }
   0xe   : > { %12736 = vmatprep.subr.msk.bf16.mxu0 %vm707_vm0, %v10263_v4  ;;  %12737 = vmatprep.subr.msk.bf16.mxu1 %vm707_vm0, %v12958_v5  ;;  %s12824_s15 = smul.u32 216, %s18433_s28  ;;  %vm12870_vm4 = vmmov 0   ;;  %vm10062_vm5 = vcmask 125952   ;;  %s12873_s20 = smov 120   ;;  %vm10068_vm6 = vcmask 257152   ;;  %vm10073_vm7 = vcmask 388352  }
   0xf   : > { %s12875_s21 = smov 112   ;;  %s12876_s22 = smov 56   ;;  %vm10078_vm8 = vcmask 519552   ;;  %vm10083_vm9 = vcmask 650752   ;;  %vm10090_vm10 = vcmask 719872   ;;  %vm10093_vm11 = vcmask 781952  }
  0x10   : > { %s12969_s18 = scalar_lea.vmem %s17494_s0, %s12824_s15  ;;  %s14328_s13 = scalar_lea.vmem %s17495_s1, %s12824_s15  ;;  %vm10098_vm12 = vcmask 913152   ;;  %vm10103_vm13 = vcmask 1044352  }
  0x11   : > { %v10694_v6 = vld [vmem:[%s12969_s18] sm:$0xff]   ;;  %v10909_v7 = vld [vmem:[%s12969_s18 + $0x8] sm:$0xff]   ;;  %v10910_v8 = vld [vmem:[%s12969_s18 + $0x10] sm:$0xff]   ;;  %s10692_s15 = sshll.u32 %s18433_s28, 3  ;;  %s12874_s28 = smov 96  }
  0x12   : > { %v10695_v10 = vunpack.c.l.bf16 %v10694_v6  ;;  %v10696_v11 = vunpack.c.h.bf16 %v10694_v6  ;;  %v10699_v12 = vunpack.c.l.bf16 %v10909_v7  ;;  %v10700_v13 = vunpack.c.h.bf16 %v10909_v7  ;;  %v10911_v14 = vld [vmem:[%s12969_s18 + $0x18] sm:$0xff]   ;;  %v10912_v15 = vld [vmem:[%s12969_s18 + $0x20] sm:$0xff]   ;;  %v10913_v16 = vld [vmem:[%s12969_s18 + $0x28] sm:$0xff]   ;;  %s12877_s23 = smov 64   ;;  %s12878_s24 = smov 48  }
  0x13   : > { %v10703_v17 = vunpack.c.l.bf16 %v10910_v8  ;;  %v10704_v18 = vunpack.c.h.bf16 %v10910_v8  ;;  %v10707_v19 = vunpack.c.l.bf16 %v10911_v14  ;;  %v10708_v20 = vunpack.c.h.bf16 %v10911_v14  ;;  %v10914_v21 = vld [vmem:[%s12969_s18 + $0x30] sm:$0xff]   ;;  %v10915_v22 = vld [vmem:[%s12969_s18 + $0x38] sm:$0xff]   ;;  %v10916_v23 = vld [vmem:[%s12969_s18 + $0x40] sm:$0xff]   ;;  %s12879_s25 = smov 88   ;;  %s12880_s26 = smov 80  }
  0x14   : > { %436 = vst.msk [vmem:[#allocation2] sm:$0xff] %vm435_vm1, %v10695_v10  ;;  %437 = vst.msk [vmem:[#allocation2 + $0x8] sm:$0xff] %vm435_vm1, %v10696_v11  ;;  %v10711_v24 = vunpack.c.l.bf16 %v10912_v15  ;;  %v10712_v25 = vunpack.c.h.bf16 %v10912_v15  ;;  %v10715_v26 = vunpack.c.l.bf16 %v10913_v16  ;;  %v10716_v27 = vunpack.c.h.bf16 %v10913_v16  ;;  %v10917_v28 = vld [vmem:[%s12969_s18 + $0x48] sm:$0xff]   ;;  %v10918_v29 = vld [vmem:[%s12969_s18 + $0x50] sm:$0xff]   ;;  %s12881_s29 = smov 40   ;;  %s12882_s30 = smov 24  }
  0x15   : > { %438 = vst.msk [vmem:[#allocation2 + $0x10] sm:$0xff] %vm435_vm1, %v10699_v12  ;;  %439 = vst.msk [vmem:[#allocation2 + $0x18] sm:$0xff] %vm435_vm1, %v10700_v13  ;;  %v10919_v30 = vld [vmem:[%s12969_s18 + $0x58] sm:$0xff]   ;;  %v10719_v31 = vunpack.c.l.bf16 %v10914_v21  ;;  %v10720_v32 = vunpack.c.h.bf16 %v10914_v21  ;;  %v10723_v33 = vunpack.c.l.bf16 %v10915_v22  ;;  %v10724_v34 = vunpack.c.h.bf16 %v10915_v22  ;;  %v10920_v35 = vld [vmem:[%s12969_s18 + $0x60] sm:$0xff]   ;;  %s12883_s9 = smov 32   ;;  %s12884_s10 = smov 16  }
  0x16   : > { %440 = vst.msk [vmem:[#allocation2 + $0x20] sm:$0xff] %vm435_vm1, %v10703_v17  ;;  %441 = vst.msk [vmem:[#allocation2 + $0x28] sm:$0xff] %vm435_vm1, %v10704_v18  ;;  %v10921_v36 = vld [vmem:[%s12969_s18 + $0x68] sm:$0xff]   ;;  %v10727_v37 = vunpack.c.l.bf16 %v10916_v23  ;;  %v10728_v38 = vunpack.c.h.bf16 %v10916_v23  ;;  %v10731_v39 = vunpack.c.l.bf16 %v10917_v28  ;;  %v10732_v40 = vunpack.c.h.bf16 %v10917_v28  ;;  %v10922_v41 = vld [vmem:[%s12969_s18 + $0x70] sm:$0xff]   ;;  %s12885_s11 = smov 72   ;;  %s12886_s12 = smov 8  }
  0x17   : > { %442 = vst.msk [vmem:[#allocation2 + $0x30] sm:$0xff] %vm435_vm1, %v10707_v19  ;;  %443 = vst.msk [vmem:[#allocation2 + $0x38] sm:$0xff] %vm435_vm1, %v10708_v20  ;;  %v10923_v42 = vld [vmem:[%s12969_s18 + $0x78] sm:$0xff]   ;;  %v10735_v43 = vunpack.c.l.bf16 %v10918_v29  ;;  %v10736_v44 = vunpack.c.h.bf16 %v10918_v29  ;;  %v10739_v45 = vunpack.c.l.bf16 %v10919_v30  ;;  %v10740_v46 = vunpack.c.h.bf16 %v10919_v30  ;;  %v10924_v47 = vld [vmem:[%s12969_s18 + $0x80] sm:$0xff]  }
  0x18   : > { %444 = vst.msk [vmem:[#allocation2 + $0x40] sm:$0xff] %vm435_vm1, %v10711_v24  ;;  %445 = vst.msk [vmem:[#allocation2 + $0x48] sm:$0xff] %vm435_vm1, %v10712_v25  ;;  %v10925_v48 = vld [vmem:[%s12969_s18 + $0x88] sm:$0xff]   ;;  %v10743_v49 = vunpack.c.l.bf16 %v10920_v35  ;;  %v10744_v50 = vunpack.c.h.bf16 %v10920_v35  ;;  %v10747_v51 = vunpack.c.l.bf16 %v10921_v36  ;;  %v10748_v52 = vunpack.c.h.bf16 %v10921_v36  ;;  %v10926_v53 = vld [vmem:[%s12969_s18 + $0x90] sm:$0xff]  }
  0x19   : > { %446 = vst.msk [vmem:[#allocation2 + $0x50] sm:$0xff] %vm435_vm1, %v10715_v26  ;;  %447 = vst.msk [vmem:[#allocation2 + $0x58] sm:$0xff] %vm435_vm1, %v10716_v27  ;;  %v10927_v54 = vld [vmem:[%s12969_s18 + $0x98] sm:$0xff]   ;;  %v10751_v55 = vunpack.c.l.bf16 %v10922_v41  ;;  %v10752_v56 = vunpack.c.h.bf16 %v10922_v41  ;;  %v10755_v57 = vunpack.c.l.bf16 %v10923_v42  ;;  %v10756_v58 = vunpack.c.h.bf16 %v10923_v42  ;;  %v10928_v59 = vld [vmem:[%s12969_s18 + $0xa0] sm:$0xff]  }
  0x1a   : > { %448 = vst.msk [vmem:[#allocation2 + $0x60] sm:$0xff] %vm435_vm1, %v10719_v31  ;;  %449 = vst.msk [vmem:[#allocation2 + $0x68] sm:$0xff] %vm435_vm1, %v10720_v32  ;;  %v10929_v60 = vld [vmem:[%s12969_s18 + $0xa8] sm:$0xff]   ;;  %v10759_v61 = vunpack.c.l.bf16 %v10924_v47  ;;  %v10760_v62 = vunpack.c.h.bf16 %v10924_v47  ;;  %v10763_v63 = vunpack.c.l.bf16 %v10925_v48  ;;  %v10764_v0 = vunpack.c.h.bf16 %v10925_v48  ;;  %v10930_v1 = vld [vmem:[%s12969_s18 + $0xb0] sm:$0xff]  }
  0x1b   : > { %450 = vst.msk [vmem:[#allocation2 + $0x70] sm:$0xff] %vm435_vm1, %v10723_v33  ;;  %451 = vst.msk [vmem:[#allocation2 + $0x78] sm:$0xff] %vm435_vm1, %v10724_v34  ;;  %v13026_v2 = vld [vmem:[%s12969_s18 + $0xb8] sm:$0xff]   ;;  %v562_v3 = vld [vmem:[#allocation2 + $0x1] sm:$0xff]  ;;  %v10767_v7 = vunpack.c.l.bf16 %v10926_v53  ;;  %v10768_v8 = vunpack.c.h.bf16 %v10926_v53  ;;  %v10771_v10 = vunpack.c.l.bf16 %v10927_v54  ;;  %v10772_v11 = vunpack.c.h.bf16 %v10927_v54 }
  0x1c   : > { %452 = vst.msk [vmem:[#allocation2 + $0x80] sm:$0xff] %vm435_vm1, %v10727_v37  ;;  %453 = vst.msk [vmem:[#allocation2 + $0x88] sm:$0xff] %vm435_vm1, %v10728_v38  ;;  %v563_v4 = vld [vmem:[#allocation2 + $0x9] sm:$0xff]  ;;  %v490_v6 = vld [vmem:[#allocation2] sm:$0xff]  ;;  %v10775_v16 = vunpack.c.l.bf16 %v10928_v59  ;;  %v10776_v17 = vunpack.c.h.bf16 %v10928_v59  ;;  %v10779_v18 = vunpack.c.l.bf16 %v10929_v60  ;;  %v10780_v24 = vunpack.c.h.bf16 %v10929_v60 }
  0x1d   : > { %454 = vst.msk [vmem:[#allocation2 + $0x90] sm:$0xff] %vm435_vm1, %v10731_v39  ;;  %455 = vst.msk [vmem:[#allocation2 + $0x98] sm:$0xff] %vm435_vm1, %v10732_v40  ;;  %v609_v12 = vpack.c.bf16 %v563_v4, %v562_v3  ;;  %v491_v13 = vld [vmem:[#allocation2 + $0x8] sm:$0xff]  ;;  %v564_v14 = vld [vmem:[#allocation2 + $0x11] sm:$0xff]  ;;  %v10783_v25 = vunpack.c.l.bf16 %v10930_v1  ;;  %v10784_v30 = vunpack.c.h.bf16 %v10930_v1  ;;  %v10787_v31 = vunpack.c.l.bf16 %v13026_v2 }
  0x1e   : > { %456 = vst.msk [vmem:[#allocation2 + $0xa0] sm:$0xff] %vm435_vm1, %v10735_v43  ;;  %457 = vst.msk [vmem:[#allocation2 + $0xa8] sm:$0xff] %vm435_vm1, %v10736_v44  ;;  %v13032_v15 = vld [vmem:[#allocation2 + $0x19] sm:$0xff]  ;;  %v537_v19 = vpack.c.bf16 %v491_v13, %v490_v6  ;;  %v492_v21 = vld [vmem:[#allocation2 + $0x10] sm:$0xff]  ;;  %v10788_v32 = vunpack.c.h.bf16 %v13026_v2  ;;  %v1739_v36 = vsel %vm707_vm0, %v12958_v5, 0 }
  0x1f   : > { %458 = vst.msk [vmem:[#allocation2 + $0xb0] sm:$0xff] %vm435_vm1, %v10739_v45  ;;  %459 = vst.msk [vmem:[#allocation2 + $0xb8] sm:$0xff] %vm435_vm1, %v10740_v46  ;;  %v610_v20 = vpack.c.bf16 %v13032_v15, %v564_v14  ;;  %v13039_v22 = vld [vmem:[#allocation2 + $0x18] sm:$0xff]  ;;  %v13041_v23 = vld [vmem:[#allocation2 + $0x21] sm:$0xff]  ;;  %11656 = vmatprep.mubr.msk.bf16.mxu0 %vm435_vm1, %v609_v12 }
  0x20   : > { %460 = vst.msk [vmem:[#allocation2 + $0xc0] sm:$0xff] %vm435_vm1, %v10743_v49  ;;  %461 = vst.msk [vmem:[#allocation2 + $0xc8] sm:$0xff] %vm435_vm1, %v10744_v50  ;;  %v538_v26 = vpack.c.bf16 %v13039_v22, %v492_v21  ;;  %v13049_v27 = vld [vmem:[#allocation2 + $0x29] sm:$0xff]  ;;  %v13051_v28 = vld [vmem:[#allocation2 + $0x20] sm:$0xff]  ;;  %11706 = vmatprep.mubr.msk.bf16.mxu1 %vm435_vm1, %v537_v19 }
  0x21   : > { %462 = vst.msk [vmem:[#allocation2 + $0xd0] sm:$0xff] %vm435_vm1, %v10747_v51  ;;  %463 = vst.msk [vmem:[#allocation2 + $0xd8] sm:$0xff] %vm435_vm1, %v10748_v52  ;;  %v13053_v29 = vld [vmem:[#allocation2 + $0x28] sm:$0xff]  ;;  %11657 = vmatmul.mubr.msk.bf16.vlgmr.msra.gmra.mxu0 %vm435_vm1, %v610_v20  ;;  %v611_v33 = vpack.c.bf16 %v13049_v27, %v13041_v23  ;;  %v13066_v35 = vld [vmem:[#allocation2 + $0x30] sm:$0xff] }
  0x22   : > { %464 = vst.msk [vmem:[#allocation2 + $0xe0] sm:$0xff] %vm435_vm1, %v10751_v55  ;;  %465 = vst.msk [vmem:[#allocation2 + $0xe8] sm:$0xff] %vm435_vm1, %v10752_v56  ;;  %v539_v34 = vpack.c.bf16 %v13053_v29, %v13051_v28  ;;  %v13077_v38 = vld [vmem:[%s17496_s2 + $0x10] sm:$0xf]  ;;  %11707 = vmatmul.mubr.msk.bf16.vlgmr.msra.gmra.mxu1 %vm435_vm1, %v538_v26  ;;  %v13082_v40 = vld [vmem:[#allocation2 + $0x39] sm:$0xff]  ;;  %11755 = vmatpush3.bf16.msra.mxu0 %v12975_v9 }
  0x23   : > { %466 = vst.msk [vmem:[#allocation2 + $0xf0] sm:$0xff] %vm435_vm1, %v10755_v57  ;;  %467 = vst.msk [vmem:[#allocation2 + $0xf8] sm:$0xff] %vm435_vm1, %v10756_v58  ;;  %v13080_v39 = vld [vmem:[#allocation2 + $0x31] sm:$0xff]  ;;  %11660 = vmatprep.mubr.msk.bf16.mxu0 %vm435_vm1, %v611_v33  ;;  %v13094_v42 = vld [vmem:[#allocation2 + $0x41] sm:$0xff]  ;;  %11805 = vmatpush3.bf16.msra.mxu1 %v1739_v36 }
  0x24   : > { %17807 = vst [vmem:[#allocation5_spill] sm:$0xff] %v13032_v15  ;;  %468 = vst.msk [vmem:[#allocation2 + $0x100] sm:$0xff] %vm435_vm1, %v10759_v61  ;;  %v13084_v41 = vld [vmem:[#allocation2 + $0x38] sm:$0xff]  ;;  %11710 = vmatprep.mubr.msk.bf16.mxu1 %vm435_vm1, %v539_v34  ;;  %v13096_v43 = vld [vmem:[#allocation2 + $0x49] sm:$0xff]  ;;  %12738 = vmatprep.subr.msk.bf16.mxu0 %vm707_vm0, %v13077_v38  ;;  %v612_v47 = vpack.c.bf16 %v13082_v40, %v13080_v39 }
  0x25   : > { %469 = vst.msk [vmem:[#allocation2 + $0x108] sm:$0xff] %vm435_vm1, %v10760_v62  ;;  %470 = vst.msk [vmem:[#allocation2 + $0x110] sm:$0xff] %vm435_vm1, %v10763_v63  ;;  %v13098_v44 = vld [vmem:[#allocation2 + $0x40] sm:$0xff]  ;;  %v13100_v9 = vld [vmem:[#allocation2 + $0x48] sm:$0xff]  ;;  %v540_v51 = vpack.c.bf16 %v13084_v41, %v13066_v35  ;;  %v613_v52 = vpack.c.bf16 %v13096_v43, %v13094_v42 }
  0x26   : > { %471 = vst.msk [vmem:[#allocation2 + $0x118] sm:$0xff] %vm435_vm1, %v10764_v0  ;;  %17808 = vst [vmem:[#allocation6_spill] sm:$0xff] %v13041_v23  ;;  %v13102_v45 = vld [vmem:[#allocation2 + $0x50] sm:$0xff]  ;;  %v13110_v48 = vld [vmem:[#allocation2 + $0x58] sm:$0xff]  ;;  %v541_v54 = vpack.c.bf16 %v13100_v9, %v13098_v44 }
  0x27   : > { %472 = vst.msk [vmem:[#allocation2 + $0x120] sm:$0xff] %vm435_vm1, %v10767_v7  ;;  %473 = vst.msk [vmem:[#allocation2 + $0x128] sm:$0xff] %vm435_vm1, %v10768_v8  ;;  %v13112_v49 = vld [vmem:[#allocation2 + $0x60] sm:$0xff]  ;;  %v13124_v55 = vld [vmem:[#allocation2 + $0x68] sm:$0xff] }
  0x28   : > { %474 = vst.msk [vmem:[#allocation2 + $0x130] sm:$0xff] %vm435_vm1, %v10771_v10  ;;  %475 = vst.msk [vmem:[#allocation2 + $0x138] sm:$0xff] %vm435_vm1, %v10772_v11  ;;  %v13126_v56 = vld [vmem:[#allocation2 + $0x70] sm:$0xff]  ;;  %v13128_v57 = vld [vmem:[#allocation2 + $0x78] sm:$0xff]  ;;  %v543_v19 = vpack.c.bf16 %v13124_v55, %v13112_v49 }
  0x29   : > { %17809 = vst [vmem:[#allocation7_spill] sm:$0xff] %v13049_v27  ;;  %476 = vst.msk [vmem:[#allocation2 + $0x140] sm:$0xff] %vm435_vm1, %v10775_v16  ;;  %v13130_v58 = vld [vmem:[#allocation2 + $0x80] sm:$0xff]  ;;  %11661 = vmatmul.mubr.msk.bf16.gmra.mxu0 %vm435_vm1, %v612_v47  ;;  %v13135_v60 = vld [vmem:[#allocation2 + $0x88] sm:$0xff]  ;;  %v542_v16 = vpack.c.bf16 %v13110_v48, %v13102_v45 }
  0x2a   : > { %477 = vst.msk [vmem:[#allocation2 + $0x148] sm:$0xff] %vm435_vm1, %v10776_v17  ;;  %478 = vst.msk [vmem:[#allocation2 + $0x150] sm:$0xff] %vm435_vm1, %v10779_v18  ;;  %v13137_v61 = vld [vmem:[#allocation2 + $0x90] sm:$0xff]  ;;  %11711 = vmatmul.mubr.msk.bf16.gmra.mxu1 %vm435_vm1, %v540_v51  ;;  %11664 = vmatprep.mubr.msk.bf16.mxu0 %vm435_vm1, %v613_v52  ;;  %v13145_v0 = vld [vmem:[#allocation2 + $0x59] sm:$0xff] }
  0x2b   : > { %479 = vst.msk [vmem:[#allocation2 + $0x158] sm:$0xff] %vm435_vm1, %v10780_v24  ;;  %480 = vst.msk [vmem:[#allocation2 + $0x160] sm:$0xff] %vm435_vm1, %v10783_v25  ;;  %v13143_v63 = vld [vmem:[#allocation2 + $0x51] sm:$0xff]  ;;  %v13147_v1 = vld [vmem:[#allocation2 + $0x61] sm:$0xff]  ;;  %11714 = vmatprep.mubr.msk.bf16.mxu1 %vm435_vm1, %v541_v54  ;;  %v544_v54 = vpack.c.bf16 %v13128_v57, %v13126_v56 }
  0x2c   : > { %17810 = vst [vmem:[#allocation8_spill] sm:$0xff] %v13080_v39  ;;  %17811 = vst [vmem:[#allocation9_spill] sm:$0xff] %v13082_v40  ;;  %v13152_v3 = vld [vmem:[#allocation2 + $0x69] sm:$0xff]  ;;  %v13154_v4 = vld [vmem:[#allocation2 + $0x98] sm:$0xff]  ;;  %v614_v11 = vpack.c.bf16 %v13145_v0, %v13143_v63 }
  0x2d   : > { %481 = vst.msk [vmem:[#allocation2 + $0x168] sm:$0xff] %vm435_vm1, %v10784_v30  ;;  %482 = vst.msk [vmem:[#allocation2 + $0x170] sm:$0xff] %vm435_vm1, %v10787_v31  ;;  %v13156_v6 = vld [vmem:[#allocation2 + $0xa0] sm:$0xff]  ;;  %v13158_v7 = vld [vmem:[#allocation2 + $0xa8] sm:$0xff]  ;;  %v615_v17 = vpack.c.bf16 %v13152_v3, %v13147_v1  ;;  %v546_v18 = vpack.c.bf16 %v13154_v4, %v13137_v61 }
  0x2e   : > { %483 = vst.msk [vmem:[#allocation2 + $0x178] sm:$0xff] %vm435_vm1, %v10788_v32  ;;  %17812 = vst [vmem:[#allocation10_spill] sm:$0xff] %v13094_v42  ;;  %v13160_v8 = vld [vmem:[#allocation2 + $0xb0] sm:$0xff]  ;;  %v13166_v12 = vld [vmem:[#allocation2 + $0xb8] sm:$0xff] }
  0x2f   : > { %17813 = vst [vmem:[#allocation11_spill] sm:$0xff] %v13096_v43  ;;  %17814 = vst [vmem:[#allocation12_spill] sm:$0xff] %v13143_v63  ;;  %v13168_v13 = vld [vmem:[#allocation2 + $0xc0] sm:$0xff]  ;;  %v13180_v20 = vld [vmem:[#allocation2 + $0xc8] sm:$0xff]  ;;  %v548_v46 = vpack.c.bf16 %v13166_v12, %v13160_v8 }
  0x30   : > { %17815 = vst [vmem:[#allocation13_spill] sm:$0xff] %v13145_v0  ;;  %17816 = vst [vmem:[#allocation14_spill] sm:$0xff] %v13147_v1  ;;  %v13182_v21 = vld [vmem:[#allocation2 + $0xd0] sm:$0xff]  ;;  %v13184_v24 = vld [vmem:[#allocation2 + $0xd8] sm:$0xff] }
  0x31   : > { %17817 = vst [vmem:[#allocation15_spill] sm:$0xff] %v13152_v3  ;;  %v13186_v25 = vld [vmem:[#allocation2 + $0xe0] sm:$0xff]  ;;  %11665 = vmatmul.mubr.msk.bf16.gmra.mxu0 %vm435_vm1, %v614_v11  ;;  %v13191_v30 = vld [vmem:[#allocation2 + $0xe8] sm:$0xff]  ;;  %v13193_v31 = vld [vmem:[#allocation2 + $0xf0] sm:$0xff] }
  0x32   : > { %11715 = vmatmul.mubr.msk.bf16.gmra.mxu1 %vm435_vm1, %v542_v16  ;;  %11668 = vmatprep.mubr.msk.bf16.mxu0 %vm435_vm1, %v615_v17  ;;  %v13199_v33 = vld [vmem:[#allocation2 + $0x71] sm:$0xff]  ;;  %v13201_v34 = vld [vmem:[#allocation2 + $0x79] sm:$0xff]  ;;  %v13206_v47 = vld [vmem:[#allocation2 + $0x81] sm:$0xff]  ;;  %v545_v16 = vpack.c.bf16 %v13135_v60, %v13130_v58 }
  0x33   : > { %17818 = vst [vmem:[#allocation16_spill] sm:$0xff] %v13199_v33  ;;  %17819 = vst [vmem:[#allocation17_spill] sm:$0xff] %v13201_v34  ;;  %11718 = vmatprep.mubr.msk.bf16.mxu1 %vm435_vm1, %v543_v19  ;;  %v13208_v51 = vld [vmem:[#allocation2 + $0x89] sm:$0xff]  ;;  %v616_v52 = vpack.c.bf16 %v13201_v34, %v13199_v33  ;;  %v13218_v17 = vld [vmem:[#allocation2 + $0xf8] sm:$0xff] }
  0x34   : > { %17820 = vst [vmem:[#allocation18_spill] sm:$0xff] %v13206_v47  ;;  %17821 = vst [vmem:[#allocation19_spill] sm:$0xff] %v13208_v51  ;;  %v617_v11 = vpack.c.bf16 %v13208_v51, %v13206_v47  ;;  %v13220_v36 = vld [vmem:[#allocation2 + $0x100] sm:$0xff]  ;;  %v13222_v19 = vld [vmem:[#allocation2 + $0x108] sm:$0xff] }
  0x35   : > { %v13224_v32 = vld [vmem:[#allocation2 + $0x110] sm:$0xff]  ;;  %v13235_v10 = vld [vmem:[#allocation2 + $0x99] sm:$0xff]  ;;  %v13238_v2 = vld [vmem:[#allocation2 + $0xa1] sm:$0xff] }
  0x36   : > { %v13233_v14 = vld [vmem:[#allocation2 + $0x91] sm:$0xff]  ;;  %17823 = vst [vmem:[#allocation21_spill] sm:$0xff] %v13235_v10  ;;  %17824 = vst [vmem:[#allocation22_spill] sm:$0xff] %v13238_v2  ;;  %v13240_v62 = vld [vmem:[#allocation2 + $0xa9] sm:$0xff] }
  0x37   : > { %17822 = vst [vmem:[#allocation20_spill] sm:$0xff] %v13233_v14  ;;  %17825 = vst [vmem:[#allocation23_spill] sm:$0xff] %v13240_v62  ;;  %v13250_v26 = vld [vmem:[#allocation2 + $0x118] sm:$0xff]  ;;  %v13252_v59 = vld [vmem:[#allocation2 + $0x120] sm:$0xff] }
  0x38   : > { %v13256_v53 = vld [vmem:[#allocation2 + $0x130] sm:$0xff]  ;;  %v13267_v37 = vld [vmem:[#allocation2 + $0xb9] sm:$0xff]  ;;  %v13302_v51 = vld [vmem:[#allocation2 + $0xe1] sm:$0xff] }
  0x39   : > { %11669 = vmatmul.mubr.msk.bf16.gmra.mxu0 %vm435_vm1, %v616_v52  ;;  %v618_v52 = vpack.c.bf16 %v13235_v10, %v13233_v14  ;;  %v13265_v5 = vld [vmem:[#allocation2 + $0xb1] sm:$0xff]  ;;  %17827 = vst [vmem:[#allocation25_spill] sm:$0xff] %v13267_v37  ;;  %v13284_v10 = vld [vmem:[#allocation2 + $0x140] sm:$0xff]  ;;  %17835 = vst [vmem:[#allocation33_spill] sm:$0xff] %v13302_v51 }
  0x3a   : > { %11719 = vmatmul.mubr.msk.bf16.gmra.mxu1 %vm435_vm1, %v544_v54  ;;  %11672 = vmatprep.mubr.msk.bf16.mxu0 %vm435_vm1, %v617_v11  ;;  %v619_v54 = vpack.c.bf16 %v13240_v62, %v13238_v2  ;;  %v547_v11 = vpack.c.bf16 %v13158_v7, %v13156_v6  ;;  %17826 = vst [vmem:[#allocation24_spill] sm:$0xff] %v13265_v5  ;;  %v13270_v62 = vld [vmem:[#allocation2 + $0xc1] sm:$0xff]  ;;  %v13272_v2 = vld [vmem:[#allocation2 + $0xc9] sm:$0xff]  ;;  %v13282_v50 = vld [vmem:[#allocation2 + $0x138] sm:$0xff] }
  0x3b   : > { %11722 = vmatprep.mubr.msk.bf16.mxu1 %vm435_vm1, %v545_v16  ;;  %v13254_v16 = vld [vmem:[#allocation2 + $0x128] sm:$0xff]  ;;  %17828 = vst [vmem:[#allocation26_spill] sm:$0xff] %v13270_v62  ;;  %17829 = vst [vmem:[#allocation27_spill] sm:$0xff] %v13272_v2  ;;  %v13288_v14 = vld [vmem:[#allocation2 + $0x150] sm:$0xff] }
  0x3c   : > { %17830 = vst [vmem:[#allocation28_spill] sm:$0xff] %v13282_v50  ;;  %17832 = vst [vmem:[#allocation30_spill] sm:$0xff] %v13288_v14  ;;  %v13304_v47 = vld [vmem:[#allocation2 + $0xe9] sm:$0xff]  ;;  %v13315_v34 = vld [vmem:[#allocation2 + $0x158] sm:$0xff] }
  0x3d   : > { %17836 = vst [vmem:[#allocation34_spill] sm:$0xff] %v13304_v47  ;;  %17837 = vst [vmem:[#allocation35_spill] sm:$0xff] %v13315_v34  ;;  %v13317_v33 = vld [vmem:[#allocation2 + $0x160] sm:$0xff]  ;;  %v13319_v3 = vld [vmem:[#allocation2 + $0x168] sm:$0xff] }
  0x3e   : > { %17838 = vst [vmem:[#allocation36_spill] sm:$0xff] %v13317_v33  ;;  %17839 = vst [vmem:[#allocation37_spill] sm:$0xff] %v13319_v3  ;;  %v13321_v1 = vld [vmem:[#allocation2 + $0x170] sm:$0xff]  ;;  %v13333_v0 = vld [vmem:[#allocation2 + $0xf9] sm:$0xff]  ;;  %v559_v23 = vpack.c.bf16 %v13319_v3, %v13317_v33 }
  0x3f   : > { %17840 = vst [vmem:[#allocation38_spill] sm:$0xff] %v13321_v1  ;;  %17842 = vst [vmem:[#allocation40_spill] sm:$0xff] %v13333_v0  ;;  %v13385_v43 = vld [vmem:[#allocation2 + $0x2a] sm:$0xff]  ;;  %v13412_v42 = vld [vmem:[#allocation2 + $0x3a] sm:$0xff] }
  0x40   : > { %v13402_v27 = vld [vmem:[#allocation2 + $0x149] sm:$0xff]  ;;  %v13419_v40 = vld [vmem:[#allocation2 + $0x52] sm:$0xff]  ;;  %v13466_v33 = vld [vmem:[#allocation2 + $0x7a] sm:$0xff] }
  0x41   : > { %11673 = vmatmul.mubr.msk.bf16.gmra.mxu0 %vm435_vm1, %v618_v52  ;;  %v620_v52 = vpack.c.bf16 %v13267_v37, %v13265_v5  ;;  %v13299_v5 = vld [vmem:[#allocation2 + $0xd9] sm:$0xff]  ;;  %v551_v37 = vpack.c.bf16 %v13191_v30, %v13186_v25  ;;  %17852 = vst [vmem:[#allocation50_spill] sm:$0xff] %v13402_v27  ;;  %v13414_v63 = vld [vmem:[#allocation2 + $0x42] sm:$0xff] }
  0x42   : > { %11723 = vmatmul.mubr.msk.bf16.gmra.mxu1 %vm435_vm1, %v546_v18  ;;  %11676 = vmatprep.mubr.msk.bf16.mxu0 %vm435_vm1, %v619_v54  ;;  %v621_v18 = vpack.c.bf16 %v13272_v2, %v13270_v62  ;;  %v549_v54 = vpack.c.bf16 %v13180_v20, %v13168_v13  ;;  %v13297_v62 = vld [vmem:[#allocation2 + $0xd1] sm:$0xff]  ;;  %17834 = vst [vmem:[#allocation32_spill] sm:$0xff] %v13299_v5  ;;  %v13434_v15 = vld [vmem:[#allocation2 + $0x169] sm:$0xff] }
  0x43   : > { %11726 = vmatprep.mubr.msk.bf16.mxu1 %vm435_vm1, %v547_v11  ;;  %v13286_v11 = vld [vmem:[#allocation2 + $0x148] sm:$0xff]  ;;  %17833 = vst [vmem:[#allocation31_spill] sm:$0xff] %v13297_v62  ;;  %v550_v2 = vpack.c.bf16 %v13184_v24, %v13182_v21  ;;  %17856 = vst [vmem:[#allocation54_spill] sm:$0xff] %v13434_v15 }
  0x44   : > { %17831 = vst [vmem:[#allocation29_spill] sm:$0xff] %v13286_v11  ;;  %v557_v39 = vpack.c.bf16 %v13286_v11, %v13284_v10  ;;  %v13444_v11 = vld [vmem:[#allocation2 + $0x5a] sm:$0xff] }
  0x49   : > { %11677 = vmatmul.mubr.msk.bf16.gmra.mxu0 %vm435_vm1, %v620_v52  ;;  %v622_v52 = vpack.c.bf16 %v13299_v5, %v13297_v62  ;;  %v13359_v62 = vld [vmem:[%s17496_s2 + $0x14] sm:$0xf] }
  0x4a   : > { %11727 = vmatmul.mubr.msk.bf16.gmra.mxu1 %vm435_vm1, %v548_v46  ;;  %11680 = vmatprep.mubr.msk.bf16.mxu0 %vm435_vm1, %v621_v18  ;;  %v623_v46 = vpack.c.bf16 %v13304_v47, %v13302_v51  ;;  %v10932_v18 = vld [vmem:[%s12969_s18 + $0xc0] sm:$0xff]   ;;  %v13331_v51 = vld [vmem:[#allocation2 + $0xf1] sm:$0xff] }
  0x4b   : > { %11730 = vmatprep.mubr.msk.bf16.mxu1 %vm435_vm1, %v549_v54  ;;  %v10791_v54 = vunpack.c.l.bf16 %v10932_v18  ;;  %v10792_v5 = vunpack.c.h.bf16 %v10932_v18  ;;  %17841 = vst [vmem:[#allocation39_spill] sm:$0xff] %v13331_v51  ;;  %v13339_v18 = vld [vmem:[#allocation2 + $0x109] sm:$0xff]  ;;  %v624_v47 = vpack.c.bf16 %v13333_v0, %v13331_v51  ;;  %12739 = vmatprep.subr.msk.bf16.mxu1 %vm707_vm0, %v13359_v62 }
  0x4c   : > { %17844 = vst [vmem:[#allocation42_spill] sm:$0xff] %v13339_v18  ;;  %v13380_v51 = vld [vmem:[#allocation2 + $0x22] sm:$0xff] }
  0x4d   : > { %484 = vst.msk [vmem:[#allocation2 + $0x180] sm:$0xff] %vm435_vm1, %v10791_v54  ;;  %485 = vst.msk [vmem:[#allocation2 + $0x188] sm:$0xff] %vm435_vm1, %v10792_v5  ;;  %v553_v54 = vpack.c.bf16 %v13222_v19, %v13220_v36  ;;  %v13354_v5 = vld [vmem:[#allocation2 + $0x119] sm:$0xff] }
  0x4e   : > { %17846 = vst [vmem:[#allocation44_spill] sm:$0xff] %v13354_v5 }
  0x51   : > { %11681 = vmatmul.mubr.msk.bf16.gmra.mxu0 %vm435_vm1, %v622_v52  ;;  %v13337_v52 = vld [vmem:[#allocation2 + $0x101] sm:$0xff] }
  0x52   : > { %11731 = vmatmul.mubr.msk.bf16.gmra.mxu1 %vm435_vm1, %v550_v2  ;;  %11684 = vmatprep.mubr.msk.bf16.mxu0 %vm435_vm1, %v623_v46  ;;  %17843 = vst [vmem:[#allocation41_spill] sm:$0xff] %v13337_v52  ;;  %v552_v2 = vpack.c.bf16 %v13218_v17, %v13193_v31  ;;  %v625_v46 = vpack.c.bf16 %v13339_v18, %v13337_v52  ;;  %v13364_v52 = vld [vmem:[#allocation2 + $0x121] sm:$0xff] }
  0x53   : > { %11734 = vmatprep.mubr.msk.bf16.mxu1 %vm435_vm1, %v551_v37  ;;  %v13352_v37 = vld [vmem:[#allocation2 + $0x111] sm:$0xff]  ;;  %17847 = vst [vmem:[#allocation45_spill] sm:$0xff] %v13364_v52  ;;  %v555_v18 = vpack.c.bf16 %v13254_v16, %v13252_v59 }
  0x54   : > { %17845 = vst [vmem:[#allocation43_spill] sm:$0xff] %v13352_v37 }
  0x59   : > { %11685 = vmatmul.mubr.msk.bf16.gmra.mxu0 %vm435_vm1, %v624_v47  ;;  %v13366_v47 = vld [vmem:[#allocation2 + $0x129] sm:$0xff] }
  0x5a   : > { %11735 = vmatmul.mubr.msk.bf16.gmra.mxu1 %vm435_vm1, %v552_v2  ;;  %11688 = vmatprep.mubr.msk.bf16.mxu0 %vm435_vm1, %v625_v46  ;;  %17848 = vst [vmem:[#allocation46_spill] sm:$0xff] %v13366_v47  ;;  %v626_v2 = vpack.c.bf16 %v13354_v5, %v13352_v37  ;;  %v554_v46 = vpack.c.bf16 %v13250_v26, %v13224_v32  ;;  %v13387_v5 = vld [vmem:[#allocation2 + $0x32] sm:$0xff] }
  0x5b   : > { %11738 = vmatprep.mubr.msk.bf16.mxu1 %vm435_vm1, %v553_v54  ;;  %v627_v0 = vpack.c.bf16 %v13366_v47, %v13364_v52  ;;  %v13378_v54 = vld [vmem:[#allocation2 + $0x1a] sm:$0xff]  ;;  %v13393_v47 = vld [vmem:[#allocation2 + $0x131] sm:$0xff] }
  0x5c   : > { %17849 = vst [vmem:[#allocation47_spill] sm:$0xff] %v13393_v47  ;;  %v13395_v52 = vld [vmem:[#allocation2 + $0x139] sm:$0xff] }
  0x5d   : > { %17850 = vst [vmem:[#allocation48_spill] sm:$0xff] %v13395_v52  ;;  %v628_v37 = vpack.c.bf16 %v13395_v52, %v13393_v47  ;;  %v13446_v47 = vld [vmem:[#allocation2 + $0x62] sm:$0xff] }
  0x61   : > { %11689 = vmatmul.mubr.msk.bf16.gmra.mxu0 %vm435_vm1, %v626_v2  ;;  %v13400_v2 = vld [vmem:[#allocation2 + $0x141] sm:$0xff] }
  0x62   : > { %11739 = vmatmul.mubr.msk.bf16.gmra.mxu1 %vm435_vm1, %v554_v46  ;;  %11692 = vmatprep.mubr.msk.bf16.mxu0 %vm435_vm1, %v627_v0  ;;  %17851 = vst [vmem:[#allocation49_spill] sm:$0xff] %v13400_v2  ;;  %v556_v46 = vpack.c.bf16 %v13282_v50, %v13256_v53  ;;  %v629_v0 = vpack.c.bf16 %v13402_v27, %v13400_v2  ;;  %v13425_v27 = vld [vmem:[#allocation2 + $0x151] sm:$0xff]  ;;  %v13427_v2 = vld [vmem:[#allocation2 + $0x159] sm:$0xff] }
  0x63   : > { %11742 = vmatprep.mubr.msk.bf16.mxu1 %vm435_vm1, %v555_v18  ;;  %v13417_v18 = vld [vmem:[#allocation2 + $0x4a] sm:$0xff]  ;;  %17853 = vst [vmem:[#allocation51_spill] sm:$0xff] %v13425_v27  ;;  %17854 = vst [vmem:[#allocation52_spill] sm:$0xff] %v13427_v2  ;;  %v630_v52 = vpack.c.bf16 %v13427_v2, %v13425_v27  ;;  %v13451_v50 = vld [vmem:[#allocation2 + $0x72] sm:$0xff] }
  0x64   : > { %v1204_v27 = vld [vmem:[#allocation2 + $0x2] sm:$0xff] }
  0x69   : > { %11693 = vmatmul.mubr.msk.bf16.gmra.mxu0 %vm435_vm1, %v628_v37  ;;  %v13432_v37 = vld [vmem:[#allocation2 + $0x161] sm:$0xff] }
  0x6a   : > { %11743 = vmatmul.mubr.msk.bf16.gmra.mxu1 %vm435_vm1, %v556_v46  ;;  %11696 = vmatprep.mubr.msk.bf16.mxu0 %vm435_vm1, %v629_v0  ;;  %17855 = vst [vmem:[#allocation53_spill] sm:$0xff] %v13432_v37  ;;  %v558_v46 = vpack.c.bf16 %v13315_v34, %v13288_v14  ;;  %v631_v0 = vpack.c.bf16 %v13434_v15, %v13432_v37  ;;  %v13457_v15 = vld [vmem:[#allocation2 + $0x171] sm:$0xff]  ;;  %v13488_v14 = vld [vmem:[#allocation2 + $0x9a] sm:$0xff] }
  0x6b   : > { %11746 = vmatprep.mubr.msk.bf16.mxu1 %vm435_vm1, %v557_v39  ;;  %v13449_v39 = vld [vmem:[#allocation2 + $0x6a] sm:$0xff]  ;;  %17857 = vst [vmem:[#allocation55_spill] sm:$0xff] %v13457_v15  ;;  %v632_v3 = vpack.c.bf16 %v13457_v15, %v13457_v15  ;;  %v560_v34 = vpack.c.bf16 %v13321_v1, %v13321_v1  ;;  %v13473_v37 = vld [vmem:[#allocation2 + $0x92] sm:$0xff]  ;;  %v1253_v1 = vpack.c.bf16 %v13385_v43, %v13380_v51 }
  0x6c   : > { %v1206_v15 = vld [vmem:[#allocation2 + $0x12] sm:$0xff] }
  0x71   : > { %11697 = vmatmul.mubr.msk.bf16.gmra.mxu0 %vm435_vm1, %v630_v52  ;;  %v1205_v52 = vld [vmem:[#allocation2 + $0xa] sm:$0xff] }
  0x72   : > { %11747 = vmatmul.mubr.msk.bf16.gmra.mxu1 %vm435_vm1, %v558_v46  ;;  %11700 = vmatprep.mubr.msk.bf16.mxu0 %vm435_vm1, %v631_v0  ;;  %v1251_v2 = vpack.c.bf16 %v1205_v52, %v1204_v27  ;;  %v13468_v46 = vld [vmem:[#allocation2 + $0x82] sm:$0xff]  ;;  %v13471_v0 = vld [vmem:[#allocation2 + $0x8a] sm:$0xff]  ;;  %v17858_v52 = vpack.c.bf16 %v13051_v28, %v13039_v22  ;;  %v2517_v22 = vsel %vm707_vm0, %v13359_v62, 0  ;;  %v17860_v62 = vpack.c.bf16 %v13098_v44, %v13084_v41 }
  0x73   : > { %11750 = vmatprep.mubr.msk.bf16.mxu1 %vm435_vm1, %v559_v23  ;;  %v13495_v27 = vld [vmem:[#allocation2 + $0xaa] sm:$0xff]  ;;  %v13497_v23 = vld [vmem:[#allocation2 + $0xb2] sm:$0xff]  ;;  %v17862_v41 = vpack.c.bf16 %v13112_v49, %v13110_v48  ;;  %v1256_v44 = vpack.c.bf16 %v13444_v11, %v13419_v40  ;;  %v1258_v48 = vpack.c.bf16 %v13466_v33, %v13451_v50  ;;  %v1259_v49 = vpack.c.bf16 %v13471_v0, %v13468_v46 }
  0x79   : > { %11701 = vmatmul.mubr.msk.bf16.gmra.mxu0 %vm435_vm1, %v632_v3  ;;  %v1252_v3 = vpack.c.bf16 %v13378_v54, %v1206_v15  ;;  %v13504_v15 = vld [vmem:[%s17496_s2 + $0x18] sm:$0xf] }
  0x7a   : > { %11751 = vmatmul.mubr.msk.bf16.gmra.mxu1 %vm435_vm1, %v560_v34  ;;  %11756 = vmatprep.mubr.msk.bf16.mxu0 %vm435_vm1, %v1251_v2  ;;  %v2128_v34 = vsel %vm707_vm0, %v13077_v38, 0  ;;  %v13492_v2 = vld [vmem:[#allocation2 + $0xa2] sm:$0xff]  ;;  %v17859_v38 = vpack.c.bf16 %v13066_v35, %v13053_v29  ;;  %v1254_v29 = vpack.c.bf16 %v13412_v42, %v13387_v5  ;;  %v1255_v35 = vpack.c.bf16 %v13417_v18, %v13414_v63 }
  0x7b   : > { %11806 = vmatprep.mubr.msk.bf16.mxu1 %vm435_vm1, %v17858_v52  ;;  %v2426_v28 = vpack.c.bf16 %v13492_v2, %v13488_v14  ;;  %v2427_v52 = vpack.c.bf16 %v13497_v23, %v13495_v27 }
  0x81   : > { %11757 = vmatmul.mubr.msk.bf16.vlgmr.msra.gmra.mxu0 %vm435_vm1, %v1252_v3  ;;  %v1257_v3 = vpack.c.bf16 %v13449_v39, %v13446_v47 }
  0x82   : > { %11807 = vmatmul.mubr.msk.bf16.vlgmr.msra.gmra.mxu1 %vm435_vm1, %v17859_v38  ;;  %11760 = vmatprep.mubr.msk.bf16.mxu0 %vm435_vm1, %v1253_v1  ;;  %v17861_v1 = vpack.c.bf16 %v13102_v45, %v13100_v9  ;;  %v17863_v9 = vpack.c.bf16 %v13126_v56, %v13124_v55  ;;  %v17864_v45 = vpack.c.bf16 %v13130_v58, %v13128_v57 }
  0x83   : > { %11810 = vmatprep.mubr.msk.bf16.mxu1 %vm435_vm1, %v17860_v62  ;;  %11855 = vmatpush3.bf16.msra.mxu0 %v2128_v34  ;;  %v17865_v55 = vpack.c.bf16 %v13137_v61, %v13135_v60  ;;  %v17866_v56 = vpack.c.bf16 %v13156_v6, %v13154_v4  ;;  %v1260_v57 = vpack.c.bf16 %v13488_v14, %v13473_v37  ;;  %v13573_v61 = vld [vmem:[#allocation2 + $0xba] sm:$0xff]  ;;  %v13579_v6 = vld [vmem:[#allocation2 + $0xc2] sm:$0xff]  ;;  %v13581_v34 = vld [vmem:[#allocation2 + $0xca] sm:$0xff] }
  0x84   : > { %11905 = vmatpush3.bf16.msra.mxu1 %v2517_v22  ;;  %12740 = vmatprep.subr.msk.bf16.mxu0 %vm707_vm0, %v13504_v15  ;;  %v1261_v58 = vpack.c.bf16 %v13495_v27, %v13492_v2  ;;  %v17867_v60 = vpack.c.bf16 %v13160_v8, %v13158_v7  ;;  %v17868_v4 = vpack.c.bf16 %v13168_v13, %v13166_v12  ;;  %v13593_v12 = vld [vmem:[#allocation2 + $0xd2] sm:$0xff]  ;;  %v13595_v13 = vld [vmem:[#allocation2 + $0xda] sm:$0xff]  ;;  %v13601_v62 = vld [vmem:[#allocation2 + $0xe2] sm:$0xff] }
  0x85   : > { %v1262_v22 = vpack.c.bf16 %v13573_v61, %v13497_v23  ;;  %v1263_v7 = vpack.c.bf16 %v13581_v34, %v13579_v6  ;;  %v17869_v8 = vpack.c.bf16 %v13182_v21, %v13180_v20  ;;  %v17870_v38 = vpack.c.bf16 %v13186_v25, %v13184_v24  ;;  %v13608_v21 = vld [vmem:[%s12969_s18 + $0xc8] sm:$0xff]   ;;  %v13620_v25 = vld [vmem:[#allocation2 + $0xf2] sm:$0xff] }
  0x86   : > { %v1264_v20 = vpack.c.bf16 %v13595_v13, %v13593_v12  ;;  %v17871_v24 = vpack.c.bf16 %v13193_v31, %v13191_v30  ;;  %v2429_v23 = vpack.c.bf16 %v13593_v12, %v13581_v34  ;;  %v17921_v27 = vld [vmem:[#allocation32_spill] sm:$0xff] }
  0x89   : > { %11761 = vmatmul.mubr.msk.bf16.gmra.mxu0 %vm435_vm1, %v1254_v29  ;;  %v13603_v29 = vld [vmem:[#allocation2 + $0xea] sm:$0xff] }
  0x8a   : > { %11811 = vmatmul.mubr.msk.bf16.gmra.mxu1 %vm435_vm1, %v17861_v1  ;;  %11764 = vmatprep.mubr.msk.bf16.mxu0 %vm435_vm1, %v1255_v35  ;;  %v1265_v35 = vpack.c.bf16 %v13603_v29, %v13601_v62  ;;  %v10795_v1 = vunpack.c.l.bf16 %v13608_v21 }
  0x8b   : > { %11814 = vmatprep.mubr.msk.bf16.mxu1 %vm435_vm1, %v17862_v41  ;;  %v13622_v41 = vld [vmem:[#allocation2 + $0xfa] sm:$0xff] }
  0x8c   : > { %486 = vst.msk [vmem:[#allocation2 + $0x190] sm:$0xff] %vm435_vm1, %v10795_v1  ;;  %v1266_v30 = vpack.c.bf16 %v13622_v41, %v13620_v25  ;;  %v17882_v1 = vld [vmem:[#allocation35_spill] sm:$0xff] }
  0x91   : > { %11765 = vmatmul.mubr.msk.bf16.gmra.mxu0 %vm435_vm1, %v1256_v44  ;;  %v17872_v44 = vpack.c.bf16 %v13220_v36, %v13218_v17  ;;  %v13642_v36 = vld [vmem:[#allocation2 + $0x112] sm:$0xff]  ;;  %v13644_v17 = vld [vmem:[#allocation2 + $0x11a] sm:$0xff] }
  0x92   : > { %11815 = vmatmul.mubr.msk.bf16.gmra.mxu1 %vm435_vm1, %v17863_v9  ;;  %11768 = vmatprep.mubr.msk.bf16.mxu0 %vm435_vm1, %v1257_v3  ;;  %v13628_v3 = vld [vmem:[#allocation2 + $0x102] sm:$0xff]  ;;  %v13630_v9 = vld [vmem:[#allocation2 + $0x10a] sm:$0xff] }
  0x93   : > { %11818 = vmatprep.mubr.msk.bf16.mxu1 %vm435_vm1, %v17864_v45  ;;  %v1267_v31 = vpack.c.bf16 %v13630_v9, %v13628_v3  ;;  %v17873_v45 = vpack.c.bf16 %v13224_v32, %v13222_v19  ;;  %v1268_v32 = vpack.c.bf16 %v13644_v17, %v13642_v36 }
  0x99   : > { %11769 = vmatmul.mubr.msk.bf16.gmra.mxu0 %vm435_vm1, %v1258_v48  ;;  %v17874_v48 = vpack.c.bf16 %v13252_v59, %v13250_v26  ;;  %v17875_v59 = vpack.c.bf16 %v13256_v53, %v13254_v16  ;;  %v13668_v26 = vld [vmem:[#allocation2 + $0x132] sm:$0xff] }
  0x9a   : > { %11819 = vmatmul.mubr.msk.bf16.gmra.mxu1 %vm435_vm1, %v17865_v55  ;;  %11772 = vmatprep.mubr.msk.bf16.mxu0 %vm435_vm1, %v1259_v49  ;;  %v13650_v49 = vld [vmem:[#allocation2 + $0x122] sm:$0xff]  ;;  %v13652_v55 = vld [vmem:[#allocation2 + $0x12a] sm:$0xff] }
  0x9b   : > { %11822 = vmatprep.mubr.msk.bf16.mxu1 %vm435_vm1, %v17866_v56  ;;  %v1269_v19 = vpack.c.bf16 %v13652_v55, %v13650_v49  ;;  %v10388_v56 = vld [vmem:[%s17496_s2 + $0x1c] sm:$0xf] }
  0x9c   : > { %12741 = vmatprep.subr.msk.bf16.mxu1 %vm707_vm0, %v10388_v56 }
  0xa1   : > { %11773 = vmatmul.mubr.msk.bf16.gmra.mxu0 %vm435_vm1, %v1260_v57  ;;  %v13670_v57 = vld [vmem:[#allocation2 + $0x13a] sm:$0xff] }
  0xa2   : > { %11823 = vmatmul.mubr.msk.bf16.gmra.mxu1 %vm435_vm1, %v17867_v60  ;;  %11776 = vmatprep.mubr.msk.bf16.mxu0 %vm435_vm1, %v1261_v58  ;;  %v17876_v58 = vld [vmem:[#allocation28_spill] sm:$0xff]  ;;  %v1270_v53 = vpack.c.bf16 %v13670_v57, %v13668_v26 }
  0xa3   : > { %11826 = vmatprep.mubr.msk.bf16.mxu1 %vm435_vm1, %v17868_v4  ;;  %v17877_v60 = vpack.c.bf16 %v13284_v10, %v17876_v58  ;;  %v13676_v4 = vld [vmem:[#allocation2 + $0x142] sm:$0xff]  ;;  %v13690_v10 = vld [vmem:[#allocation2 + $0x152] sm:$0xff] }
  0xa4   : > { %v17885_v58 = vld [vmem:[#allocation37_spill] sm:$0xff] }
  0xa9   : > { %11777 = vmatmul.mubr.msk.bf16.gmra.mxu0 %vm435_vm1, %v1262_v22  ;;  %v13678_v22 = vld [vmem:[#allocation2 + $0x14a] sm:$0xff] }
  0xaa   : > { %11827 = vmatmul.mubr.msk.bf16.gmra.mxu1 %vm435_vm1, %v17869_v8  ;;  %11780 = vmatprep.mubr.msk.bf16.mxu0 %vm435_vm1, %v1263_v7  ;;  %v1271_v16 = vpack.c.bf16 %v13678_v22, %v13676_v4  ;;  %v17878_v7 = vld [vmem:[#allocation30_spill] sm:$0xff]  ;;  %v17879_v8 = vld [vmem:[#allocation29_spill] sm:$0xff] }
  0xab   : > { %11830 = vmatprep.mubr.msk.bf16.mxu1 %vm435_vm1, %v17870_v38  ;;  %v17880_v38 = vpack.c.bf16 %v17878_v7, %v17879_v8 }
  0xb1   : > { %11781 = vmatmul.mubr.msk.bf16.gmra.mxu0 %vm435_vm1, %v1264_v20  ;;  %v13692_v20 = vld [vmem:[#allocation2 + $0x15a] sm:$0xff] }
  0xb2   : > { %11831 = vmatmul.mubr.msk.bf16.gmra.mxu1 %vm435_vm1, %v17871_v24  ;;  %11784 = vmatprep.mubr.msk.bf16.mxu0 %vm435_vm1, %v1265_v35  ;;  %v17881_v35 = vld [vmem:[#allocation36_spill] sm:$0xff] }
  0xb3   : > { %11834 = vmatprep.mubr.msk.bf16.mxu1 %vm435_vm1, %v17872_v44  ;;  %v17883_v24 = vpack.c.bf16 %v17881_v35, %v17882_v1  ;;  %v13698_v44 = vld [vmem:[#allocation2 + $0x162] sm:$0xff]  ;;  %v17888_v35 = vld [vmem:[#allocation5_spill] sm:$0xff] }
  0xb9   : > { %11785 = vmatmul.mubr.msk.bf16.gmra.mxu0 %vm435_vm1, %v1266_v30  ;;  %v13700_v30 = vld [vmem:[#allocation2 + $0x16a] sm:$0xff] }
  0xba   : > { %11835 = vmatmul.mubr.msk.bf16.gmra.mxu1 %vm435_vm1, %v17873_v45  ;;  %11788 = vmatprep.mubr.msk.bf16.mxu0 %vm435_vm1, %v1267_v31  ;;  %v1637_v31 = vld [vmem:[#allocation2 + $0x178] sm:$0xff]  ;;  %v1638_v45 = vld [vmem:[#allocation2 + $0x180] sm:$0xff] }
  0xbb   : > { %11838 = vmatprep.mubr.msk.bf16.mxu1 %vm435_vm1, %v17874_v48  ;;  %v1272_v48 = vpack.c.bf16 %v13692_v20, %v13690_v10 }
  0xc1   : > { %11789 = vmatmul.mubr.msk.bf16.gmra.mxu0 %vm435_vm1, %v1268_v32  ;;  %v1273_v32 = vpack.c.bf16 %v13700_v30, %v13698_v44 }
  0xc2   : > { %11839 = vmatmul.mubr.msk.bf16.gmra.mxu1 %vm435_vm1, %v17875_v59  ;;  %11792 = vmatprep.mubr.msk.bf16.mxu0 %vm435_vm1, %v1269_v19  ;;  %v1662_v19 = vpack.c.bf16 %v1638_v45, %v1637_v31  ;;  %v17884_v59 = vld [vmem:[#allocation38_spill] sm:$0xff]  ;;  %v17891_v31 = vld [vmem:[#allocation9_spill] sm:$0xff] }
  0xc3   : > { %11842 = vmatprep.mubr.msk.bf16.mxu1 %vm435_vm1, %v17877_v60  ;;  %v17886_v60 = vpack.c.bf16 %v17884_v59, %v17885_v58  ;;  %v17892_v45 = vld [vmem:[#allocation10_spill] sm:$0xff]  ;;  %v17893_v59 = vld [vmem:[#allocation8_spill] sm:$0xff]  ;;  %v17894_v58 = vld [vmem:[#allocation7_spill] sm:$0xff] }
  0xc9   : > { %11793 = vmatmul.mubr.msk.bf16.gmra.mxu0 %vm435_vm1, %v1270_v53  ;;  %v13712_v53 = vld [vmem:[#allocation2 + $0x172] sm:$0xff] }
  0xca   : > { %11843 = vmatmul.mubr.msk.bf16.gmra.mxu1 %vm435_vm1, %v17880_v38  ;;  %11796 = vmatprep.mubr.msk.bf16.mxu0 %vm435_vm1, %v1271_v16  ;;  %v1639_v16 = vld [vmem:[#allocation2 + $0x188] sm:$0xff]  ;;  %v1274_v7 = vpack.c.bf16 %v13712_v53, %v13712_v53  ;;  %v17887_v38 = vld [vmem:[#allocation6_spill] sm:$0xff] }
  0xcb   : > { %11846 = vmatprep.mubr.msk.bf16.mxu1 %vm435_vm1, %v17883_v24  ;;  %v1663_v8 = vpack.c.bf16 %v1639_v16, %v1639_v16  ;;  %v17889_v1 = vpack.c.bf16 %v17887_v38, %v17888_v35  ;;  %v17890_v24 = vpack.c.bf16 %v13380_v51, %v13378_v54  ;;  %v3295_v16 = vsel %vm707_vm0, %v10388_v56, 0  ;;  %v13739_v51 = vld [vmem:[%s17496_s2 + $0x20] sm:$0xf] }
  0xd1   : > { %11797 = vmatmul.mubr.msk.bf16.gmra.mxu0 %vm435_vm1, %v1272_v48  ;;  %v2031_v48 = vpack.c.bf16 %v17892_v45, %v17891_v31  ;;  %v17900_v31 = vld [vmem:[#allocation13_spill] sm:$0xff]  ;;  %v17901_v45 = vld [vmem:[#allocation14_spill] sm:$0xff] }
  0xd2   : > { %11847 = vmatmul.mubr.msk.bf16.gmra.mxu1 %vm435_vm1, %v17886_v60  ;;  %11800 = vmatprep.mubr.msk.bf16.mxu0 %vm435_vm1, %v1273_v32  ;;  %v2906_v32 = vsel %vm707_vm0, %v13504_v15, 0  ;;  %v17895_v60 = vpack.c.bf16 %v17893_v59, %v17894_v58 }
  0xd3   : > { %11850 = vmatprep.mubr.msk.bf16.mxu1 %vm435_vm1, %v1662_v19 }
  0xd9   : > { %11801 = vmatmul.mubr.msk.bf16.gmra.mxu0 %vm435_vm1, %v1274_v7  ;;  %v17896_v7 = vpack.c.bf16 %v13387_v5, %v13385_v43  ;;  %v17898_v43 = vld [vmem:[#allocation11_spill] sm:$0xff]  ;;  %v17899_v5 = vld [vmem:[#allocation12_spill] sm:$0xff] }
  0xda   : > { %11851 = vmatmul.mubr.msk.bf16.gmra.mxu1 %vm435_vm1, %v1663_v8  ;;  %11856 = vmatprep.mubr.msk.bf16.mxu0 %vm435_vm1, %v17889_v1  ;;  %v17897_v8 = vpack.c.bf16 %v13414_v63, %v13412_v42  ;;  %v2032_v1 = vpack.c.bf16 %v17899_v5, %v17898_v43  ;;  %v17905_v43 = vld [vmem:[#allocation16_spill] sm:$0xff] }
  0xdb   : > { %11906 = vmatprep.mubr.msk.bf16.mxu1 %vm435_vm1, %v17890_v24 }
  0xe1   : > { %v11658_v19 = vpop.f32.mrf.mxu0  ;;  %11857 = vmatmul.mubr.msk.bf16.vlgmr.msra.gmra.mxu0 %vm435_vm1, %v17895_v60  ;;  %v17902_v60 = vpack.c.bf16 %v13419_v40, %v13417_v18  ;;  %v17906_v18 = vld [vmem:[#allocation17_spill] sm:$0xff] }
  0xe2   : > { %v11708_v54 = vpop.f32.mrf.mxu1  ;;  %11907 = vmatmul.mubr.msk.bf16.vlgmr.msra.gmra.mxu1 %vm435_vm1, %v17896_v7  ;;  %11860 = vmatprep.mubr.msk.bf16.mxu0 %vm435_vm1, %v2031_v48  ;;  %v2033_v48 = vpack.c.bf16 %v17901_v45, %v17900_v31  ;;  %v17903_v7 = vpack.c.bf16 %v13446_v47, %v13444_v11  ;;  %v17908_v47 = vpack.c.bf16 %v13451_v50, %v13449_v39  ;;  %v17913_v50 = vld [vmem:[#allocation22_spill] sm:$0xff] }
  0xe3   : > { %v745_v15 = vpop.f32.mrf.mxu0  ;;  %11910 = vmatprep.mubr.msk.bf16.mxu1 %vm435_vm1, %v17897_v8  ;;  %11955 = vmatpush3.bf16.msra.mxu0 %v2906_v32 }
  0xe4   : > { %v1029_v56 = vpop.f32.mrf.mxu1  ;;  %12005 = vmatpush3.bf16.msra.mxu1 %v3295_v16  ;;  %12742 = vmatprep.subr.msk.bf16.mxu0 %vm707_vm0, %v13739_v51 }
  0xe5   : > { %v13752_v38 = vadd.f32 %v1029_v56, %v745_v15  ;;  %v11659_v35 = vpop.f32.mrf.mxu0 }
  0xe6   : > { %v11709_v24 = vpop.f32.mrf.mxu1 }
  0xe7   : > { %v13758_v19 = vadd.f32 %v11709_v24, %v11659_v35  ;;  %v748_v42 = vpop.f32.mrf.mxu0  ;;  %v17904_v35 = vld [vmem:[#allocation15_spill] sm:$0xff] }
  0xe8   : > { %v1032_v63 = vpop.f32.mrf.mxu1  ;;  %v2034_v5 = vpack.c.bf16 %v17905_v43, %v17904_v35  ;;  %v17912_v43 = vld [vmem:[#allocation21_spill] sm:$0xff] }
  0xe9   : > { %v13760_v32 = vadd.f32 %v1032_v63, %v748_v42  ;;  %v11662_v59 = vpop.f32.mrf.mxu0  ;;  %11861 = vmatmul.mubr.msk.bf16.gmra.mxu0 %vm435_vm1, %v2032_v1  ;;  %v17907_v1 = vld [vmem:[#allocation18_spill] sm:$0xff]  ;;  %v2037_v39 = vpack.c.bf16 %v17913_v50, %v17912_v43 }
  0xea   : > { %v11712_v58 = vpop.f32.mrf.mxu1  ;;  %11911 = vmatmul.mubr.msk.bf16.gmra.mxu1 %vm435_vm1, %v17902_v60  ;;  %11864 = vmatprep.mubr.msk.bf16.mxu0 %vm435_vm1, %v2033_v48  ;;  %v2035_v24 = vpack.c.bf16 %v17907_v1, %v17906_v18 }
  0xeb   : > { %v13768_v16 = vadd.f32 %v11712_v58, %v11662_v59  ;;  %v760_v54 = vpop.f32.mrf.mxu0  ;;  %11914 = vmatprep.mubr.msk.bf16.mxu1 %vm435_vm1, %v17903_v7  ;;  %v17909_v58 = vpack.c.bf16 %v13468_v46, %v13466_v33  ;;  %v17910_v7 = vld [vmem:[#allocation19_spill] sm:$0xff]  ;;  %v17914_v33 = vpack.c.bf16 %v13473_v37, %v13471_v0  ;;  %v17918_v37 = vld [vmem:[#allocation26_spill] sm:$0xff] }
  0xec   : > { %v1044_v15 = vpop.f32.mrf.mxu1 }
  0xed   : > { %v13774_v8 = vadd.f32 %v1044_v15, %v760_v54  ;;  %v11663_v56 = vpop.f32.mrf.mxu0  ;;  %v17911_v15 = vld [vmem:[#allocation20_spill] sm:$0xff] }
  0xee   : > { %v11713_v40 = vpop.f32.mrf.mxu1 }
  0xef   : > { %v13780_v31 = vadd.f32 %v11713_v40, %v11663_v56  ;;  %v763_v45 = vpop.f32.mrf.mxu0  ;;  %v2036_v56 = vpack.c.bf16 %v17911_v15, %v17910_v7  ;;  %v2428_v15 = vpack.c.bf16 %v13579_v6, %v13573_v61 }
  0xf0   : > { %v1047_v48 = vpop.f32.mrf.mxu1 }
  0xf1   : > { %v11666_v42 = vpop.f32.mrf.mxu0  ;;  %11865 = vmatmul.mubr.msk.bf16.gmra.mxu0 %vm435_vm1, %v2034_v5 }
  0xf2   : > { %v11716_v11 = vpop.f32.mrf.mxu1  ;;  %11915 = vmatmul.mubr.msk.bf16.gmra.mxu1 %vm435_vm1, %v17908_v47  ;;  %11868 = vmatprep.mubr.msk.bf16.mxu0 %vm435_vm1, %v2035_v24  ;;  %v17916_v47 = vld [vmem:[#allocation24_spill] sm:$0xff] }
  0xf3   : > { %v13788_v63 = vadd.f32 %v11716_v11, %v11666_v42  ;;  %v775_v59 = vpop.f32.mrf.mxu0  ;;  %11918 = vmatprep.mubr.msk.bf16.mxu1 %vm435_vm1, %v17909_v58  ;;  %v17915_v11 = vld [vmem:[#allocation23_spill] sm:$0xff] }
  0xf4   : > { %v1059_v60 = vpop.f32.mrf.mxu1  ;;  %v2038_v59 = vpack.c.bf16 %v17916_v47, %v17915_v11 }
  0xf5   : > { %v11667_v54 = vpop.f32.mrf.mxu0  ;;  %v17917_v60 = vld [vmem:[#allocation25_spill] sm:$0xff] }
  0xf6   : > { %v11717_v35 = vpop.f32.mrf.mxu1  ;;  %v2039_v0 = vpack.c.bf16 %v17918_v37, %v17917_v60  ;;  %v17923_v60 = vld [vmem:[#allocation34_spill] sm:$0xff]  ;;  %v17924_v37 = vld [vmem:[#allocation39_spill] sm:$0xff] }
  0xf7   : > { %v777_v5 = vpop.f32.mrf.mxu0 }
  0xf8   : > { %v1061_v40 = vpop.f32.mrf.mxu1 }
  0xf9   : > { %v13798_v18 = vadd.f32 %v1061_v40, %v777_v5  ;;  %v11670_v1 = vpop.f32.mrf.mxu0  ;;  %11869 = vmatmul.mubr.msk.bf16.gmra.mxu0 %vm435_vm1, %v2036_v56  ;;  %v17920_v5 = vld [vmem:[#allocation31_spill] sm:$0xff] }
  0xfa   : > { %v11720_v24 = vpop.f32.mrf.mxu1  ;;  %11919 = vmatmul.mubr.msk.bf16.gmra.mxu1 %vm435_vm1, %v17914_v33  ;;  %11872 = vmatprep.mubr.msk.bf16.mxu0 %vm435_vm1, %v2037_v39  ;;  %v17919_v39 = vld [vmem:[#allocation27_spill] sm:$0xff] }
  0xfb   : > { %v789_v46 = vpop.f32.mrf.mxu0  ;;  %11922 = vmatprep.mubr.msk.bf16.mxu1 %vm435_vm1, %v2426_v28  ;;  %v2040_v40 = vpack.c.bf16 %v17920_v5, %v17919_v39 }
  0xfc   : > { %v1073_v45 = vpop.f32.mrf.mxu1 }
  0xfd   : > { %v13810_v48 = vadd.f32 %v1073_v45, %v789_v46  ;;  %v11671_v42 = vpop.f32.mrf.mxu0  ;;  %v2430_v45 = vpack.c.bf16 %v13601_v62, %v13595_v13  ;;  %v10796_v13 = vunpack.c.h.bf16 %v13608_v21  ;;  %v10934_v62 = vld [vmem:[%s12969_s18 + $0xd0] sm:$0xff]   ;;  %s12869_s18 = smov 4  }
  0xfe   : > { %v11721_v58 = vpop.f32.mrf.mxu1  ;;  %v10800_v5 = vunpack.c.h.bf16 %v10934_v62 }
  0xff   : > { %v13816_v54 = vadd.f32 %v11721_v58, %v11671_v42  ;;  %v792_v7 = vpop.f32.mrf.mxu0  ;;  %487 = vst.msk [vmem:[#allocation2 + $0x198] sm:$0xff] %vm435_vm1, %v10796_v13 }
 0x100   : > { %v1076_v14 = vpop.f32.mrf.mxu1  ;;  %489 = vst.msk [vmem:[#allocation2 + $0x1a8] sm:$0xff] %vm435_vm1, %v10800_v5  ;;  %v2436_v5 = vpack.c.bf16 %v13676_v4, %v13670_v57  ;;  %v2437_v4 = vpack.c.bf16 %v13690_v10, %v13678_v22  ;;  %v13920_v22 = vld [vmem:[#allocation2 + $0x179] sm:$0xff]  ;;  %v13922_v10 = vld [vmem:[#allocation2 + $0x181] sm:$0xff] }
 0x101   : > { %v13820_v2 = vadd.f32 %v1076_v14, %v792_v7  ;;  %v11674_v28 = vpop.f32.mrf.mxu0  ;;  %11873 = vmatmul.mubr.msk.bf16.gmra.mxu0 %vm435_vm1, %v2038_v59  ;;  %v17925_v14 = vld [vmem:[#allocation40_spill] sm:$0xff] }
 0x102   : > { %v11724_v56 = vpop.f32.mrf.mxu1  ;;  %11923 = vmatmul.mubr.msk.bf16.gmra.mxu1 %vm435_vm1, %v2427_v52  ;;  %11876 = vmatprep.mubr.msk.bf16.mxu0 %vm435_vm1, %v2039_v0  ;;  %v17922_v52 = vld [vmem:[#allocation33_spill] sm:$0xff]  ;;  %v2042_v0 = vpack.c.bf16 %v17924_v37, %v17923_v60 }
 0x103   : > { %v13828_v35 = vadd.f32 %v11724_v56, %v11674_v28  ;;  %v804_v43 = vpop.f32.mrf.mxu0  ;;  %11926 = vmatprep.mubr.msk.bf16.mxu1 %vm435_vm1, %v2428_v15  ;;  %v2041_v24 = vpack.c.bf16 %v17922_v52, %v17921_v27  ;;  %v2431_v15 = vpack.c.bf16 %v13620_v25, %v13603_v29  ;;  %v17926_v28 = vld [vmem:[#allocation41_spill] sm:$0xff]  ;;  %v17928_v27 = vld [vmem:[#allocation43_spill] sm:$0xff] }
 0x104   : > { %v1088_v61 = vpop.f32.mrf.mxu1  ;;  %v2043_v56 = vpack.c.bf16 %v17926_v28, %v17925_v14  ;;  %v2435_v28 = vpack.c.bf16 %v13668_v26, %v13652_v55 }
 0x105   : > { %v13831_v6 = vadd.f32 %v1088_v61, %v804_v43  ;;  %v11675_v50 = vpop.f32.mrf.mxu0  ;;  %v10799_v43 = vunpack.c.l.bf16 %v10934_v62 }
 0x106   : > { %v11725_v1 = vpop.f32.mrf.mxu1 }
 0x107   : > { %v13839_v33 = vadd.f32 %v11725_v1, %v11675_v50  ;;  %v807_v46 = vpop.f32.mrf.mxu0  ;;  %v2432_v50 = vpack.c.bf16 %v13628_v3, %v13622_v41  ;;  %488 = vst.msk [vmem:[#allocation2 + $0x1a0] sm:$0xff] %vm435_vm1, %v10799_v43  ;;  %v17934_v43 = vld [vmem:[#allocation49_spill] sm:$0xff] }
 0x108   : > { %v1091_v42 = vpop.f32.mrf.mxu1  ;;  %v2433_v46 = vpack.c.bf16 %v13642_v36, %v13630_v9 }
 0x109   : > { %v11678_v11 = vpop.f32.mrf.mxu0  ;;  %11877 = vmatmul.mubr.msk.bf16.gmra.mxu0 %vm435_vm1, %v2040_v40  ;;  %v17930_v42 = vld [vmem:[#allocation45_spill] sm:$0xff] }
 0x10a   : > { %v11728_v47 = vpop.f32.mrf.mxu1  ;;  %11927 = vmatmul.mubr.msk.bf16.gmra.mxu1 %vm435_vm1, %v2429_v23  ;;  %11880 = vmatprep.mubr.msk.bf16.mxu0 %vm435_vm1, %v2041_v24  ;;  %v17927_v23 = vld [vmem:[#allocation42_spill] sm:$0xff] }
 0x10b   : > { %v13846_v34 = vadd.f32 %v11728_v47, %v11678_v11  ;;  %v819_v12 = vpop.f32.mrf.mxu0  ;;  %11930 = vmatprep.mubr.msk.bf16.mxu1 %vm435_vm1, %v2430_v45  ;;  %v2044_v52 = vpack.c.bf16 %v17928_v27, %v17927_v23  ;;  %v17929_v45 = vld [vmem:[#allocation44_spill] sm:$0xff]  ;;  %v17935_v23 = vld [vmem:[#allocation50_spill] sm:$0xff]  ;;  %v17936_v27 = vld [vmem:[#allocation51_spill] sm:$0xff] }
 0x10c   : > { %v1103_v59 = vpop.f32.mrf.mxu1  ;;  %v2045_v11 = vpack.c.bf16 %v17930_v42, %v17929_v45 }
 0x10d   : > { %v11679_v58 = vpop.f32.mrf.mxu0  ;;  %v2434_v59 = vpack.c.bf16 %v13650_v49, %v13644_v17  ;;  %v17931_v49 = vld [vmem:[#allocation46_spill] sm:$0xff] }
 0x10e   : > { %v11729_v7 = vpop.f32.mrf.mxu1 }
 0x10f   : > { %v821_v61 = vpop.f32.mrf.mxu0  ;;  %v17932_v7 = vld [vmem:[#allocation47_spill] sm:$0xff] }
 0x110   : > { %v1105_v39 = vpop.f32.mrf.mxu1 }
 0x111   : > { %v13861_v21 = vadd.f32 %v1105_v39, %v821_v61  ;;  %v11682_v40 = vpop.f32.mrf.mxu0  ;;  %11881 = vmatmul.mubr.msk.bf16.gmra.mxu0 %vm435_vm1, %v2042_v0 }
 0x112   : > { %v11732_v29 = vpop.f32.mrf.mxu1  ;;  %11931 = vmatmul.mubr.msk.bf16.gmra.mxu1 %vm435_vm1, %v2431_v15  ;;  %11884 = vmatprep.mubr.msk.bf16.mxu0 %vm435_vm1, %v2043_v56  ;;  %v2046_v15 = vpack.c.bf16 %v17932_v7, %v17931_v49  ;;  %v17933_v56 = vld [vmem:[#allocation48_spill] sm:$0xff]  ;;  %v17939_v49 = vld [vmem:[#allocation54_spill] sm:$0xff]  ;;  %v17940_v7 = vld [vmem:[#allocation55_spill] sm:$0xff] }
 0x113   : > { %v833_v25 = vpop.f32.mrf.mxu0  ;;  %11934 = vmatprep.mubr.msk.bf16.mxu1 %vm435_vm1, %v2432_v50  ;;  %v2047_v61 = vpack.c.bf16 %v17934_v43, %v17933_v56  ;;  %v2051_v56 = vpack.c.bf16 %v13922_v10, %v13920_v22 }
 0x114   : > { %v1117_v41 = vpop.f32.mrf.mxu1 }
 0x115   : > { %v13868_v3 = vadd.f32 %v1117_v41, %v833_v25  ;;  %v11683_v1 = vpop.f32.mrf.mxu0 }
 0x116   : > { %v11733_v24 = vpop.f32.mrf.mxu1 }
 0x117   : > { %v13876_v47 = vadd.f32 %v11733_v24, %v11683_v1  ;;  %v836_v12 = vpop.f32.mrf.mxu0  ;;  %v17937_v24 = vld [vmem:[#allocation52_spill] sm:$0xff] }
 0x118   : > { %v1120_v58 = vpop.f32.mrf.mxu1 }
 0x119   : > { %v13880_v60 = vadd.f32 %v1120_v58, %v836_v12  ;;  %v11686_v37 = vpop.f32.mrf.mxu0  ;;  %11885 = vmatmul.mubr.msk.bf16.gmra.mxu0 %vm435_vm1, %v2044_v52  ;;  %v2048_v52 = vpack.c.bf16 %v17936_v27, %v17935_v23  ;;  %v2761_v23 = vld [vmem:[#allocation2 + $0x38] sm:$0xff] }
 0x11a   : > { %v11736_v0 = vpop.f32.mrf.mxu1  ;;  %11935 = vmatmul.mubr.msk.bf16.gmra.mxu1 %vm435_vm1, %v2433_v46  ;;  %11888 = vmatprep.mubr.msk.bf16.mxu0 %vm435_vm1, %v2045_v11  ;;  %v17938_v46 = vld [vmem:[#allocation53_spill] sm:$0xff]  ;;  %v2438_v11 = vpack.c.bf16 %v13698_v44, %v13692_v20  ;;  %v2415_v20 = vld [vmem:[#allocation2 + $0x17a] sm:$0xff]  ;;  %v2416_v44 = vld [vmem:[#allocation2 + $0x182] sm:$0xff] }
 0x11b   : > { %v13885_v9 = vadd.f32 %v11736_v0, %v11686_v37  ;;  %v848_v36 = vpop.f32.mrf.mxu0  ;;  %11938 = vmatprep.mubr.msk.bf16.mxu1 %vm435_vm1, %v2434_v59  ;;  %v2049_v45 = vpack.c.bf16 %v17938_v46, %v17937_v24 }
 0x11c   : > { %v1132_v13 = vpop.f32.mrf.mxu1 }
 0x11d   : > { %v13888_v62 = vadd.f32 %v1132_v13, %v848_v36  ;;  %v11687_v17 = vpop.f32.mrf.mxu0 }
 0x11e   : > { %v11737_v14 = vpop.f32.mrf.mxu1 }
 0x11f   : > { %v13896_v50 = vadd.f32 %v11737_v14, %v11687_v17  ;;  %v851_v39 = vpop.f32.mrf.mxu0 }
 0x120   : > { %v1135_v40 = vpop.f32.mrf.mxu1  ;;  %v2440_v39 = vpack.c.bf16 %v2416_v44, %v2415_v20  ;;  %v2762_v44 = vld [vmem:[#allocation2 + $0x40] sm:$0xff] }
 0x121   : > { %v11690_v29 = vpop.f32.mrf.mxu0  ;;  %11889 = vmatmul.mubr.msk.bf16.gmra.mxu0 %vm435_vm1, %v2046_v15  ;;  %v2050_v15 = vpack.c.bf16 %v17940_v7, %v17939_v49  ;;  %v3151_v49 = vld [vmem:[#allocation2 + $0x41] sm:$0xff] }
 0x122   : > { %v11740_v25 = vpop.f32.mrf.mxu1  ;;  %11939 = vmatmul.mubr.msk.bf16.gmra.mxu1 %vm435_vm1, %v2435_v28  ;;  %11892 = vmatprep.mubr.msk.bf16.mxu0 %vm435_vm1, %v2047_v61  ;;  %v2439_v28 = vpack.c.bf16 %v13712_v53, %v13700_v30 }
 0x123   : > { %v13903_v41 = vadd.f32 %v11740_v25, %v11690_v29  ;;  %v863_v55 = vpop.f32.mrf.mxu0  ;;  %11942 = vmatprep.mubr.msk.bf16.mxu1 %vm435_vm1, %v2436_v5 }
 0x124   : > { %v1147_v26 = vpop.f32.mrf.mxu1  ;;  %v13939_v55 = vld [vmem:[#allocation2 + $0x189] sm:$0xff] }
 0x125   : > { %v11691_v1 = vpop.f32.mrf.mxu0  ;;  %v2417_v26 = vld [vmem:[#allocation2 + $0x18a] sm:$0xff]  ;;  %v2052_v46 = vpack.c.bf16 %v13939_v55, %v13939_v55 }
 0x126   : > { %v11741_v57 = vpop.f32.mrf.mxu1  ;;  %v2760_v1 = vld [vmem:[#allocation2 + $0x30] sm:$0xff] }
 0x127   : > { %v865_v42 = vpop.f32.mrf.mxu0  ;;  %v3150_v57 = vld [vmem:[#allocation2 + $0x39] sm:$0xff] }
 0x128   : > { %v1149_v12 = vpop.f32.mrf.mxu1 }
 0x129   : > { %v13914_v59 = vadd.f32 %v1149_v12, %v865_v42  ;;  %v11694_v58 = vpop.f32.mrf.mxu0  ;;  %11893 = vmatmul.mubr.msk.bf16.gmra.mxu0 %vm435_vm1, %v2048_v52  ;;  %v3149_v52 = vld [vmem:[#allocation2 + $0x31] sm:$0xff]  ;;  %v2441_v42 = vpack.c.bf16 %v2417_v26, %v2417_v26 }
 0x12a   : > { %v11744_v37 = vpop.f32.mrf.mxu1  ;;  %11943 = vmatmul.mubr.msk.bf16.gmra.mxu1 %vm435_vm1, %v2437_v4  ;;  %11896 = vmatprep.mubr.msk.bf16.mxu0 %vm435_vm1, %v2049_v45 }
 0x12b   : > { %v877_v0 = vpop.f32.mrf.mxu0  ;;  %11946 = vmatprep.mubr.msk.bf16.mxu1 %vm435_vm1, %v2438_v11  ;;  %v2807_v11 = vpack.c.bf16 %v2761_v23, %v2760_v1  ;;  %v3196_v37 = vpack.c.bf16 %v3150_v57, %v3149_v52  ;;  %v3684_v57 = vsel %vm707_vm0, %v13739_v51, 0 }
 0x12c   : > { %v1161_v36 = vpop.f32.mrf.mxu1 }
 0x12d   : > { %v13924_v13 = vadd.f32 %v1161_v36, %v877_v0  ;;  %v11695_v17 = vpop.f32.mrf.mxu0 }
 0x12e   : > { %v11745_v14 = vpop.f32.mrf.mxu1 }
 0x12f   : > { %v13932_v43 = vadd.f32 %v11745_v14, %v11695_v17  ;;  %v880_v61 = vpop.f32.mrf.mxu0  ;;  %v2763_v17 = vld [vmem:[#allocation2 + $0x48] sm:$0xff] }
 0x130   : > { %v1164_v5 = vpop.f32.mrf.mxu1  ;;  %v3152_v14 = vld [vmem:[#allocation2 + $0x49] sm:$0xff] }
 0x131   : > { %v13934_v40 = vadd.f32 %v1164_v5, %v880_v61  ;;  %v11698_v29 = vpop.f32.mrf.mxu0  ;;  %11897 = vmatmul.mubr.msk.bf16.gmra.mxu0 %vm435_vm1, %v2050_v15  ;;  %v3154_v5 = vld [vmem:[#allocation2 + $0x59] sm:$0xff]  ;;  %v3197_v26 = vpack.c.bf16 %v3152_v14, %v3151_v49 }
 0x132   : > { %v11748_v25 = vpop.f32.mrf.mxu1  ;;  %11947 = vmatmul.mubr.msk.bf16.gmra.mxu1 %vm435_vm1, %v2439_v28  ;;  %11900 = vmatprep.mubr.msk.bf16.mxu0 %vm435_vm1, %v2051_v56  ;;  %v2764_v28 = vld [vmem:[#allocation2 + $0x50] sm:$0xff]  ;;  %v2765_v56 = vld [vmem:[#allocation2 + $0x58] sm:$0xff] }
 0x133   : > { %v13941_v30 = vadd.f32 %v11748_v25, %v11698_v29  ;;  %v892_v53 = vpop.f32.mrf.mxu0  ;;  %11950 = vmatprep.mubr.msk.bf16.mxu1 %vm435_vm1, %v2440_v39  ;;  %v3153_v39 = vld [vmem:[#allocation2 + $0x51] sm:$0xff]  ;;  %v2808_v25 = vpack.c.bf16 %v2763_v17, %v2762_v44  ;;  %v2809_v1 = vpack.c.bf16 %v2765_v56, %v2764_v28  ;;  %v3158_v49 = vld [vmem:[#allocation2 + $0x79] sm:$0xff] }
 0x134   : > { %v1176_v27 = vpop.f32.mrf.mxu1  ;;  %v3157_v17 = vld [vmem:[#allocation2 + $0x71] sm:$0xff] }
 0x135   : > { %v13944_v4 = vadd.f32 %v1176_v27, %v892_v53  ;;  %v11699_v24 = vpop.f32.mrf.mxu0  ;;  %v3198_v27 = vpack.c.bf16 %v3154_v5, %v3153_v39 }
 0x136   : > { %v11749_v45 = vpop.f32.mrf.mxu1 }
 0x137   : > { %v13948_v12 = vadd.f32 %v11749_v45, %v11699_v24  ;;  %v895_v58 = vpop.f32.mrf.mxu0 }
 0x138   : > { %v1179_v0 = vpop.f32.mrf.mxu1  ;;  %v3155_v58 = vld [vmem:[#allocation2 + $0x61] sm:$0xff] }
 0x139   : > { %v11702_v36 = vpop.f32.mrf.mxu0  ;;  %11901 = vmatmul.mubr.msk.bf16.gmra.mxu0 %vm435_vm1, %v2052_v46  ;;  %v3156_v0 = vld [vmem:[#allocation2 + $0x69] sm:$0xff] }
 0x13a   : > { %v11752_v20 = vpop.f32.mrf.mxu1  ;;  %11951 = vmatmul.mubr.msk.bf16.gmra.mxu1 %vm435_vm1, %v2441_v42  ;;  %11956 = vmatprep.mubr.msk.bf16.mxu0 %vm435_vm1, %v2807_v11  ;;  %v2766_v42 = vld [vmem:[#allocation2 + $0x60] sm:$0xff]  ;;  %v2767_v11 = vld [vmem:[#allocation2 + $0x68] sm:$0xff]  ;;  %v3199_v39 = vpack.c.bf16 %v3156_v0, %v3155_v58  ;;  %v3161_v0 = vld [vmem:[#allocation2 + $0x91] sm:$0xff] }
 0x13b   : > { %v13953_v7 = vadd.f32 %v11752_v20, %v11702_v36  ;;  %v907_v15 = vpop.f32.mrf.mxu0  ;;  %12006 = vmatprep.mubr.msk.bf16.mxu1 %vm435_vm1, %v3196_v37  ;;  %v2768_v36 = vld [vmem:[#allocation2 + $0x70] sm:$0xff]  ;;  %v2769_v20 = vld [vmem:[#allocation2 + $0x78] sm:$0xff]  ;;  %v2810_v14 = vpack.c.bf16 %v2767_v11, %v2766_v42 }
 0x13c   : > { %v1191_v61 = vpop.f32.mrf.mxu1  ;;  %v2811_v5 = vpack.c.bf16 %v2769_v20, %v2768_v36  ;;  %v2772_v42 = vld [vmem:[#allocation2 + $0x90] sm:$0xff]  ;;  %v2773_v11 = vld [vmem:[#allocation2 + $0x98] sm:$0xff] }
 0x13d   : > { %v11703_v29 = vpop.f32.mrf.mxu0  ;;  %v3162_v36 = vld [vmem:[#allocation2 + $0x99] sm:$0xff] }
 0x13e   : > { %v11753_v53 = vpop.f32.mrf.mxu1 }
 0x13f   : > { %v909_v23 = vpop.f32.mrf.mxu0 }
 0x140   : > { %v1193_v52 = vpop.f32.mrf.mxu1 }
 0x141   : > { %v13958_v24 = vadd.f32 %v1193_v52, %v909_v23  ;;  %v11758_v46 = vpop.f32.mrf.mxu0  ;;  %11957 = vmatmul.mubr.msk.bf16.vlgmr.msra.gmra.mxu0 %vm435_vm1, %v2808_v25  ;;  %v3200_v25 = vpack.c.bf16 %v3158_v49, %v3157_v17  ;;  %v2770_v52 = vld [vmem:[#allocation2 + $0x80] sm:$0xff] }
 0x142   : > { %v11808_v45 = vpop.f32.mrf.mxu1  ;;  %12007 = vmatmul.mubr.msk.bf16.vlgmr.msra.gmra.mxu1 %vm435_vm1, %v3197_v26  ;;  %11960 = vmatprep.mubr.msk.bf16.mxu0 %vm435_vm1, %v2809_v1  ;;  %v3159_v46 = vld [vmem:[#allocation2 + $0x81] sm:$0xff] }
 0x143   : > { %v1386_v37 = vpop.f32.mrf.mxu0  ;;  %12010 = vmatprep.mubr.msk.bf16.mxu1 %vm435_vm1, %v3198_v27  ;;  %12055 = vmatpush3.bf16.msra.mxu0 %v3684_v57  ;;  %v2771_v57 = vld [vmem:[#allocation2 + $0x88] sm:$0xff] }
 0x144   : > { %v1561_v51 = vadd.f32 %v1386_v37, %v13752_v38  ;;  %v1775_v44 = vpop.f32.mrf.mxu1 }
 0x145   : > { %v11759_v15 = vpop.f32.mrf.mxu0 }
 0x146   : > { %v1563_v28 = vadd.f32 %v11759_v15, %v13758_v19  ;;  %v13966_v56 = vadd.f32 %v1775_v44, %v1561_v51  ;;  %v11809_v61 = vpop.f32.mrf.mxu1  ;;  %v2812_v51 = vpack.c.bf16 %v2771_v57, %v2770_v52  ;;  %v2777_v52 = vld [vmem:[#allocation2 + $0xb8] sm:$0xff] }
 0x147   : > { %v1389_v29 = vpop.f32.mrf.mxu0 }
 0x148   : > { %v1562_v53 = vadd.f32 %v1389_v29, %v13760_v32  ;;  %v13969_v26 = vadd.f32 %v11809_v61, %v1563_v28  ;;  %v1778_v1 = vpop.f32.mrf.mxu1  ;;  %v3160_v32 = vld [vmem:[#allocation2 + $0x89] sm:$0xff]  ;;  %v3202_v61 = vpack.c.bf16 %v3162_v36, %v3161_v0 }
 0x149   : > { %v11762_v38 = vpop.f32.mrf.mxu0  ;;  %11961 = vmatmul.mubr.msk.bf16.gmra.mxu0 %vm435_vm1, %v2810_v14  ;;  %v3201_v15 = vpack.c.bf16 %v3160_v32, %v3159_v46  ;;  %v2813_v14 = vpack.c.bf16 %v2773_v11, %v2772_v42  ;;  %v3166_v32 = vld [vmem:[#allocation2 + $0xb9] sm:$0xff] }
 0x14a   : > { %v1565_v23 = vadd.f32 %v11762_v38, %v13768_v16  ;;  %v13973_v27 = vadd.f32 %v1778_v1, %v1562_v53  ;;  %v11812_v19 = vpop.f32.mrf.mxu1  ;;  %12011 = vmatmul.mubr.msk.bf16.gmra.mxu1 %vm435_vm1, %v3199_v39  ;;  %11964 = vmatprep.mubr.msk.bf16.mxu0 %vm435_vm1, %v2811_v5  ;;  %v2775_v53 = vld [vmem:[#allocation2 + $0xa8] sm:$0xff] }
 0x14b   : > { %v1401_v45 = vpop.f32.mrf.mxu0  ;;  %12014 = vmatprep.mubr.msk.bf16.mxu1 %vm435_vm1, %v3200_v25  ;;  %v3163_v1 = vld [vmem:[#allocation2 + $0xa1] sm:$0xff] }
 0x14c   : > { %v1564_v58 = vadd.f32 %v1401_v45, %v13774_v8  ;;  %v13979_v37 = vadd.f32 %v11812_v19, %v1565_v23  ;;  %v1790_v16 = vpop.f32.mrf.mxu1  ;;  %v3164_v23 = vld [vmem:[#allocation2 + $0xa9] sm:$0xff]  ;;  %v3165_v45 = vld [vmem:[#allocation2 + $0xb1] sm:$0xff] }
 0x14d   : > { %v11763_v20 = vpop.f32.mrf.mxu0  ;;  %v2776_v19 = vld [vmem:[#allocation2 + $0xb0] sm:$0xff]  ;;  %v3204_v36 = vpack.c.bf16 %v3166_v32, %v3165_v45 }
 0x14e   : > { %v1566_v44 = vadd.f32 %v11763_v20, %v13780_v31  ;;  %v13982_v17 = vadd.f32 %v1790_v16, %v1564_v58  ;;  %v11813_v49 = vpop.f32.mrf.mxu1  ;;  %v2774_v31 = vld [vmem:[#allocation2 + $0xa0] sm:$0xff]  ;;  %v3203_v58 = vpack.c.bf16 %v3164_v23, %v3163_v1  ;;  %v2815_v16 = vpack.c.bf16 %v2777_v52, %v2776_v19 }
 0x14f   : > { %v1404_v28 = vpop.f32.mrf.mxu0  ;;  %v2814_v42 = vpack.c.bf16 %v2775_v53, %v2774_v31  ;;  %v3169_v53 = vld [vmem:[#allocation2 + $0xd1] sm:$0xff]  ;;  %v3170_v1 = vld [vmem:[#allocation2 + $0xd9] sm:$0xff] }
 0x150   : > { %v13984_v39 = vadd.f32 %v11813_v49, %v1566_v44  ;;  %v1793_v5 = vpop.f32.mrf.mxu1  ;;  %v2779_v28 = vld [vmem:[#allocation2 + $0xc8] sm:$0xff] }
 0x151   : > { %v11766_v8 = vpop.f32.mrf.mxu0  ;;  %11965 = vmatmul.mubr.msk.bf16.gmra.mxu0 %vm435_vm1, %v2812_v51 }
 0x152   : > { %v1568_v29 = vadd.f32 %v11766_v8, %v13788_v63  ;;  %v11816_v25 = vpop.f32.mrf.mxu1  ;;  %12015 = vmatmul.mubr.msk.bf16.gmra.mxu1 %vm435_vm1, %v3201_v15  ;;  %11968 = vmatprep.mubr.msk.bf16.mxu0 %vm435_vm1, %v2813_v14  ;;  %v2778_v14 = vld [vmem:[#allocation2 + $0xc0] sm:$0xff]  ;;  %v3168_v8 = vld [vmem:[#allocation2 + $0xc9] sm:$0xff] }
 0x153   : > { %v1416_v38 = vpop.f32.mrf.mxu0  ;;  %12018 = vmatprep.mubr.msk.bf16.mxu1 %vm435_vm1, %v3202_v61  ;;  %v3167_v61 = vld [vmem:[#allocation2 + $0xc1] sm:$0xff]  ;;  %v2816_v23 = vpack.c.bf16 %v2779_v28, %v2778_v14  ;;  %v2784_v14 = vld [vmem:[#allocation2 + $0xf0] sm:$0xff]  ;;  %v2785_v28 = vld [vmem:[#allocation2 + $0xf8] sm:$0xff] }
 0x154   : > { %v13991_v57 = vadd.f32 %v11816_v25, %v1568_v29  ;;  %v1805_v46 = vpop.f32.mrf.mxu1  ;;  %v2780_v29 = vld [vmem:[#allocation2 + $0xd0] sm:$0xff]  ;;  %v3205_v45 = vpack.c.bf16 %v3168_v8, %v3167_v61 }
 0x155   : > { %v11767_v63 = vpop.f32.mrf.mxu0  ;;  %v3173_v8 = vld [vmem:[#allocation2 + $0xf1] sm:$0xff] }
 0x156   : > { %v11817_v11 = vpop.f32.mrf.mxu1 }
 0x157   : > { %v1418_v0 = vpop.f32.mrf.mxu0 }
 0x158   : > { %v1567_v20 = vadd.f32 %v1418_v0, %v13798_v18  ;;  %v1807_v51 = vpop.f32.mrf.mxu1  ;;  %v2781_v18 = vld [vmem:[#allocation2 + $0xd8] sm:$0xff] }
 0x159   : > { %v11770_v44 = vpop.f32.mrf.mxu0  ;;  %11969 = vmatmul.mubr.msk.bf16.gmra.mxu0 %vm435_vm1, %v2814_v42  ;;  %v2817_v32 = vpack.c.bf16 %v2781_v18, %v2780_v29  ;;  %v3206_v42 = vpack.c.bf16 %v3170_v1, %v3169_v53  ;;  %v3174_v29 = vld [vmem:[#allocation2 + $0xf9] sm:$0xff] }
 0x15a   : > { %v13995_v49 = vadd.f32 %v1807_v51, %v1567_v20  ;;  %v11820_v15 = vpop.f32.mrf.mxu1  ;;  %12019 = vmatmul.mubr.msk.bf16.gmra.mxu1 %vm435_vm1, %v3203_v58  ;;  %11972 = vmatprep.mubr.msk.bf16.mxu0 %vm435_vm1, %v2815_v16  ;;  %v2782_v20 = vld [vmem:[#allocation2 + $0xe0] sm:$0xff]  ;;  %v2783_v51 = vld [vmem:[#allocation2 + $0xe8] sm:$0xff] }
 0x15b   : > { %v1430_v5 = vpop.f32.mrf.mxu0  ;;  %12022 = vmatprep.mubr.msk.bf16.mxu1 %vm435_vm1, %v3204_v36  ;;  %v3171_v44 = vld [vmem:[#allocation2 + $0xe1] sm:$0xff] }
 0x15c   : > { %v1569_v25 = vadd.f32 %v1430_v5, %v13810_v48  ;;  %v1819_v31 = vpop.f32.mrf.mxu1 }
 0x15d   : > { %v11771_v38 = vpop.f32.mrf.mxu0 }
 0x15e   : > { %v1571_v19 = vadd.f32 %v11771_v38, %v13816_v54  ;;  %v14002_v52 = vadd.f32 %v1819_v31, %v1569_v25  ;;  %v11821_v46 = vpop.f32.mrf.mxu1  ;;  %v2818_v25 = vpack.c.bf16 %v2783_v51, %v2782_v20  ;;  %v2789_v20 = vld [vmem:[#allocation2 + $0x118] sm:$0xff] }
 0x15f   : > { %v1433_v63 = vpop.f32.mrf.mxu0 }
 0x160   : > { %v1570_v11 = vadd.f32 %v1433_v63, %v13820_v2  ;;  %v14005_v58 = vadd.f32 %v11821_v46, %v1571_v19  ;;  %v1822_v16 = vpop.f32.mrf.mxu1  ;;  %v3172_v2 = vld [vmem:[#allocation2 + $0xe9] sm:$0xff]  ;;  %v3208_v46 = vpack.c.bf16 %v3174_v29, %v3173_v8 }
 0x161   : > { %v11774_v48 = vpop.f32.mrf.mxu0  ;;  %11973 = vmatmul.mubr.msk.bf16.gmra.mxu0 %vm435_vm1, %v2816_v23  ;;  %v3207_v38 = vpack.c.bf16 %v3172_v2, %v3171_v44  ;;  %v2819_v23 = vpack.c.bf16 %v2785_v28, %v2784_v14  ;;  %v3178_v2 = vld [vmem:[#allocation2 + $0x119] sm:$0xff] }
 0x162   : > { %v1573_v0 = vadd.f32 %v11774_v48, %v13828_v35  ;;  %v14009_v36 = vadd.f32 %v1822_v16, %v1570_v11  ;;  %v11824_v54 = vpop.f32.mrf.mxu1  ;;  %12023 = vmatmul.mubr.msk.bf16.gmra.mxu1 %vm435_vm1, %v3205_v45  ;;  %11976 = vmatprep.mubr.msk.bf16.mxu0 %vm435_vm1, %v2817_v32  ;;  %v2787_v11 = vld [vmem:[#allocation2 + $0x108] sm:$0xff] }
 0x163   : > { %v1445_v15 = vpop.f32.mrf.mxu0  ;;  %12026 = vmatprep.mubr.msk.bf16.mxu1 %vm435_vm1, %v3206_v42  ;;  %v3175_v16 = vld [vmem:[#allocation2 + $0x101] sm:$0xff] }
 0x164   : > { %v1572_v61 = vadd.f32 %v1445_v15, %v13831_v6  ;;  %v14015_v5 = vadd.f32 %v11824_v54, %v1573_v0  ;;  %v1834_v35 = vpop.f32.mrf.mxu1  ;;  %v3176_v0 = vld [vmem:[#allocation2 + $0x109] sm:$0xff]  ;;  %v3177_v15 = vld [vmem:[#allocation2 + $0x111] sm:$0xff] }
 0x165   : > { %v11775_v18 = vpop.f32.mrf.mxu0  ;;  %v2788_v54 = vld [vmem:[#allocation2 + $0x110] sm:$0xff]  ;;  %v3210_v29 = vpack.c.bf16 %v3178_v2, %v3177_v15 }
 0x166   : > { %v1574_v31 = vadd.f32 %v11775_v18, %v13839_v33  ;;  %v14018_v53 = vadd.f32 %v1834_v35, %v1572_v61  ;;  %v11825_v1 = vpop.f32.mrf.mxu1  ;;  %v2786_v33 = vld [vmem:[#allocation2 + $0x100] sm:$0xff]  ;;  %v3209_v61 = vpack.c.bf16 %v3176_v0, %v3175_v16  ;;  %v2821_v35 = vpack.c.bf16 %v2789_v20, %v2788_v54 }
 0x167   : > { %v1448_v19 = vpop.f32.mrf.mxu0  ;;  %v2820_v14 = vpack.c.bf16 %v2787_v11, %v2786_v33  ;;  %v3181_v11 = vld [vmem:[#allocation2 + $0x131] sm:$0xff]  ;;  %v3182_v16 = vld [vmem:[#allocation2 + $0x139] sm:$0xff] }
 0x168   : > { %v14020_v45 = vadd.f32 %v11825_v1, %v1574_v31  ;;  %v1837_v32 = vpop.f32.mrf.mxu1  ;;  %v2791_v19 = vld [vmem:[#allocation2 + $0x128] sm:$0xff] }
 0x169   : > { %v11778_v6 = vpop.f32.mrf.mxu0  ;;  %11977 = vmatmul.mubr.msk.bf16.gmra.mxu0 %vm435_vm1, %v2818_v25 }
 0x16a   : > { %v1576_v63 = vadd.f32 %v11778_v6, %v13846_v34  ;;  %v11828_v42 = vpop.f32.mrf.mxu1  ;;  %12027 = vmatmul.mubr.msk.bf16.gmra.mxu1 %vm435_vm1, %v3207_v38  ;;  %11980 = vmatprep.mubr.msk.bf16.mxu0 %vm435_vm1, %v2819_v23  ;;  %v2790_v23 = vld [vmem:[#allocation2 + $0x120] sm:$0xff]  ;;  %v3180_v6 = vld [vmem:[#allocation2 + $0x129] sm:$0xff] }
 0x16b   : > { %v1460_v48 = vpop.f32.mrf.mxu0  ;;  %12030 = vmatprep.mubr.msk.bf16.mxu1 %vm435_vm1, %v3208_v46  ;;  %v3179_v46 = vld [vmem:[#allocation2 + $0x121] sm:$0xff]  ;;  %v2822_v0 = vpack.c.bf16 %v2791_v19, %v2790_v23  ;;  %v2796_v23 = vld [vmem:[#allocation2 + $0x150] sm:$0xff]  ;;  %v2797_v19 = vld [vmem:[#allocation2 + $0x158] sm:$0xff] }
 0x16c   : > { %v14027_v51 = vadd.f32 %v11828_v42, %v1576_v63  ;;  %v1849_v44 = vpop.f32.mrf.mxu1  ;;  %v2792_v63 = vld [vmem:[#allocation2 + $0x130] sm:$0xff]  ;;  %v3211_v15 = vpack.c.bf16 %v3180_v6, %v3179_v46 }
 0x16d   : > { %v11779_v34 = vpop.f32.mrf.mxu0  ;;  %v3185_v6 = vld [vmem:[#allocation2 + $0x151] sm:$0xff] }
 0x16e   : > { %v11829_v28 = vpop.f32.mrf.mxu1 }
 0x16f   : > { %v1462_v8 = vpop.f32.mrf.mxu0 }
 0x170   : > { %v1575_v18 = vadd.f32 %v1462_v8, %v13861_v21  ;;  %v1851_v25 = vpop.f32.mrf.mxu1  ;;  %v2793_v21 = vld [vmem:[#allocation2 + $0x138] sm:$0xff] }
 0x171   : > { %v11782_v31 = vpop.f32.mrf.mxu0  ;;  %11981 = vmatmul.mubr.msk.bf16.gmra.mxu0 %vm435_vm1, %v2820_v14  ;;  %v2823_v2 = vpack.c.bf16 %v2793_v21, %v2792_v63  ;;  %v3212_v14 = vpack.c.bf16 %v3182_v16, %v3181_v11  ;;  %v3186_v63 = vld [vmem:[#allocation2 + $0x159] sm:$0xff] }
 0x172   : > { %v14031_v1 = vadd.f32 %v1851_v25, %v1575_v18  ;;  %v11832_v38 = vpop.f32.mrf.mxu1  ;;  %12031 = vmatmul.mubr.msk.bf16.gmra.mxu1 %vm435_vm1, %v3209_v61  ;;  %11984 = vmatprep.mubr.msk.bf16.mxu0 %vm435_vm1, %v2821_v35  ;;  %v2794_v18 = vld [vmem:[#allocation2 + $0x140] sm:$0xff]  ;;  %v2795_v25 = vld [vmem:[#allocation2 + $0x148] sm:$0xff] }
 0x173   : > { %v1474_v32 = vpop.f32.mrf.mxu0  ;;  %12034 = vmatprep.mubr.msk.bf16.mxu1 %vm435_vm1, %v3210_v29  ;;  %v3183_v31 = vld [vmem:[#allocation2 + $0x141] sm:$0xff] }
 0x174   : > { %v1577_v42 = vadd.f32 %v1474_v32, %v13868_v3  ;;  %v1863_v33 = vpop.f32.mrf.mxu1 }
 0x175   : > { %v11783_v48 = vpop.f32.mrf.mxu0 }
 0x176   : > { %v1579_v54 = vadd.f32 %v11783_v48, %v13876_v47  ;;  %v14038_v20 = vadd.f32 %v1863_v33, %v1577_v42  ;;  %v11833_v44 = vpop.f32.mrf.mxu1  ;;  %v2824_v42 = vpack.c.bf16 %v2795_v25, %v2794_v18  ;;  %v2801_v18 = vld [vmem:[#allocation2 + $0x178] sm:$0xff] }
 0x177   : > { %v1477_v34 = vpop.f32.mrf.mxu0 }
 0x178   : > { %v1578_v28 = vadd.f32 %v1477_v34, %v13880_v60  ;;  %v14041_v61 = vadd.f32 %v11833_v44, %v1579_v54  ;;  %v1866_v35 = vpop.f32.mrf.mxu1  ;;  %v3184_v60 = vld [vmem:[#allocation2 + $0x149] sm:$0xff]  ;;  %v3214_v44 = vpack.c.bf16 %v3186_v63, %v3185_v6 }
 0x179   : > { %v11786_v3 = vpop.f32.mrf.mxu0  ;;  %11985 = vmatmul.mubr.msk.bf16.gmra.mxu0 %vm435_vm1, %v2822_v0  ;;  %v3213_v48 = vpack.c.bf16 %v3184_v60, %v3183_v31  ;;  %v2825_v0 = vpack.c.bf16 %v2797_v19, %v2796_v23 }
 0x17a   : > { %v1581_v8 = vadd.f32 %v11786_v3, %v13885_v9  ;;  %v14045_v29 = vadd.f32 %v1866_v35, %v1578_v28  ;;  %v11836_v47 = vpop.f32.mrf.mxu1  ;;  %12035 = vmatmul.mubr.msk.bf16.gmra.mxu1 %vm435_vm1, %v3211_v15  ;;  %11988 = vmatprep.mubr.msk.bf16.mxu0 %vm435_vm1, %v2823_v2  ;;  %v2799_v28 = vld [vmem:[#allocation2 + $0x168] sm:$0xff] }
 0x17b   : > { %v1489_v38 = vpop.f32.mrf.mxu0  ;;  %12038 = vmatprep.mubr.msk.bf16.mxu1 %vm435_vm1, %v3212_v14  ;;  %v3187_v35 = vld [vmem:[#allocation2 + $0x161] sm:$0xff] }
 0x17c   : > { %v1580_v46 = vadd.f32 %v1489_v38, %v13888_v62  ;;  %v14051_v32 = vadd.f32 %v11836_v47, %v1581_v8  ;;  %v1878_v9 = vpop.f32.mrf.mxu1  ;;  %v3188_v8 = vld [vmem:[#allocation2 + $0x169] sm:$0xff]  ;;  %v3189_v38 = vld [vmem:[#allocation2 + $0x171] sm:$0xff] }
 0x17d   : > { %v11787_v21 = vpop.f32.mrf.mxu0  ;;  %v2800_v47 = vld [vmem:[#allocation2 + $0x170] sm:$0xff]  ;;  %v3215_v19 = vpack.c.bf16 %v3188_v8, %v3187_v35  ;;  %v3216_v6 = vpack.c.bf16 %v13920_v22, %v3189_v38  ;;  %v2805_v22 = vld [vmem:[#allocation2 + $0x198] sm:$0xff] }
 0x17e   : > { %v1582_v33 = vadd.f32 %v11787_v21, %v13896_v50  ;;  %v14054_v11 = vadd.f32 %v1878_v9, %v1580_v46  ;;  %v11837_v16 = vpop.f32.mrf.mxu1  ;;  %v2798_v50 = vld [vmem:[#allocation2 + $0x160] sm:$0xff]  ;;  %v2827_v46 = vpack.c.bf16 %v2801_v18, %v2800_v47 }
 0x17f   : > { %v1492_v54 = vpop.f32.mrf.mxu0 }
 0x180   : > { %v14056_v15 = vadd.f32 %v11837_v16, %v1582_v33  ;;  %v1881_v2 = vpop.f32.mrf.mxu1  ;;  %v2802_v16 = vld [vmem:[#allocation2 + $0x180] sm:$0xff]  ;;  %v2804_v54 = vld [vmem:[#allocation2 + $0x190] sm:$0xff] }
 0x181   : > { %v11790_v62 = vpop.f32.mrf.mxu0  ;;  %11989 = vmatmul.mubr.msk.bf16.gmra.mxu0 %vm435_vm1, %v2824_v42  ;;  %v3193_v2 = vld [vmem:[#allocation2 + $0x191] sm:$0xff]  ;;  %v2829_v8 = vpack.c.bf16 %v2805_v22, %v2804_v54 }
 0x182   : > { %v1584_v34 = vadd.f32 %v11790_v62, %v13903_v41  ;;  %v11840_v14 = vpop.f32.mrf.mxu1  ;;  %12039 = vmatmul.mubr.msk.bf16.gmra.mxu1 %vm435_vm1, %v3213_v48  ;;  %11992 = vmatprep.mubr.msk.bf16.mxu0 %vm435_vm1, %v2825_v0  ;;  %v2826_v41 = vpack.c.bf16 %v2799_v28, %v2798_v50  ;;  %v2803_v48 = vld [vmem:[#allocation2 + $0x188] sm:$0xff]  ;;  %v3194_v62 = vld [vmem:[#allocation2 + $0x199] sm:$0xff] }
 0x183   : > { %v1504_v3 = vpop.f32.mrf.mxu0  ;;  %12042 = vmatprep.mubr.msk.bf16.mxu1 %vm435_vm1, %v3214_v44  ;;  %v3218_v18 = vpack.c.bf16 %v3194_v62, %v3193_v2 }
 0x184   : > { %v14063_v25 = vadd.f32 %v11840_v14, %v1584_v34  ;;  %v1893_v31 = vpop.f32.mrf.mxu1  ;;  %v2828_v14 = vpack.c.bf16 %v2803_v48, %v2802_v16  ;;  %v3217_v3 = vpack.c.bf16 %v13939_v55, %v13922_v10  ;;  %v2806_v10 = vld [vmem:[#allocation2 + $0x1a0] sm:$0xff] }
 0x185   : > { %v11791_v60 = vpop.f32.mrf.mxu0 }
 0x186   : > { %v11841_v23 = vpop.f32.mrf.mxu1 }
 0x187   : > { %v1506_v9 = vpop.f32.mrf.mxu0  ;;  %v3538_v23 = vld [vmem:[#allocation2 + $0x32] sm:$0xff] }
 0x188   : > { %v14067_v63 = vadd.f32 %v1506_v9, %v13914_v59  ;;  %v14069_v21 = vpop.f32.mrf.mxu1 }
 0x189   : > { %v11794_v42 = vpop.f32.mrf.mxu0  ;;  %11993 = vmatmul.mubr.msk.bf16.gmra.mxu0 %vm435_vm1, %v2826_v41 }
 0x18a   : > { %v11844_v33 = vpop.f32.mrf.mxu1  ;;  %12043 = vmatmul.mubr.msk.bf16.gmra.mxu1 %vm435_vm1, %v3215_v19  ;;  %11996 = vmatprep.mubr.msk.bf16.mxu0 %vm435_vm1, %v2827_v46  ;;  %v3539_v19 = vld [vmem:[#allocation2 + $0x3a] sm:$0xff] }
 0x18b   : > { %v1518_v0 = vpop.f32.mrf.mxu0  ;;  %12046 = vmatprep.mubr.msk.bf16.mxu1 %vm435_vm1, %v3216_v6  ;;  %v2830_v33 = vpack.c.bf16 %v2806_v10, %v2806_v10  ;;  %v3585_v54 = vpack.c.bf16 %v3539_v19, %v3538_v23  ;;  %v3544_v23 = vld [vmem:[#allocation2 + $0x62] sm:$0xff]  ;;  %v3545_v19 = vld [vmem:[#allocation2 + $0x6a] sm:$0xff] }
 0x18c   : > { %v1585_v59 = vadd.f32 %v1518_v0, %v13924_v13  ;;  %v1907_v44 = vpop.f32.mrf.mxu1 }
 0x18d   : > { %v11795_v34 = vpop.f32.mrf.mxu0 }
 0x18e   : > { %v1587_v50 = vadd.f32 %v11795_v34, %v13932_v43  ;;  %v14077_v28 = vadd.f32 %v1907_v44, %v1585_v59  ;;  %v11845_v35 = vpop.f32.mrf.mxu1  ;;  %v3541_v34 = vld [vmem:[#allocation2 + $0x4a] sm:$0xff] }
 0x18f   : > { %v1521_v47 = vpop.f32.mrf.mxu0 }
 0x190   : > { %v14082_v31 = vadd.f32 %v1521_v47, %v13934_v40  ;;  %v14084_v13 = vadd.f32 %v11845_v35, %v1587_v50  ;;  %v14086_v38 = vpop.f32.mrf.mxu1  ;;  %v3195_v40 = vld [vmem:[#allocation2 + $0x1a1] sm:$0xff]  ;;  %v3542_v50 = vld [vmem:[#allocation2 + $0x52] sm:$0xff] }
 0x191   : > { %17942 = vst [vmem:[#allocation30_spill] sm:$0xff] %v14086_v38  ;;  %v11798_v60 = vpop.f32.mrf.mxu0  ;;  %11997 = vmatmul.mubr.msk.bf16.gmra.mxu0 %vm435_vm1, %v2828_v14  ;;  %v3219_v0 = vpack.c.bf16 %v3195_v40, %v3195_v40  ;;  %v3543_v35 = vld [vmem:[#allocation2 + $0x5a] sm:$0xff] }
 0x192   : > { %17941 = vst [vmem:[#allocation28_spill] sm:$0xff] %v14082_v31  ;;  %v1589_v43 = vadd.f32 %v11798_v60, %v13941_v30  ;;  %v11848_v41 = vpop.f32.mrf.mxu1  ;;  %12047 = vmatmul.mubr.msk.bf16.gmra.mxu1 %vm435_vm1, %v3217_v3  ;;  %12000 = vmatprep.mubr.msk.bf16.mxu0 %vm435_vm1, %v2829_v8 }
 0x193   : > { %v1533_v55 = vpop.f32.mrf.mxu0  ;;  %12050 = vmatprep.mubr.msk.bf16.mxu1 %vm435_vm1, %v3218_v18 }
 0x194   : > { %v1588_v46 = vadd.f32 %v1533_v55, %v13944_v4  ;;  %v14094_v9 = vadd.f32 %v11848_v41, %v1589_v43  ;;  %v1922_v6 = vpop.f32.mrf.mxu1  ;;  %v3587_v43 = vpack.c.bf16 %v3543_v35, %v3542_v50  ;;  %v3549_v50 = vld [vmem:[#allocation2 + $0x8a] sm:$0xff] }
 0x195   : > { %v11799_v42 = vpop.f32.mrf.mxu0 }
 0x196   : > { %v1590_v30 = vadd.f32 %v11799_v42, %v13948_v12  ;;  %v14097_v16 = vadd.f32 %v1922_v6, %v1588_v46  ;;  %v11849_v48 = vpop.f32.mrf.mxu1  ;;  %v3540_v12 = vld [vmem:[#allocation2 + $0x42] sm:$0xff]  ;;  %v3546_v6 = vld [vmem:[#allocation2 + $0x72] sm:$0xff]  ;;  %v3547_v42 = vld [vmem:[#allocation2 + $0x7a] sm:$0xff] }
 0x197   : > { %v1536_v22 = vpop.f32.mrf.mxu0  ;;  %v3586_v18 = vpack.c.bf16 %v3541_v34, %v3540_v12 }
 0x198   : > { %v14099_v59 = vadd.f32 %v11849_v48, %v1590_v30  ;;  %v1925_v44 = vpop.f32.mrf.mxu1 }
 0x199   : > { %v11802_v2 = vpop.f32.mrf.mxu0  ;;  %12001 = vmatmul.mubr.msk.bf16.gmra.mxu0 %vm435_vm1, %v2830_v33  ;;  %v3589_v44 = vpack.c.bf16 %v3547_v42, %v3546_v6 }
 0x19a   : > { %v1592_v4 = vadd.f32 %v11802_v2, %v13953_v7  ;;  %v11852_v62 = vpop.f32.mrf.mxu1  ;;  %12051 = vmatmul.mubr.msk.bf16.gmra.mxu1 %vm435_vm1, %v3219_v0  ;;  %12056 = vmatprep.mubr.msk.bf16.mxu0 %vm435_vm1, %v3585_v54  ;;  %v3588_v0 = vpack.c.bf16 %v3545_v19, %v3544_v23 }
 0x19b   : > { %v1548_v14 = vpop.f32.mrf.mxu0 }
 0x19c   : > { %v14105_v3 = vadd.f32 %v11852_v62, %v1592_v4  ;;  %v1937_v8 = vpop.f32.mrf.mxu1 }
 0x19d   : > { %v11803_v47 = vpop.f32.mrf.mxu0  ;;  %v3550_v8 = vld [vmem:[#allocation2 + $0x92] sm:$0xff] }
 0x19e   : > { %v11853_v60 = vpop.f32.mrf.mxu1  ;;  %v3551_v47 = vld [vmem:[#allocation2 + $0x9a] sm:$0xff] }
 0x19f   : > { %v1550_v41 = vpop.f32.mrf.mxu0  ;;  %v3591_v23 = vpack.c.bf16 %v3551_v47, %v3550_v8  ;;  %v3556_v47 = vld [vmem:[#allocation2 + $0xc2] sm:$0xff] }
 0x1a0   : > { %v14108_v7 = vadd.f32 %v1550_v41, %v13958_v24  ;;  %v14110_v10 = vpop.f32.mrf.mxu1 }
 0x1a1   : > { %17944 = vst [vmem:[#allocation36_spill] sm:$0xff] %v14110_v10  ;;  %v11858_v55 = vpop.f32.mrf.mxu0  ;;  %12057 = vmatmul.mubr.msk.bf16.vlgmr.msra.gmra.mxu0 %vm435_vm1, %v3586_v18 }
 0x1a2   : > { %17943 = vst [vmem:[#allocation29_spill] sm:$0xff] %v14108_v7  ;;  %v11908_v40 = vpop.f32.mrf.mxu1  ;;  %12060 = vmatprep.mubr.msk.bf16.mxu0 %vm435_vm1, %v3587_v43 }
 0x1a3   : > { %v2164_v46 = vpop.f32.mrf.mxu0 }
 0x1a4   : > { %v2339_v33 = vadd.f32 %v2164_v46, %v13966_v56  ;;  %v2553_v30 = vpop.f32.mrf.mxu1 }
 0x1a5   : > { %v11859_v48 = vpop.f32.mrf.mxu0 }
 0x1a6   : > { %v2341_v24 = vadd.f32 %v11859_v48, %v13969_v26  ;;  %v14116_v54 = vadd.f32 %v2553_v30, %v2339_v33  ;;  %v11909_v22 = vpop.f32.mrf.mxu1  ;;  %v3548_v26 = vld [vmem:[#allocation2 + $0x82] sm:$0xff]  ;;  %v3553_v48 = vld [vmem:[#allocation2 + $0xaa] sm:$0xff] }
 0x1a7   : > { %v2167_v2 = vpop.f32.mrf.mxu0  ;;  %v3590_v41 = vpack.c.bf16 %v3549_v50, %v3548_v26  ;;  %v3552_v30 = vld [vmem:[#allocation2 + $0xa2] sm:$0xff] }
 0x1a8   : > { %v14119_v4 = vadd.f32 %v2167_v2, %v13973_v27  ;;  %v14121_v62 = vadd.f32 %v11909_v22, %v2341_v24  ;;  %v14123_v12 = vpop.f32.mrf.mxu1  ;;  %v3555_v24 = vld [vmem:[#allocation2 + $0xba] sm:$0xff] }
 0x1a9   : > { %v11862_v34 = vpop.f32.mrf.mxu0  ;;  %12061 = vmatmul.mubr.msk.bf16.gmra.mxu0 %vm435_vm1, %v3588_v0 }
 0x1aa   : > { %v2343_v56 = vadd.f32 %v11862_v34, %v13979_v37  ;;  %v11912_v14 = vpop.f32.mrf.mxu1  ;;  %12064 = vmatprep.mubr.msk.bf16.mxu0 %vm435_vm1, %v3589_v44  ;;  %v3592_v34 = vpack.c.bf16 %v3553_v48, %v3552_v30 }
 0x1ab   : > { %v2179_v35 = vpop.f32.mrf.mxu0 }
 0x1ac   : > { %v2342_v27 = vadd.f32 %v2179_v35, %v13982_v17  ;;  %v14129_v18 = vadd.f32 %v11912_v14, %v2343_v56  ;;  %v2568_v60 = vpop.f32.mrf.mxu1 }
 0x1ad   : > { %v11863_v43 = vpop.f32.mrf.mxu0 }
 0x1ae   : > { %v2344_v55 = vadd.f32 %v11863_v43, %v13984_v39  ;;  %v14132_v40 = vadd.f32 %v2568_v60, %v2342_v27  ;;  %v11913_v37 = vpop.f32.mrf.mxu1  ;;  %v3554_v39 = vld [vmem:[#allocation2 + $0xb2] sm:$0xff]  ;;  %v3557_v27 = vld [vmem:[#allocation2 + $0xca] sm:$0xff] }
 0x1af   : > { %v2182_v19 = vpop.f32.mrf.mxu0  ;;  %v3593_v14 = vpack.c.bf16 %v3555_v24, %v3554_v39  ;;  %v3558_v43 = vld [vmem:[#allocation2 + $0xd2] sm:$0xff] }
 0x1b0   : > { %v14134_v46 = vadd.f32 %v11913_v37, %v2344_v55  ;;  %v2571_v6 = vpop.f32.mrf.mxu1  ;;  %v3594_v19 = vpack.c.bf16 %v3557_v27, %v3556_v47 }
 0x1b1   : > { %v11866_v42 = vpop.f32.mrf.mxu0  ;;  %12065 = vmatmul.mubr.msk.bf16.gmra.mxu0 %vm435_vm1, %v3590_v41  ;;  %v3559_v41 = vld [vmem:[#allocation2 + $0xda] sm:$0xff] }
 0x1b2   : > { %v2346_v17 = vadd.f32 %v11866_v42, %v13991_v57  ;;  %v11916_v33 = vpop.f32.mrf.mxu1  ;;  %12068 = vmatprep.mubr.msk.bf16.mxu0 %vm435_vm1, %v3591_v23 }
 0x1b3   : > { %v2194_v0 = vpop.f32.mrf.mxu0 }
 0x1b4   : > { %v14139_v22 = vadd.f32 %v11916_v33, %v2346_v17  ;;  %v2583_v44 = vpop.f32.mrf.mxu1  ;;  %v3595_v17 = vpack.c.bf16 %v3559_v41, %v3558_v43 }
 0x1b5   : > { %v11867_v2 = vpop.f32.mrf.mxu0  ;;  %v3561_v44 = vld [vmem:[#allocation2 + $0xea] sm:$0xff] }
 0x1b6   : > { %v11917_v56 = vpop.f32.mrf.mxu1 }
 0x1b7   : > { %v2196_v26 = vpop.f32.mrf.mxu0  ;;  %v3563_v56 = vld [vmem:[#allocation2 + $0xfa] sm:$0xff] }
 0x1b8   : > { %v14142_v50 = vadd.f32 %v2196_v26, %v13995_v49  ;;  %v14144_v57 = vpop.f32.mrf.mxu1 }
 0x1b9   : > { %v11870_v35 = vpop.f32.mrf.mxu0  ;;  %12069 = vmatmul.mubr.msk.bf16.gmra.mxu0 %vm435_vm1, %v3592_v34  ;;  %v3562_v34 = vld [vmem:[#allocation2 + $0xf2] sm:$0xff] }
 0x1ba   : > { %v11920_v8 = vpop.f32.mrf.mxu1  ;;  %12072 = vmatprep.mubr.msk.bf16.mxu0 %vm435_vm1, %v3593_v14 }
 0x1bb   : > { %v2208_v60 = vpop.f32.mrf.mxu0 }
 0x1bc   : > { %v2347_v55 = vadd.f32 %v2208_v60, %v14002_v52  ;;  %v2597_v37 = vpop.f32.mrf.mxu1  ;;  %v3597_v60 = vpack.c.bf16 %v3563_v56, %v3562_v34 }
 0x1bd   : > { %v11871_v23 = vpop.f32.mrf.mxu0 }
 0x1be   : > { %v2349_v49 = vadd.f32 %v11871_v23, %v14005_v58  ;;  %v14150_v6 = vadd.f32 %v2597_v37, %v2347_v55  ;;  %v11921_v42 = vpop.f32.mrf.mxu1  ;;  %v3560_v58 = vld [vmem:[#allocation2 + $0xe2] sm:$0xff] }
 0x1bf   : > { %v2211_v33 = vpop.f32.mrf.mxu0  ;;  %v3596_v8 = vpack.c.bf16 %v3561_v44, %v3560_v58 }
 0x1c0   : > { %v14153_v30 = vadd.f32 %v2211_v33, %v14009_v36  ;;  %v14155_v48 = vadd.f32 %v11921_v42, %v2349_v49  ;;  %v14157_v0 = vpop.f32.mrf.mxu1  ;;  %v3565_v49 = vld [vmem:[#allocation2 + $0x10a] sm:$0xff] }
 0x1c1   : > { %v11874_v39 = vpop.f32.mrf.mxu0  ;;  %12073 = vmatmul.mubr.msk.bf16.gmra.mxu0 %vm435_vm1, %v3594_v19  ;;  %v3564_v19 = vld [vmem:[#allocation2 + $0x102] sm:$0xff] }
 0x1c2   : > { %v2351_v52 = vadd.f32 %v11874_v39, %v14015_v5  ;;  %v11924_v24 = vpop.f32.mrf.mxu1  ;;  %12076 = vmatprep.mubr.msk.bf16.mxu0 %vm435_vm1, %v3595_v17  ;;  %v3567_v17 = vld [vmem:[#allocation2 + $0x11a] sm:$0xff] }
 0x1c3   : > { %v2223_v2 = vpop.f32.mrf.mxu0 }
 0x1c4   : > { %v2350_v36 = vadd.f32 %v2223_v2, %v14018_v53  ;;  %v14163_v14 = vadd.f32 %v11924_v24, %v2351_v52  ;;  %v2612_v26 = vpop.f32.mrf.mxu1  ;;  %v3598_v24 = vpack.c.bf16 %v3565_v49, %v3564_v19 }
 0x1c5   : > { %v11875_v35 = vpop.f32.mrf.mxu0 }
 0x1c6   : > { %v2352_v47 = vadd.f32 %v11875_v35, %v14020_v45  ;;  %v14166_v27 = vadd.f32 %v2612_v26, %v2350_v36  ;;  %v11925_v5 = vpop.f32.mrf.mxu1  ;;  %v3566_v45 = vld [vmem:[#allocation2 + $0x112] sm:$0xff]  ;;  %v3568_v26 = vld [vmem:[#allocation2 + $0x122] sm:$0xff]  ;;  %v3569_v35 = vld [vmem:[#allocation2 + $0x12a] sm:$0xff] }
 0x1c7   : > { %v2226_v43 = vpop.f32.mrf.mxu0  ;;  %v3599_v44 = vpack.c.bf16 %v3567_v17, %v3566_v45 }
 0x1c8   : > { %v14168_v41 = vadd.f32 %v11925_v5, %v2352_v47  ;;  %v2615_v55 = vpop.f32.mrf.mxu1  ;;  %v3570_v47 = vld [vmem:[#allocation2 + $0x132] sm:$0xff]  ;;  %v3571_v5 = vld [vmem:[#allocation2 + $0x13a] sm:$0xff] }
 0x1c9   : > { %v11878_v37 = vpop.f32.mrf.mxu0  ;;  %12077 = vmatmul.mubr.msk.bf16.gmra.mxu0 %vm435_vm1, %v3596_v8  ;;  %v3601_v19 = vpack.c.bf16 %v3571_v5, %v3570_v47 }
 0x1ca   : > { %v2354_v53 = vadd.f32 %v11878_v37, %v14027_v51  ;;  %v11928_v23 = vpop.f32.mrf.mxu1  ;;  %12080 = vmatprep.mubr.msk.bf16.mxu0 %vm435_vm1, %v3597_v60  ;;  %v3600_v37 = vpack.c.bf16 %v3569_v35, %v3568_v26 }
 0x1cb   : > { %v2238_v42 = vpop.f32.mrf.mxu0 }
 0x1cc   : > { %v14173_v33 = vadd.f32 %v11928_v23, %v2354_v53  ;;  %v2627_v39 = vpop.f32.mrf.mxu1 }
 0x1cd   : > { %v11879_v52 = vpop.f32.mrf.mxu0 }
 0x1ce   : > { %v11929_v58 = vpop.f32.mrf.mxu1 }
 0x1cf   : > { %v2240_v2 = vpop.f32.mrf.mxu0 }
 0x1d0   : > { %v14176_v34 = vadd.f32 %v2240_v2, %v14031_v1  ;;  %v14178_v51 = vpop.f32.mrf.mxu1  ;;  %v3575_v2 = vld [vmem:[#allocation2 + $0x15a] sm:$0xff] }
 0x1d1   : > { %v11882_v56 = vpop.f32.mrf.mxu0  ;;  %12081 = vmatmul.mubr.msk.bf16.gmra.mxu0 %vm435_vm1, %v3598_v24  ;;  %v3573_v24 = vld [vmem:[#allocation2 + $0x14a] sm:$0xff] }
 0x1d2   : > { %v11932_v36 = vpop.f32.mrf.mxu1  ;;  %12084 = vmatprep.mubr.msk.bf16.mxu0 %vm435_vm1, %v3599_v44  ;;  %v3574_v44 = vld [vmem:[#allocation2 + $0x152] sm:$0xff] }
 0x1d3   : > { %v2252_v8 = vpop.f32.mrf.mxu0  ;;  %v3603_v5 = vpack.c.bf16 %v3575_v2, %v3574_v44 }
 0x1d4   : > { %v2355_v60 = vadd.f32 %v2252_v8, %v14038_v20  ;;  %v2641_v43 = vpop.f32.mrf.mxu1 }
 0x1d5   : > { %v11883_v55 = vpop.f32.mrf.mxu0 }
 0x1d6   : > { %v2357_v1 = vadd.f32 %v11883_v55, %v14041_v61  ;;  %v14184_v53 = vadd.f32 %v2641_v43, %v2355_v60  ;;  %v11933_v23 = vpop.f32.mrf.mxu1  ;;  %v3572_v61 = vld [vmem:[#allocation2 + $0x142] sm:$0xff] }
 0x1d7   : > { %v2255_v49 = vpop.f32.mrf.mxu0  ;;  %v3602_v35 = vpack.c.bf16 %v3573_v24, %v3572_v61 }
 0x1d8   : > { %v14187_v42 = vadd.f32 %v2255_v49, %v14045_v29  ;;  %v14189_v45 = vadd.f32 %v11933_v23, %v2357_v1  ;;  %v14191_v17 = vpop.f32.mrf.mxu1  ;;  %v3576_v23 = vld [vmem:[#allocation2 + $0x162] sm:$0xff] }
 0x1d9   : > { %v11886_v39 = vpop.f32.mrf.mxu0  ;;  %12085 = vmatmul.mubr.msk.bf16.gmra.mxu0 %vm435_vm1, %v3600_v37 }
 0x1da   : > { %v2359_v20 = vadd.f32 %v11886_v39, %v14051_v32  ;;  %v11936_v52 = vpop.f32.mrf.mxu1  ;;  %12088 = vmatprep.mubr.msk.bf16.mxu0 %vm435_vm1, %v3601_v19  ;;  %v3577_v19 = vld [vmem:[#allocation2 + $0x16a] sm:$0xff]  ;;  %v3579_v39 = vld [vmem:[#allocation2 + $0x17a] sm:$0xff] }
 0x1db   : > { %v2267_v58 = vpop.f32.mrf.mxu0  ;;  %v3604_v24 = vpack.c.bf16 %v3577_v19, %v3576_v23 }
 0x1dc   : > { %v2358_v29 = vadd.f32 %v2267_v58, %v14054_v11  ;;  %v14197_v56 = vadd.f32 %v11936_v52, %v2359_v20  ;;  %v2656_v36 = vpop.f32.mrf.mxu1 }
 0x1dd   : > { %v11887_v26 = vpop.f32.mrf.mxu0 }
 0x1de   : > { %v2360_v8 = vadd.f32 %v11887_v26, %v14056_v15  ;;  %v14200_v47 = vadd.f32 %v2656_v36, %v2358_v29  ;;  %v11937_v32 = vpop.f32.mrf.mxu1  ;;  %v3578_v15 = vld [vmem:[#allocation2 + $0x172] sm:$0xff]  ;;  %v3580_v26 = vld [vmem:[#allocation2 + $0x182] sm:$0xff] }
 0x1df   : > { %v2270_v60 = vpop.f32.mrf.mxu0  ;;  %v3605_v44 = vpack.c.bf16 %v3579_v39, %v3578_v15 }
 0x1e0   : > { %v14202_v43 = vadd.f32 %v11937_v32, %v2360_v8  ;;  %v2659_v55 = vpop.f32.mrf.mxu1  ;;  %v3582_v32 = vld [vmem:[#allocation2 + $0x192] sm:$0xff] }
 0x1e1   : > { %v11890_v37 = vpop.f32.mrf.mxu0  ;;  %12089 = vmatmul.mubr.msk.bf16.gmra.mxu0 %vm435_vm1, %v3602_v35  ;;  %v3581_v35 = vld [vmem:[#allocation2 + $0x18a] sm:$0xff] }
 0x1e2   : > { %v2362_v11 = vadd.f32 %v11890_v37, %v14063_v25  ;;  %v11940_v1 = vpop.f32.mrf.mxu1  ;;  %12092 = vmatprep.mubr.msk.bf16.mxu0 %vm435_vm1, %v3603_v5  ;;  %v3583_v5 = vld [vmem:[#allocation2 + $0x19a] sm:$0xff] }
 0x1e3   : > { %v2282_v49 = vpop.f32.mrf.mxu0 }
 0x1e4   : > { %v14207_v20 = vadd.f32 %v11940_v1, %v2362_v11  ;;  %v2671_v52 = vpop.f32.mrf.mxu1  ;;  %v3606_v11 = vpack.c.bf16 %v3581_v35, %v3580_v26  ;;  %v3607_v49 = vpack.c.bf16 %v3583_v5, %v3582_v32 }
 0x1e5   : > { %v11891_v61 = vpop.f32.mrf.mxu0 }
 0x1e6   : > { %v11941_v58 = vpop.f32.mrf.mxu1 }
 0x1e7   : > { %v14209_v2 = vpop.f32.mrf.mxu0  ;;  %v3584_v58 = vld [vmem:[#allocation2 + $0x1a2] sm:$0xff] }
 0x1e8   : > { %v14211_v29 = vpop.f32.mrf.mxu1  ;;  %v3608_v35 = vpack.c.bf16 %v3584_v58, %v3584_v58 }
 0x1e9   : > { %v11894_v25 = vpop.f32.mrf.mxu0  ;;  %12093 = vmatmul.mubr.msk.bf16.gmra.mxu0 %vm435_vm1, %v3604_v24 }
 0x1ea   : > { %v11944_v36 = vpop.f32.mrf.mxu1  ;;  %12096 = vmatprep.mubr.msk.bf16.mxu0 %vm435_vm1, %v3605_v44 }
 0x1eb   : > { %v2296_v8 = vpop.f32.mrf.mxu0 }
 0x1ec   : > { %v2363_v60 = vadd.f32 %v2296_v8, %v14077_v28  ;;  %v2685_v55 = vpop.f32.mrf.mxu1 }
 0x1ed   : > { %v11895_v37 = vpop.f32.mrf.mxu0 }
 0x1ee   : > { %v2365_v1 = vadd.f32 %v11895_v37, %v14084_v13  ;;  %v14217_v23 = vadd.f32 %v2685_v55, %v2363_v60  ;;  %v11945_v19 = vpop.f32.mrf.mxu1 }
 0x1ef   : > { %v14219_v15 = vpop.f32.mrf.mxu0 }
 0x1f0   : > { %17945 = vst [vmem:[#allocation35_spill] sm:$0xff] %v14219_v15  ;;  %v14221_v39 = vadd.f32 %v11945_v19, %v2365_v1  ;;  %v14223_v52 = vpop.f32.mrf.mxu1 }
 0x1f1   : > { %17946 = vst [vmem:[#allocation38_spill] sm:$0xff] %v14223_v52  ;;  %v11898_v61 = vpop.f32.mrf.mxu0  ;;  %12097 = vmatmul.mubr.msk.bf16.gmra.mxu0 %vm435_vm1, %v3606_v11 }
 0x1f2   : > { %v2367_v28 = vadd.f32 %v11898_v61, %v14094_v9  ;;  %v11948_v24 = vpop.f32.mrf.mxu1  ;;  %12100 = vmatprep.mubr.msk.bf16.mxu0 %vm435_vm1, %v3607_v49 }
 0x1f3   : > { %v2311_v13 = vpop.f32.mrf.mxu0 }
 0x1f4   : > { %v2366_v44 = vadd.f32 %v2311_v13, %v14097_v16  ;;  %v14229_v25 = vadd.f32 %v11948_v24, %v2367_v28  ;;  %v2700_v36 = vpop.f32.mrf.mxu1 }
 0x1f5   : > { %v11899_v26 = vpop.f32.mrf.mxu0 }
 0x1f6   : > { %v2368_v8 = vadd.f32 %v11899_v26, %v14099_v59  ;;  %v14232_v32 = vadd.f32 %v2700_v36, %v2366_v44  ;;  %v11949_v5 = vpop.f32.mrf.mxu1 }
 0x1f7   : > { %v2314_v60 = vpop.f32.mrf.mxu0 }
 0x1f8   : > { %v14234_v55 = vadd.f32 %v11949_v5, %v2368_v8  ;;  %v2703_v9 = vpop.f32.mrf.mxu1 }
 0x1f9   : > { %v11902_v37 = vpop.f32.mrf.mxu0  ;;  %12101 = vmatmul.mubr.msk.bf16.gmra.mxu0 %vm435_vm1, %v3608_v35 }
 0x1fa   : > { %v2370_v11 = vadd.f32 %v11902_v37, %v14105_v3  ;;  %v11952_v16 = vpop.f32.mrf.mxu1 }
 0x1fb   : > { %v2326_v1 = vpop.f32.mrf.mxu0 }
 0x1fc   : > { %v14238_v19 = vadd.f32 %v11952_v16, %v2370_v11  ;;  %v2715_v49 = vpop.f32.mrf.mxu1 }
 0x1fd   : > { %v11903_v61 = vpop.f32.mrf.mxu0 }
 0x1fe   : > { %v11953_v28 = vpop.f32.mrf.mxu1 }
 0x1ff   : > { %v14240_v59 = vpop.f32.mrf.mxu0 }
 0x200   : > { %17947 = vst [vmem:[#allocation37_spill] sm:$0xff] %v14240_v59  ;;  %v14242_v24 = vpop.f32.mrf.mxu1 }
 0x201   : > { %17948 = vst [vmem:[#allocation6_spill] sm:$0xff] %v14242_v24  ;;  %v11958_v58 = vpop.f32.mrf.mxu0 }
 0x202   : > { %v12008_v13 = vpop.f32.mrf.mxu1 }
 0x203   : > { %v2942_v44 = vpop.f32.mrf.mxu0 }
 0x204   : > { %v3117_v36 = vadd.f32 %v2942_v44, %v14116_v54  ;;  %v3331_v26 = vpop.f32.mrf.mxu1 }
 0x205   : > { %v11959_v35 = vpop.f32.mrf.mxu0 }
 0x206   : > { %v3119_v3 = vadd.f32 %v11959_v35, %v14121_v62  ;;  %v14246_v8 = vadd.f32 %v3331_v26, %v3117_v36  ;;  %v12009_v5 = vpop.f32.mrf.mxu1 }
 0x207   : > { %v14248_v60 = vpop.f32.mrf.mxu0 }
 0x208   : > { %v14250_v9 = vadd.f32 %v12009_v5, %v3119_v3  ;;  %v14252_v37 = vpop.f32.mrf.mxu1 }
 0x209   : > { %v11962_v11 = vpop.f32.mrf.mxu0 }
 0x20a   : > { %v3121_v16 = vadd.f32 %v11962_v11, %v14129_v18  ;;  %v12012_v1 = vpop.f32.mrf.mxu1 }
 0x20b   : > { %v2957_v49 = vpop.f32.mrf.mxu0 }
 0x20c   : > { %v3120_v54 = vadd.f32 %v2957_v49, %v14132_v40  ;;  %v14256_v61 = vadd.f32 %v12012_v1, %v3121_v16  ;;  %v3346_v28 = vpop.f32.mrf.mxu1 }
 0x20d   : > { %v11963_v62 = vpop.f32.mrf.mxu0 }
 0x20e   : > { %v3122_v58 = vadd.f32 %v11963_v62, %v14134_v46  ;;  %v14259_v13 = vadd.f32 %v3346_v28, %v3120_v54  ;;  %v12013_v44 = vpop.f32.mrf.mxu1 }
 0x20f   : > { %v2960_v36 = vpop.f32.mrf.mxu0 }
 0x210   : > { %v14261_v26 = vadd.f32 %v12013_v44, %v3122_v58  ;;  %v3349_v35 = vpop.f32.mrf.mxu1 }
 0x211   : > { %v11966_v3 = vpop.f32.mrf.mxu0 }
 0x212   : > { %v3124_v18 = vadd.f32 %v11966_v3, %v14139_v22  ;;  %v12016_v5 = vpop.f32.mrf.mxu1 }
 0x213   : > { %v2972_v11 = vpop.f32.mrf.mxu0 }
 0x214   : > { %v14264_v24 = vadd.f32 %v12016_v5, %v3124_v18  ;;  %v3361_v40 = vpop.f32.mrf.mxu1 }
 0x215   : > { %v11967_v16 = vpop.f32.mrf.mxu0 }
 0x216   : > { %v12017_v1 = vpop.f32.mrf.mxu1 }
 0x217   : > { %v14266_v49 = vpop.f32.mrf.mxu0 }
 0x218   : > { %v14268_v46 = vpop.f32.mrf.mxu1 }
 0x219   : > { %v11970_v54 = vpop.f32.mrf.mxu0 }
 0x21a   : > { %v12020_v28 = vpop.f32.mrf.mxu1 }
 0x21b   : > { %v2986_v62 = vpop.f32.mrf.mxu0 }
 0x21c   : > { %v3125_v58 = vadd.f32 %v2986_v62, %v14150_v6  ;;  %v3375_v44 = vpop.f32.mrf.mxu1 }
 0x21d   : > { %v11971_v36 = vpop.f32.mrf.mxu0 }
 0x21e   : > { %v3127_v22 = vadd.f32 %v11971_v36, %v14155_v48  ;;  %v14272_v35 = vadd.f32 %v3375_v44, %v3125_v58  ;;  %v12021_v3 = vpop.f32.mrf.mxu1 }
 0x21f   : > { %v14274_v18 = vpop.f32.mrf.mxu0 }
 0x220   : > { %v14276_v5 = vadd.f32 %v12021_v3, %v3127_v22  ;;  %v14278_v11 = vpop.f32.mrf.mxu1  ;;  %v10439_v22 = vld [vmem:[%s17498_s4 + $0x4] sm:$0xf] }
 0x221   : > { %v11974_v40 = vpop.f32.mrf.mxu0  ;;  %12743 = vmatprep.subr.msk.bf16.mxu1 %vm707_vm0, %v10439_v22 }
 0x222   : > { %v3129_v16 = vadd.f32 %v11974_v40, %v14163_v14  ;;  %v12024_v1 = vpop.f32.mrf.mxu1 }
 0x223   : > { %v3001_v54 = vpop.f32.mrf.mxu0 }
 0x224   : > { %v3128_v6 = vadd.f32 %v3001_v54, %v14166_v27  ;;  %v14282_v28 = vadd.f32 %v12024_v1, %v3129_v16  ;;  %v3390_v62 = vpop.f32.mrf.mxu1  ;;  %v4594_v54 = vsel %vm707_vm0, %v10439_v22, 0 }
 0x225   : > { %v11975_v48 = vpop.f32.mrf.mxu0  ;;  %12105 = vmatpush3.bf16.msra.mxu1 %v4594_v54 }
 0x226   : > { %v3130_v58 = vadd.f32 %v11975_v48, %v14168_v41  ;;  %v14285_v44 = vadd.f32 %v3390_v62, %v3128_v6  ;;  %v12025_v36 = vpop.f32.mrf.mxu1 }
 0x227   : > { %v3004_v3 = vpop.f32.mrf.mxu0 }
 0x228   : > { %v14291_v14 = vadd.f32 %v12025_v36, %v3130_v58  ;;  %v3393_v40 = vpop.f32.mrf.mxu1 }
 0x229   : > { %v11978_v27 = vpop.f32.mrf.mxu0 }
 0x22a   : > { %v3132_v16 = vadd.f32 %v11978_v27, %v14173_v33  ;;  %v12028_v1 = vpop.f32.mrf.mxu1 }
 0x22b   : > { %v3016_v41 = vpop.f32.mrf.mxu0 }
 0x22c   : > { %v14295_v6 = vadd.f32 %v12028_v1, %v3132_v16  ;;  %v3405_v62 = vpop.f32.mrf.mxu1 }
 0x22d   : > { %v11979_v48 = vpop.f32.mrf.mxu0 }
 0x22e   : > { %v12029_v59 = vpop.f32.mrf.mxu1 }
 0x22f   : > { %v14297_v10 = vpop.f32.mrf.mxu0 }
 0x230   : > { %v14299_v3 = vpop.f32.mrf.mxu1 }
 0x231   : > { %v11982_v58 = vpop.f32.mrf.mxu0 }
 0x232   : > { %v12032_v36 = vpop.f32.mrf.mxu1 }
 0x233   : > { %v3030_v40 = vpop.f32.mrf.mxu0 }
 0x234   : > { %v3133_v7 = vadd.f32 %v3030_v40, %v14184_v53  ;;  %v3419_v33 = vpop.f32.mrf.mxu1 }
 0x235   : > { %v11983_v27 = vpop.f32.mrf.mxu0 }
 0x236   : > { %v3135_v22 = vadd.f32 %v11983_v27, %v14189_v45  ;;  %v14303_v41 = vadd.f32 %v3419_v33, %v3133_v7  ;;  %v12033_v16 = vpop.f32.mrf.mxu1 }
 0x237   : > { %v14305_v1 = vpop.f32.mrf.mxu0 }
 0x238   : > { %v14307_v54 = vadd.f32 %v12033_v16, %v3135_v22  ;;  %v14309_v59 = vpop.f32.mrf.mxu1 }
 0x239   : > { %v11986_v62 = vpop.f32.mrf.mxu0 }
 0x23a   : > { %v3137_v48 = vadd.f32 %v11986_v62, %v14197_v56  ;;  %v12036_v58 = vpop.f32.mrf.mxu1 }
 0x23b   : > { %v3045_v36 = vpop.f32.mrf.mxu0 }
 0x23c   : > { %v3136_v53 = vadd.f32 %v3045_v36, %v14200_v47  ;;  %v14313_v40 = vadd.f32 %v12036_v58, %v3137_v48  ;;  %v3434_v52 = vpop.f32.mrf.mxu1 }
 0x23d   : > { %v11987_v7 = vpop.f32.mrf.mxu0 }
 0x23e   : > { %v3138_v45 = vadd.f32 %v11987_v7, %v14202_v43  ;;  %v14316_v33 = vadd.f32 %v3434_v52, %v3136_v53  ;;  %v12037_v27 = vpop.f32.mrf.mxu1 }
 0x23f   : > { %v3048_v22 = vpop.f32.mrf.mxu0 }
 0x240   : > { %v14318_v16 = vadd.f32 %v12037_v27, %v3138_v45  ;;  %v3437_v15 = vpop.f32.mrf.mxu1 }
 0x241   : > { %v11990_v38 = vpop.f32.mrf.mxu0  ;;  %v17554_v15 = vmov 0.0  }
 0x242   : > { %v3140_v56 = vadd.f32 %v11990_v38, %v14207_v20  ;;  %v12040_v62 = vpop.f32.mrf.mxu1  ;;  %4000 = vst.msk [vmem:[#allocation3 + $0x10] sm:$0xff] %vm435_vm1, %v17554_v15  ;;  %4001 = vst.msk [vmem:[#allocation3 + $0x18] sm:$0xff] %vm435_vm1, %v17554_v15  ;;  %v14344_v38 = vld [vmem:[%s14328_s13 + $0x10] sm:$0xff]  }
 0x243   : > { %v3060_v31 = vpop.f32.mrf.mxu0  ;;  %4002 = vst.msk [vmem:[#allocation3 + $0x20] sm:$0xff] %vm435_vm1, %v17554_v15  ;;  %4003 = vst.msk [vmem:[#allocation3 + $0x28] sm:$0xff] %vm435_vm1, %v17554_v15  ;;  %v10811_v7 = vunpack.c.l.bf16 %v14344_v38  ;;  %v10812_v27 = vunpack.c.h.bf16 %v14344_v38 }
 0x244   : > { %v14321_v47 = vadd.f32 %v12040_v62, %v3140_v56  ;;  %v3449_v48 = vpop.f32.mrf.mxu1  ;;  %v14341_v31 = vld [vmem:[%s14328_s13 + $0x8] sm:$0xff]   ;;  %3998 = vst.msk [vmem:[#allocation3] sm:$0xff] %vm435_vm1, %v17554_v15  ;;  %3999 = vst.msk [vmem:[#allocation3 + $0x8] sm:$0xff] %vm435_vm1, %v17554_v15 }
 0x245   : > { %v11991_v58 = vpop.f32.mrf.mxu0  ;;  %4004 = vst.msk [vmem:[#allocation3 + $0x30] sm:$0xff] %vm435_vm1, %v17554_v15  ;;  %4005 = vst.msk [vmem:[#allocation3 + $0x38] sm:$0xff] %vm435_vm1, %v17554_v15  ;;  %v10807_v52 = vunpack.c.l.bf16 %v14341_v31  ;;  %v10808_v53 = vunpack.c.h.bf16 %v14341_v31 }
 0x246   : > { %v12041_v36 = vpop.f32.mrf.mxu1  ;;  %4006 = vst.msk [vmem:[#allocation3 + $0x40] sm:$0xff] %vm435_vm1, %v17554_v15  ;;  %4007 = vst.msk [vmem:[#allocation3 + $0x48] sm:$0xff] %vm435_vm1, %v17554_v15 }
 0x247   : > { %v14330_v43 = vpop.f32.mrf.mxu0  ;;  %4008 = vst.msk [vmem:[#allocation3 + $0x50] sm:$0xff] %vm435_vm1, %v17554_v15  ;;  %4009 = vst.msk [vmem:[#allocation3 + $0x58] sm:$0xff] %vm435_vm1, %v17554_v15 }
 0x248   : > { %4010 = vst.msk [vmem:[#allocation3 + $0x60] sm:$0xff] %vm435_vm1, %v17554_v15  ;;  %4011 = vst.msk [vmem:[#allocation3 + $0x68] sm:$0xff] %vm435_vm1, %v17554_v15  ;;  %v14554_v20 = vpop.f32.mrf.mxu1 }
 0x249   : > { %4012 = vst.msk [vmem:[#allocation3 + $0x70] sm:$0xff] %vm435_vm1, %v17554_v15  ;;  %4013 = vst.msk [vmem:[#allocation3 + $0x78] sm:$0xff] %vm435_vm1, %v17554_v15  ;;  %v11994_v45 = vpop.f32.mrf.mxu0 }
 0x24a   : > { %4014 = vst.msk [vmem:[#allocation3 + $0x80] sm:$0xff] %vm435_vm1, %v17554_v15  ;;  %4015 = vst.msk [vmem:[#allocation3 + $0x88] sm:$0xff] %vm435_vm1, %v17554_v15  ;;  %v12044_v22 = vpop.f32.mrf.mxu1 }
 0x24b   : > { %4016 = vst.msk [vmem:[#allocation3 + $0x90] sm:$0xff] %vm435_vm1, %v17554_v15  ;;  %4017 = vst.msk [vmem:[#allocation3 + $0x98] sm:$0xff] %vm435_vm1, %v17554_v15  ;;  %v3074_v56 = vpop.f32.mrf.mxu0 }
 0x24c   : > { %4018 = vst.msk [vmem:[#allocation3 + $0xa0] sm:$0xff] %vm435_vm1, %v17554_v15  ;;  %4019 = vst.msk [vmem:[#allocation3 + $0xa8] sm:$0xff] %vm435_vm1, %v17554_v15  ;;  %v3141_v62 = vadd.f32 %v3074_v56, %v14217_v23  ;;  %v3463_v48 = vpop.f32.mrf.mxu1 }
 0x24d   : > { %4020 = vst.msk [vmem:[#allocation3 + $0xb0] sm:$0xff] %vm435_vm1, %v17554_v15  ;;  %4021 = vst.msk [vmem:[#allocation3 + $0xb8] sm:$0xff] %vm435_vm1, %v17554_v15  ;;  %v11995_v58 = vpop.f32.mrf.mxu0 }
 0x24e   : > { %4022 = vst.msk [vmem:[#allocation3 + $0xc0] sm:$0xff] %vm435_vm1, %v17554_v15  ;;  %4023 = vst.msk [vmem:[#allocation3 + $0xc8] sm:$0xff] %vm435_vm1, %v17554_v15  ;;  %v3143_v36 = vadd.f32 %v11995_v58, %v14221_v39  ;;  %v14566_v31 = vadd.f32 %v3463_v48, %v3141_v62  ;;  %v12045_v45 = vpop.f32.mrf.mxu1 }
 0x24f   : > { %4024 = vst.msk [vmem:[#allocation3 + $0xd0] sm:$0xff] %vm435_vm1, %v17554_v15  ;;  %4025 = vst.msk [vmem:[#allocation3 + $0xd8] sm:$0xff] %vm435_vm1, %v17554_v15  ;;  %v14568_v38 = vpop.f32.mrf.mxu0 }
 0x250   : > { %4026 = vst.msk [vmem:[#allocation3 + $0xe0] sm:$0xff] %vm435_vm1, %v17554_v15  ;;  %4027 = vst.msk [vmem:[#allocation3 + $0xe8] sm:$0xff] %vm435_vm1, %v17554_v15  ;;  %v14570_v22 = vadd.f32 %v12045_v45, %v3143_v36 }
 0x251   : > { %4028 = vst.msk [vmem:[#allocation3 + $0xf0] sm:$0xff] %vm435_vm1, %v17554_v15  ;;  %4029 = vst.msk [vmem:[#allocation3 + $0xf8] sm:$0xff] %vm435_vm1, %v17554_v15 }
 0x252   : > { %4030 = vst.msk [vmem:[#allocation3 + $0x100] sm:$0xff] %vm435_vm1, %v17554_v15  ;;  %4031 = vst.msk [vmem:[#allocation3 + $0x108] sm:$0xff] %vm435_vm1, %v17554_v15 }
 0x253   : > { %4032 = vst.msk [vmem:[#allocation3 + $0x110] sm:$0xff] %vm435_vm1, %v17554_v15  ;;  %4033 = vst.msk [vmem:[#allocation3 + $0x118] sm:$0xff] %vm435_vm1, %v17554_v15 }
 0x254   : > { %4034 = vst.msk [vmem:[#allocation3 + $0x120] sm:$0xff] %vm435_vm1, %v17554_v15  ;;  %4035 = vst.msk [vmem:[#allocation3 + $0x128] sm:$0xff] %vm435_vm1, %v17554_v15 }
 0x255   : > { %4036 = vst.msk [vmem:[#allocation3 + $0x130] sm:$0xff] %vm435_vm1, %v17554_v15  ;;  %4037 = vst.msk [vmem:[#allocation3 + $0x138] sm:$0xff] %vm435_vm1, %v17554_v15 }
 0x256   : > { %4038 = vst.msk [vmem:[#allocation3 + $0x140] sm:$0xff] %vm435_vm1, %v17554_v15  ;;  %4039 = vst.msk [vmem:[#allocation3 + $0x148] sm:$0xff] %vm435_vm1, %v17554_v15 }
 0x257   : > { %4040 = vst.msk [vmem:[#allocation3 + $0x150] sm:$0xff] %vm435_vm1, %v17554_v15  ;;  %4041 = vst.msk [vmem:[#allocation3 + $0x158] sm:$0xff] %vm435_vm1, %v17554_v15 }
 0x258   : > { %4042 = vst.msk [vmem:[#allocation3 + $0x160] sm:$0xff] %vm435_vm1, %v17554_v15  ;;  %4043 = vst.msk [vmem:[#allocation3 + $0x168] sm:$0xff] %vm435_vm1, %v17554_v15 }
 0x259   : > { %4044 = vst.msk [vmem:[#allocation3 + $0x170] sm:$0xff] %vm435_vm1, %v17554_v15  ;;  %4045 = vst.msk [vmem:[#allocation3 + $0x178] sm:$0xff] %vm435_vm1, %v17554_v15 }
 0x25a   : > { %4046 = vst.msk [vmem:[#allocation3 + $0x180] sm:$0xff] %vm435_vm1, %v17554_v15  ;;  %4047 = vst.msk [vmem:[#allocation3 + $0x188] sm:$0xff] %vm435_vm1, %v17554_v15 }
 0x25b   : > { %4048 = vst.msk [vmem:[#allocation3 + $0x190] sm:$0xff] %vm435_vm1, %v17554_v15  ;;  %4049 = vst.msk [vmem:[#allocation3 + $0x198] sm:$0xff] %vm435_vm1, %v17554_v15 }
 0x25c   : > { %4050 = vst.msk [vmem:[#allocation3 + $0x1a0] sm:$0xff] %vm435_vm1, %v17554_v15  ;;  %4051 = vst.msk [vmem:[#allocation3 + $0x1a8] sm:$0xff] %vm435_vm1, %v17554_v15 }
 0x25d   : > { %7883 = vst.msk [vmem:[#allocation4] sm:$0xff] %vm4160_vm2, %v17554_v15  ;;  %7884 = vst.msk [vmem:[#allocation4 + $0x8] sm:$0xff] %vm4160_vm2, %v17554_v15 }
 0x25e   : > { %7885 = vst.msk [vmem:[#allocation4 + $0x10] sm:$0xff] %vm4160_vm2, %v17554_v15  ;;  %7886 = vst.msk [vmem:[#allocation4 + $0x18] sm:$0xff] %vm4160_vm2, %v17554_v15 }
 0x25f   : > { %7887 = vst.msk [vmem:[#allocation4 + $0x20] sm:$0xff] %vm4160_vm2, %v17554_v15  ;;  %7888 = vst.msk [vmem:[#allocation4 + $0x28] sm:$0xff] %vm4160_vm2, %v17554_v15 }
 0x260   : > { %7889 = vst.msk [vmem:[#allocation4 + $0x30] sm:$0xff] %vm4160_vm2, %v17554_v15  ;;  %7890 = vst.msk [vmem:[#allocation4 + $0x38] sm:$0xff] %vm4160_vm2, %v17554_v15 }
 0x261   : > { %7891 = vst.msk [vmem:[#allocation4 + $0x40] sm:$0xff] %vm4160_vm2, %v17554_v15  ;;  %7892 = vst.msk [vmem:[#allocation4 + $0x48] sm:$0xff] %vm4160_vm2, %v17554_v15 }
 0x262   : > { %7893 = vst.msk [vmem:[#allocation4 + $0x50] sm:$0xff] %vm4160_vm2, %v17554_v15  ;;  %7894 = vst.msk [vmem:[#allocation4 + $0x58] sm:$0xff] %vm4160_vm2, %v17554_v15 }
 0x263   : > { %7895 = vst.msk [vmem:[#allocation4 + $0x60] sm:$0xff] %vm4160_vm2, %v17554_v15  ;;  %7896 = vst.msk [vmem:[#allocation4 + $0x68] sm:$0xff] %vm4160_vm2, %v17554_v15 }
 0x264   : > { %7897 = vst.msk [vmem:[#allocation4 + $0x70] sm:$0xff] %vm4160_vm2, %v17554_v15  ;;  %7898 = vst.msk [vmem:[#allocation4 + $0x78] sm:$0xff] %vm4160_vm2, %v17554_v15 }
 0x265   : > { %7899 = vst.msk [vmem:[#allocation4 + $0x80] sm:$0xff] %vm4160_vm2, %v17554_v15  ;;  %7900 = vst.msk [vmem:[#allocation4 + $0x88] sm:$0xff] %vm4160_vm2, %v17554_v15 }
 0x266   : > { %7901 = vst.msk [vmem:[#allocation4 + $0x90] sm:$0xff] %vm4160_vm2, %v17554_v15  ;;  %7902 = vst.msk [vmem:[#allocation4 + $0x98] sm:$0xff] %vm4160_vm2, %v17554_v15 }
 0x267   : > { %7903 = vst.msk [vmem:[#allocation4 + $0xa0] sm:$0xff] %vm4160_vm2, %v17554_v15  ;;  %7904 = vst.msk [vmem:[#allocation4 + $0xa8] sm:$0xff] %vm4160_vm2, %v17554_v15 }
 0x268   : > { %7905 = vst.msk [vmem:[#allocation4 + $0xb0] sm:$0xff] %vm4160_vm2, %v17554_v15  ;;  %7906 = vst.msk [vmem:[#allocation4 + $0xb8] sm:$0xff] %vm4160_vm2, %v17554_v15 }
 0x269   : > { %7907 = vst.msk [vmem:[#allocation4 + $0xc0] sm:$0xff] %vm4160_vm2, %v17554_v15  ;;  %7908 = vst.msk [vmem:[#allocation4 + $0xc8] sm:$0xff] %vm4160_vm2, %v17554_v15 }
 0x26a   : > { %7909 = vst.msk [vmem:[#allocation4 + $0xd0] sm:$0xff] %vm4160_vm2, %v17554_v15  ;;  %7910 = vst.msk [vmem:[#allocation4 + $0xd8] sm:$0xff] %vm4160_vm2, %v17554_v15 }
 0x26b   : > { %7911 = vst.msk [vmem:[#allocation4 + $0xe0] sm:$0xff] %vm4160_vm2, %v17554_v15  ;;  %7912 = vst.msk [vmem:[#allocation4 + $0xe8] sm:$0xff] %vm4160_vm2, %v17554_v15 }
 0x26c   : > { %7913 = vst.msk [vmem:[#allocation4 + $0xf0] sm:$0xff] %vm4160_vm2, %v17554_v15  ;;  %7914 = vst.msk [vmem:[#allocation4 + $0xf8] sm:$0xff] %vm4160_vm2, %v17554_v15 }
 0x26d   : > { %7915 = vst.msk [vmem:[#allocation4 + $0x100] sm:$0xff] %vm4160_vm2, %v17554_v15  ;;  %7916 = vst.msk [vmem:[#allocation4 + $0x108] sm:$0xff] %vm4160_vm2, %v17554_v15 }
 0x26e   : > { %7917 = vst.msk [vmem:[#allocation4 + $0x110] sm:$0xff] %vm4160_vm2, %v17554_v15  ;;  %7918 = vst.msk [vmem:[#allocation4 + $0x118] sm:$0xff] %vm4160_vm2, %v17554_v15 }
 0x26f   : > { %7919 = vst.msk [vmem:[#allocation4 + $0x120] sm:$0xff] %vm4160_vm2, %v17554_v15  ;;  %7920 = vst.msk [vmem:[#allocation4 + $0x128] sm:$0xff] %vm4160_vm2, %v17554_v15 }
 0x270   : > { %7921 = vst.msk [vmem:[#allocation4 + $0x130] sm:$0xff] %vm4160_vm2, %v17554_v15  ;;  %7922 = vst.msk [vmem:[#allocation4 + $0x138] sm:$0xff] %vm4160_vm2, %v17554_v15 }
 0x271   : > { %7923 = vst.msk [vmem:[#allocation4 + $0x140] sm:$0xff] %vm4160_vm2, %v17554_v15  ;;  %7924 = vst.msk [vmem:[#allocation4 + $0x148] sm:$0xff] %vm4160_vm2, %v17554_v15 }
 0x272   : > { %7925 = vst.msk [vmem:[#allocation4 + $0x150] sm:$0xff] %vm4160_vm2, %v17554_v15  ;;  %7926 = vst.msk [vmem:[#allocation4 + $0x158] sm:$0xff] %vm4160_vm2, %v17554_v15 }
 0x273   : > { %7927 = vst.msk [vmem:[#allocation4 + $0x160] sm:$0xff] %vm4160_vm2, %v17554_v15  ;;  %7928 = vst.msk [vmem:[#allocation4 + $0x168] sm:$0xff] %vm4160_vm2, %v17554_v15 }
 0x274   : > { %7929 = vst.msk [vmem:[#allocation4 + $0x170] sm:$0xff] %vm4160_vm2, %v17554_v15  ;;  %7930 = vst.msk [vmem:[#allocation4 + $0x178] sm:$0xff] %vm4160_vm2, %v17554_v15 }
 0x275   : > { %7931 = vst.msk [vmem:[#allocation4 + $0x180] sm:$0xff] %vm4160_vm2, %v17554_v15  ;;  %7932 = vst.msk [vmem:[#allocation4 + $0x188] sm:$0xff] %vm4160_vm2, %v17554_v15 }
 0x276   : > { %7933 = vst.msk [vmem:[#allocation4 + $0x190] sm:$0xff] %vm4160_vm2, %v17554_v15  ;;  %7934 = vst.msk [vmem:[#allocation4 + $0x198] sm:$0xff] %vm4160_vm2, %v17554_v15 }
 0x277   : > { %7935 = vst.msk [vmem:[#allocation4 + $0x1a0] sm:$0xff] %vm4160_vm2, %v17554_v15  ;;  %7936 = vst.msk [vmem:[#allocation4 + $0x1a8] sm:$0xff] %vm4160_vm2, %v17554_v15 }
 0x278   : > { %4163 = vst.msk [vmem:[#allocation3 + $0x10] sm:$0xff] %vm4160_vm2, %v10807_v52  ;;  %4164 = vst.msk [vmem:[#allocation3 + $0x18] sm:$0xff] %vm4160_vm2, %v10808_v53  ;;  %v14572_v52 = vpop.f32.mrf.mxu1  ;;  %v11998_v53 = vpop.f32.mrf.mxu0 }
 0x279   : > { %4165 = vst.msk [vmem:[#allocation3 + $0x20] sm:$0xff] %vm4160_vm2, %v10811_v7  ;;  %4166 = vst.msk [vmem:[#allocation3 + $0x28] sm:$0xff] %vm4160_vm2, %v10812_v27  ;;  %v3145_v7 = vadd.f32 %v11998_v53, %v14229_v25 }
 0x27a   : > { %17949 = vst [vmem:[#allocation5_spill] sm:$0xff] %v14566_v31  ;;  %17950 = vst [vmem:[#allocation9_spill] sm:$0xff] %v14568_v38  ;;  %v12048_v27 = vpop.f32.mrf.mxu1  ;;  %v3089_v15 = vpop.f32.mrf.mxu0  ;;  %v10802_v38 = vld [vmem:[%s14328_s13] sm:$0xff]  }
 0x27b   : > { %17951 = vst [vmem:[#allocation10_spill] sm:$0xff] %v14570_v22  ;;  %17952 = vst [vmem:[#allocation8_spill] sm:$0xff] %v14572_v52  ;;  %v3144_v23 = vadd.f32 %v3089_v15, %v14232_v32  ;;  %v14576_v56 = vadd.f32 %v12048_v27, %v3145_v7  ;;  %v10803_v15 = vunpack.c.l.bf16 %v10802_v38  ;;  %v10804_v7 = vunpack.c.h.bf16 %v10802_v38 }
 0x27c   : > { %v3478_v39 = vpop.f32.mrf.mxu1  ;;  %v11999_v62 = vpop.f32.mrf.mxu0 }
 0x27d   : > { %17953 = vst [vmem:[#allocation7_spill] sm:$0xff] %v14576_v56  ;;  %v3146_v48 = vadd.f32 %v11999_v62, %v14234_v55  ;;  %v14579_v58 = vadd.f32 %v3478_v39, %v3144_v23  ;;  %v10937_v55 = vld [vmem:[%s14328_s13 + $0x18] sm:$0xff]   ;;  %4161 = vst.msk [vmem:[#allocation3] sm:$0xff] %vm4160_vm2, %v10803_v15  ;;  %v14607_v15 = vld [vmem:[%s17497_s3] ss:$0 sm:$0xff] }
 0x27e   : > { %v12049_v36 = vpop.f32.mrf.mxu1  ;;  %v3092_v45 = vpop.f32.mrf.mxu0  ;;  %v10815_v39 = vunpack.c.l.bf16 %v10937_v55  ;;  %v10816_v62 = vunpack.c.h.bf16 %v10937_v55  ;;  %4162 = vst.msk [vmem:[#allocation3 + $0x8] sm:$0xff] %vm4160_vm2, %v10804_v7 }
 0x27f   : > { %v14581_v22 = vadd.f32 %v12049_v36, %v3146_v48  ;;  %v10938_v48 = vld [vmem:[%s14328_s13 + $0x20] sm:$0xff]  }
 0x280   : > { %v3481_v52 = vpop.f32.mrf.mxu1  ;;  %v12002_v25 = vpop.f32.mrf.mxu0  ;;  %4167 = vst.msk [vmem:[#allocation3 + $0x30] sm:$0xff] %vm4160_vm2, %v10815_v39  ;;  %4168 = vst.msk [vmem:[#allocation3 + $0x38] sm:$0xff] %vm4160_vm2, %v10816_v62 }
 0x281   : > { %v3148_v53 = vadd.f32 %v12002_v25, %v14238_v19  ;;  %v10819_v25 = vunpack.c.l.bf16 %v10938_v48 }
 0x282   : > { %v12052_v31 = vpop.f32.mrf.mxu1  ;;  %v3104_v32 = vpop.f32.mrf.mxu0 }
 0x283   : > { %v14585_v27 = vadd.f32 %v12052_v31, %v3148_v53  ;;  %v2729_v31 = vadd.f32 %v14123_v12, %v14119_v4  ;;  %v10939_v53 = vld [vmem:[%s14328_s13 + $0x28] sm:$0xff]   ;;  %v10820_v4 = vunpack.c.h.bf16 %v10938_v48  ;;  %4169 = vst.msk [vmem:[#allocation3 + $0x40] sm:$0xff] %vm4160_vm2, %v10819_v25  ;;  %v10940_v25 = vld [vmem:[%s14328_s13 + $0x30] sm:$0xff]  }
 0x284   : > { %v3493_v56 = vpop.f32.mrf.mxu1  ;;  %v12003_v23 = vpop.f32.mrf.mxu0  ;;  %v10823_v12 = vunpack.c.l.bf16 %v10939_v53  ;;  %v10824_v62 = vunpack.c.h.bf16 %v10939_v53 }
 0x285   : > { %v4447_v56 = vld [vmem:[%s17498_s4] sm:$0xf]  ;;  %v3118_v36 = vadd.f32 %v14248_v60, %v2729_v31  ;;  %v4448_v60 = vld [vmem:[#allocation3 + $0x1] sm:$0xff]  ;;  %4170 = vst.msk [vmem:[#allocation3 + $0x48] sm:$0xff] %vm4160_vm2, %v10820_v4 }
 0x286   : > { %v12053_v52 = vpop.f32.mrf.mxu1  ;;  %v14590_v19 = vpop.f32.mrf.mxu0  ;;  %12744 = vmatprep.subr.msk.bf16.mxu0 %vm707_vm0, %v4447_v56  ;;  %v4878_v45 = vsel %vm707_vm0, %v4447_v56, 0  ;;  %v4449_v55 = vld [vmem:[#allocation3 + $0x9] sm:$0xff]  ;;  %v4376_v23 = vld [vmem:[#allocation3] sm:$0xff]  ;;  %4171 = vst.msk [vmem:[#allocation3 + $0x50] sm:$0xff] %vm4160_vm2, %v10823_v12  ;;  %4172 = vst.msk [vmem:[#allocation3 + $0x58] sm:$0xff] %vm4160_vm2, %v10824_v62  ;;  %v10827_v12 = vunpack.c.l.bf16 %v10940_v25 }
 0x287   : > { %12155 = vmatpush3.bf16.msra.mxu0 %v4878_v45  ;;  %v4495_v52 = vpack.c.bf16 %v4449_v55, %v4448_v60  ;;  %v4377_v31 = vld [vmem:[#allocation3 + $0x8] sm:$0xff] }
 0x288   : > { %v12058_v38 = vpop.f32.mrf.mxu0  ;;  %v4423_v48 = vpack.c.bf16 %v4377_v31, %v4376_v23  ;;  %v10941_v60 = vld [vmem:[%s14328_s13 + $0x38] sm:$0xff]   ;;  %4173 = vst.msk [vmem:[#allocation3 + $0x60] sm:$0xff] %vm4160_vm2, %v10827_v12  ;;  %v10828_v23 = vunpack.c.h.bf16 %v10940_v25 }
 0x289   : > { %v3507_v38 = vadd.f32 %v14252_v37, %v3118_v36  ;;  %12106 = vmatprep.mubr.msk.bf16.mxu1 %vm435_vm1, %v4495_v52 }
 0x28a   : > { %v3720_v32 = vpop.f32.mrf.mxu0  ;;  %12156 = vmatprep.mubr.msk.bf16.mxu0 %vm435_vm1, %v4423_v48  ;;  %4174 = vst.msk [vmem:[#allocation3 + $0x68] sm:$0xff] %vm4160_vm2, %v10828_v23 }
 0x28b   : > { %v3895_v7 = vadd.f32 %v3720_v32, %v14246_v8 }
 0x28c   : > { %v12059_v39 = vpop.f32.mrf.mxu0 }
 0x28d   : > { %v3897_v56 = vadd.f32 %v12059_v39, %v14250_v9  ;;  %v3934_v8 = vadd.f32 %v14607_v15, %v3895_v7  ;;  %v10831_v39 = vunpack.c.l.bf16 %v10941_v60 }
 0x28e   : > { %v3723_v45 = vpop.f32.mrf.mxu0 }
 0x28f   : > { %v3896_v53 = vadd.f32 %v3723_v45, %v3507_v38  ;;  %v3966_v32 = vmax.f32 %v3934_v8, 0.0  ;;  %v3936_v4 = vadd.f32 %v14607_v15, %v3897_v56  ;;  %v10832_v38 = vunpack.c.h.bf16 %v10941_v60  ;;  %4175 = vst.msk [vmem:[#allocation3 + $0x70] sm:$0xff] %vm4160_vm2, %v10831_v39 }
 0x290   : > { %v12062_v37 = vpop.f32.mrf.mxu0  ;;  %v2737_v39 = vadd.f32 %v14157_v0, %v14153_v30 }
 0x291   : > { %v3935_v9 = vadd.f32 %v14607_v15, %v3896_v53  ;;  %v3899_v36 = vadd.f32 %v12062_v37, %v14256_v61  ;;  %4217 = vrot.lane.b32.xlu0 %v3966_v32, %s12869_s18  ;;  %v3968_v7 = vmax.f32 %v3936_v4, 0.0  ;;  %4176 = vst.msk [vmem:[#allocation3 + $0x78] sm:$0xff] %vm4160_vm2, %v10832_v38  ;;  %v10942_v4 = vld [vmem:[%s14328_s13 + $0x40] sm:$0xff]  }
 0x292   : > { %v3735_v55 = vpop.f32.mrf.mxu0  ;;  %v3126_v38 = vadd.f32 %v14274_v18, %v2737_v39 }
 0x293   : > { %v3938_v62 = vadd.f32 %v14607_v15, %v3899_v36  ;;  %v3898_v52 = vadd.f32 %v3735_v55, %v14259_v13  ;;  %4228 = vrot.lane.b32.xlu1 %v3968_v7, %s12869_s18  ;;  %v3967_v31 = vmax.f32 %v3935_v9, 0.0  ;;  %v2734_v13 = vadd.f32 %v14144_v57, %v14142_v50 }
 0x294   : > { %v12063_v61 = vpop.f32.mrf.mxu0  ;;  %v10836_v9 = vunpack.c.h.bf16 %v10942_v4  ;;  %v3515_v18 = vadd.f32 %v14278_v11, %v3126_v38 }
 0x295   : > { %v3937_v56 = vadd.f32 %v14607_v15, %v3898_v52  ;;  %v3900_v8 = vadd.f32 %v12063_v61, %v14261_v26  ;;  %4219 = vrot.lane.b32.xlu0 %v3967_v31, %s12869_s18  ;;  %v3970_v45 = vmax.f32 %v3938_v62, 0.0  ;;  %v3123_v12 = vadd.f32 %v14266_v49, %v2734_v13  ;;  %v10944_v61 = vld [vmem:[%s14328_s13 + $0x50] sm:$0xff]  }
 0x296   : > { %v3738_v48 = vpop.f32.mrf.mxu0  ;;  %v10835_v26 = vunpack.c.l.bf16 %v10942_v4  ;;  %4178 = vst.msk [vmem:[#allocation3 + $0x88] sm:$0xff] %vm4160_vm2, %v10836_v9  ;;  %v10844_v13 = vunpack.c.h.bf16 %v10944_v61 }
 0x297   : > { %v3969_v25 = vmax.f32 %v3937_v56, 0.0  ;;  %v3939_v53 = vadd.f32 %v14607_v15, %v3900_v8  ;;  %v3512_v49 = vadd.f32 %v14268_v46, %v3123_v12  ;;  %v10945_v56 = vld [vmem:[%s14328_s13 + $0x58] sm:$0xff]   ;;  %v10843_v48 = vunpack.c.l.bf16 %v10944_v61 }
 0x298   : > { %v12066_v32 = vpop.f32.mrf.mxu0  ;;  %4177 = vst.msk [vmem:[#allocation3 + $0x80] sm:$0xff] %vm4160_vm2, %v10835_v26  ;;  %v10847_v30 = vunpack.c.l.bf16 %v10945_v56  ;;  %4182 = vst.msk [vmem:[#allocation3 + $0xa8] sm:$0xff] %vm4160_vm2, %v10844_v13 }
 0x299   : > { %v3902_v37 = vadd.f32 %v12066_v32, %v14264_v24  ;;  %4230 = vrot.lane.b32.xlu1 %v3969_v25, %s12869_s18  ;;  %4238 = vrot.lane.b32.xlu0 %v3970_v45, %s12869_s18  ;;  %v3971_v7 = vmax.f32 %v3939_v53, 0.0  ;;  %v10943_v24 = vld [vmem:[%s14328_s13 + $0x48] sm:$0xff]   ;;  %4181 = vst.msk [vmem:[#allocation3 + $0xa0] sm:$0xff] %vm4160_vm2, %v10843_v48  ;;  %v10848_v53 = vunpack.c.h.bf16 %v10945_v56 }
 0x29a   : > { %v3750_v36 = vpop.f32.mrf.mxu0  ;;  %v10839_v55 = vunpack.c.l.bf16 %v10943_v24  ;;  %v10840_v23 = vunpack.c.h.bf16 %v10943_v24  ;;  %4183 = vst.msk [vmem:[#allocation3 + $0xb0] sm:$0xff] %vm4160_vm2, %v10847_v30 }
 0x29b   : > { %v3941_v50 = vadd.f32 %v14607_v15, %v3902_v37  ;;  %4184 = vst.msk [vmem:[#allocation3 + $0xb8] sm:$0xff] %vm4160_vm2, %v10848_v53 }
 0x29c   : > { %v12067_v57 = vpop.f32.mrf.mxu0  ;;  %4179 = vst.msk [vmem:[#allocation3 + $0x90] sm:$0xff] %vm4160_vm2, %v10839_v55  ;;  %4180 = vst.msk [vmem:[#allocation3 + $0x98] sm:$0xff] %vm4160_vm2, %v10840_v23 }
 0x29d   : > { %4240 = vrot.lane.b32.xlu1 %v3971_v7, %s12869_s18  ;;  %v3973_v62 = vmax.f32 %v3941_v50, 0.0  ;;  %v10947_v57 = vld [vmem:[%s14328_s13 + $0x68] sm:$0xff]  }
 0x29e   : > { %v3752_v60 = vpop.f32.mrf.mxu0 }
 0x29f   : > { %v3901_v52 = vadd.f32 %v3752_v60, %v3512_v49  ;;  %v10855_v60 = vunpack.c.l.bf16 %v10947_v57 }
 0x2a0   : > { %v12070_v31 = vpop.f32.mrf.mxu0 }
 0x2a1   : > { %v3940_v46 = vadd.f32 %v14607_v15, %v3901_v52  ;;  %4250 = vrot.lane.b32.xlu1 %v3973_v62, %s12869_s18  ;;  %v10856_v62 = vunpack.c.h.bf16 %v10947_v57  ;;  %4187 = vst.msk [vmem:[#allocation3 + $0xd0] sm:$0xff] %vm4160_vm2, %v10855_v60 }
 0x2a2   : > { %v3764_v8 = vpop.f32.mrf.mxu0 }
 0x2a3   : > { %v3903_v0 = vadd.f32 %v3764_v8, %v14272_v35  ;;  %v3972_v45 = vmax.f32 %v3940_v46, 0.0  ;;  %v10946_v35 = vld [vmem:[%s14328_s13 + $0x60] sm:$0xff]   ;;  %4188 = vst.msk [vmem:[#allocation3 + $0xd8] sm:$0xff] %vm4160_vm2, %v10856_v62  ;;  %v2742_v46 = vadd.f32 %v14178_v51, %v14176_v34 }
 0x2a4   : > { %v12071_v25 = vpop.f32.mrf.mxu0  ;;  %v10851_v36 = vunpack.c.l.bf16 %v10946_v35  ;;  %v10852_v24 = vunpack.c.h.bf16 %v10946_v35 }
 0x2a5   : > { %v3942_v32 = vadd.f32 %v14607_v15, %v3903_v0  ;;  %v3905_v4 = vadd.f32 %v12071_v25, %v14276_v5  ;;  %4248 = vrot.lane.b32.xlu0 %v3972_v45, %s12869_s18  ;;  %v3131_v13 = vadd.f32 %v14297_v10, %v2742_v46 }
 0x2a6   : > { %v3767_v12 = vpop.f32.mrf.mxu0  ;;  %4185 = vst.msk [vmem:[#allocation3 + $0xc0] sm:$0xff] %vm4160_vm2, %v10851_v36  ;;  %4186 = vst.msk [vmem:[#allocation3 + $0xc8] sm:$0xff] %vm4160_vm2, %v10852_v24  ;;  %v10950_v36 = vld [vmem:[%s14328_s13 + $0x80] sm:$0xff]  }
 0x2a7   : > { %v3974_v37 = vmax.f32 %v3942_v32, 0.0  ;;  %v3944_v26 = vadd.f32 %v14607_v15, %v3905_v4  ;;  %v3904_v9 = vadd.f32 %v3767_v12, %v3515_v18  ;;  %v3520_v10 = vadd.f32 %v14299_v3, %v3131_v13 }
 0x2a8   : > { %v12074_v7 = vpop.f32.mrf.mxu0  ;;  %v2745_v12 = vadd.f32 %v14191_v17, %v14187_v42  ;;  %v10868_v57 = vunpack.c.h.bf16 %v10950_v36 }
 0x2a9   : > { %v3943_v50 = vadd.f32 %v14607_v15, %v3904_v9  ;;  %v3907_v11 = vadd.f32 %v12074_v7, %v14282_v28  ;;  %4258 = vrot.lane.b32.xlu0 %v3974_v37, %s12869_s18  ;;  %v3976_v5 = vmax.f32 %v3944_v26, 0.0  ;;  %v14681_v28 = vld [vmem:[%s17498_s4 + $0x8] sm:$0xf] }
 0x2aa   : > { %v3779_v49 = vpop.f32.mrf.mxu0  ;;  %12745 = vmatprep.subr.msk.bf16.mxu1 %vm707_vm0, %v14681_v28  ;;  %v3134_v9 = vadd.f32 %v14305_v1, %v2745_v12  ;;  %v10951_v7 = vld [vmem:[%s14328_s13 + $0x88] sm:$0xff]   ;;  %4194 = vst.msk [vmem:[#allocation3 + $0x108] sm:$0xff] %vm4160_vm2, %v10868_v57  ;;  %v17957_v57 = vld [vmem:[#allocation38_spill] sm:$0xff] }
 0x2ab   : > { %v3946_v55 = vadd.f32 %v14607_v15, %v3907_v11  ;;  %v3906_v23 = vadd.f32 %v3779_v49, %v14285_v44  ;;  %v3975_v39 = vmax.f32 %v3943_v50, 0.0  ;;  %v10867_v11 = vunpack.c.l.bf16 %v10950_v36 }
 0x2ac   : > { %v12075_v52 = vpop.f32.mrf.mxu0  ;;  %v10871_v42 = vunpack.c.l.bf16 %v10951_v7  ;;  %v10872_v24 = vunpack.c.h.bf16 %v10951_v7  ;;  %v3523_v1 = vadd.f32 %v14309_v59, %v3134_v9 }
 0x2ad   : > { %v3945_v31 = vadd.f32 %v14607_v15, %v3906_v23  ;;  %v3908_v38 = vadd.f32 %v12075_v52, %v14291_v14  ;;  %4260 = vrot.lane.b32.xlu1 %v3975_v39, %s12869_s18  ;;  %4268 = vrot.lane.b32.xlu0 %v3976_v5, %s12869_s18  ;;  %v3978_v61 = vmax.f32 %v3946_v55, 0.0  ;;  %v10948_v14 = vld [vmem:[%s14328_s13 + $0x70] sm:$0xff]   ;;  %4193 = vst.msk [vmem:[#allocation3 + $0x100] sm:$0xff] %vm4160_vm2, %v10867_v11 }
 0x2ae   : > { %v3782_v44 = vpop.f32.mrf.mxu0  ;;  %v10859_v0 = vunpack.c.l.bf16 %v10948_v14  ;;  %v10860_v45 = vunpack.c.h.bf16 %v10948_v14  ;;  %4195 = vst.msk [vmem:[#allocation3 + $0x110] sm:$0xff] %vm4160_vm2, %v10871_v42  ;;  %4196 = vst.msk [vmem:[#allocation3 + $0x118] sm:$0xff] %vm4160_vm2, %v10872_v24  ;;  %v17958_v24 = vld [vmem:[#allocation9_spill] sm:$0xff] }
 0x2af   : > { %v3977_v56 = vmax.f32 %v3945_v31, 0.0  ;;  %v3947_v8 = vadd.f32 %v14607_v15, %v3908_v38  ;;  %v1972_v38 = vadd.f32 %v14069_v21, %v14067_v63 }
 0x2b0   : > { %v12078_v48 = vpop.f32.mrf.mxu0  ;;  %4189 = vst.msk [vmem:[#allocation3 + $0xe0] sm:$0xff] %vm4160_vm2, %v10859_v0  ;;  %4190 = vst.msk [vmem:[#allocation3 + $0xe8] sm:$0xff] %vm4160_vm2, %v10860_v45 }
 0x2b1   : > { %v3910_v30 = vadd.f32 %v12078_v48, %v14295_v6  ;;  %4270 = vrot.lane.b32.xlu1 %v3977_v56, %s12869_s18  ;;  %4278 = vrot.lane.b32.xlu0 %v3978_v61, %s12869_s18  ;;  %v3979_v53 = vmax.f32 %v3947_v8, 0.0  ;;  %v10949_v6 = vld [vmem:[%s14328_s13 + $0x78] sm:$0xff]   ;;  %v2361_v61 = vadd.f32 %v14209_v2, %v1972_v38 }
 0x2b2   : > { %v3794_v25 = vpop.f32.mrf.mxu0  ;;  %v10863_v32 = vunpack.c.l.bf16 %v10949_v6  ;;  %v10864_v4 = vunpack.c.h.bf16 %v10949_v6 }
 0x2b3   : > { %v3949_v34 = vadd.f32 %v14607_v15, %v3910_v30 }
 0x2b4   : > { %v12079_v51 = vpop.f32.mrf.mxu0  ;;  %4191 = vst.msk [vmem:[#allocation3 + $0xf0] sm:$0xff] %vm4160_vm2, %v10863_v32  ;;  %4192 = vst.msk [vmem:[#allocation3 + $0xf8] sm:$0xff] %vm4160_vm2, %v10864_v4  ;;  %v10954_v32 = vld [vmem:[%s14328_s13 + $0xa0] sm:$0xff]  }
 0x2b5   : > { %4280 = vrot.lane.b32.xlu1 %v3979_v53, %s12869_s18  ;;  %v3981_v35 = vmax.f32 %v3949_v34, 0.0  ;;  %v17954_v51 = vld [vmem:[#allocation28_spill] sm:$0xff]  ;;  %v10883_v12 = vunpack.c.l.bf16 %v10954_v32 }
 0x2b6   : > { %v3796_v18 = vpop.f32.mrf.mxu0 }
 0x2b7   : > { %v3909_v37 = vadd.f32 %v3796_v18, %v3520_v10  ;;  %v17955_v10 = vld [vmem:[#allocation30_spill] sm:$0xff]  ;;  %4201 = vst.msk [vmem:[#allocation3 + $0x140] sm:$0xff] %vm4160_vm2, %v10883_v12 }
 0x2b8   : > { %v12082_v26 = vpop.f32.mrf.mxu0  ;;  %v1975_v6 = vadd.f32 %v17955_v10, %v17954_v51  ;;  %v17965_v51 = vld [vmem:[#allocation37_spill] sm:$0xff] }
 0x2b9   : > { %v3948_v3 = vadd.f32 %v14607_v15, %v3909_v37  ;;  %4290 = vrot.lane.b32.xlu1 %v3981_v35, %s12869_s18  ;;  %v17956_v37 = vld [vmem:[#allocation35_spill] sm:$0xff] }
 0x2ba   : > { %v3808_v50 = vpop.f32.mrf.mxu0  ;;  %v2364_v26 = vadd.f32 %v17956_v37, %v1975_v6 }
 0x2bb   : > { %v3911_v17 = vadd.f32 %v3808_v50, %v14303_v41  ;;  %v3980_v5 = vmax.f32 %v3948_v3, 0.0  ;;  %v10952_v41 = vld [vmem:[%s14328_s13 + $0x90] sm:$0xff]  }
 0x2bc   : > { %v12083_v49 = vpop.f32.mrf.mxu0  ;;  %v10875_v31 = vunpack.c.l.bf16 %v10952_v41  ;;  %v10876_v48 = vunpack.c.h.bf16 %v10952_v41  ;;  %v2753_v42 = vadd.f32 %v17957_v57, %v2364_v26 }
 0x2bd   : > { %v3950_v60 = vadd.f32 %v14607_v15, %v3911_v17  ;;  %v3913_v55 = vadd.f32 %v12083_v49, %v14307_v54  ;;  %4288 = vrot.lane.b32.xlu0 %v3980_v5, %s12869_s18  ;;  %v10953_v54 = vld [vmem:[%s14328_s13 + $0x98] sm:$0xff]  }
 0x2be   : > { %v3811_v23 = vpop.f32.mrf.mxu0  ;;  %4197 = vst.msk [vmem:[#allocation3 + $0x120] sm:$0xff] %vm4160_vm2, %v10875_v31  ;;  %v10879_v14 = vunpack.c.l.bf16 %v10953_v54  ;;  %v10880_v30 = vunpack.c.h.bf16 %v10953_v54  ;;  %4198 = vst.msk [vmem:[#allocation3 + $0x128] sm:$0xff] %vm4160_vm2, %v10876_v48 }
 0x2bf   : > { %v3982_v39 = vmax.f32 %v3950_v60, 0.0  ;;  %v3952_v62 = vadd.f32 %v14607_v15, %v3913_v55  ;;  %v3912_v52 = vadd.f32 %v3811_v23, %v3523_v1  ;;  %v3142_v1 = vadd.f32 %v17958_v24, %v2753_v42  ;;  %v10956_v60 = vld [vmem:[%s14328_s13 + $0xb0] sm:$0xff]   ;;  %v10957_v55 = vld [vmem:[%s14328_s13 + $0xb8] sm:$0xff]  }
 0x2c0   : > { %v12086_v59 = vpop.f32.mrf.mxu0  ;;  %4199 = vst.msk [vmem:[#allocation3 + $0x130] sm:$0xff] %vm4160_vm2, %v10879_v14  ;;  %4200 = vst.msk [vmem:[#allocation3 + $0x138] sm:$0xff] %vm4160_vm2, %v10880_v30  ;;  %v10891_v41 = vunpack.c.l.bf16 %v10956_v60  ;;  %v10958_v14 = vld [vmem:[%s14328_s13 + $0xc0] sm:$0xff]  }
 0x2c1   : > { %v3951_v44 = vadd.f32 %v14607_v15, %v3912_v52  ;;  %v3915_v46 = vadd.f32 %v12086_v59, %v14313_v40  ;;  %4298 = vrot.lane.b32.xlu0 %v3982_v39, %s12869_s18  ;;  %v3984_v56 = vmax.f32 %v3952_v62, 0.0  ;;  %v10892_v39 = vunpack.c.h.bf16 %v10956_v60  ;;  %v17959_v52 = vld [vmem:[#allocation5_spill] sm:$0xff] }
 0x2c2   : > { %v3823_v8 = vpop.f32.mrf.mxu0  ;;  %v10895_v62 = vunpack.c.l.bf16 %v10957_v55  ;;  %4205 = vst.msk [vmem:[#allocation3 + $0x160] sm:$0xff] %vm4160_vm2, %v10891_v41  ;;  %v10899_v30 = vunpack.c.l.bf16 %v10958_v14 }
 0x2c3   : > { %v3954_v13 = vadd.f32 %v14607_v15, %v3915_v46  ;;  %v3914_v63 = vadd.f32 %v3823_v8, %v14316_v33  ;;  %v3983_v21 = vmax.f32 %v3951_v44, 0.0  ;;  %v2750_v33 = vadd.f32 %v14211_v29, %v2361_v61  ;;  %4206 = vst.msk [vmem:[#allocation3 + $0x168] sm:$0xff] %vm4160_vm2, %v10892_v39  ;;  %v17960_v46 = vld [vmem:[#allocation8_spill] sm:$0xff] }
 0x2c4   : > { %v12087_v0 = vpop.f32.mrf.mxu0  ;;  %v10884_v29 = vunpack.c.h.bf16 %v10954_v32  ;;  %v10896_v44 = vunpack.c.h.bf16 %v10957_v55  ;;  %4207 = vst.msk [vmem:[#allocation3 + $0x170] sm:$0xff] %vm4160_vm2, %v10895_v62  ;;  %v3531_v54 = vadd.f32 %v17960_v46, %v3142_v1  ;;  %4209 = vst.msk [vmem:[#allocation3 + $0x180] sm:$0xff] %vm4160_vm2, %v10899_v30  ;;  %v4450_v62 = vld [vmem:[#allocation3 + $0x11] sm:$0xff] }
 0x2c5   : > { %v3953_v40 = vadd.f32 %v14607_v15, %v3914_v63  ;;  %v3916_v2 = vadd.f32 %v12087_v0, %v14318_v16  ;;  %4300 = vrot.lane.b32.xlu1 %v3983_v21, %s12869_s18  ;;  %4308 = vrot.lane.b32.xlu0 %v3984_v56, %s12869_s18  ;;  %v3986_v25 = vmax.f32 %v3954_v13, 0.0  ;;  %v3139_v16 = vadd.f32 %v14330_v43, %v2750_v33  ;;  %v10955_v43 = vld [vmem:[%s14328_s13 + $0xa8] sm:$0xff]   ;;  %v17961_v56 = vld [vmem:[#allocation10_spill] sm:$0xff]  ;;  %v17962_v0 = vld [vmem:[#allocation29_spill] sm:$0xff] }
 0x2c6   : > { %v3826_v45 = vpop.f32.mrf.mxu0  ;;  %4202 = vst.msk [vmem:[#allocation3 + $0x148] sm:$0xff] %vm4160_vm2, %v10884_v29  ;;  %v10887_v50 = vunpack.c.l.bf16 %v10955_v43  ;;  %v10888_v11 = vunpack.c.h.bf16 %v10955_v43  ;;  %4208 = vst.msk [vmem:[#allocation3 + $0x178] sm:$0xff] %vm4160_vm2, %v10896_v44 }
 0x2c7   : > { %v3985_v53 = vmax.f32 %v3953_v40, 0.0  ;;  %v3955_v34 = vadd.f32 %v14607_v15, %v3916_v2  ;;  %v17963_v40 = vld [vmem:[#allocation36_spill] sm:$0xff] }
 0x2c8   : > { %v12090_v18 = vpop.f32.mrf.mxu0  ;;  %4203 = vst.msk [vmem:[#allocation3 + $0x150] sm:$0xff] %vm4160_vm2, %v10887_v50  ;;  %4204 = vst.msk [vmem:[#allocation3 + $0x158] sm:$0xff] %vm4160_vm2, %v10888_v11  ;;  %v1980_v2 = vadd.f32 %v17963_v40, %v17962_v0 }
 0x2c9   : > { %v3918_v4 = vadd.f32 %v12090_v18, %v14321_v47  ;;  %4310 = vrot.lane.b32.xlu1 %v3985_v53, %s12869_s18  ;;  %4318 = vrot.lane.b32.xlu0 %v3986_v25, %s12869_s18  ;;  %v3987_v9 = vmax.f32 %v3955_v34, 0.0  ;;  %v3528_v47 = vadd.f32 %v14554_v20, %v3139_v16  ;;  %v17964_v25 = vld [vmem:[#allocation7_spill] sm:$0xff]  ;;  %v10959_v34 = vld [vmem:[%s14328_s13 + $0xc8] sm:$0xff]   ;;  %v10900_v18 = vunpack.c.h.bf16 %v10958_v14 }
 0x2ca   : > { %v3838_v35 = vpop.f32.mrf.mxu0  ;;  %v2369_v10 = vadd.f32 %v17965_v51, %v1980_v2  ;;  %v10903_v32 = vunpack.c.l.bf16 %v10959_v34  ;;  %v10904_v16 = vunpack.c.h.bf16 %v10959_v34  ;;  %v14851_v51 = vld [vmem:[#allocation3 + $0x41] sm:$0xff] }
 0x2cb   : > { %v3957_v3 = vadd.f32 %v14607_v15, %v3918_v4  ;;  %4210 = vst.msk [vmem:[#allocation3 + $0x188] sm:$0xff] %vm4160_vm2, %v10900_v18  ;;  %17967 = vst [vmem:[#allocation11_spill] sm:$0xff] %v14851_v51 }
 0x2cc   : > { %v12091_v36 = vpop.f32.mrf.mxu0  ;;  %4211 = vst.msk [vmem:[#allocation3 + $0x190] sm:$0xff] %vm4160_vm2, %v10903_v32  ;;  %4212 = vst.msk [vmem:[#allocation3 + $0x198] sm:$0xff] %vm4160_vm2, %v10904_v16 }
 0x2cd   : > { %4320 = vrot.lane.b32.xlu1 %v3987_v9, %s12869_s18  ;;  %v3989_v17 = vmax.f32 %v3957_v3, 0.0  ;;  %v17966_v36 = vld [vmem:[#allocation6_spill] sm:$0xff] }
 0x2ce   : > { %v3840_v7 = vpop.f32.mrf.mxu0 }
 0x2cf   : > { %v3917_v5 = vadd.f32 %v3840_v7, %v3528_v47  ;;  %v2758_v47 = vadd.f32 %v17966_v36, %v2369_v10 }
 0x2d0   : > { %v12094_v49 = vpop.f32.mrf.mxu0 }
 0x2d1   : > { %v3956_v20 = vadd.f32 %v14607_v15, %v3917_v5  ;;  %4330 = vrot.lane.b32.xlu1 %v3989_v17, %s12869_s18  ;;  %v3147_v11 = vadd.f32 %v14590_v19, %v2758_v47 }
 0x2d2   : > { %v3852_v23 = vpop.f32.mrf.mxu0 }
 0x2d3   : > { %v3919_v31 = vadd.f32 %v3852_v23, %v17959_v52  ;;  %v3988_v38 = vmax.f32 %v3956_v20, 0.0  ;;  %v4378_v52 = vld [vmem:[#allocation3 + $0x10] sm:$0xff] }
 0x2d4   : > { %v12095_v59 = vpop.f32.mrf.mxu0 }
 0x2d5   : > { %v3958_v61 = vadd.f32 %v14607_v15, %v3919_v31  ;;  %v3921_v8 = vadd.f32 %v12095_v59, %v17961_v56  ;;  %4328 = vrot.lane.b32.xlu0 %v3988_v38, %s12869_s18  ;;  %v4453_v56 = vld [vmem:[#allocation3 + $0x29] sm:$0xff] }
 0x2d6   : > { %v3855_v48 = vpop.f32.mrf.mxu0 }
 0x2d7   : > { %v3990_v13 = vmax.f32 %v3958_v61, 0.0  ;;  %v3960_v63 = vadd.f32 %v14607_v15, %v3921_v8  ;;  %v3920_v21 = vadd.f32 %v3855_v48, %v3531_v54  ;;  %v5235_v54 = vsel %vm707_vm0, %v14681_v28, 0  ;;  %v14822_v8 = vld [vmem:[%s17498_s4 + $0x10] sm:$0xf] }
 0x2d8   : > { %v12098_v45 = vpop.f32.mrf.mxu0 }
 0x2d9   : > { %v3959_v33 = vadd.f32 %v14607_v15, %v3920_v21  ;;  %v3923_v53 = vadd.f32 %v12098_v45, %v17964_v25  ;;  %4338 = vrot.lane.b32.xlu0 %v3990_v13, %s12869_s18  ;;  %v3992_v4 = vmax.f32 %v3960_v63, 0.0 }
 0x2da   : > { %v3867_v6 = vpop.f32.mrf.mxu0 }
 0x2db   : > { %v3962_v12 = vadd.f32 %v14607_v15, %v3923_v53  ;;  %v3922_v29 = vadd.f32 %v3867_v6, %v14579_v58  ;;  %v3991_v35 = vmax.f32 %v3959_v33, 0.0  ;;  %v4456_v33 = vld [vmem:[#allocation3 + $0x41] sm:$0xff] }
 0x2dc   : > { %v12099_v37 = vpop.f32.mrf.mxu0 }
 0x2dd   : > { %v3961_v26 = vadd.f32 %v14607_v15, %v3922_v29  ;;  %v3924_v9 = vadd.f32 %v12099_v37, %v14581_v22  ;;  %4340 = vrot.lane.b32.xlu1 %v3991_v35, %s12869_s18  ;;  %4348 = vrot.lane.b32.xlu0 %v3992_v4, %s12869_s18  ;;  %v3994_v58 = vmax.f32 %v3962_v12, 0.0  ;;  %v3495_v22 = vpop.f32.mrf.mxu1 }
 0x2de   : > { %v3870_v3 = vpop.f32.mrf.mxu0  ;;  %v3536_v24 = vadd.f32 %v3495_v22, %v3147_v11  ;;  %v14884_v11 = vld [vmem:[#allocation3 + $0x59] sm:$0xff] }
 0x2df   : > { %v3993_v43 = vmax.f32 %v3961_v26, 0.0  ;;  %v3963_v7 = vadd.f32 %v14607_v15, %v3924_v9  ;;  %17971 = vst [vmem:[#allocation15_spill] sm:$0xff] %v14884_v11 }
 0x2e0   : > { %v12102_v50 = vpop.f32.mrf.mxu0 }
 0x2e1   : > { %v3926_v57 = vadd.f32 %v12102_v50, %v14585_v27  ;;  %4350 = vrot.lane.b32.xlu1 %v3993_v43, %s12869_s18  ;;  %4358 = vrot.lane.b32.xlu0 %v3994_v58, %s12869_s18  ;;  %v3995_v17 = vmax.f32 %v3963_v7, 0.0  ;;  %v10513_v27 = vld [vmem:[%s17498_s4 + $0xc] sm:$0xf] }
 0x2e2   : > { %v3882_v42 = vpop.f32.mrf.mxu0  ;;  %12746 = vmatprep.subr.msk.bf16.mxu0 %vm707_vm0, %v10513_v27  ;;  %v5624_v61 = vsel %vm707_vm0, %v10513_v27, 0 }
 0x2e3   : > { %v3965_v5 = vadd.f32 %v14607_v15, %v3926_v57 }
 0x2e4   : > { %v12103_v49 = vpop.f32.mrf.mxu0 }
 0x2e5   : > { %4360 = vrot.lane.b32.xlu1 %v3995_v17, %s12869_s18  ;;  %v3997_v20 = vmax.f32 %v3965_v5, 0.0  ;;  %v4471_v5 = vld [vmem:[#allocation3 + $0xb9] sm:$0xff] }
 0x2e6   : > { %v3884_v1 = vpop.f32.mrf.mxu0 }
 0x2e7   : > { %v3925_v60 = vadd.f32 %v3884_v1, %v3536_v24 }
 0x2e9   : > { %v3964_v19 = vadd.f32 %v14607_v15, %v3925_v60  ;;  %4370 = vrot.lane.b32.xlu1 %v3997_v20, %s12869_s18  ;;  %v4459_v60 = vld [vmem:[#allocation3 + $0x59] sm:$0xff] }
 0x2eb   : > { %v3996_v55 = vmax.f32 %v3964_v19, 0.0 }
 0x2ed   : > { %4368 = vrot.lane.b32.xlu0 %v3996_v55, %s12869_s18  ;;  %s17467_s18 = scalar_lea.vmem %s17502_s8, %s10692_s15 }
 0x303   : > { %v4218_v23 = vpop.permute.xlu0 %4217 }
 0x304   : > { %4224 = vst.msk [vmem:[#allocation3 + $0x19] sm:$0xff] %vm4223_vm3, %v4218_v23 }
 0x305   : > { %v4229_v41 = vpop.permute.xlu1 %4228 }
 0x306   : > { %4234 = vst.msk [vmem:[#allocation3 + $0x31] sm:$0xff] %vm4223_vm3, %v4229_v41 }
 0x307   : > { %v4220_v39 = vpop.permute.xlu0 %4219 }
 0x308   : > { %4225 = vst.msk [vmem:[#allocation3 + $0x21] sm:$0xff] %vm4223_vm3, %v4220_v39 }
 0x30b   : > { %v4231_v31 = vpop.permute.xlu1 %4230  ;;  %v4239_v38 = vpop.permute.xlu0 %4238  ;;  %v4451_v15 = vld [vmem:[#allocation3 + $0x19] sm:$0xff] }
 0x30c   : > { %v14811_v59 = vld [vmem:[#allocation3 + $0x18] sm:$0xff]  ;;  %4235 = vst.msk [vmem:[#allocation3 + $0x39] sm:$0xff] %vm4223_vm3, %v4231_v31  ;;  %4244 = vst.msk [vmem:[#allocation3 + $0x49] sm:$0xff] %vm4223_vm3, %v4239_v38  ;;  %v4496_v44 = vpack.c.bf16 %v4451_v15, %v4450_v62 }
 0x30d   : > { %v4424_v46 = vpack.c.bf16 %v14811_v59, %v4378_v52  ;;  %v14826_v48 = vld [vmem:[#allocation3 + $0x30] sm:$0xff] }
 0x30e   : > { %12107 = vmatmul.mubr.msk.bf16.vlgmr.msra.gmra.mxu1 %vm435_vm1, %v4496_v44  ;;  %v4454_v53 = vld [vmem:[#allocation3 + $0x31] sm:$0xff] }
 0x30f   : > { %12157 = vmatmul.mubr.msk.bf16.vlgmr.msra.gmra.mxu0 %vm435_vm1, %v4424_v46  ;;  %v4241_v14 = vpop.permute.xlu1 %4240  ;;  %v4452_v13 = vld [vmem:[#allocation3 + $0x21] sm:$0xff]  ;;  %12205 = vmatpush3.bf16.msra.mxu1 %v5235_v54  ;;  %v14849_v34 = vld [vmem:[#allocation3 + $0x2a] sm:$0xff] }
 0x310   : > { %v14828_v63 = vld [vmem:[#allocation3 + $0x20] sm:$0xff]  ;;  %v14830_v21 = vld [vmem:[#allocation3 + $0x28] sm:$0xff]  ;;  %12255 = vmatpush3.bf16.msra.mxu0 %v5624_v61  ;;  %4245 = vst.msk [vmem:[#allocation3 + $0x51] sm:$0xff] %vm4223_vm3, %v4241_v14  ;;  %v4497_v28 = vpack.c.bf16 %v4453_v56, %v4452_v13  ;;  %12747 = vmatprep.subr.msk.bf16.mxu1 %vm707_vm0, %v14822_v8  ;;  %v14878_v43 = vld [vmem:[#allocation3 + $0x31] sm:$0xff] }
 0x311   : > { %v4425_v30 = vpack.c.bf16 %v14830_v21, %v14828_v63  ;;  %v14837_v40 = vld [vmem:[#allocation3 + $0x1a] sm:$0xff]  ;;  %v14841_v45 = vld [vmem:[#allocation3 + $0x22] sm:$0xff]  ;;  %17969 = vst [vmem:[#allocation13_spill] sm:$0xff] %v14878_v43 }
 0x312   : > { %12110 = vmatprep.mubr.msk.bf16.mxu1 %vm435_vm1, %v4497_v28 }
 0x313   : > { %12160 = vmatprep.mubr.msk.bf16.mxu0 %vm435_vm1, %v4425_v30  ;;  %v4251_v10 = vpop.permute.xlu1 %4250  ;;  %v4455_v6 = vld [vmem:[#allocation3 + $0x39] sm:$0xff]  ;;  %v4457_v32 = vld [vmem:[#allocation3 + $0x49] sm:$0xff] }
 0x314   : > { %v14853_v18 = vld [vmem:[#allocation3 + $0x38] sm:$0xff]  ;;  %4255 = vst.msk [vmem:[#allocation3 + $0x69] sm:$0xff] %vm4223_vm3, %v4251_v10  ;;  %v4498_v16 = vpack.c.bf16 %v4455_v6, %v4454_v53  ;;  %v4499_v12 = vpack.c.bf16 %v4457_v32, %v4456_v33  ;;  %v14858_v29 = vld [vmem:[#allocation3 + $0x40] sm:$0xff]  ;;  %v14860_v35 = vld [vmem:[#allocation3 + $0x48] sm:$0xff] }
 0x315   : > { %v4426_v4 = vpack.c.bf16 %v14853_v18, %v14826_v48  ;;  %v14862_v37 = vld [vmem:[#allocation3 + $0x32] sm:$0xff]  ;;  %v4427_v26 = vpack.c.bf16 %v14860_v35, %v14858_v29  ;;  %v14868_v3 = vld [vmem:[#allocation3 + $0x3a] sm:$0xff]  ;;  %v14870_v36 = vld [vmem:[#allocation3 + $0x42] sm:$0xff] }
 0x316   : > { %v14874_v58 = vld [vmem:[#allocation3 + $0x39] sm:$0xff]  ;;  %12111 = vmatmul.mubr.msk.bf16.gmra.mxu1 %vm435_vm1, %v4498_v16  ;;  %v14882_v50 = vld [vmem:[#allocation3 + $0x49] sm:$0xff]  ;;  %v4462_v33 = vld [vmem:[#allocation3 + $0x71] sm:$0xff] }
 0x317   : > { %17968 = vst [vmem:[#allocation12_spill] sm:$0xff] %v14874_v58  ;;  %12161 = vmatmul.mubr.msk.bf16.gmra.mxu0 %vm435_vm1, %v4426_v4  ;;  %17970 = vst [vmem:[#allocation14_spill] sm:$0xff] %v14882_v50  ;;  %12114 = vmatprep.mubr.msk.bf16.mxu1 %vm435_vm1, %v4499_v12  ;;  %v4249_v57 = vpop.permute.xlu0 %4248  ;;  %v14888_v22 = vld [vmem:[#allocation3 + $0x50] sm:$0xff]  ;;  %v14903_v27 = vld [vmem:[#allocation3 + $0x58] sm:$0xff] }
 0x318   : > { %12164 = vmatprep.mubr.msk.bf16.mxu0 %vm435_vm1, %v4427_v26  ;;  %4254 = vst.msk [vmem:[#allocation3 + $0x61] sm:$0xff] %vm4223_vm3, %v4249_v57  ;;  %v14897_v49 = vld [vmem:[#allocation3 + $0x4a] sm:$0xff]  ;;  %v14899_v24 = vld [vmem:[#allocation3 + $0x52] sm:$0xff]  ;;  %v4428_v39 = vpack.c.bf16 %v14903_v27, %v14888_v22  ;;  %v15105_v58 = vld [vmem:[#allocation3 + $0x101] sm:$0xff] }
 0x319   : > { %v14901_v1 = vld [vmem:[#allocation3 + $0x51] sm:$0xff]  ;;  %17993 = vst [vmem:[#allocation44_spill] sm:$0xff] %v15105_v58 }
 0x31a   : > { %17972 = vst [vmem:[#allocation16_spill] sm:$0xff] %v14901_v1  ;;  %v4458_v20 = vld [vmem:[#allocation3 + $0x51] sm:$0xff] }
 0x31b   : > { %v4259_v23 = vpop.permute.xlu0 %4258  ;;  %v4500_v41 = vpack.c.bf16 %v4459_v60, %v4458_v20  ;;  %v4461_v62 = vld [vmem:[#allocation3 + $0x69] sm:$0xff] }
 0x31c   : > { %4264 = vst.msk [vmem:[#allocation3 + $0x79] sm:$0xff] %vm4223_vm3, %v4259_v23  ;;  %v14914_v52 = vld [vmem:[#allocation3 + $0x70] sm:$0xff] }
 0x31d   : > { %v14936_v10 = vld [vmem:[#allocation3 + $0x69] sm:$0xff]  ;;  %v14952_v23 = vld [vmem:[#allocation3 + $0x71] sm:$0xff] }
 0x31e   : > { %12115 = vmatmul.mubr.msk.bf16.gmra.mxu1 %vm435_vm1, %v4500_v41  ;;  %17974 = vst [vmem:[#allocation18_spill] sm:$0xff] %v14936_v10  ;;  %v14940_v6 = vld [vmem:[#allocation3 + $0x6a] sm:$0xff]  ;;  %17975 = vst [vmem:[#allocation19_spill] sm:$0xff] %v14952_v23 }
 0x31f   : > { %12165 = vmatmul.mubr.msk.bf16.gmra.mxu0 %vm435_vm1, %v4428_v39  ;;  %v4261_v31 = vpop.permute.xlu1 %4260  ;;  %v4269_v38 = vpop.permute.xlu0 %4268  ;;  %v4460_v15 = vld [vmem:[#allocation3 + $0x61] sm:$0xff] }
 0x320   : > { %v14916_v44 = vld [vmem:[#allocation3 + $0x60] sm:$0xff]  ;;  %v14918_v46 = vld [vmem:[#allocation3 + $0x68] sm:$0xff]  ;;  %4265 = vst.msk [vmem:[#allocation3 + $0x81] sm:$0xff] %vm4223_vm3, %v4261_v31  ;;  %4274 = vst.msk [vmem:[#allocation3 + $0x91] sm:$0xff] %vm4223_vm3, %v4269_v38  ;;  %v4501_v54 = vpack.c.bf16 %v4461_v62, %v4460_v15 }
 0x321   : > { %v4429_v61 = vpack.c.bf16 %v14918_v46, %v14916_v44  ;;  %v14926_v14 = vld [vmem:[#allocation3 + $0x5a] sm:$0xff]  ;;  %v14930_v28 = vld [vmem:[#allocation3 + $0x62] sm:$0xff] }
 0x322   : > { %v14932_v30 = vld [vmem:[#allocation3 + $0x61] sm:$0xff]  ;;  %12118 = vmatprep.mubr.msk.bf16.mxu1 %vm435_vm1, %v4501_v54  ;;  %v4465_v62 = vld [vmem:[#allocation3 + $0x89] sm:$0xff] }
 0x323   : > { %17973 = vst [vmem:[#allocation17_spill] sm:$0xff] %v14932_v30  ;;  %12168 = vmatprep.mubr.msk.bf16.mxu0 %vm435_vm1, %v4429_v61  ;;  %v4271_v16 = vpop.permute.xlu1 %4270  ;;  %v4279_v4 = vpop.permute.xlu0 %4278  ;;  %v4463_v12 = vld [vmem:[#allocation3 + $0x79] sm:$0xff]  ;;  %v4477_v30 = vld [vmem:[#allocation3 + $0xe9] sm:$0xff] }
 0x324   : > { %v14944_v26 = vld [vmem:[#allocation3 + $0x78] sm:$0xff]  ;;  %4275 = vst.msk [vmem:[#allocation3 + $0x99] sm:$0xff] %vm4223_vm3, %v4271_v16  ;;  %4284 = vst.msk [vmem:[#allocation3 + $0xa9] sm:$0xff] %vm4223_vm3, %v4279_v4  ;;  %v4502_v20 = vpack.c.bf16 %v4463_v12, %v4462_v33 }
 0x325   : > { %v14946_v57 = vld [vmem:[#allocation3 + $0x72] sm:$0xff]  ;;  %v4430_v60 = vpack.c.bf16 %v14944_v26, %v14914_v52 }
 0x326   : > { %v14956_v39 = vld [vmem:[#allocation3 + $0x79] sm:$0xff]  ;;  %12119 = vmatmul.mubr.msk.bf16.gmra.mxu1 %vm435_vm1, %v4502_v20 }
 0x327   : > { %17976 = vst [vmem:[#allocation20_spill] sm:$0xff] %v14956_v39  ;;  %12169 = vmatmul.mubr.msk.bf16.gmra.mxu0 %vm435_vm1, %v4430_v60  ;;  %v4281_v38 = vpop.permute.xlu1 %4280  ;;  %v14962_v15 = vld [vmem:[#allocation3 + $0x81] sm:$0xff]  ;;  %v14972_v4 = vld [vmem:[#allocation3 + $0x90] sm:$0xff] }
 0x328   : > { %17977 = vst [vmem:[#allocation21_spill] sm:$0xff] %v14962_v15  ;;  %v14964_v54 = vld [vmem:[#allocation3 + $0x80] sm:$0xff]  ;;  %v14966_v61 = vld [vmem:[#allocation3 + $0x88] sm:$0xff]  ;;  %4285 = vst.msk [vmem:[#allocation3 + $0xb1] sm:$0xff] %vm4223_vm3, %v4281_v38  ;;  %v4503_v33 = vpack.c.bf16 %v4465_v62, %v14962_v15 }
 0x329   : > { %v4431_v16 = vpack.c.bf16 %v14966_v61, %v14964_v54  ;;  %v14976_v20 = vld [vmem:[#allocation3 + $0x7a] sm:$0xff]  ;;  %v14982_v32 = vld [vmem:[#allocation3 + $0x82] sm:$0xff]  ;;  %v14986_v62 = vld [vmem:[#allocation3 + $0x91] sm:$0xff] }
 0x32a   : > { %v14978_v60 = vld [vmem:[#allocation3 + $0xa1] sm:$0xff]  ;;  %12122 = vmatprep.mubr.msk.bf16.mxu1 %vm435_vm1, %v4503_v33  ;;  %17979 = vst [vmem:[#allocation23_spill] sm:$0xff] %v14986_v62  ;;  %v14988_v38 = vld [vmem:[#allocation3 + $0x8a] sm:$0xff] }
 0x32b   : > { %17978 = vst [vmem:[#allocation22_spill] sm:$0xff] %v14978_v60  ;;  %12172 = vmatprep.mubr.msk.bf16.mxu0 %vm435_vm1, %v4431_v16  ;;  %v4291_v17 = vpop.permute.xlu1 %4290  ;;  %v4467_v42 = vld [vmem:[#allocation3 + $0x99] sm:$0xff]  ;;  %v4469_v53 = vld [vmem:[#allocation3 + $0xa9] sm:$0xff] }
 0x32c   : > { %v14992_v41 = vld [vmem:[#allocation3 + $0x98] sm:$0xff]  ;;  %4295 = vst.msk [vmem:[#allocation3 + $0xc9] sm:$0xff] %vm4223_vm3, %v4291_v17  ;;  %v4504_v19 = vpack.c.bf16 %v4467_v42, %v14986_v62  ;;  %v4505_v16 = vpack.c.bf16 %v4469_v53, %v14978_v60  ;;  %v14999_v7 = vld [vmem:[#allocation3 + $0xa0] sm:$0xff]  ;;  %v15001_v47 = vld [vmem:[#allocation3 + $0xa8] sm:$0xff] }
 0x32d   : > { %v4432_v33 = vpack.c.bf16 %v14992_v41, %v14972_v4  ;;  %v15003_v25 = vld [vmem:[#allocation3 + $0x92] sm:$0xff]  ;;  %v4433_v55 = vpack.c.bf16 %v15001_v47, %v14999_v7  ;;  %v15009_v17 = vld [vmem:[#allocation3 + $0x9a] sm:$0xff]  ;;  %v15011_v42 = vld [vmem:[#allocation3 + $0xa2] sm:$0xff] }
 0x32e   : > { %12123 = vmatmul.mubr.msk.bf16.gmra.mxu1 %vm435_vm1, %v4504_v19 }
 0x32f   : > { %12173 = vmatmul.mubr.msk.bf16.gmra.mxu0 %vm435_vm1, %v4432_v33  ;;  %12126 = vmatprep.mubr.msk.bf16.mxu1 %vm435_vm1, %v4505_v16  ;;  %v4289_v13 = vpop.permute.xlu0 %4288  ;;  %v15021_v31 = vld [vmem:[#allocation3 + $0xb0] sm:$0xff]  ;;  %v15032_v53 = vld [vmem:[#allocation3 + $0xb8] sm:$0xff] }
 0x330   : > { %12176 = vmatprep.mubr.msk.bf16.mxu0 %vm435_vm1, %v4433_v55  ;;  %4294 = vst.msk [vmem:[#allocation3 + $0xc1] sm:$0xff] %vm4223_vm3, %v4289_v13  ;;  %v15026_v12 = vld [vmem:[#allocation3 + $0xaa] sm:$0xff]  ;;  %v15028_v19 = vld [vmem:[#allocation3 + $0xb2] sm:$0xff]  ;;  %v4434_v56 = vpack.c.bf16 %v15032_v53, %v15021_v31 }
 0x331   : > { %v15030_v33 = vld [vmem:[#allocation3 + $0xb1] sm:$0xff] }
 0x332   : > { %17980 = vst [vmem:[#allocation24_spill] sm:$0xff] %v15030_v33  ;;  %v4506_v13 = vpack.c.bf16 %v4471_v5, %v15030_v33 }
 0x333   : > { %v4299_v16 = vpop.permute.xlu0 %4298  ;;  %v4473_v9 = vld [vmem:[#allocation3 + $0xc9] sm:$0xff] }
 0x334   : > { %4304 = vst.msk [vmem:[#allocation3 + $0xd9] sm:$0xff] %vm4223_vm3, %v4299_v16  ;;  %v15042_v2 = vld [vmem:[#allocation3 + $0xd0] sm:$0xff] }
 0x335   : > { %17981 = vst [vmem:[#allocation25_spill] sm:$0xff] %v15042_v2 }
 0x336   : > { %12127 = vmatmul.mubr.msk.bf16.gmra.mxu1 %vm435_vm1, %v4506_v13 }
 0x337   : > { %12177 = vmatmul.mubr.msk.bf16.gmra.mxu0 %vm435_vm1, %v4434_v56  ;;  %v4301_v0 = vpop.permute.xlu1 %4300  ;;  %v4309_v60 = vpop.permute.xlu0 %4308  ;;  %v15044_v62 = vld [vmem:[#allocation3 + $0xc1] sm:$0xff] }
 0x338   : > { %17982 = vst [vmem:[#allocation26_spill] sm:$0xff] %v15044_v62  ;;  %v15046_v55 = vld [vmem:[#allocation3 + $0xc0] sm:$0xff]  ;;  %v15048_v15 = vld [vmem:[#allocation3 + $0xc8] sm:$0xff]  ;;  %4305 = vst.msk [vmem:[#allocation3 + $0xe1] sm:$0xff] %vm4223_vm3, %v4301_v0  ;;  %v4507_v5 = vpack.c.bf16 %v4473_v9, %v15044_v62 }
 0x339   : > { %17983 = vst [vmem:[#allocation27_spill] sm:$0xff] %v15048_v15  ;;  %4314 = vst.msk [vmem:[#allocation3 + $0xf1] sm:$0xff] %vm4223_vm3, %v4309_v60  ;;  %v4435_v56 = vpack.c.bf16 %v15048_v15, %v15046_v55  ;;  %v15057_v13 = vld [vmem:[#allocation3 + $0xba] sm:$0xff]  ;;  %v15061_v39 = vld [vmem:[#allocation3 + $0xc2] sm:$0xff] }
 0x33a   : > { %12130 = vmatprep.mubr.msk.bf16.mxu1 %vm435_vm1, %v4507_v5  ;;  %v15067_v9 = vld [vmem:[#allocation3 + $0xd1] sm:$0xff] }
 0x33b   : > { %12180 = vmatprep.mubr.msk.bf16.mxu0 %vm435_vm1, %v4435_v56  ;;  %17984 = vst [vmem:[#allocation31_spill] sm:$0xff] %v15067_v9  ;;  %v15069_v60 = vld [vmem:[#allocation3 + $0xca] sm:$0xff]  ;;  %v4311_v62 = vpop.permute.xlu1 %4310  ;;  %v4319_v16 = vpop.permute.xlu0 %4318  ;;  %v15071_v23 = vld [vmem:[#allocation3 + $0xd9] sm:$0xff] }
 0x33c   : > { %17985 = vst [vmem:[#allocation32_spill] sm:$0xff] %v15071_v23  ;;  %v15073_v10 = vld [vmem:[#allocation3 + $0xd8] sm:$0xff]  ;;  %4315 = vst.msk [vmem:[#allocation3 + $0xf9] sm:$0xff] %vm4223_vm3, %v4311_v62  ;;  %v4508_v5 = vpack.c.bf16 %v15071_v23, %v15067_v9 }
 0x33d   : > { %17986 = vst [vmem:[#allocation33_spill] sm:$0xff] %v15073_v10  ;;  %v15075_v33 = vld [vmem:[#allocation3 + $0xd2] sm:$0xff]  ;;  %4324 = vst.msk [vmem:[#allocation3 + $0x109] sm:$0xff] %vm4223_vm3, %v4319_v16  ;;  %v4436_v56 = vpack.c.bf16 %v15073_v10, %v15042_v2 }
 0x33e   : > { %17987 = vst [vmem:[#allocation34_spill] sm:$0xff] %v15075_v33  ;;  %12131 = vmatmul.mubr.msk.bf16.gmra.mxu1 %vm435_vm1, %v4508_v5 }
 0x33f   : > { %12181 = vmatmul.mubr.msk.bf16.gmra.mxu0 %vm435_vm1, %v4436_v56  ;;  %v4321_v11 = vpop.permute.xlu1 %4320  ;;  %v15087_v1 = vld [vmem:[#allocation3 + $0xe1] sm:$0xff] }
 0x340   : > { %17988 = vst [vmem:[#allocation39_spill] sm:$0xff] %v15087_v1  ;;  %v15089_v62 = vld [vmem:[#allocation3 + $0xe0] sm:$0xff]  ;;  %v15091_v16 = vld [vmem:[#allocation3 + $0xe8] sm:$0xff]  ;;  %4325 = vst.msk [vmem:[#allocation3 + $0x111] sm:$0xff] %vm4223_vm3, %v4321_v11  ;;  %v4509_v9 = vpack.c.bf16 %v4477_v30, %v15087_v1 }
 0x341   : > { %17989 = vst [vmem:[#allocation40_spill] sm:$0xff] %v15089_v62  ;;  %17990 = vst [vmem:[#allocation41_spill] sm:$0xff] %v15091_v16  ;;  %v4437_v50 = vpack.c.bf16 %v15091_v16, %v15089_v62  ;;  %v15097_v0 = vld [vmem:[#allocation3 + $0xf0] sm:$0xff]  ;;  %v15101_v56 = vld [vmem:[#allocation3 + $0xda] sm:$0xff] }
 0x342   : > { %17991 = vst [vmem:[#allocation42_spill] sm:$0xff] %v15097_v0  ;;  %17992 = vst [vmem:[#allocation43_spill] sm:$0xff] %v15101_v56  ;;  %v15109_v43 = vld [vmem:[#allocation3 + $0xe2] sm:$0xff]  ;;  %12134 = vmatprep.mubr.msk.bf16.mxu1 %vm435_vm1, %v4509_v9  ;;  %v15113_v30 = vld [vmem:[#allocation3 + $0xf1] sm:$0xff] }
 0x343   : > { %17994 = vst [vmem:[#allocation45_spill] sm:$0xff] %v15109_v43  ;;  %12184 = vmatprep.mubr.msk.bf16.mxu0 %vm435_vm1, %v4437_v50  ;;  %17995 = vst [vmem:[#allocation46_spill] sm:$0xff] %v15113_v30  ;;  %v15115_v33 = vld [vmem:[#allocation3 + $0xea] sm:$0xff]  ;;  %v4331_v10 = vpop.permute.xlu1 %4330  ;;  %v15119_v51 = vld [vmem:[#allocation3 + $0xf9] sm:$0xff] }
 0x344   : > { %17996 = vst [vmem:[#allocation47_spill] sm:$0xff] %v15115_v33  ;;  %17997 = vst [vmem:[#allocation48_spill] sm:$0xff] %v15119_v51  ;;  %v15121_v23 = vld [vmem:[#allocation3 + $0xf8] sm:$0xff]  ;;  %v4481_v1 = vld [vmem:[#allocation3 + $0x109] sm:$0xff]  ;;  %v4510_v9 = vpack.c.bf16 %v15119_v51, %v15113_v30 }
 0x345   : > { %17998 = vst [vmem:[#allocation49_spill] sm:$0xff] %v15121_v23  ;;  %4335 = vst.msk [vmem:[#allocation3 + $0x129] sm:$0xff] %vm4223_vm3, %v4331_v10  ;;  %v4438_v50 = vpack.c.bf16 %v15121_v23, %v15097_v0  ;;  %v4511_v11 = vpack.c.bf16 %v4481_v1, %v15105_v58  ;;  %v15129_v16 = vld [vmem:[#allocation3 + $0x100] sm:$0xff]  ;;  %v15131_v62 = vld [vmem:[#allocation3 + $0x108] sm:$0xff] }
 0x346   : > { %17999 = vst [vmem:[#allocation50_spill] sm:$0xff] %v15129_v16  ;;  %18000 = vst [vmem:[#allocation51_spill] sm:$0xff] %v15131_v62  ;;  %v15133_v5 = vld [vmem:[#allocation3 + $0xf2] sm:$0xff]  ;;  %v4439_v10 = vpack.c.bf16 %v15131_v62, %v15129_v16  ;;  %v15141_v56 = vld [vmem:[#allocation3 + $0xfa] sm:$0xff]  ;;  %12135 = vmatmul.mubr.msk.bf16.gmra.mxu1 %vm435_vm1, %v4510_v9 }
 0x347   : > { %18001 = vst [vmem:[#allocation52_spill] sm:$0xff] %v15133_v5  ;;  %18002 = vst [vmem:[#allocation53_spill] sm:$0xff] %v15141_v56  ;;  %v15143_v0 = vld [vmem:[#allocation3 + $0x102] sm:$0xff]  ;;  %12185 = vmatmul.mubr.msk.bf16.gmra.mxu0 %vm435_vm1, %v4438_v50  ;;  %12138 = vmatprep.mubr.msk.bf16.mxu1 %vm435_vm1, %v4511_v11  ;;  %v4329_v51 = vpop.permute.xlu0 %4328  ;;  %v15153_v30 = vld [vmem:[#allocation3 + $0x119] sm:$0xff] }
 0x348   : > { %18003 = vst [vmem:[#allocation54_spill] sm:$0xff] %v15143_v0  ;;  %12188 = vmatprep.mubr.msk.bf16.mxu0 %vm435_vm1, %v4439_v10  ;;  %18004 = vst [vmem:[#allocation55_spill] sm:$0xff] %v15153_v30  ;;  %v15155_v58 = vld [vmem:[#allocation3 + $0x110] sm:$0xff]  ;;  %v15167_v11 = vld [vmem:[%s17498_s4 + $0x14] sm:$0xf] }
 0x349   : > { %18005 = vst [vmem:[#allocation28_spill] sm:$0xff] %v15155_v58  ;;  %4334 = vst.msk [vmem:[#allocation3 + $0x121] sm:$0xff] %vm4223_vm3, %v4329_v51  ;;  %v15160_v9 = vld [vmem:[#allocation3 + $0x10a] sm:$0xff]  ;;  %v15162_v50 = vld [vmem:[#allocation3 + $0x112] sm:$0xff]  ;;  %12748 = vmatprep.subr.msk.bf16.mxu0 %vm707_vm0, %v15167_v11 }
 0x34a   : > { %18006 = vst [vmem:[#allocation30_spill] sm:$0xff] %v15160_v9  ;;  %18007 = vst [vmem:[#allocation35_spill] sm:$0xff] %v15162_v50  ;;  %v15169_v10 = vld [vmem:[#allocation3 + $0x111] sm:$0xff] }
 0x34b   : > { %18008 = vst [vmem:[#allocation38_spill] sm:$0xff] %v15169_v10  ;;  %v15171_v43 = vld [vmem:[#allocation3 + $0x118] sm:$0xff]  ;;  %v4339_v1 = vpop.permute.xlu0 %4338  ;;  %v4512_v56 = vpack.c.bf16 %v15153_v30, %v15169_v10 }
 0x34c   : > { %18009 = vst [vmem:[#allocation9_spill] sm:$0xff] %v15171_v43  ;;  %v15173_v0 = vld [vmem:[#allocation3 + $0x131] sm:$0xff]  ;;  %v15179_v62 = vld [vmem:[#allocation3 + $0x129] sm:$0xff]  ;;  %4344 = vst.msk [vmem:[#allocation3 + $0x139] sm:$0xff] %vm4223_vm3, %v4339_v1  ;;  %v4440_v5 = vpack.c.bf16 %v15171_v43, %v15155_v58 }
 0x34d   : > { %18010 = vst [vmem:[#allocation5_spill] sm:$0xff] %v15173_v0  ;;  %18011 = vst [vmem:[#allocation8_spill] sm:$0xff] %v15179_v62  ;;  %v15190_v16 = vld [vmem:[#allocation3 + $0x130] sm:$0xff] }
 0x34e   : > { %12139 = vmatmul.mubr.msk.bf16.gmra.mxu1 %vm435_vm1, %v4512_v56  ;;  %18012 = vst [vmem:[#allocation10_spill] sm:$0xff] %v15190_v16 }
 0x34f   : > { %12189 = vmatmul.mubr.msk.bf16.gmra.mxu0 %vm435_vm1, %v4440_v5  ;;  %v4341_v51 = vpop.permute.xlu1 %4340  ;;  %v4349_v50 = vpop.permute.xlu0 %4348 }
 0x350   : > { %v15192_v9 = vld [vmem:[#allocation3 + $0x121] sm:$0xff]  ;;  %4345 = vst.msk [vmem:[#allocation3 + $0x141] sm:$0xff] %vm4223_vm3, %v4341_v51  ;;  %4354 = vst.msk [vmem:[#allocation3 + $0x151] sm:$0xff] %vm4223_vm3, %v4349_v50  ;;  %v15234_v51 = vld [vmem:[#allocation3 + $0x149] sm:$0xff] }
 0x351   : > { %18013 = vst [vmem:[#allocation29_spill] sm:$0xff] %v15192_v9  ;;  %v15194_v1 = vld [vmem:[#allocation3 + $0x120] sm:$0xff]  ;;  %v15196_v33 = vld [vmem:[#allocation3 + $0x128] sm:$0xff]  ;;  %v4513_v23 = vpack.c.bf16 %v15179_v62, %v15192_v9  ;;  %18022 = vst [vmem:[#allocation60_spill] sm:$0xff] %v15234_v51 }
 0x352   : > { %18014 = vst [vmem:[#allocation36_spill] sm:$0xff] %v15194_v1  ;;  %18015 = vst [vmem:[#allocation7_spill] sm:$0xff] %v15196_v33  ;;  %v4441_v5 = vpack.c.bf16 %v15196_v33, %v15194_v1  ;;  %v15206_v10 = vld [vmem:[#allocation3 + $0x11a] sm:$0xff]  ;;  %v15210_v15 = vld [vmem:[#allocation3 + $0x122] sm:$0xff] }
 0x353   : > { %18016 = vst [vmem:[#allocation37_spill] sm:$0xff] %v15206_v10  ;;  %18017 = vst [vmem:[#allocation6_spill] sm:$0xff] %v15210_v15  ;;  %12142 = vmatprep.mubr.msk.bf16.mxu1 %vm435_vm1, %v4513_v23  ;;  %v15218_v62 = vld [vmem:[#allocation3 + $0x12a] sm:$0xff]  ;;  %v4351_v56 = vpop.permute.xlu1 %4350  ;;  %v4359_v43 = vpop.permute.xlu0 %4358  ;;  %v15220_v1 = vld [vmem:[#allocation3 + $0x139] sm:$0xff] }
 0x354   : > { %12192 = vmatprep.mubr.msk.bf16.mxu0 %vm435_vm1, %v4441_v5  ;;  %18018 = vst [vmem:[#allocation56_spill] sm:$0xff] %v15218_v62  ;;  %18019 = vst [vmem:[#allocation57_spill] sm:$0xff] %v15220_v1  ;;  %v15222_v2 = vld [vmem:[#allocation3 + $0x138] sm:$0xff]  ;;  %v4514_v50 = vpack.c.bf16 %v15220_v1, %v15173_v0  ;;  %v15259_v62 = vld [vmem:[#allocation3 + $0x161] sm:$0xff] }
 0x355   : > { %18020 = vst [vmem:[#allocation58_spill] sm:$0xff] %v15222_v2  ;;  %v15224_v58 = vld [vmem:[#allocation3 + $0x132] sm:$0xff]  ;;  %4355 = vst.msk [vmem:[#allocation3 + $0x159] sm:$0xff] %vm4223_vm3, %v4351_v56  ;;  %v4442_v23 = vpack.c.bf16 %v15222_v2, %v15190_v16 }
 0x356   : > { %18021 = vst [vmem:[#allocation59_spill] sm:$0xff] %v15224_v58  ;;  %4364 = vst.msk [vmem:[#allocation3 + $0x169] sm:$0xff] %vm4223_vm3, %v4359_v43  ;;  %12143 = vmatmul.mubr.msk.bf16.gmra.mxu1 %vm435_vm1, %v4514_v50 }
 0x357   : > { %12193 = vmatmul.mubr.msk.bf16.gmra.mxu0 %vm435_vm1, %v4442_v23  ;;  %v4361_v30 = vpop.permute.xlu1 %4360  ;;  %v15238_v9 = vld [vmem:[#allocation3 + $0x141] sm:$0xff]  ;;  %v15249_v58 = vld [vmem:[#allocation3 + $0x151] sm:$0xff]  ;;  %18029 = vst [vmem:[#allocation67_spill] sm:$0xff] %v15259_v62 }
 0x358   : > { %18023 = vst [vmem:[#allocation61_spill] sm:$0xff] %v15238_v9  ;;  %v15240_v56 = vld [vmem:[#allocation3 + $0x140] sm:$0xff]  ;;  %v15242_v43 = vld [vmem:[#allocation3 + $0x148] sm:$0xff]  ;;  %4365 = vst.msk [vmem:[#allocation3 + $0x171] sm:$0xff] %vm4223_vm3, %v4361_v30  ;;  %v4515_v0 = vpack.c.bf16 %v15234_v51, %v15238_v9 }
 0x359   : > { %18024 = vst [vmem:[#allocation62_spill] sm:$0xff] %v15240_v56  ;;  %18025 = vst [vmem:[#allocation63_spill] sm:$0xff] %v15242_v43  ;;  %v4443_v5 = vpack.c.bf16 %v15242_v43, %v15240_v56  ;;  %v15251_v50 = vld [vmem:[#allocation3 + $0x150] sm:$0xff]  ;;  %v15255_v33 = vld [vmem:[#allocation3 + $0x13a] sm:$0xff] }
 0x35a   : > { %18026 = vst [vmem:[#allocation64_spill] sm:$0xff] %v15249_v58  ;;  %18027 = vst [vmem:[#allocation65_spill] sm:$0xff] %v15251_v50  ;;  %v15263_v15 = vld [vmem:[#allocation3 + $0x142] sm:$0xff]  ;;  %12146 = vmatprep.mubr.msk.bf16.mxu1 %vm435_vm1, %v4515_v0  ;;  %v15269_v23 = vld [vmem:[#allocation3 + $0x14a] sm:$0xff] }
 0x35b   : > { %18028 = vst [vmem:[#allocation66_spill] sm:$0xff] %v15255_v33  ;;  %18030 = vst [vmem:[#allocation68_spill] sm:$0xff] %v15263_v15  ;;  %12196 = vmatprep.mubr.msk.bf16.mxu0 %vm435_vm1, %v4443_v5  ;;  %v4371_v16 = vpop.permute.xlu1 %4370  ;;  %v5089_v56 = vld [vmem:[#allocation3 + $0x2] sm:$0xff] }
 0x35c   : > { %v15273_v1 = vld [vmem:[#allocation3 + $0x159] sm:$0xff]  ;;  %4375 = vst.msk [vmem:[#allocation3 + $0x189] sm:$0xff] %vm4223_vm3, %v4371_v16 }
 0x35d   : > { %18031 = vst [vmem:[#allocation69_spill] sm:$0xff] %v15273_v1  ;;  %v15275_v9 = vld [vmem:[#allocation3 + $0x158] sm:$0xff]  ;;  %v15277_v30 = vld [vmem:[#allocation3 + $0x169] sm:$0xff]  ;;  %v4516_v10 = vpack.c.bf16 %v15273_v1, %v15249_v58  ;;  %v15286_v51 = vld [vmem:[#allocation3 + $0x160] sm:$0xff] }
 0x35e   : > { %18032 = vst [vmem:[#allocation70_spill] sm:$0xff] %v15275_v9  ;;  %18033 = vst [vmem:[#allocation71_spill] sm:$0xff] %v15277_v30  ;;  %v4444_v0 = vpack.c.bf16 %v15275_v9, %v15251_v50  ;;  %v4517_v5 = vpack.c.bf16 %v15277_v30, %v15259_v62  ;;  %v15288_v2 = vld [vmem:[#allocation3 + $0x168] sm:$0xff]  ;;  %v15290_v43 = vld [vmem:[#allocation3 + $0x152] sm:$0xff] }
 0x35f   : > { %18034 = vst [vmem:[#allocation72_spill] sm:$0xff] %v15290_v43  ;;  %v4445_v16 = vpack.c.bf16 %v15288_v2, %v15286_v51  ;;  %v15298_v33 = vld [vmem:[#allocation3 + $0x15a] sm:$0xff]  ;;  %v15300_v50 = vld [vmem:[#allocation3 + $0x162] sm:$0xff]  ;;  %12147 = vmatmul.mubr.msk.bf16.gmra.mxu1 %vm435_vm1, %v4516_v10  ;;  %v4369_v1 = vpop.permute.xlu0 %4368  ;;  %v15310_v58 = vld [vmem:[#allocation3 + $0x171] sm:$0xff] }
 0x360   : > { %18035 = vst [vmem:[#allocation73_spill] sm:$0xff] %v15300_v50  ;;  %12197 = vmatmul.mubr.msk.bf16.gmra.mxu0 %vm435_vm1, %v4444_v0  ;;  %12150 = vmatprep.mubr.msk.bf16.mxu1 %vm435_vm1, %v4517_v5  ;;  %v15312_v62 = vld [vmem:[#allocation3 + $0x170] sm:$0xff]  ;;  %4374 = vst.msk [vmem:[#allocation3 + $0x181] sm:$0xff] %vm4223_vm3, %v4369_v1  ;;  %v4518_v50 = vpack.c.bf16 %v15310_v58, %v15310_v58  ;;  %v18036_v0 = vpack.c.bf16 %v14828_v63, %v14811_v59  ;;  %v6013_v59 = vsel %vm707_vm0, %v14822_v8, 0 }
 0x361   : > { %12200 = vmatprep.mubr.msk.bf16.mxu0 %vm435_vm1, %v4445_v16  ;;  %v15314_v9 = vld [vmem:[#allocation3 + $0x16a] sm:$0xff]  ;;  %v15319_v43 = vld [vmem:[#allocation3 + $0x172] sm:$0xff]  ;;  %v4446_v1 = vpack.c.bf16 %v15312_v62, %v15312_v62  ;;  %v6402_v63 = vsel %vm707_vm0, %v15167_v11, 0  ;;  %v18038_v8 = vpack.c.bf16 %v14858_v29, %v14853_v18  ;;  %v18039_v11 = vpack.c.bf16 %v14888_v22, %v14860_v35 }
 0x362   : > { %v5090_v10 = vld [vmem:[#allocation3 + $0xa] sm:$0xff]  ;;  %v5091_v16 = vld [vmem:[#allocation3 + $0x12] sm:$0xff]  ;;  %v18040_v18 = vpack.c.bf16 %v14916_v44, %v14903_v27  ;;  %v5141_v29 = vpack.c.bf16 %v14926_v14, %v14899_v24  ;;  %v18041_v35 = vpack.c.bf16 %v14914_v52, %v14918_v46  ;;  %v18042_v22 = vpack.c.bf16 %v14964_v54, %v14944_v26 }
 0x363   : > { %v5136_v15 = vpack.c.bf16 %v5090_v10, %v5089_v56  ;;  %v15338_v56 = vld [vmem:[#allocation3 + $0x189] sm:$0xff]  ;;  %v5137_v30 = vpack.c.bf16 %v14837_v40, %v5091_v16  ;;  %v5143_v27 = vpack.c.bf16 %v14976_v20, %v14946_v57  ;;  %v5144_v44 = vpack.c.bf16 %v14988_v38, %v14982_v32  ;;  %v18047_v16 = vld [vmem:[#allocation25_spill] sm:$0xff] }
 0x364   : > { %v18043_v52 = vpack.c.bf16 %v14972_v4, %v14966_v61  ;;  %v18044_v46 = vpack.c.bf16 %v14999_v7, %v14992_v41  ;;  %v5145_v26 = vpack.c.bf16 %v15009_v17, %v15003_v25  ;;  %v5146_v54 = vpack.c.bf16 %v15026_v12, %v15011_v42 }
 0x365   : > { %v18045_v61 = vpack.c.bf16 %v15021_v31, %v15001_v47  ;;  %v18046_v7 = vpack.c.bf16 %v15046_v55, %v15032_v53  ;;  %v5147_v41 = vpack.c.bf16 %v15057_v13, %v15028_v19  ;;  %v5148_v4 = vpack.c.bf16 %v15069_v60, %v15061_v39  ;;  %v18050_v31 = vld [vmem:[#allocation40_spill] sm:$0xff]  ;;  %v18053_v55 = vld [vmem:[#allocation34_spill] sm:$0xff] }
 0x367   : > { %12151 = vmatmul.mubr.msk.bf16.gmra.mxu1 %vm435_vm1, %v4518_v50  ;;  %v15336_v5 = vld [vmem:[#allocation3 + $0x181] sm:$0xff]  ;;  %v5138_v50 = vpack.c.bf16 %v14849_v34, %v14841_v45 }
 0x368   : > { %12201 = vmatmul.mubr.msk.bf16.gmra.mxu0 %vm435_vm1, %v4446_v1  ;;  %12206 = vmatprep.mubr.msk.bf16.mxu1 %vm435_vm1, %v5136_v15  ;;  %v18037_v15 = vpack.c.bf16 %v14826_v48, %v14830_v21  ;;  %v5139_v48 = vpack.c.bf16 %v14868_v3, %v14862_v37  ;;  %v5140_v21 = vpack.c.bf16 %v14897_v49, %v14870_v36  ;;  %v18048_v1 = vld [vmem:[#allocation27_spill] sm:$0xff] }
 0x369   : > { %12256 = vmatprep.mubr.msk.bf16.mxu0 %vm435_vm1, %v18036_v0  ;;  %v15357_v0 = vld [vmem:[%s17498_s4 + $0x18] sm:$0xf]  ;;  %v18049_v47 = vpack.c.bf16 %v18047_v16, %v18048_v1  ;;  %v10613_v1 = vld [vmem:[%s17498_s4 + $0x1c] sm:$0xf] }
 0x36f   : > { %12207 = vmatmul.mubr.msk.bf16.vlgmr.msra.gmra.mxu1 %vm435_vm1, %v5137_v30  ;;  %v5142_v30 = vpack.c.bf16 %v14940_v6, %v14930_v28 }
 0x370   : > { %12257 = vmatmul.mubr.msk.bf16.vlgmr.msra.gmra.mxu0 %vm435_vm1, %v18037_v15  ;;  %12210 = vmatprep.mubr.msk.bf16.mxu1 %vm435_vm1, %v5138_v50  ;;  %v18051_v50 = vld [vmem:[#allocation33_spill] sm:$0xff] }
 0x371   : > { %12260 = vmatprep.mubr.msk.bf16.mxu0 %vm435_vm1, %v18038_v8  ;;  %12305 = vmatpush3.bf16.msra.mxu1 %v6013_v59  ;;  %v18052_v53 = vpack.c.bf16 %v18050_v31, %v18051_v50  ;;  %v18054_v59 = vld [vmem:[#allocation43_spill] sm:$0xff]  ;;  %v18055_v15 = vld [vmem:[#allocation45_spill] sm:$0xff] }
 0x372   : > { %12355 = vmatpush3.bf16.msra.mxu0 %v6402_v63  ;;  %12749 = vmatprep.subr.msk.bf16.mxu1 %vm707_vm0, %v15357_v0  ;;  %v5149_v63 = vpack.c.bf16 %v18054_v59, %v18053_v55  ;;  %v18056_v8 = vld [vmem:[#allocation47_spill] sm:$0xff]  ;;  %v18074_v31 = vld [vmem:[#allocation37_spill] sm:$0xff] }
 0x373   : > { %12750 = vmatprep.subr.msk.bf16.mxu0 %vm707_vm0, %v10613_v1 }
 0x377   : > { %12211 = vmatmul.mubr.msk.bf16.gmra.mxu1 %vm435_vm1, %v5139_v48  ;;  %v5150_v48 = vpack.c.bf16 %v18056_v8, %v18055_v15 }
 0x378   : > { %12261 = vmatmul.mubr.msk.bf16.gmra.mxu0 %vm435_vm1, %v18039_v11  ;;  %12214 = vmatprep.mubr.msk.bf16.mxu1 %vm435_vm1, %v5140_v21  ;;  %v18057_v21 = vld [vmem:[#allocation42_spill] sm:$0xff]  ;;  %v18058_v11 = vld [vmem:[#allocation41_spill] sm:$0xff] }
 0x379   : > { %12264 = vmatprep.mubr.msk.bf16.mxu0 %vm435_vm1, %v18040_v18  ;;  %v18059_v18 = vpack.c.bf16 %v18057_v21, %v18058_v11  ;;  %v18077_v21 = vld [vmem:[#allocation10_spill] sm:$0xff]  ;;  %v18078_v11 = vld [vmem:[#allocation7_spill] sm:$0xff] }
 0x37f   : > { %12215 = vmatmul.mubr.msk.bf16.gmra.mxu1 %vm435_vm1, %v5141_v29  ;;  %v18060_v29 = vld [vmem:[#allocation50_spill] sm:$0xff] }
 0x380   : > { %12265 = vmatmul.mubr.msk.bf16.gmra.mxu0 %vm435_vm1, %v18041_v35  ;;  %12218 = vmatprep.mubr.msk.bf16.mxu1 %vm435_vm1, %v5142_v30  ;;  %v18061_v30 = vld [vmem:[#allocation49_spill] sm:$0xff] }
 0x381   : > { %12268 = vmatprep.mubr.msk.bf16.mxu0 %vm435_vm1, %v18042_v22  ;;  %v18062_v35 = vpack.c.bf16 %v18060_v29, %v18061_v30  ;;  %v18063_v22 = vld [vmem:[#allocation52_spill] sm:$0xff]  ;;  %v18080_v29 = vld [vmem:[#allocation62_spill] sm:$0xff] }
 0x382   : > { %v18081_v30 = vld [vmem:[#allocation58_spill] sm:$0xff] }
 0x387   : > { %12219 = vmatmul.mubr.msk.bf16.gmra.mxu1 %vm435_vm1, %v5143_v27  ;;  %v18064_v27 = vld [vmem:[#allocation53_spill] sm:$0xff] }
 0x388   : > { %12269 = vmatmul.mubr.msk.bf16.gmra.mxu0 %vm435_vm1, %v18043_v52  ;;  %12222 = vmatprep.mubr.msk.bf16.mxu1 %vm435_vm1, %v5144_v44  ;;  %v5151_v44 = vpack.c.bf16 %v18064_v27, %v18063_v22  ;;  %v18065_v52 = vld [vmem:[#allocation54_spill] sm:$0xff] }
 0x389   : > { %12272 = vmatprep.mubr.msk.bf16.mxu0 %vm435_vm1, %v18044_v46  ;;  %v18066_v46 = vld [vmem:[#allocation30_spill] sm:$0xff] }
 0x38f   : > { %12223 = vmatmul.mubr.msk.bf16.gmra.mxu1 %vm435_vm1, %v5145_v26  ;;  %v5152_v26 = vpack.c.bf16 %v18066_v46, %v18065_v52 }
 0x390   : > { %12273 = vmatmul.mubr.msk.bf16.gmra.mxu0 %vm435_vm1, %v18045_v61  ;;  %12226 = vmatprep.mubr.msk.bf16.mxu1 %vm435_vm1, %v5146_v54  ;;  %v18067_v54 = vld [vmem:[#allocation28_spill] sm:$0xff]  ;;  %v18068_v61 = vld [vmem:[#allocation51_spill] sm:$0xff] }
 0x391   : > { %12276 = vmatprep.mubr.msk.bf16.mxu0 %vm435_vm1, %v18046_v7  ;;  %v18069_v7 = vpack.c.bf16 %v18067_v54, %v18068_v61  ;;  %v18085_v61 = vld [vmem:[#allocation68_spill] sm:$0xff] }
 0x397   : > { %12227 = vmatmul.mubr.msk.bf16.gmra.mxu1 %vm435_vm1, %v5147_v41  ;;  %v18070_v41 = vld [vmem:[#allocation36_spill] sm:$0xff] }
 0x398   : > { %12277 = vmatmul.mubr.msk.bf16.gmra.mxu0 %vm435_vm1, %v18049_v47  ;;  %12230 = vmatprep.mubr.msk.bf16.mxu1 %vm435_vm1, %v5148_v4  ;;  %v18071_v4 = vld [vmem:[#allocation9_spill] sm:$0xff]  ;;  %v18073_v47 = vld [vmem:[#allocation35_spill] sm:$0xff] }
 0x399   : > { %12280 = vmatprep.mubr.msk.bf16.mxu0 %vm435_vm1, %v18052_v53  ;;  %v18072_v16 = vpack.c.bf16 %v18070_v41, %v18071_v4  ;;  %v5153_v50 = vpack.c.bf16 %v18074_v31, %v18073_v47  ;;  %v18075_v53 = vld [vmem:[#allocation6_spill] sm:$0xff]  ;;  %v18086_v41 = vld [vmem:[#allocation65_spill] sm:$0xff]  ;;  %v18087_v4 = vld [vmem:[#allocation63_spill] sm:$0xff] }
 0x39f   : > { %12231 = vmatmul.mubr.msk.bf16.gmra.mxu1 %vm435_vm1, %v5149_v63  ;;  %v18076_v63 = vld [vmem:[#allocation56_spill] sm:$0xff] }
 0x3a0   : > { %12281 = vmatmul.mubr.msk.bf16.gmra.mxu0 %vm435_vm1, %v18059_v18  ;;  %12234 = vmatprep.mubr.msk.bf16.mxu1 %vm435_vm1, %v5150_v48  ;;  %v5154_v48 = vpack.c.bf16 %v18076_v63, %v18075_v53  ;;  %v18079_v18 = vpack.c.bf16 %v18077_v21, %v18078_v11  ;;  %v5523_v21 = vld [vmem:[#allocation3 + $0x180] sm:$0xff]  ;;  %v18091_v11 = vld [vmem:[#allocation72_spill] sm:$0xff] }
 0x3a1   : > { %12284 = vmatprep.mubr.msk.bf16.mxu0 %vm435_vm1, %v18062_v35  ;;  %v18082_v35 = vpack.c.bf16 %v18080_v29, %v18081_v30  ;;  %v5522_v29 = vld [vmem:[#allocation3 + $0x178] sm:$0xff]  ;;  %v18092_v30 = vld [vmem:[#allocation73_spill] sm:$0xff] }
 0x3a7   : > { %12235 = vmatmul.mubr.msk.bf16.gmra.mxu1 %vm435_vm1, %v5151_v44  ;;  %v18083_v44 = vld [vmem:[#allocation59_spill] sm:$0xff] }
 0x3a8   : > { %12285 = vmatmul.mubr.msk.bf16.gmra.mxu0 %vm435_vm1, %v18069_v7  ;;  %12238 = vmatprep.mubr.msk.bf16.mxu1 %vm435_vm1, %v5152_v26  ;;  %v18084_v26 = vld [vmem:[#allocation66_spill] sm:$0xff]  ;;  %v5156_v7 = vpack.c.bf16 %v15269_v23, %v18085_v61 }
 0x3a9   : > { %12288 = vmatprep.mubr.msk.bf16.mxu0 %vm435_vm1, %v18072_v16  ;;  %v5155_v54 = vpack.c.bf16 %v18084_v26, %v18083_v44  ;;  %v18088_v16 = vpack.c.bf16 %v18086_v41, %v18087_v4  ;;  %v18093_v41 = vpack.c.bf16 %v15312_v62, %v15288_v2  ;;  %v5159_v4 = vpack.c.bf16 %v15319_v43, %v15319_v43  ;;  %v5869_v62 = vld [vmem:[#allocation3 + $0x29] sm:$0xff] }
 0x3aa   : > { %v18094_v2 = vpack.c.bf16 %v14841_v45, %v14837_v40  ;;  %v18098_v40 = vpack.c.bf16 %v14862_v37, %v14849_v34  ;;  %v18099_v45 = vpack.c.bf16 %v14870_v36, %v14868_v3 }
 0x3af   : > { %12239 = vmatmul.mubr.msk.bf16.gmra.mxu1 %vm435_vm1, %v5153_v50  ;;  %v18089_v50 = vld [vmem:[#allocation70_spill] sm:$0xff] }
 0x3b0   : > { %12289 = vmatmul.mubr.msk.bf16.gmra.mxu0 %vm435_vm1, %v18079_v18  ;;  %12242 = vmatprep.mubr.msk.bf16.mxu1 %vm435_vm1, %v5154_v48  ;;  %v18090_v48 = vpack.c.bf16 %v15286_v51, %v18089_v50  ;;  %v5157_v18 = vpack.c.bf16 %v15298_v33, %v18091_v11  ;;  %v5524_v51 = vld [vmem:[#allocation3 + $0x188] sm:$0xff]  ;;  %v5867_v50 = vld [vmem:[#allocation3 + $0x19] sm:$0xff] }
 0x3b1   : > { %12292 = vmatprep.mubr.msk.bf16.mxu0 %vm435_vm1, %v18082_v35  ;;  %v5158_v35 = vpack.c.bf16 %v15314_v9, %v18092_v30 }
 0x3b7   : > { %12243 = vmatmul.mubr.msk.bf16.gmra.mxu1 %vm435_vm1, %v5155_v54  ;;  %v5547_v54 = vpack.c.bf16 %v5523_v21, %v5522_v29  ;;  %v18095_v21 = vld [vmem:[#allocation13_spill] sm:$0xff]  ;;  %v18096_v29 = vld [vmem:[#allocation12_spill] sm:$0xff] }
 0x3b8   : > { %12293 = vmatmul.mubr.msk.bf16.gmra.mxu0 %vm435_vm1, %v18088_v16  ;;  %12246 = vmatprep.mubr.msk.bf16.mxu1 %vm435_vm1, %v5156_v7  ;;  %v5868_v7 = vld [vmem:[#allocation3 + $0x21] sm:$0xff]  ;;  %v5548_v16 = vpack.c.bf16 %v5524_v51, %v5524_v51  ;;  %v7180_v51 = vsel %vm707_vm0, %v10613_v1, 0 }
 0x3b9   : > { %12296 = vmatprep.mubr.msk.bf16.mxu0 %vm435_vm1, %v18090_v48  ;;  %v5914_v48 = vpack.c.bf16 %v5868_v7, %v5867_v50 }
 0x3bf   : > { %12247 = vmatmul.mubr.msk.bf16.gmra.mxu1 %vm435_vm1, %v5157_v18  ;;  %v5915_v18 = vpack.c.bf16 %v18095_v21, %v5869_v62  ;;  %v18101_v62 = vld [vmem:[#allocation16_spill] sm:$0xff] }
 0x3c0   : > { %12297 = vmatmul.mubr.msk.bf16.gmra.mxu0 %vm435_vm1, %v18093_v41  ;;  %12250 = vmatprep.mubr.msk.bf16.mxu1 %vm435_vm1, %v5158_v35  ;;  %v18097_v35 = vld [vmem:[#allocation11_spill] sm:$0xff]  ;;  %v6791_v41 = vsel %vm707_vm0, %v15357_v0, 0 }
 0x3c1   : > { %12300 = vmatprep.mubr.msk.bf16.mxu0 %vm435_vm1, %v5547_v54  ;;  %v5916_v54 = vpack.c.bf16 %v18097_v35, %v18096_v29  ;;  %v15535_v0 = vld [vmem:[%s17498_s4 + $0x20] sm:$0xf] }
 0x3c7   : > { %12251 = vmatmul.mubr.msk.bf16.gmra.mxu1 %vm435_vm1, %v5159_v4 }
 0x3c8   : > { %12301 = vmatmul.mubr.msk.bf16.gmra.mxu0 %vm435_vm1, %v5548_v16  ;;  %12306 = vmatprep.mubr.msk.bf16.mxu1 %vm435_vm1, %v5914_v48 }
 0x3c9   : > { %12356 = vmatprep.mubr.msk.bf16.mxu0 %vm435_vm1, %v18094_v2  ;;  %v18100_v2 = vld [vmem:[#allocation14_spill] sm:$0xff] }
 0x3ce   : > { %v12108_v7 = vpop.f32.mrf.mxu1 }
 0x3cf   : > { %v12158_v4 = vpop.f32.mrf.mxu0  ;;  %12307 = vmatmul.mubr.msk.bf16.vlgmr.msra.gmra.mxu1 %vm435_vm1, %v5915_v18  ;;  %v5917_v18 = vpack.c.bf16 %v18101_v62, %v18100_v2  ;;  %v18103_v7 = vld [vmem:[#allocation15_spill] sm:$0xff] }
 0x3d0   : > { %12357 = vmatmul.mubr.msk.bf16.vlgmr.msra.gmra.mxu0 %vm435_vm1, %v18098_v40  ;;  %12310 = vmatprep.mubr.msk.bf16.mxu1 %vm435_vm1, %v5916_v54  ;;  %v4630_v1 = vpop.f32.mrf.mxu1  ;;  %v18104_v4 = vld [vmem:[#allocation17_spill] sm:$0xff] }
 0x3d1   : > { %12360 = vmatprep.mubr.msk.bf16.mxu0 %vm435_vm1, %v18099_v45  ;;  %v4914_v16 = vpop.f32.mrf.mxu0  ;;  %12405 = vmatpush3.bf16.msra.mxu1 %v6791_v41  ;;  %v5918_v41 = vpack.c.bf16 %v18104_v4, %v18103_v7  ;;  %v18105_v45 = vpack.c.bf16 %v14899_v24, %v14897_v49 }
 0x3d2   : > { %12455 = vmatpush3.bf16.msra.mxu0 %v7180_v51  ;;  %v15537_v50 = vadd.f32 %v4914_v16, %v4630_v1  ;;  %12751 = vmatprep.subr.msk.bf16.mxu1 %vm707_vm0, %v15535_v0  ;;  %v12109_v34 = vpop.f32.mrf.mxu1  ;;  %v18107_v16 = vpack.c.bf16 %v14930_v28, %v14926_v14  ;;  %v18112_v28 = vpack.c.bf16 %v14946_v57, %v14940_v6 }
 0x3d3   : > { %v12159_v37 = vpop.f32.mrf.mxu0 }
 0x3d4   : > { %v15541_v48 = vadd.f32 %v12159_v37, %v12109_v34  ;;  %v4633_v3 = vpop.f32.mrf.mxu1 }
 0x3d5   : > { %v4917_v36 = vpop.f32.mrf.mxu0 }
 0x3d6   : > { %v15545_v54 = vadd.f32 %v4917_v36, %v4633_v3  ;;  %v12112_v51 = vpop.f32.mrf.mxu1 }
 0x3d7   : > { %v12162_v40 = vpop.f32.mrf.mxu0  ;;  %12311 = vmatmul.mubr.msk.bf16.gmra.mxu1 %vm435_vm1, %v5917_v18 }
 0x3d8   : > { %18102 = vst [vmem:[#allocation25_spill] sm:$0xff] %v15545_v54  ;;  %12361 = vmatmul.mubr.msk.bf16.gmra.mxu0 %vm435_vm1, %v18105_v45  ;;  %v15554_v1 = vadd.f32 %v12162_v40, %v12112_v51  ;;  %12314 = vmatprep.mubr.msk.bf16.mxu1 %vm435_vm1, %v5918_v41  ;;  %v4645_v34 = vpop.f32.mrf.mxu1  ;;  %v18108_v45 = vld [vmem:[#allocation18_spill] sm:$0xff]  ;;  %v18109_v51 = vld [vmem:[#allocation19_spill] sm:$0xff]  ;;  %v18111_v41 = vld [vmem:[#allocation21_spill] sm:$0xff] }
 0x3d9   : > { %12364 = vmatprep.mubr.msk.bf16.mxu0 %vm435_vm1, %v18107_v16  ;;  %v4929_v37 = vpop.f32.mrf.mxu0  ;;  %v5919_v40 = vpack.c.bf16 %v18109_v51, %v18108_v45 }
 0x3da   : > { %18106 = vst [vmem:[#allocation27_spill] sm:$0xff] %v15554_v1  ;;  %v15561_v3 = vadd.f32 %v4929_v37, %v4645_v34  ;;  %v12113_v36 = vpop.f32.mrf.mxu1  ;;  %v18110_v1 = vld [vmem:[#allocation20_spill] sm:$0xff]  ;;  %v18113_v34 = vpack.c.bf16 %v14982_v32, %v14976_v20 }
 0x3db   : > { %v12163_v18 = vpop.f32.mrf.mxu0  ;;  %v5920_v4 = vpack.c.bf16 %v18111_v41, %v18110_v1 }
 0x3dc   : > { %v15563_v10 = vadd.f32 %v12163_v18, %v12113_v36  ;;  %v4648_v49 = vpop.f32.mrf.mxu1  ;;  %v15581_v18 = vld [vmem:[#allocation3 + $0x89] sm:$0xff] }
 0x3dd   : > { %v4932_v24 = vpop.f32.mrf.mxu0 }
 0x3de   : > { %v12116_v54 = vpop.f32.mrf.mxu1 }
 0x3df   : > { %v12166_v14 = vpop.f32.mrf.mxu0  ;;  %12315 = vmatmul.mubr.msk.bf16.gmra.mxu1 %vm435_vm1, %v5919_v40  ;;  %v15583_v40 = vld [vmem:[#allocation3 + $0x99] sm:$0xff] }
 0x3e0   : > { %12365 = vmatmul.mubr.msk.bf16.gmra.mxu0 %vm435_vm1, %v18112_v28  ;;  %v15574_v16 = vadd.f32 %v12166_v14, %v12116_v54  ;;  %12318 = vmatprep.mubr.msk.bf16.mxu1 %vm435_vm1, %v5920_v4  ;;  %v4660_v37 = vpop.f32.mrf.mxu1  ;;  %v18114_v54 = vld [vmem:[#allocation23_spill] sm:$0xff]  ;;  %v18115_v4 = vld [vmem:[#allocation22_spill] sm:$0xff] }
 0x3e1   : > { %12368 = vmatprep.mubr.msk.bf16.mxu0 %vm435_vm1, %v18113_v34  ;;  %v4944_v36 = vpop.f32.mrf.mxu0  ;;  %v5921_v41 = vpack.c.bf16 %v18114_v54, %v15581_v18  ;;  %v5922_v32 = vpack.c.bf16 %v18115_v4, %v15583_v40  ;;  %v18116_v34 = vpack.c.bf16 %v15003_v25, %v14988_v38  ;;  %v18117_v37 = vpack.c.bf16 %v15011_v42, %v15009_v17  ;;  %v18118_v4 = vld [vmem:[#allocation24_spill] sm:$0xff]  ;;  %v18119_v42 = vld [vmem:[#allocation26_spill] sm:$0xff] }
 0x3e2   : > { %v12117_v49 = vpop.f32.mrf.mxu1 }
 0x3e3   : > { %v12167_v24 = vpop.f32.mrf.mxu0 }
 0x3e4   : > { %v4662_v6 = vpop.f32.mrf.mxu1 }
 0x3e5   : > { %v4946_v57 = vpop.f32.mrf.mxu0 }
 0x3e6   : > { %v15587_v14 = vadd.f32 %v4946_v57, %v4662_v6  ;;  %v12120_v20 = vpop.f32.mrf.mxu1 }
 0x3e7   : > { %v12170_v28 = vpop.f32.mrf.mxu0  ;;  %12319 = vmatmul.mubr.msk.bf16.gmra.mxu1 %vm435_vm1, %v5921_v41  ;;  %v15605_v41 = vld [vmem:[#allocation3 + $0xa9] sm:$0xff]  ;;  %v15609_v20 = vld [vmem:[#allocation3 + $0xb9] sm:$0xff] }
 0x3e8   : > { %12369 = vmatmul.mubr.msk.bf16.gmra.mxu0 %vm435_vm1, %v18116_v34  ;;  %12322 = vmatprep.mubr.msk.bf16.mxu1 %vm435_vm1, %v5922_v32  ;;  %v4674_v36 = vpop.f32.mrf.mxu1  ;;  %v5923_v32 = vpack.c.bf16 %v18118_v4, %v15605_v41  ;;  %v5924_v28 = vpack.c.bf16 %v18119_v42, %v15609_v20  ;;  %v15629_v4 = vld [vmem:[#allocation3 + $0xc9] sm:$0xff] }
 0x3e9   : > { %12372 = vmatprep.mubr.msk.bf16.mxu0 %vm435_vm1, %v18117_v37  ;;  %v4958_v49 = vpop.f32.mrf.mxu0 }
 0x3ea   : > { %v15601_v24 = vadd.f32 %v4958_v49, %v4674_v36  ;;  %v12121_v6 = vpop.f32.mrf.mxu1  ;;  %v18120_v36 = vpack.c.bf16 %v15028_v19, %v15026_v12 }
 0x3eb   : > { %v12171_v57 = vpop.f32.mrf.mxu0 }
 0x3ec   : > { %v15603_v54 = vadd.f32 %v12171_v57, %v12121_v6  ;;  %v4677_v25 = vpop.f32.mrf.mxu1  ;;  %v18122_v6 = vpack.c.bf16 %v15061_v39, %v15057_v13  ;;  %v18124_v39 = vpack.c.bf16 %v18053_v55, %v15069_v60 }
 0x3ed   : > { %v4961_v38 = vpop.f32.mrf.mxu0 }
 0x3ee   : > { %v15611_v17 = vadd.f32 %v4961_v38, %v4677_v25  ;;  %v12124_v34 = vpop.f32.mrf.mxu1 }
 0x3ef   : > { %v12174_v37 = vpop.f32.mrf.mxu0  ;;  %12323 = vmatmul.mubr.msk.bf16.gmra.mxu1 %vm435_vm1, %v5923_v32 }
 0x3f0   : > { %12373 = vmatmul.mubr.msk.bf16.gmra.mxu0 %vm435_vm1, %v18120_v36  ;;  %v15620_v49 = vadd.f32 %v12174_v37, %v12124_v34  ;;  %12326 = vmatprep.mubr.msk.bf16.mxu1 %vm435_vm1, %v5924_v28  ;;  %v4689_v57 = vpop.f32.mrf.mxu1  ;;  %v18123_v37 = vld [vmem:[#allocation31_spill] sm:$0xff] }
 0x3f1   : > { %12376 = vmatprep.mubr.msk.bf16.mxu0 %vm435_vm1, %v18122_v6  ;;  %v4973_v25 = vpop.f32.mrf.mxu0  ;;  %v5925_v28 = vpack.c.bf16 %v18123_v37, %v15629_v4  ;;  %v18125_v6 = vld [vmem:[#allocation39_spill] sm:$0xff] }
 0x3f2   : > { %18121 = vst [vmem:[#allocation40_spill] sm:$0xff] %v15620_v49  ;;  %v15627_v38 = vadd.f32 %v4973_v25, %v4689_v57  ;;  %v12125_v32 = vpop.f32.mrf.mxu1  ;;  %v18126_v57 = vld [vmem:[#allocation32_spill] sm:$0xff] }
 0x3f3   : > { %v12175_v42 = vpop.f32.mrf.mxu0  ;;  %v18127_v25 = vpack.c.bf16 %v18125_v6, %v18126_v57 }
 0x3f4   : > { %v15631_v12 = vadd.f32 %v12175_v42, %v12125_v32  ;;  %v4692_v19 = vpop.f32.mrf.mxu1  ;;  %v18128_v32 = vpack.c.bf16 %v18055_v15, %v18054_v59  ;;  %v18130_v59 = vpack.c.bf16 %v18063_v22, %v18056_v8  ;;  %v18131_v15 = vld [vmem:[#allocation44_spill] sm:$0xff] }
 0x3f5   : > { %v4976_v34 = vpop.f32.mrf.mxu0 }
 0x3f6   : > { %v12128_v36 = vpop.f32.mrf.mxu1  ;;  %v15650_v34 = vld [vmem:[#allocation3 + $0xe9] sm:$0xff] }
 0x3f7   : > { %v12178_v49 = vpop.f32.mrf.mxu0  ;;  %12327 = vmatmul.mubr.msk.bf16.gmra.mxu1 %vm435_vm1, %v5925_v28  ;;  %v18129_v28 = vld [vmem:[#allocation46_spill] sm:$0xff] }
 0x3f8   : > { %12377 = vmatmul.mubr.msk.bf16.gmra.mxu0 %vm435_vm1, %v18124_v39  ;;  %v15640_v13 = vadd.f32 %v12178_v49, %v12128_v36  ;;  %12330 = vmatprep.mubr.msk.bf16.mxu1 %vm435_vm1, %v18127_v25  ;;  %v4704_v42 = vpop.f32.mrf.mxu1  ;;  %v5927_v36 = vpack.c.bf16 %v18129_v28, %v15650_v34  ;;  %v18132_v25 = vld [vmem:[#allocation48_spill] sm:$0xff] }
 0x3f9   : > { %12380 = vmatprep.mubr.msk.bf16.mxu0 %vm435_vm1, %v18128_v32  ;;  %v4988_v19 = vpop.f32.mrf.mxu0  ;;  %v18133_v32 = vpack.c.bf16 %v18131_v15, %v18132_v25  ;;  %v18134_v42 = vpack.c.bf16 %v18065_v52, %v18064_v27  ;;  %v18135_v27 = vld [vmem:[#allocation38_spill] sm:$0xff] }
 0x3fa   : > { %v12129_v60 = vpop.f32.mrf.mxu1 }
 0x3fb   : > { %v12179_v55 = vpop.f32.mrf.mxu0 }
 0x3fc   : > { %v4706_v37 = vpop.f32.mrf.mxu1  ;;  %v10960_v55 = vld [vmem:[%s14328_s13 + $0xd0] sm:$0xff]  }
 0x3fd   : > { %v4990_v49 = vpop.f32.mrf.mxu0 }
 0x3fe   : > { %v15654_v39 = vadd.f32 %v4990_v49, %v4706_v37  ;;  %v12132_v6 = vpop.f32.mrf.mxu1  ;;  %v10907_v49 = vunpack.c.l.bf16 %v10960_v55 }
 0x3ff   : > { %v12182_v57 = vpop.f32.mrf.mxu0  ;;  %12331 = vmatmul.mubr.msk.bf16.gmra.mxu1 %vm435_vm1, %v5927_v36  ;;  %v15674_v36 = vld [vmem:[#allocation3 + $0x109] sm:$0xff]  ;;  %v10908_v6 = vunpack.c.h.bf16 %v10960_v55 }
 0x400   : > { %12381 = vmatmul.mubr.msk.bf16.gmra.mxu0 %vm435_vm1, %v18130_v59  ;;  %12334 = vmatprep.mubr.msk.bf16.mxu1 %vm435_vm1, %v18133_v32  ;;  %v4718_v19 = vpop.f32.mrf.mxu1  ;;  %4213 = vst.msk [vmem:[#allocation3 + $0x1a0] sm:$0xff] %vm4160_vm2, %v10907_v49  ;;  %v5929_v52 = vpack.c.bf16 %v18135_v27, %v15674_v36  ;;  %v18138_v55 = vld [vmem:[#allocation55_spill] sm:$0xff] }
 0x401   : > { %12384 = vmatprep.mubr.msk.bf16.mxu0 %vm435_vm1, %v18134_v42  ;;  %v5002_v60 = vpop.f32.mrf.mxu0  ;;  %4214 = vst.msk [vmem:[#allocation3 + $0x1a8] sm:$0xff] %vm4160_vm2, %v10908_v6  ;;  %v18136_v42 = vpack.c.bf16 %v18073_v47, %v18066_v46 }
 0x402   : > { %v15670_v37 = vadd.f32 %v5002_v60, %v4718_v19  ;;  %v12133_v28 = vpop.f32.mrf.mxu1  ;;  %v18137_v60 = vld [vmem:[#allocation29_spill] sm:$0xff] }
 0x403   : > { %v12183_v8 = vpop.f32.mrf.mxu0  ;;  %v18139_v49 = vpack.c.bf16 %v18137_v60, %v18138_v55  ;;  %v18142_v60 = vld [vmem:[#allocation8_spill] sm:$0xff] }
 0x404   : > { %v15672_v22 = vadd.f32 %v12183_v8, %v12133_v28  ;;  %v4721_v57 = vpop.f32.mrf.mxu1  ;;  %v18140_v28 = vpack.c.bf16 %v18075_v53, %v18074_v31  ;;  %v18144_v31 = vpack.c.bf16 %v18083_v44, %v18076_v63 }
 0x405   : > { %v5005_v59 = vpop.f32.mrf.mxu0 }
 0x406   : > { %v15679_v15 = vadd.f32 %v5005_v59, %v4721_v57  ;;  %v12136_v25 = vpop.f32.mrf.mxu1 }
 0x407   : > { %v12186_v32 = vpop.f32.mrf.mxu0  ;;  %12335 = vmatmul.mubr.msk.bf16.gmra.mxu1 %vm435_vm1, %v5929_v52 }
 0x408   : > { %12385 = vmatmul.mubr.msk.bf16.gmra.mxu0 %vm435_vm1, %v18136_v42  ;;  %v15687_v19 = vadd.f32 %v12186_v32, %v12136_v25  ;;  %12338 = vmatprep.mubr.msk.bf16.mxu1 %vm435_vm1, %v18139_v49  ;;  %v4733_v8 = vpop.f32.mrf.mxu1  ;;  %v18141_v42 = vld [vmem:[#allocation5_spill] sm:$0xff] }
 0x409   : > { %12388 = vmatprep.mubr.msk.bf16.mxu0 %vm435_vm1, %v18140_v28  ;;  %v5017_v6 = vpop.f32.mrf.mxu0  ;;  %v18143_v55 = vpack.c.bf16 %v18141_v42, %v18142_v60  ;;  %v18145_v49 = vld [vmem:[#allocation61_spill] sm:$0xff]  ;;  %v18149_v60 = vld [vmem:[#allocation64_spill] sm:$0xff] }
 0x40a   : > { %v15697_v57 = vadd.f32 %v5017_v6, %v4733_v8  ;;  %v12137_v59 = vpop.f32.mrf.mxu1  ;;  %v18146_v28 = vld [vmem:[#allocation57_spill] sm:$0xff]  ;;  %v18148_v6 = vpack.c.bf16 %v18085_v61, %v18084_v26  ;;  %v18152_v26 = vpack.c.bf16 %v18091_v11, %v15269_v23  ;;  %v18153_v61 = vld [vmem:[#allocation67_spill] sm:$0xff] }
 0x40b   : > { %v12187_v46 = vpop.f32.mrf.mxu0  ;;  %v18147_v8 = vpack.c.bf16 %v18145_v49, %v18146_v28  ;;  %v18154_v49 = vld [vmem:[#allocation69_spill] sm:$0xff] }
 0x40c   : > { %v15699_v47 = vadd.f32 %v12187_v46, %v12137_v59  ;;  %v4736_v27 = vpop.f32.mrf.mxu1  ;;  %v18155_v28 = vpack.c.bf16 %v18153_v61, %v18154_v49  ;;  %v6301_v23 = vld [vmem:[#allocation3 + $0x182] sm:$0xff]  ;;  %v18159_v49 = vpack.c.bf16 %v15319_v43, %v15314_v9  ;;  %v5937_v43 = vpack.c.bf16 %v15338_v56, %v15338_v56 }
 0x40d   : > { %v5020_v52 = vpop.f32.mrf.mxu0 }
 0x40e   : > { %v12140_v25 = vpop.f32.mrf.mxu1 }
 0x40f   : > { %v12190_v32 = vpop.f32.mrf.mxu0  ;;  %12339 = vmatmul.mubr.msk.bf16.gmra.mxu1 %vm435_vm1, %v18143_v55  ;;  %v18150_v55 = vld [vmem:[#allocation60_spill] sm:$0xff] }
 0x410   : > { %12389 = vmatmul.mubr.msk.bf16.gmra.mxu0 %vm435_vm1, %v18144_v31  ;;  %v15709_v53 = vadd.f32 %v12190_v32, %v12140_v25  ;;  %12342 = vmatprep.mubr.msk.bf16.mxu1 %vm435_vm1, %v18147_v8  ;;  %v4748_v59 = vpop.f32.mrf.mxu1  ;;  %v18151_v31 = vpack.c.bf16 %v18149_v60, %v18150_v55  ;;  %v18156_v8 = vpack.c.bf16 %v18092_v30, %v15298_v33 }
 0x411   : > { %12392 = vmatprep.mubr.msk.bf16.mxu0 %vm435_vm1, %v18148_v6  ;;  %v5032_v46 = vpop.f32.mrf.mxu0 }
 0x412   : > { %v12141_v27 = vpop.f32.mrf.mxu1 }
 0x413   : > { %v12191_v52 = vpop.f32.mrf.mxu0 }
 0x414   : > { %v4750_v42 = vpop.f32.mrf.mxu1 }
 0x415   : > { %v5034_v63 = vpop.f32.mrf.mxu0 }
 0x416   : > { %v15719_v44 = vadd.f32 %v5034_v63, %v4750_v42  ;;  %v12144_v25 = vpop.f32.mrf.mxu1  ;;  %v6300_v42 = vld [vmem:[#allocation3 + $0x17a] sm:$0xff] }
 0x417   : > { %v12194_v32 = vpop.f32.mrf.mxu0  ;;  %12343 = vmatmul.mubr.msk.bf16.gmra.mxu1 %vm435_vm1, %v18151_v31  ;;  %v6325_v30 = vpack.c.bf16 %v6301_v23, %v6300_v42  ;;  %v6646_v42 = vld [vmem:[#allocation3 + $0x38] sm:$0xff] }
 0x418   : > { %12393 = vmatmul.mubr.msk.bf16.gmra.mxu0 %vm435_vm1, %v18152_v26  ;;  %12346 = vmatprep.mubr.msk.bf16.mxu1 %vm435_vm1, %v18155_v28  ;;  %v4762_v6 = vpop.f32.mrf.mxu1  ;;  %v15741_v32 = vld [vmem:[#allocation3 + $0x179] sm:$0xff]  ;;  %v18157_v26 = vld [vmem:[#allocation71_spill] sm:$0xff] }
 0x419   : > { %12396 = vmatprep.mubr.msk.bf16.mxu0 %vm435_vm1, %v18156_v8  ;;  %v5046_v59 = vpop.f32.mrf.mxu0  ;;  %v5936_v33 = vpack.c.bf16 %v15336_v5, %v15741_v32  ;;  %v18158_v61 = vpack.c.bf16 %v15310_v58, %v18157_v26 }
 0x41a   : > { %v15737_v46 = vadd.f32 %v5046_v59, %v4762_v6  ;;  %v12145_v27 = vpop.f32.mrf.mxu1 }
 0x41b   : > { %v12195_v52 = vpop.f32.mrf.mxu0 }
 0x41c   : > { %v15739_v11 = vadd.f32 %v12195_v52, %v12145_v27  ;;  %v4765_v63 = vpop.f32.mrf.mxu1  ;;  %v6302_v27 = vld [vmem:[#allocation3 + $0x18a] sm:$0xff] }
 0x41d   : > { %v5049_v25 = vpop.f32.mrf.mxu0 }
 0x41e   : > { %v15743_v60 = vadd.f32 %v5049_v25, %v4765_v63  ;;  %v6326_v25 = vpack.c.bf16 %v6302_v27, %v6302_v27  ;;  %v6648_v27 = vld [vmem:[#allocation3 + $0x48] sm:$0xff] }
 0x41f   : > { %v12148_v55 = vpop.f32.mrf.mxu1  ;;  %12347 = vmatmul.mubr.msk.bf16.gmra.mxu1 %vm435_vm1, %v18158_v61  ;;  %v18160_v61 = vpack.c.bf16 %v18096_v29, %v18095_v21 }
 0x420   : > { %v12198_v31 = vpop.f32.mrf.mxu0  ;;  %12397 = vmatmul.mubr.msk.bf16.gmra.mxu0 %vm435_vm1, %v18159_v49  ;;  %12350 = vmatprep.mubr.msk.bf16.mxu1 %vm435_vm1, %v5936_v33 }
 0x421   : > { %v15755_v28 = vadd.f32 %v12198_v31, %v12148_v55  ;;  %12400 = vmatprep.mubr.msk.bf16.mxu0 %vm435_vm1, %v6325_v30  ;;  %v4777_v8 = vpop.f32.mrf.mxu1  ;;  %v6645_v55 = vld [vmem:[#allocation3 + $0x30] sm:$0xff] }
 0x422   : > { %v5061_v6 = vpop.f32.mrf.mxu0  ;;  %v6692_v33 = vpack.c.bf16 %v6646_v42, %v6645_v55  ;;  %v6649_v42 = vld [vmem:[#allocation3 + $0x50] sm:$0xff] }
 0x423   : > { %v15759_v59 = vadd.f32 %v5061_v6, %v4777_v8  ;;  %v12149_v52 = vpop.f32.mrf.mxu1  ;;  %v6647_v6 = vld [vmem:[#allocation3 + $0x40] sm:$0xff] }
 0x424   : > { %v12199_v58 = vpop.f32.mrf.mxu0 }
 0x425   : > { %v15761_v23 = vadd.f32 %v12199_v58, %v12149_v52  ;;  %v4780_v63 = vpop.f32.mrf.mxu1 }
 0x426   : > { %v5064_v9 = vpop.f32.mrf.mxu0  ;;  %v6650_v63 = vld [vmem:[#allocation3 + $0x58] sm:$0xff] }
 0x427   : > { %v12152_v31 = vpop.f32.mrf.mxu1  ;;  %12351 = vmatmul.mubr.msk.bf16.gmra.mxu1 %vm435_vm1, %v5937_v43 }
 0x428   : > { %v12202_v30 = vpop.f32.mrf.mxu0  ;;  %12401 = vmatmul.mubr.msk.bf16.gmra.mxu0 %vm435_vm1, %v6326_v25  ;;  %12406 = vmatprep.mubr.msk.bf16.mxu1 %vm435_vm1, %v6692_v33  ;;  %v6693_v25 = vpack.c.bf16 %v6648_v27, %v6647_v6  ;;  %v7569_v33 = vsel %vm707_vm0, %v15535_v0, 0  ;;  %v6651_v6 = vld [vmem:[#allocation3 + $0x60] sm:$0xff]  ;;  %v6652_v27 = vld [vmem:[#allocation3 + $0x68] sm:$0xff] }
 0x429   : > { %v15767_v26 = vadd.f32 %v12202_v30, %v12152_v31  ;;  %12456 = vmatprep.mubr.msk.bf16.mxu0 %vm435_vm1, %v18160_v61  ;;  %v4792_v49 = vpop.f32.mrf.mxu1  ;;  %v6694_v31 = vpack.c.bf16 %v6650_v63, %v6649_v42  ;;  %v18161_v30 = vpack.c.bf16 %v18100_v2, %v18097_v35  ;;  %v18162_v61 = vpack.c.bf16 %v18103_v7, %v18101_v62  ;;  %v6654_v2 = vld [vmem:[#allocation3 + $0x78] sm:$0xff] }
 0x42a   : > { %v5076_v8 = vpop.f32.mrf.mxu0  ;;  %v6695_v7 = vpack.c.bf16 %v6652_v27, %v6651_v6 }
 0x42b   : > { %v12153_v52 = vpop.f32.mrf.mxu1 }
 0x42c   : > { %v12203_v58 = vpop.f32.mrf.mxu0  ;;  %v18163_v52 = vmov 0.0  }
 0x42d   : > { %v4794_v9 = vpop.f32.mrf.mxu1 }
 0x42e   : > { %v5078_v43 = vpop.f32.mrf.mxu0 }
 0x42f   : > { %v15774_v55 = vadd.f32 %v5078_v43, %v4794_v9  ;;  %v12208_v21 = vpop.f32.mrf.mxu1  ;;  %12407 = vmatmul.mubr.msk.bf16.vlgmr.msra.gmra.mxu1 %vm435_vm1, %v6693_v25  ;;  %v6653_v43 = vld [vmem:[#allocation3 + $0x70] sm:$0xff] }
 0x430   : > { %v12258_v29 = vpop.f32.mrf.mxu0  ;;  %12457 = vmatmul.mubr.msk.bf16.vlgmr.msra.gmra.mxu0 %vm435_vm1, %v18161_v30  ;;  %12410 = vmatprep.mubr.msk.bf16.mxu1 %vm435_vm1, %v6694_v31  ;;  %v18164_v31 = vld [vmem:[#allocation25_spill] sm:$0xff] }
 0x431   : > { %12460 = vmatprep.mubr.msk.bf16.mxu0 %vm435_vm1, %v18162_v61  ;;  %v5271_v49 = vpop.f32.mrf.mxu1  ;;  %12505 = vmatpush3.bf16.msra.mxu1 %v7569_v33  ;;  %v18165_v30 = vld [vmem:[#allocation17_spill] sm:$0xff] }
 0x432   : > { %v5660_v8 = vpop.f32.mrf.mxu0  ;;  %v5446_v0 = vadd.f32 %v5271_v49, %v15537_v50  ;;  %12554 = vmatprep.subr.bf16.mxu1 %v18163_v52  ;;  %v6696_v50 = vpack.c.bf16 %v6654_v2, %v6653_v43  ;;  %v18166_v61 = vpack.c.bf16 %v18108_v45, %v18165_v30  ;;  %v6655_v45 = vld [vmem:[#allocation3 + $0x80] sm:$0xff]  ;;  %v6656_v2 = vld [vmem:[#allocation3 + $0x88] sm:$0xff] }
 0x433   : > { %v12209_v58 = vpop.f32.mrf.mxu1 }
 0x434   : > { %v12259_v35 = vpop.f32.mrf.mxu0  ;;  %v15790_v42 = vadd.f32 %v5660_v8, %v5446_v0  ;;  %v5448_v63 = vadd.f32 %v12209_v58, %v15541_v48  ;;  %v18167_v48 = vld [vmem:[#allocation27_spill] sm:$0xff]  ;;  %v18168_v0 = vpack.c.bf16 %v18110_v1, %v18109_v51  ;;  %v6697_v51 = vpack.c.bf16 %v6656_v2, %v6655_v45  ;;  %v7048_v45 = vld [vmem:[#allocation3 + $0xa1] sm:$0xff] }
 0x435   : > { %v5274_v9 = vpop.f32.mrf.mxu1 }
 0x436   : > { %v5663_v62 = vpop.f32.mrf.mxu0  ;;  %v15793_v25 = vadd.f32 %v12259_v35, %v5448_v63  ;;  %v5447_v33 = vadd.f32 %v5274_v9, %v18164_v31  ;;  %v7044_v63 = vld [vmem:[#allocation3 + $0x81] sm:$0xff] }
 0x437   : > { %v12212_v21 = vpop.f32.mrf.mxu1  ;;  %12411 = vmatmul.mubr.msk.bf16.gmra.mxu1 %vm435_vm1, %v6695_v7  ;;  %v6658_v7 = vld [vmem:[#allocation3 + $0x98] sm:$0xff] }
 0x438   : > { %v12262_v29 = vpop.f32.mrf.mxu0  ;;  %12461 = vmatmul.mubr.msk.bf16.gmra.mxu0 %vm435_vm1, %v18166_v61  ;;  %v15801_v49 = vadd.f32 %v5663_v62, %v5447_v33  ;;  %v5450_v8 = vadd.f32 %v12212_v21, %v18167_v48  ;;  %12414 = vmatprep.mubr.msk.bf16.mxu1 %vm435_vm1, %v6696_v50  ;;  %v7086_v50 = vpack.c.bf16 %v15581_v18, %v7044_v63  ;;  %v6657_v21 = vld [vmem:[#allocation3 + $0x90] sm:$0xff] }
 0x439   : > { %12464 = vmatprep.mubr.msk.bf16.mxu0 %vm435_vm1, %v18168_v0  ;;  %v5286_v6 = vpop.f32.mrf.mxu1  ;;  %v6661_v63 = vld [vmem:[#allocation3 + $0xb0] sm:$0xff] }
 0x43a   : > { %v5675_v27 = vpop.f32.mrf.mxu0  ;;  %v15809_v58 = vadd.f32 %v12262_v29, %v5450_v8  ;;  %v5449_v35 = vadd.f32 %v5286_v6, %v15561_v3  ;;  %v7046_v29 = vld [vmem:[#allocation3 + $0x91] sm:$0xff]  ;;  %v6698_v3 = vpack.c.bf16 %v6658_v7, %v6657_v21 }
 0x43b   : > { %v12213_v9 = vpop.f32.mrf.mxu1  ;;  %v7087_v61 = vpack.c.bf16 %v15583_v40, %v7046_v29 }
 0x43c   : > { %v12263_v62 = vpop.f32.mrf.mxu0  ;;  %v15812_v43 = vadd.f32 %v5675_v27, %v5449_v35  ;;  %v5451_v31 = vadd.f32 %v12213_v9, %v15563_v10  ;;  %v6659_v27 = vld [vmem:[#allocation3 + $0xa0] sm:$0xff]  ;;  %v6660_v35 = vld [vmem:[#allocation3 + $0xa8] sm:$0xff]  ;;  %v6662_v9 = vld [vmem:[#allocation3 + $0xb8] sm:$0xff] }
 0x43d   : > { %v5289_v33 = vpop.f32.mrf.mxu1 }
 0x43e   : > { %v5678_v1 = vpop.f32.mrf.mxu0  ;;  %v15816_v30 = vadd.f32 %v12263_v62, %v5451_v31  ;;  %v7050_v62 = vld [vmem:[#allocation3 + $0xb1] sm:$0xff]  ;;  %v6699_v33 = vpack.c.bf16 %v6660_v35, %v6659_v27  ;;  %v7055_v35 = vld [vmem:[#allocation3 + $0xd9] sm:$0xff] }
 0x43f   : > { %v12216_v48 = vpop.f32.mrf.mxu1  ;;  %12415 = vmatmul.mubr.msk.bf16.gmra.mxu1 %vm435_vm1, %v6697_v51  ;;  %v6700_v51 = vpack.c.bf16 %v6662_v9, %v6661_v63  ;;  %v7054_v27 = vld [vmem:[#allocation3 + $0xd1] sm:$0xff] }
 0x440   : > { %v12266_v8 = vpop.f32.mrf.mxu0  ;;  %12465 = vmatmul.mubr.msk.bf16.gmra.mxu0 %vm435_vm1, %v7086_v50  ;;  %v5453_v10 = vadd.f32 %v12216_v48, %v15574_v16  ;;  %12418 = vmatprep.mubr.msk.bf16.mxu1 %vm435_vm1, %v6698_v3  ;;  %v7088_v16 = vpack.c.bf16 %v15605_v41, %v7048_v45  ;;  %v7089_v50 = vpack.c.bf16 %v15609_v20, %v7050_v62 }
 0x441   : > { %12468 = vmatprep.mubr.msk.bf16.mxu0 %vm435_vm1, %v7087_v61  ;;  %v5301_v18 = vpop.f32.mrf.mxu1 }
 0x442   : > { %v5690_v0 = vpop.f32.mrf.mxu0  ;;  %v15824_v6 = vadd.f32 %v12266_v8, %v5453_v10  ;;  %v6664_v8 = vld [vmem:[#allocation3 + $0xc8] sm:$0xff] }
 0x443   : > { %v12217_v40 = vpop.f32.mrf.mxu1  ;;  %v7052_v10 = vld [vmem:[#allocation3 + $0xc1] sm:$0xff]  ;;  %v6666_v0 = vld [vmem:[#allocation3 + $0xd8] sm:$0xff] }
 0x444   : > { %v12267_v2 = vpop.f32.mrf.mxu0  ;;  %v7090_v62 = vpack.c.bf16 %v15629_v4, %v7052_v10 }
 0x445   : > { %v5303_v7 = vpop.f32.mrf.mxu1 }
 0x446   : > { %v5692_v31 = vpop.f32.mrf.mxu0  ;;  %v5452_v1 = vadd.f32 %v5303_v7, %v15587_v14  ;;  %v6663_v14 = vld [vmem:[#allocation3 + $0xc0] sm:$0xff]  ;;  %v6665_v7 = vld [vmem:[#allocation3 + $0xd0] sm:$0xff] }
 0x447   : > { %v12220_v21 = vpop.f32.mrf.mxu1  ;;  %12419 = vmatmul.mubr.msk.bf16.gmra.mxu1 %vm435_vm1, %v6699_v33  ;;  %v6701_v9 = vpack.c.bf16 %v6664_v8, %v6663_v14  ;;  %v6702_v33 = vpack.c.bf16 %v6666_v0, %v6665_v7  ;;  %v7056_v14 = vld [vmem:[#allocation3 + $0xe1] sm:$0xff] }
 0x448   : > { %v12270_v29 = vpop.f32.mrf.mxu0  ;;  %12469 = vmatmul.mubr.msk.bf16.gmra.mxu0 %vm435_vm1, %v7088_v16  ;;  %v15831_v3 = vadd.f32 %v5692_v31, %v5452_v1  ;;  %12422 = vmatprep.mubr.msk.bf16.mxu1 %vm435_vm1, %v6700_v51  ;;  %v7091_v16 = vpack.c.bf16 %v7055_v35, %v7054_v27 }
 0x449   : > { %12472 = vmatprep.mubr.msk.bf16.mxu0 %vm435_vm1, %v7089_v50  ;;  %v5315_v61 = vpop.f32.mrf.mxu1 }
 0x44a   : > { %v5704_v48 = vpop.f32.mrf.mxu0  ;;  %v5454_v41 = vadd.f32 %v5315_v61, %v15601_v24 }
 0x44b   : > { %v12221_v20 = vpop.f32.mrf.mxu1 }
 0x44c   : > { %v12271_v18 = vpop.f32.mrf.mxu0  ;;  %v15836_v45 = vadd.f32 %v5704_v48, %v5454_v41  ;;  %v5456_v40 = vadd.f32 %v12221_v20, %v15603_v54  ;;  %v18169_v54 = vld [vmem:[#allocation40_spill] sm:$0xff]  ;;  %v6667_v48 = vld [vmem:[#allocation3 + $0xe0] sm:$0xff]  ;;  %v6668_v41 = vld [vmem:[#allocation3 + $0xe8] sm:$0xff] }
 0x44d   : > { %v5318_v2 = vpop.f32.mrf.mxu1  ;;  %v6670_v20 = vld [vmem:[#allocation3 + $0xf8] sm:$0xff] }
 0x44e   : > { %v5707_v63 = vpop.f32.mrf.mxu0  ;;  %v15840_v31 = vadd.f32 %v12271_v18, %v5456_v40  ;;  %v5455_v24 = vadd.f32 %v5318_v2, %v15611_v17  ;;  %v7059_v18 = vld [vmem:[#allocation3 + $0xf9] sm:$0xff]  ;;  %v6703_v2 = vpack.c.bf16 %v6668_v41, %v6667_v48  ;;  %v6673_v41 = vld [vmem:[#allocation3 + $0x110] sm:$0xff] }
 0x44f   : > { %v12224_v1 = vpop.f32.mrf.mxu1  ;;  %12423 = vmatmul.mubr.msk.bf16.gmra.mxu1 %vm435_vm1, %v6701_v9  ;;  %v6669_v9 = vld [vmem:[#allocation3 + $0xf0] sm:$0xff] }
 0x450   : > { %v12274_v51 = vpop.f32.mrf.mxu0  ;;  %12473 = vmatmul.mubr.msk.bf16.gmra.mxu0 %vm435_vm1, %v7090_v62  ;;  %v15845_v50 = vadd.f32 %v5707_v63, %v5455_v24  ;;  %v5458_v21 = vadd.f32 %v12224_v1, %v18169_v54  ;;  %12426 = vmatprep.mubr.msk.bf16.mxu1 %vm435_vm1, %v6702_v33  ;;  %v7092_v63 = vpack.c.bf16 %v15650_v34, %v7056_v14  ;;  %v7058_v62 = vld [vmem:[#allocation3 + $0xf1] sm:$0xff] }
 0x451   : > { %12476 = vmatprep.mubr.msk.bf16.mxu0 %vm435_vm1, %v7091_v16  ;;  %v5330_v4 = vpop.f32.mrf.mxu1  ;;  %v7093_v24 = vpack.c.bf16 %v7059_v18, %v7058_v62  ;;  %v6674_v14 = vld [vmem:[#allocation3 + $0x118] sm:$0xff] }
 0x452   : > { %v5719_v29 = vpop.f32.mrf.mxu0  ;;  %v15850_v61 = vadd.f32 %v12274_v51, %v5458_v21  ;;  %v5457_v17 = vadd.f32 %v5330_v4, %v15627_v38  ;;  %v6704_v38 = vpack.c.bf16 %v6670_v20, %v6669_v9  ;;  %v7060_v51 = vld [vmem:[#allocation3 + $0x101] sm:$0xff] }
 0x453   : > { %v12225_v8 = vpop.f32.mrf.mxu1  ;;  %v6671_v21 = vld [vmem:[#allocation3 + $0x100] sm:$0xff]  ;;  %v6672_v4 = vld [vmem:[#allocation3 + $0x108] sm:$0xff]  ;;  %v7094_v18 = vpack.c.bf16 %v15674_v36, %v7060_v51 }
 0x454   : > { %v12275_v10 = vpop.f32.mrf.mxu0  ;;  %v15853_v0 = vadd.f32 %v5719_v29, %v5457_v17  ;;  %v5459_v27 = vadd.f32 %v12225_v8, %v15631_v12  ;;  %v7063_v29 = vld [vmem:[#allocation3 + $0x119] sm:$0xff]  ;;  %v7062_v8 = vld [vmem:[#allocation3 + $0x111] sm:$0xff] }
 0x455   : > { %v5333_v35 = vpop.f32.mrf.mxu1  ;;  %v7067_v51 = vld [vmem:[#allocation3 + $0x139] sm:$0xff] }
 0x456   : > { %v5722_v40 = vpop.f32.mrf.mxu0  ;;  %v15857_v7 = vadd.f32 %v12275_v10, %v5459_v27  ;;  %v6706_v35 = vpack.c.bf16 %v6674_v14, %v6673_v41 }
 0x457   : > { %v12228_v33 = vpop.f32.mrf.mxu1  ;;  %12427 = vmatmul.mubr.msk.bf16.gmra.mxu1 %vm435_vm1, %v6703_v2  ;;  %v7095_v40 = vpack.c.bf16 %v7063_v29, %v7062_v8  ;;  %v7065_v29 = vld [vmem:[#allocation3 + $0x129] sm:$0xff] }
 0x458   : > { %v12278_v16 = vpop.f32.mrf.mxu0  ;;  %12477 = vmatmul.mubr.msk.bf16.gmra.mxu0 %vm435_vm1, %v7092_v63  ;;  %v5461_v1 = vadd.f32 %v12228_v33, %v15640_v13  ;;  %12430 = vmatprep.mubr.msk.bf16.mxu1 %vm435_vm1, %v6704_v38  ;;  %v6705_v13 = vpack.c.bf16 %v6672_v4, %v6671_v21  ;;  %v7064_v33 = vld [vmem:[#allocation3 + $0x121] sm:$0xff]  ;;  %v6677_v8 = vld [vmem:[#allocation3 + $0x130] sm:$0xff] }
 0x459   : > { %12480 = vmatprep.mubr.msk.bf16.mxu0 %vm435_vm1, %v7093_v24  ;;  %v5345_v12 = vpop.f32.mrf.mxu1  ;;  %v6675_v24 = vld [vmem:[#allocation3 + $0x120] sm:$0xff]  ;;  %v7096_v14 = vpack.c.bf16 %v7065_v29, %v7064_v33 }
 0x45a   : > { %v5734_v34 = vpop.f32.mrf.mxu0  ;;  %v15864_v54 = vadd.f32 %v12278_v16, %v5461_v1  ;;  %v6678_v12 = vld [vmem:[#allocation3 + $0x138] sm:$0xff] }
 0x45b   : > { %v12229_v17 = vpop.f32.mrf.mxu1  ;;  %v7066_v34 = vld [vmem:[#allocation3 + $0x131] sm:$0xff] }
 0x45c   : > { %v12279_v48 = vpop.f32.mrf.mxu0 }
 0x45d   : > { %v5347_v10 = vpop.f32.mrf.mxu1 }
 0x45e   : > { %v5736_v20 = vpop.f32.mrf.mxu0  ;;  %v5460_v27 = vadd.f32 %v5347_v10, %v15654_v39  ;;  %v6676_v39 = vld [vmem:[#allocation3 + $0x128] sm:$0xff] }
 0x45f   : > { %v12232_v2 = vpop.f32.mrf.mxu1  ;;  %12431 = vmatmul.mubr.msk.bf16.gmra.mxu1 %vm435_vm1, %v6705_v13  ;;  %v6707_v41 = vpack.c.bf16 %v6676_v39, %v6675_v24  ;;  %v7097_v13 = vpack.c.bf16 %v7067_v51, %v7066_v34  ;;  %v7068_v24 = vld [vmem:[#allocation3 + $0x141] sm:$0xff] }
 0x460   : > { %v12282_v63 = vpop.f32.mrf.mxu0  ;;  %12481 = vmatmul.mubr.msk.bf16.gmra.mxu0 %vm435_vm1, %v7094_v18  ;;  %v15870_v9 = vadd.f32 %v5736_v20, %v5460_v27  ;;  %12434 = vmatprep.mubr.msk.bf16.mxu1 %vm435_vm1, %v6706_v35  ;;  %v6708_v20 = vpack.c.bf16 %v6678_v12, %v6677_v8 }
 0x461   : > { %12484 = vmatprep.mubr.msk.bf16.mxu0 %vm435_vm1, %v7095_v40  ;;  %v5359_v62 = vpop.f32.mrf.mxu1  ;;  %v7069_v63 = vld [vmem:[#allocation3 + $0x149] sm:$0xff] }
 0x462   : > { %v5748_v38 = vpop.f32.mrf.mxu0  ;;  %v5462_v36 = vadd.f32 %v5359_v62, %v15670_v37  ;;  %v7098_v29 = vpack.c.bf16 %v7069_v63, %v7068_v24  ;;  %v7074_v24 = vld [vmem:[#allocation3 + $0x171] sm:$0xff] }
 0x463   : > { %v12233_v16 = vpop.f32.mrf.mxu1 }
 0x464   : > { %v12283_v1 = vpop.f32.mrf.mxu0  ;;  %v15875_v21 = vadd.f32 %v5748_v38, %v5462_v36  ;;  %v5464_v4 = vadd.f32 %v12233_v16, %v15672_v22  ;;  %v6679_v38 = vld [vmem:[#allocation3 + $0x140] sm:$0xff]  ;;  %v6680_v36 = vld [vmem:[#allocation3 + $0x148] sm:$0xff]  ;;  %v6682_v16 = vld [vmem:[#allocation3 + $0x158] sm:$0xff] }
 0x465   : > { %v5362_v17 = vpop.f32.mrf.mxu1 }
 0x466   : > { %v5751_v48 = vpop.f32.mrf.mxu0  ;;  %v15878_v10 = vadd.f32 %v12283_v1, %v5464_v4  ;;  %v5463_v37 = vadd.f32 %v5362_v17, %v15679_v15  ;;  %v7071_v1 = vld [vmem:[#allocation3 + $0x159] sm:$0xff]  ;;  %v6709_v4 = vpack.c.bf16 %v6680_v36, %v6679_v38  ;;  %v6681_v17 = vld [vmem:[#allocation3 + $0x150] sm:$0xff] }
 0x467   : > { %v12236_v18 = vpop.f32.mrf.mxu1  ;;  %12435 = vmatmul.mubr.msk.bf16.gmra.mxu1 %vm435_vm1, %v6707_v41  ;;  %v6685_v38 = vld [vmem:[#allocation3 + $0x170] sm:$0xff]  ;;  %v6686_v36 = vld [vmem:[#allocation3 + $0x178] sm:$0xff] }
 0x468   : > { %v12286_v27 = vpop.f32.mrf.mxu0  ;;  %12485 = vmatmul.mubr.msk.bf16.gmra.mxu0 %vm435_vm1, %v7096_v14  ;;  %v15883_v35 = vadd.f32 %v5751_v48, %v5463_v37  ;;  %v5466_v22 = vadd.f32 %v12236_v18, %v15687_v19  ;;  %12438 = vmatprep.mubr.msk.bf16.mxu1 %vm435_vm1, %v6708_v20  ;;  %v7070_v48 = vld [vmem:[#allocation3 + $0x151] sm:$0xff]  ;;  %v7072_v18 = vld [vmem:[#allocation3 + $0x161] sm:$0xff] }
 0x469   : > { %12488 = vmatprep.mubr.msk.bf16.mxu0 %vm435_vm1, %v7097_v13  ;;  %v5374_v40 = vpop.f32.mrf.mxu1  ;;  %v7099_v14 = vpack.c.bf16 %v7071_v1, %v7070_v48  ;;  %v7078_v48 = vld [vmem:[#allocation3 + $0x191] sm:$0xff] }
 0x46a   : > { %v5763_v2 = vpop.f32.mrf.mxu0  ;;  %v15888_v15 = vadd.f32 %v12286_v27, %v5466_v22  ;;  %v5465_v62 = vadd.f32 %v5374_v40, %v15697_v57  ;;  %v6710_v57 = vpack.c.bf16 %v6682_v16, %v6681_v17  ;;  %v6683_v22 = vld [vmem:[#allocation3 + $0x160] sm:$0xff]  ;;  %v6684_v40 = vld [vmem:[#allocation3 + $0x168] sm:$0xff] }
 0x46b   : > { %v12237_v39 = vpop.f32.mrf.mxu1 }
 0x46c   : > { %v12287_v33 = vpop.f32.mrf.mxu0  ;;  %v15891_v12 = vadd.f32 %v5763_v2, %v5465_v62  ;;  %v5467_v19 = vadd.f32 %v12237_v39, %v15699_v47  ;;  %v7073_v2 = vld [vmem:[#allocation3 + $0x169] sm:$0xff] }
 0x46d   : > { %v5377_v34 = vpop.f32.mrf.mxu1  ;;  %v7100_v16 = vpack.c.bf16 %v7073_v2, %v7072_v18 }
 0x46e   : > { %v5766_v51 = vpop.f32.mrf.mxu0  ;;  %v15894_v41 = vadd.f32 %v12287_v33, %v5467_v19  ;;  %v6712_v19 = vpack.c.bf16 %v6686_v36, %v6685_v38  ;;  %v7101_v34 = vpack.c.bf16 %v15741_v32, %v7074_v24 }
 0x46f   : > { %v12240_v8 = vpop.f32.mrf.mxu1  ;;  %12439 = vmatmul.mubr.msk.bf16.gmra.mxu1 %vm435_vm1, %v6709_v4 }
 0x470   : > { %v12290_v37 = vpop.f32.mrf.mxu0  ;;  %12489 = vmatmul.mubr.msk.bf16.gmra.mxu0 %vm435_vm1, %v7098_v29  ;;  %v5469_v20 = vadd.f32 %v12240_v8, %v15709_v53  ;;  %12442 = vmatprep.mubr.msk.bf16.mxu1 %vm435_vm1, %v6710_v57  ;;  %v6711_v53 = vpack.c.bf16 %v6684_v40, %v6683_v22  ;;  %v7079_v57 = vld [vmem:[#allocation3 + $0x199] sm:$0xff]  ;;  %v6688_v8 = vld [vmem:[#allocation3 + $0x188] sm:$0xff] }
 0x471   : > { %12492 = vmatprep.mubr.msk.bf16.mxu0 %vm435_vm1, %v7099_v14  ;;  %v5389_v47 = vpop.f32.mrf.mxu1  ;;  %v6687_v14 = vld [vmem:[#allocation3 + $0x180] sm:$0xff]  ;;  %v7103_v22 = vpack.c.bf16 %v7079_v57, %v7078_v48 }
 0x472   : > { %v5778_v13 = vpop.f32.mrf.mxu0  ;;  %v15901_v27 = vadd.f32 %v12290_v37, %v5469_v20  ;;  %v6689_v20 = vld [vmem:[#allocation3 + $0x190] sm:$0xff]  ;;  %v6690_v47 = vld [vmem:[#allocation3 + $0x198] sm:$0xff] }
 0x473   : > { %v12241_v63 = vpop.f32.mrf.mxu1 }
 0x474   : > { %v12291_v62 = vpop.f32.mrf.mxu0  ;;  %v6713_v63 = vpack.c.bf16 %v6688_v8, %v6687_v14 }
 0x475   : > { %v5391_v39 = vpop.f32.mrf.mxu1 }
 0x476   : > { %v15903_v33 = vpop.f32.mrf.mxu0  ;;  %v15906_v1 = vadd.f32 %v5391_v39, %v15719_v44  ;;  %v18170_v39 = vpack.c.bf16 %v15338_v56, %v15336_v5  ;;  %v7423_v5 = vld [vmem:[#allocation3 + $0x32] sm:$0xff]  ;;  %v7424_v56 = vld [vmem:[#allocation3 + $0x3a] sm:$0xff] }
 0x477   : > { %v12244_v51 = vpop.f32.mrf.mxu1  ;;  %12443 = vmatmul.mubr.msk.bf16.gmra.mxu1 %vm435_vm1, %v6711_v53  ;;  %v6691_v53 = vld [vmem:[#allocation3 + $0x1a0] sm:$0xff] }
 0x478   : > { %v12294_v4 = vpop.f32.mrf.mxu0  ;;  %12493 = vmatmul.mubr.msk.bf16.gmra.mxu0 %vm435_vm1, %v7100_v16  ;;  %12446 = vmatprep.mubr.msk.bf16.mxu1 %vm435_vm1, %v6712_v19  ;;  %v7080_v16 = vld [vmem:[#allocation3 + $0x1a1] sm:$0xff] }
 0x479   : > { %12496 = vmatprep.mubr.msk.bf16.mxu0 %vm435_vm1, %v7101_v34  ;;  %v5403_v29 = vpop.f32.mrf.mxu1  ;;  %v7104_v48 = vpack.c.bf16 %v7080_v16, %v7080_v16 }
 0x47a   : > { %v5792_v17 = vpop.f32.mrf.mxu0  ;;  %v5470_v44 = vadd.f32 %v5403_v29, %v15737_v46  ;;  %v6714_v46 = vpack.c.bf16 %v6690_v47, %v6689_v20 }
 0x47b   : > { %v12245_v37 = vpop.f32.mrf.mxu1 }
 0x47c   : > { %v12295_v32 = vpop.f32.mrf.mxu0  ;;  %v15914_v13 = vadd.f32 %v5792_v17, %v5470_v44  ;;  %v5472_v18 = vadd.f32 %v12245_v37, %v15739_v11  ;;  %v6715_v17 = vpack.c.bf16 %v6691_v53, %v6691_v53  ;;  %v7470_v37 = vpack.c.bf16 %v7424_v56, %v7423_v5  ;;  %v7427_v53 = vld [vmem:[#allocation3 + $0x52] sm:$0xff] }
 0x47d   : > { %v5406_v40 = vpop.f32.mrf.mxu1 }
 0x47e   : > { %v15917_v2 = vpop.f32.mrf.mxu0  ;;  %v15919_v62 = vadd.f32 %v12295_v32, %v5472_v18  ;;  %v15922_v38 = vadd.f32 %v5406_v40, %v15743_v60 }
 0x47f   : > { %v12248_v36 = vpop.f32.mrf.mxu1  ;;  %12447 = vmatmul.mubr.msk.bf16.gmra.mxu1 %vm435_vm1, %v6713_v63 }
 0x480   : > { %v12298_v24 = vpop.f32.mrf.mxu0  ;;  %12497 = vmatmul.mubr.msk.bf16.gmra.mxu0 %vm435_vm1, %v18170_v39  ;;  %v5474_v11 = vadd.f32 %v12248_v36, %v15755_v28  ;;  %12450 = vmatprep.mubr.msk.bf16.mxu1 %vm435_vm1, %v6714_v46  ;;  %v7428_v46 = vld [vmem:[#allocation3 + $0x5a] sm:$0xff]  ;;  %v7425_v36 = vld [vmem:[#allocation3 + $0x42] sm:$0xff] }
 0x481   : > { %12500 = vmatprep.mubr.msk.bf16.mxu0 %vm435_vm1, %v7103_v22  ;;  %v5418_v60 = vpop.f32.mrf.mxu1 }
 0x482   : > { %v5807_v19 = vpop.f32.mrf.mxu0  ;;  %v15932_v34 = vadd.f32 %v12298_v24, %v5474_v11  ;;  %v5473_v51 = vadd.f32 %v5418_v60, %v15759_v59 }
 0x483   : > { %v12249_v4 = vpop.f32.mrf.mxu1 }
 0x484   : > { %v12299_v29 = vpop.f32.mrf.mxu0  ;;  %v15935_v57 = vadd.f32 %v5807_v19, %v5473_v51  ;;  %v5475_v28 = vadd.f32 %v12249_v4, %v15761_v23  ;;  %v7426_v23 = vld [vmem:[#allocation3 + $0x4a] sm:$0xff] }
 0x485   : > { %v5421_v44 = vpop.f32.mrf.mxu1  ;;  %v7471_v11 = vpack.c.bf16 %v7426_v23, %v7425_v36 }
 0x486   : > { %v5810_v14 = vpop.f32.mrf.mxu0  ;;  %v15938_v8 = vadd.f32 %v12299_v29, %v5475_v28  ;;  %v7430_v44 = vld [vmem:[#allocation3 + $0x6a] sm:$0xff] }
 0x487   : > { %v12252_v32 = vpop.f32.mrf.mxu1  ;;  %12451 = vmatmul.mubr.msk.bf16.gmra.mxu1 %vm435_vm1, %v6715_v17  ;;  %v7429_v17 = vld [vmem:[#allocation3 + $0x62] sm:$0xff] }
 0x488   : > { %v12302_v20 = vpop.f32.mrf.mxu0  ;;  %12501 = vmatmul.mubr.msk.bf16.gmra.mxu0 %vm435_vm1, %v7104_v48  ;;  %v5477_v59 = vadd.f32 %v12252_v32, %v15767_v26  ;;  %12506 = vmatprep.mubr.msk.bf16.mxu1 %vm435_vm1, %v7470_v37  ;;  %v7472_v26 = vpack.c.bf16 %v7428_v46, %v7427_v53  ;;  %v7432_v48 = vld [vmem:[#allocation3 + $0x7a] sm:$0xff]  ;;  %v7473_v32 = vpack.c.bf16 %v7430_v44, %v7429_v17 }
 0x489   : > { %v5433_v47 = vpop.f32.mrf.mxu1 }
 0x48a   : > { %v5822_v18 = vpop.f32.mrf.mxu0  ;;  %v15944_v22 = vadd.f32 %v12302_v20, %v5477_v59  ;;  %v7431_v20 = vld [vmem:[#allocation3 + $0x72] sm:$0xff] }
 0x48b   : > { %v12253_v40 = vpop.f32.mrf.mxu1 }
 0x48c   : > { %v12303_v63 = vpop.f32.mrf.mxu0 }
 0x48d   : > { %v5435_v24 = vpop.f32.mrf.mxu1 }
 0x48e   : > { %v15946_v39 = vpop.f32.mrf.mxu0  ;;  %v15949_v16 = vadd.f32 %v5435_v24, %v15774_v55  ;;  %v7433_v24 = vld [vmem:[#allocation3 + $0x82] sm:$0xff] }
 0x48f   : > { %v12308_v60 = vpop.f32.mrf.mxu1  ;;  %12507 = vmatmul.mubr.msk.bf16.vlgmr.msra.gmra.mxu1 %vm435_vm1, %v7471_v11  ;;  %v7434_v11 = vld [vmem:[#allocation3 + $0x8a] sm:$0xff] }
 0x490   : > { %v12358_v19 = vpop.f32.mrf.mxu0  ;;  %12510 = vmatprep.mubr.msk.bf16.mxu1 %vm435_vm1, %v7472_v26  ;;  %v7435_v26 = vld [vmem:[#allocation3 + $0x92] sm:$0xff]  ;;  %v7436_v60 = vld [vmem:[#allocation3 + $0x9a] sm:$0xff] }
 0x491   : > { %v6049_v51 = vpop.f32.mrf.mxu1 }
 0x492   : > { %v6438_v4 = vpop.f32.mrf.mxu0  ;;  %v6224_v29 = vadd.f32 %v6049_v51, %v15790_v42  ;;  %v7474_v42 = vpack.c.bf16 %v7432_v48, %v7431_v20 }
 0x493   : > { %v12309_v5 = vpop.f32.mrf.mxu1 }
 0x494   : > { %v12359_v56 = vpop.f32.mrf.mxu0  ;;  %v15954_v28 = vadd.f32 %v6438_v4, %v6224_v29  ;;  %v6226_v55 = vadd.f32 %v12309_v5, %v15793_v25  ;;  %v7475_v29 = vpack.c.bf16 %v7434_v11, %v7433_v24  ;;  %v7476_v5 = vpack.c.bf16 %v7436_v60, %v7435_v26  ;;  %v7441_v60 = vld [vmem:[#allocation3 + $0xc2] sm:$0xff] }
 0x495   : > { %v6052_v14 = vpop.f32.mrf.mxu1 }
 0x496   : > { %v15957_v37 = vpop.f32.mrf.mxu0  ;;  %v15959_v59 = vadd.f32 %v12359_v56, %v6226_v55  ;;  %v15962_v47 = vadd.f32 %v6052_v14, %v15801_v49 }
 0x497   : > { %v12312_v18 = vpop.f32.mrf.mxu1  ;;  %12511 = vmatmul.mubr.msk.bf16.gmra.mxu1 %vm435_vm1, %v7473_v32  ;;  %v7438_v32 = vld [vmem:[#allocation3 + $0xaa] sm:$0xff] }
 0x498   : > { %v12362_v23 = vpop.f32.mrf.mxu0  ;;  %v6228_v40 = vadd.f32 %v12312_v18, %v15809_v58  ;;  %12514 = vmatprep.mubr.msk.bf16.mxu1 %vm435_vm1, %v7474_v42  ;;  %v7440_v42 = vld [vmem:[#allocation3 + $0xba] sm:$0xff]  ;;  %v7437_v18 = vld [vmem:[#allocation3 + $0xa2] sm:$0xff] }
 0x499   : > { %v6064_v25 = vpop.f32.mrf.mxu1 }
 0x49a   : > { %v6453_v63 = vpop.f32.mrf.mxu0  ;;  %v15967_v46 = vadd.f32 %v12362_v23, %v6228_v40  ;;  %v6227_v36 = vadd.f32 %v6064_v25, %v15812_v43  ;;  %v7477_v25 = vpack.c.bf16 %v7438_v32, %v7437_v18 }
 0x49b   : > { %v12313_v53 = vpop.f32.mrf.mxu1 }
 0x49c   : > { %v12363_v49 = vpop.f32.mrf.mxu0  ;;  %v15970_v19 = vadd.f32 %v6453_v63, %v6227_v36  ;;  %v6229_v51 = vadd.f32 %v12313_v53, %v15816_v30  ;;  %v7439_v63 = vld [vmem:[#allocation3 + $0xb2] sm:$0xff] }
 0x49d   : > { %v6067_v4 = vpop.f32.mrf.mxu1 }
 0x49e   : > { %v6456_v58 = vpop.f32.mrf.mxu0  ;;  %v15973_v17 = vadd.f32 %v12363_v49, %v6229_v51 }
 0x49f   : > { %v12316_v56 = vpop.f32.mrf.mxu1  ;;  %12515 = vmatmul.mubr.msk.bf16.gmra.mxu1 %vm435_vm1, %v7475_v29  ;;  %v7444_v58 = vld [vmem:[#allocation3 + $0xda] sm:$0xff] }
 0x4a0   : > { %v12366_v48 = vpop.f32.mrf.mxu0  ;;  %v6231_v43 = vadd.f32 %v12316_v56, %v15824_v6  ;;  %12518 = vmatprep.mubr.msk.bf16.mxu1 %vm435_vm1, %v7476_v5  ;;  %v7478_v6 = vpack.c.bf16 %v7440_v42, %v7439_v63  ;;  %v7442_v5 = vld [vmem:[#allocation3 + $0xca] sm:$0xff]  ;;  %v7445_v63 = vld [vmem:[#allocation3 + $0xe2] sm:$0xff] }
 0x4a1   : > { %v6079_v55 = vpop.f32.mrf.mxu1 }
 0x4a2   : > { %v6468_v44 = vpop.f32.mrf.mxu0  ;;  %v15978_v14 = vadd.f32 %v12366_v48, %v6231_v43  ;;  %v7479_v43 = vpack.c.bf16 %v7442_v5, %v7441_v60  ;;  %v7443_v55 = vld [vmem:[#allocation3 + $0xd2] sm:$0xff] }
 0x4a3   : > { %v12317_v30 = vpop.f32.mrf.mxu1 }
 0x4a4   : > { %v12367_v20 = vpop.f32.mrf.mxu0 }
 0x4a5   : > { %v6081_v23 = vpop.f32.mrf.mxu1 }
 0x4a6   : > { %v15980_v40 = vpop.f32.mrf.mxu0  ;;  %v15983_v36 = vadd.f32 %v6081_v23, %v15831_v3 }
 0x4a7   : > { %v12320_v24 = vpop.f32.mrf.mxu1  ;;  %12519 = vmatmul.mubr.msk.bf16.gmra.mxu1 %vm435_vm1, %v7477_v25 }
 0x4a8   : > { %v12370_v11 = vpop.f32.mrf.mxu0  ;;  %12522 = vmatprep.mubr.msk.bf16.mxu1 %vm435_vm1, %v7478_v6  ;;  %v7446_v6 = vld [vmem:[#allocation3 + $0xea] sm:$0xff] }
 0x4a9   : > { %v6093_v53 = vpop.f32.mrf.mxu1  ;;  %v7447_v11 = vld [vmem:[#allocation3 + $0xf2] sm:$0xff] }
 0x4aa   : > { %v6482_v49 = vpop.f32.mrf.mxu0  ;;  %v6232_v26 = vadd.f32 %v6093_v53, %v15836_v45  ;;  %v7480_v45 = vpack.c.bf16 %v7444_v58, %v7443_v55  ;;  %v7448_v53 = vld [vmem:[#allocation3 + $0xfa] sm:$0xff] }
 0x4ab   : > { %v12321_v51 = vpop.f32.mrf.mxu1  ;;  %v7482_v58 = vpack.c.bf16 %v7448_v53, %v7447_v11 }
 0x4ac   : > { %v12371_v4 = vpop.f32.mrf.mxu0  ;;  %v15988_v29 = vadd.f32 %v6482_v49, %v6232_v26  ;;  %v6234_v3 = vadd.f32 %v12321_v51, %v15840_v31  ;;  %v7481_v51 = vpack.c.bf16 %v7446_v6, %v7445_v63  ;;  %v7451_v63 = vld [vmem:[#allocation3 + $0x112] sm:$0xff] }
 0x4ad   : > { %v6096_v56 = vpop.f32.mrf.mxu1 }
 0x4ae   : > { %v15991_v48 = vpop.f32.mrf.mxu0  ;;  %v15993_v44 = vadd.f32 %v12371_v4, %v6234_v3  ;;  %v15996_v32 = vadd.f32 %v6096_v56, %v15845_v50 }
 0x4af   : > { %v12324_v30 = vpop.f32.mrf.mxu1  ;;  %12523 = vmatmul.mubr.msk.bf16.gmra.mxu1 %vm435_vm1, %v7479_v43 }
 0x4b0   : > { %v12374_v20 = vpop.f32.mrf.mxu0  ;;  %v6236_v42 = vadd.f32 %v12324_v30, %v15850_v61  ;;  %12526 = vmatprep.mubr.msk.bf16.mxu1 %vm435_vm1, %v7480_v45  ;;  %v7450_v45 = vld [vmem:[#allocation3 + $0x10a] sm:$0xff] }
 0x4b1   : > { %v6108_v31 = vpop.f32.mrf.mxu1 }
 0x4b2   : > { %v6497_v18 = vpop.f32.mrf.mxu0  ;;  %v16001_v23 = vadd.f32 %v12374_v20, %v6236_v42  ;;  %v6235_v25 = vadd.f32 %v6108_v31, %v15853_v0  ;;  %v7452_v20 = vld [vmem:[#allocation3 + $0x11a] sm:$0xff]  ;;  %v7449_v42 = vld [vmem:[#allocation3 + $0x102] sm:$0xff] }
 0x4b3   : > { %v12325_v24 = vpop.f32.mrf.mxu1 }
 0x4b4   : > { %v12375_v50 = vpop.f32.mrf.mxu0  ;;  %v16004_v49 = vadd.f32 %v6497_v18, %v6235_v25  ;;  %v6237_v26 = vadd.f32 %v12325_v24, %v15857_v7  ;;  %v7483_v25 = vpack.c.bf16 %v7450_v45, %v7449_v42  ;;  %v7484_v24 = vpack.c.bf16 %v7452_v20, %v7451_v63 }
 0x4b5   : > { %v6111_v60 = vpop.f32.mrf.mxu1 }
 0x4b6   : > { %v6500_v61 = vpop.f32.mrf.mxu0  ;;  %v16007_v4 = vadd.f32 %v12375_v50, %v6237_v26 }
 0x4b7   : > { %v12328_v3 = vpop.f32.mrf.mxu1  ;;  %12527 = vmatmul.mubr.msk.bf16.gmra.mxu1 %vm435_vm1, %v7481_v51  ;;  %v7453_v61 = vld [vmem:[#allocation3 + $0x122] sm:$0xff] }
 0x4b8   : > { %v12378_v5 = vpop.f32.mrf.mxu0  ;;  %v6239_v0 = vadd.f32 %v12328_v3, %v15864_v54  ;;  %12530 = vmatprep.mubr.msk.bf16.mxu1 %vm435_vm1, %v7482_v58  ;;  %v7456_v3 = vld [vmem:[#allocation3 + $0x13a] sm:$0xff] }
 0x4b9   : > { %v6123_v56 = vpop.f32.mrf.mxu1 }
 0x4ba   : > { %v6512_v43 = vpop.f32.mrf.mxu0  ;;  %v16012_v55 = vadd.f32 %v12378_v5, %v6239_v0  ;;  %v7454_v0 = vld [vmem:[#allocation3 + $0x12a] sm:$0xff] }
 0x4bb   : > { %v12329_v7 = vpop.f32.mrf.mxu1  ;;  %v7485_v45 = vpack.c.bf16 %v7454_v0, %v7453_v61 }
 0x4bc   : > { %v12379_v30 = vpop.f32.mrf.mxu0  ;;  %v7455_v7 = vld [vmem:[#allocation3 + $0x132] sm:$0xff] }
 0x4bd   : > { %v6125_v31 = vpop.f32.mrf.mxu1  ;;  %v7486_v42 = vpack.c.bf16 %v7456_v3, %v7455_v7 }
 0x4be   : > { %v6514_v18 = vpop.f32.mrf.mxu0  ;;  %v6238_v6 = vadd.f32 %v6125_v31, %v15870_v9 }
 0x4bf   : > { %v12332_v50 = vpop.f32.mrf.mxu1  ;;  %12531 = vmatmul.mubr.msk.bf16.gmra.mxu1 %vm435_vm1, %v7483_v25 }
 0x4c0   : > { %v12382_v54 = vpop.f32.mrf.mxu0  ;;  %v16016_v11 = vadd.f32 %v6514_v18, %v6238_v6  ;;  %12534 = vmatprep.mubr.msk.bf16.mxu1 %vm435_vm1, %v7484_v24  ;;  %v7457_v50 = vld [vmem:[#allocation3 + $0x142] sm:$0xff] }
 0x4c1   : > { %v6137_v53 = vpop.f32.mrf.mxu1  ;;  %v7458_v54 = vld [vmem:[#allocation3 + $0x14a] sm:$0xff] }
 0x4c2   : > { %v6526_v26 = vpop.f32.mrf.mxu0  ;;  %v6240_v60 = vadd.f32 %v6137_v53, %v15875_v21  ;;  %v7487_v3 = vpack.c.bf16 %v7458_v54, %v7457_v50  ;;  %v7463_v54 = vld [vmem:[#allocation3 + $0x172] sm:$0xff] }
 0x4c3   : > { %v12333_v51 = vpop.f32.mrf.mxu1 }
 0x4c4   : > { %v12383_v58 = vpop.f32.mrf.mxu0  ;;  %v16020_v5 = vadd.f32 %v6526_v26, %v6240_v60  ;;  %v6242_v9 = vadd.f32 %v12333_v51, %v15878_v10  ;;  %v7459_v26 = vld [vmem:[#allocation3 + $0x152] sm:$0xff]  ;;  %v7460_v60 = vld [vmem:[#allocation3 + $0x15a] sm:$0xff] }
 0x4c5   : > { %v6140_v56 = vpop.f32.mrf.mxu1  ;;  %v7488_v0 = vpack.c.bf16 %v7460_v60, %v7459_v26 }
 0x4c6   : > { %v6529_v43 = vpop.f32.mrf.mxu0  ;;  %v16023_v30 = vadd.f32 %v12383_v58, %v6242_v9  ;;  %v6241_v20 = vadd.f32 %v6140_v56, %v15883_v35 }
 0x4c7   : > { %v12336_v31 = vpop.f32.mrf.mxu1  ;;  %12535 = vmatmul.mubr.msk.bf16.gmra.mxu1 %vm435_vm1, %v7485_v45 }
 0x4c8   : > { %v12386_v21 = vpop.f32.mrf.mxu0  ;;  %v16027_v18 = vadd.f32 %v6529_v43, %v6241_v20  ;;  %v6244_v25 = vadd.f32 %v12336_v31, %v15888_v15  ;;  %12538 = vmatprep.mubr.msk.bf16.mxu1 %vm435_vm1, %v7486_v42  ;;  %v7462_v42 = vld [vmem:[#allocation3 + $0x16a] sm:$0xff] }
 0x4c9   : > { %v6152_v10 = vpop.f32.mrf.mxu1 }
 0x4ca   : > { %v6541_v63 = vpop.f32.mrf.mxu0  ;;  %v16031_v6 = vadd.f32 %v12386_v21, %v6244_v25  ;;  %v6243_v24 = vadd.f32 %v6152_v10, %v15891_v12  ;;  %v7464_v21 = vld [vmem:[#allocation3 + $0x17a] sm:$0xff]  ;;  %v5857_v25 = vadd.f32 %v15903_v33, %v15906_v1  ;;  %v7461_v10 = vld [vmem:[#allocation3 + $0x162] sm:$0xff] }
 0x4cb   : > { %v12337_v35 = vpop.f32.mrf.mxu1  ;;  %v7489_v50 = vpack.c.bf16 %v7462_v42, %v7461_v10  ;;  %v7465_v1 = vld [vmem:[#allocation3 + $0x182] sm:$0xff] }
 0x4cc   : > { %v12387_v53 = vpop.f32.mrf.mxu0  ;;  %v16034_v61 = vadd.f32 %v6541_v63, %v6243_v24  ;;  %v6245_v51 = vadd.f32 %v12337_v35, %v15894_v41 }
 0x4cd   : > { %v6155_v58 = vpop.f32.mrf.mxu1 }
 0x4ce   : > { %v6544_v15 = vpop.f32.mrf.mxu0  ;;  %v16037_v9 = vadd.f32 %v12387_v53, %v6245_v51 }
 0x4cf   : > { %v12340_v56 = vpop.f32.mrf.mxu1  ;;  %12539 = vmatmul.mubr.msk.bf16.gmra.mxu1 %vm435_vm1, %v7487_v3  ;;  %v7467_v15 = vld [vmem:[#allocation3 + $0x192] sm:$0xff]  ;;  %v7468_v3 = vld [vmem:[#allocation3 + $0x19a] sm:$0xff] }
 0x4d0   : > { %v12390_v43 = vpop.f32.mrf.mxu0  ;;  %v6247_v12 = vadd.f32 %v12340_v56, %v15901_v27  ;;  %12542 = vmatprep.mubr.msk.bf16.mxu1 %vm435_vm1, %v7488_v0  ;;  %v7490_v27 = vpack.c.bf16 %v7464_v21, %v7463_v54  ;;  %v7492_v42 = vpack.c.bf16 %v7468_v3, %v7467_v15 }
 0x4d1   : > { %v6167_v45 = vpop.f32.mrf.mxu1 }
 0x4d2   : > { %v6556_v7 = vpop.f32.mrf.mxu0  ;;  %v16042_v20 = vadd.f32 %v12390_v43, %v6247_v12  ;;  %v5860_v43 = vadd.f32 %v15917_v2, %v15922_v38  ;;  %v7469_v38 = vld [vmem:[#allocation3 + $0x1a2] sm:$0xff] }
 0x4d3   : > { %v12341_v41 = vpop.f32.mrf.mxu1  ;;  %v7466_v7 = vld [vmem:[#allocation3 + $0x18a] sm:$0xff] }
 0x4d4   : > { %v12391_v31 = vpop.f32.mrf.mxu0  ;;  %v7491_v21 = vpack.c.bf16 %v7466_v7, %v7465_v1 }
 0x4d5   : > { %v6169_v63 = vpop.f32.mrf.mxu1 }
 0x4d6   : > { %v6558_v24 = vpop.f32.mrf.mxu0  ;;  %v6246_v35 = vadd.f32 %v6169_v63, %v5857_v25 }
 0x4d7   : > { %v12344_v53 = vpop.f32.mrf.mxu1  ;;  %12543 = vmatmul.mubr.msk.bf16.gmra.mxu1 %vm435_vm1, %v7489_v50 }
 0x4d8   : > { %v12394_v26 = vpop.f32.mrf.mxu0  ;;  %v16047_v60 = vadd.f32 %v6558_v24, %v6246_v35  ;;  %12546 = vmatprep.mubr.msk.bf16.mxu1 %vm435_vm1, %v7490_v27 }
 0x4d9   : > { %v6181_v51 = vpop.f32.mrf.mxu1  ;;  %v7493_v26 = vpack.c.bf16 %v7469_v38, %v7469_v38 }
 0x4da   : > { %v6570_v58 = vpop.f32.mrf.mxu0  ;;  %v6248_v33 = vadd.f32 %v6181_v51, %v15914_v13 }
 0x4db   : > { %v12345_v0 = vpop.f32.mrf.mxu1 }
 0x4dc   : > { %v12395_v56 = vpop.f32.mrf.mxu0  ;;  %v16053_v12 = vadd.f32 %v6570_v58, %v6248_v33  ;;  %v6250_v45 = vadd.f32 %v12345_v0, %v15919_v62 }
 0x4dd   : > { %v6184_v41 = vpop.f32.mrf.mxu1 }
 0x4de   : > { %v6573_v31 = vpop.f32.mrf.mxu0  ;;  %v16056_v25 = vadd.f32 %v12395_v56, %v6250_v45  ;;  %v6249_v10 = vadd.f32 %v6184_v41, %v5860_v43 }
 0x4df   : > { %v12348_v63 = vpop.f32.mrf.mxu1  ;;  %12547 = vmatmul.mubr.msk.bf16.gmra.mxu1 %vm435_vm1, %v7491_v21 }
 0x4e0   : > { %v12398_v13 = vpop.f32.mrf.mxu0  ;;  %v16059_v24 = vadd.f32 %v6573_v31, %v6249_v10  ;;  %v6252_v2 = vadd.f32 %v12348_v63, %v15932_v34  ;;  %12550 = vmatprep.mubr.msk.bf16.mxu1 %vm435_vm1, %v7492_v42  ;;  %v5865_v42 = vadd.f32 %v15946_v39, %v15949_v16 }
 0x4e1   : > { %v6196_v62 = vpop.f32.mrf.mxu1 }
 0x4e2   : > { %v6585_v50 = vpop.f32.mrf.mxu0  ;;  %v16063_v54 = vadd.f32 %v12398_v13, %v6252_v2  ;;  %v6251_v35 = vadd.f32 %v6196_v62, %v15935_v57 }
 0x4e3   : > { %v12349_v27 = vpop.f32.mrf.mxu1 }
 0x4e4   : > { %v12399_v53 = vpop.f32.mrf.mxu0  ;;  %v16066_v51 = vadd.f32 %v6585_v50, %v6251_v35  ;;  %v6253_v58 = vadd.f32 %v12349_v27, %v15938_v8  ;;  %v6614_v50 = vadd.f32 %v15957_v37, %v15962_v47 }
 0x4e5   : > { %v6199_v15 = vpop.f32.mrf.mxu1 }
 0x4e6   : > { %v6588_v3 = vpop.f32.mrf.mxu0  ;;  %v16069_v33 = vadd.f32 %v12399_v53, %v6253_v58 }
 0x4e7   : > { %v12352_v34 = vpop.f32.mrf.mxu1  ;;  %12551 = vmatmul.mubr.msk.bf16.gmra.mxu1 %vm435_vm1, %v7493_v26 }
 0x4e8   : > { %v12402_v1 = vpop.f32.mrf.mxu0  ;;  %v6255_v0 = vadd.f32 %v12352_v34, %v15944_v22  ;;  %12570 = vmatprep.mubr.msk.bf16.mxu1 %vm12870_vm4, %v18163_v52 }
 0x4e9   : > { %v6211_v56 = vpop.f32.mrf.mxu1 }
 0x4ea   : > { %v6600_v43 = vpop.f32.mrf.mxu0  ;;  %v16073_v57 = vadd.f32 %v12402_v1, %v6255_v0 }
 0x4eb   : > { %v12353_v45 = vpop.f32.mrf.mxu1 }
 0x4ec   : > { %v12403_v7 = vpop.f32.mrf.mxu0 }
 0x4ed   : > { %v6213_v8 = vpop.f32.mrf.mxu1 }
 0x4ee   : > { %v6602_v41 = vpop.f32.mrf.mxu0  ;;  %v6254_v31 = vadd.f32 %v6213_v8, %v5865_v42 }
 0x4ef   : > { %v12408_v21 = vpop.f32.mrf.mxu1 }
 0x4f0   : > { %v12458_v10 = vpop.f32.mrf.mxu0  ;;  %v16077_v63 = vadd.f32 %v6602_v41, %v6254_v31 }
 0x4f1   : > { %v6827_v13 = vpop.f32.mrf.mxu1 }
 0x4f2   : > { %v7216_v2 = vpop.f32.mrf.mxu0  ;;  %v7002_v22 = vadd.f32 %v6827_v13, %v15954_v28 }
 0x4f3   : > { %v12409_v38 = vpop.f32.mrf.mxu1 }
 0x4f4   : > { %v12459_v62 = vpop.f32.mrf.mxu0  ;;  %v16082_v35 = vadd.f32 %v7216_v2, %v7002_v22  ;;  %v7004_v39 = vadd.f32 %v12409_v38, %v15959_v59  ;;  %v6619_v2 = vadd.f32 %v15980_v40, %v15983_v36 }
 0x4f5   : > { %v6830_v16 = vpop.f32.mrf.mxu1 }
 0x4f6   : > { %v7219_v27 = vpop.f32.mrf.mxu0  ;;  %v16085_v53 = vadd.f32 %v12459_v62, %v7004_v39  ;;  %v7003_v26 = vadd.f32 %v6830_v16, %v6614_v50 }
 0x4f7   : > { %v12412_v58 = vpop.f32.mrf.mxu1 }
 0x4f8   : > { %v12462_v15 = vpop.f32.mrf.mxu0  ;;  %v16087_v3 = vadd.f32 %v7219_v27, %v7003_v26  ;;  %v7006_v28 = vadd.f32 %v12412_v58, %v15967_v46 }
 0x4f9   : > { %v6842_v34 = vpop.f32.mrf.mxu1 }
 0x4fa   : > { %v7231_v1 = vpop.f32.mrf.mxu0  ;;  %v16090_v0 = vadd.f32 %v12462_v15, %v7006_v28  ;;  %v7005_v37 = vadd.f32 %v6842_v34, %v15970_v19  ;;  %v6622_v15 = vadd.f32 %v15991_v48, %v15996_v32 }
 0x4fb   : > { %v12413_v47 = vpop.f32.mrf.mxu1 }
 0x4fc   : > { %v12463_v56 = vpop.f32.mrf.mxu0  ;;  %v16093_v59 = vadd.f32 %v7231_v1, %v7005_v37  ;;  %v7007_v43 = vadd.f32 %v12413_v47, %v15973_v17 }
 0x4fd   : > { %v6845_v45 = vpop.f32.mrf.mxu1 }
 0x4fe   : > { %v7234_v7 = vpop.f32.mrf.mxu0  ;;  %v16096_v42 = vadd.f32 %v12463_v56, %v7007_v43 }
 0x4ff   : > { %v12416_v8 = vpop.f32.mrf.mxu1 }
 0x500   : > { %v12466_v41 = vpop.f32.mrf.mxu0  ;;  %v7009_v46 = vadd.f32 %v12416_v8, %v15978_v14 }
 0x501   : > { %v6857_v31 = vpop.f32.mrf.mxu1 }
 0x502   : > { %v7246_v21 = vpop.f32.mrf.mxu0  ;;  %v16099_v10 = vadd.f32 %v12466_v41, %v7009_v46 }
 0x503   : > { %v12417_v13 = vpop.f32.mrf.mxu1 }
 0x504   : > { %v12467_v19 = vpop.f32.mrf.mxu0 }
 0x505   : > { %v6859_v22 = vpop.f32.mrf.mxu1 }
 0x506   : > { %v7248_v38 = vpop.f32.mrf.mxu0  ;;  %v7008_v17 = vadd.f32 %v6859_v22, %v6619_v2 }
 0x507   : > { %v12420_v62 = vpop.f32.mrf.mxu1 }
 0x508   : > { %v12470_v50 = vpop.f32.mrf.mxu0  ;;  %v16103_v39 = vadd.f32 %v7248_v38, %v7008_v17 }
 0x509   : > { %v6871_v16 = vpop.f32.mrf.mxu1 }
 0x50a   : > { %v7260_v27 = vpop.f32.mrf.mxu0  ;;  %v7010_v14 = vadd.f32 %v6871_v16, %v15988_v29 }
 0x50b   : > { %v12421_v26 = vpop.f32.mrf.mxu1 }
 0x50c   : > { %v12471_v58 = vpop.f32.mrf.mxu0  ;;  %v16108_v28 = vadd.f32 %v7260_v27, %v7010_v14  ;;  %v7012_v40 = vadd.f32 %v12421_v26, %v15993_v44 }
 0x50d   : > { %v6874_v36 = vpop.f32.mrf.mxu1 }
 0x50e   : > { %v7263_v34 = vpop.f32.mrf.mxu0  ;;  %v16111_v1 = vadd.f32 %v12471_v58, %v7012_v40  ;;  %v7011_v37 = vadd.f32 %v6874_v36, %v6622_v15 }
 0x50f   : > { %v12424_v47 = vpop.f32.mrf.mxu1 }
 0x510   : > { %v12474_v56 = vpop.f32.mrf.mxu0  ;;  %v16113_v43 = vadd.f32 %v7263_v34, %v7011_v37  ;;  %v7014_v29 = vadd.f32 %v12424_v47, %v16001_v23 }
 0x511   : > { %v6886_v45 = vpop.f32.mrf.mxu1 }
 0x512   : > { %v7275_v7 = vpop.f32.mrf.mxu0  ;;  %v16116_v8 = vadd.f32 %v12474_v56, %v7014_v29  ;;  %v7013_v48 = vadd.f32 %v6886_v45, %v16004_v49 }
 0x513   : > { %v12425_v32 = vpop.f32.mrf.mxu1 }
 0x514   : > { %v12475_v41 = vpop.f32.mrf.mxu0  ;;  %v16119_v44 = vadd.f32 %v7275_v7, %v7013_v48  ;;  %v7015_v46 = vadd.f32 %v12425_v32, %v16007_v4 }
 0x515   : > { %v6889_v31 = vpop.f32.mrf.mxu1 }
 0x516   : > { %v7278_v21 = vpop.f32.mrf.mxu0  ;;  %v16122_v13 = vadd.f32 %v12475_v41, %v7015_v46 }
 0x517   : > { %v12428_v19 = vpop.f32.mrf.mxu1 }
 0x518   : > { %v12478_v2 = vpop.f32.mrf.mxu0  ;;  %v7017_v23 = vadd.f32 %v12428_v19, %v16012_v55 }
 0x519   : > { %v6901_v22 = vpop.f32.mrf.mxu1 }
 0x51a   : > { %v7290_v38 = vpop.f32.mrf.mxu0  ;;  %v16125_v17 = vadd.f32 %v12478_v2, %v7017_v23 }
 0x51b   : > { %v12429_v62 = vpop.f32.mrf.mxu1 }
 0x51c   : > { %v12479_v49 = vpop.f32.mrf.mxu0 }
 0x51d   : > { %v6903_v50 = vpop.f32.mrf.mxu1 }
 0x51e   : > { %v7292_v16 = vpop.f32.mrf.mxu0  ;;  %v7016_v27 = vadd.f32 %v6903_v50, %v16016_v11 }
 0x51f   : > { %v12432_v14 = vpop.f32.mrf.mxu1 }
 0x520   : > { %v12482_v4 = vpop.f32.mrf.mxu0  ;;  %v16128_v26 = vadd.f32 %v7292_v16, %v7016_v27 }
 0x521   : > { %v6915_v58 = vpop.f32.mrf.mxu1 }
 0x522   : > { %v7304_v15 = vpop.f32.mrf.mxu0  ;;  %v7018_v40 = vadd.f32 %v6915_v58, %v16020_v5 }
 0x523   : > { %v12433_v36 = vpop.f32.mrf.mxu1 }
 0x524   : > { %v12483_v55 = vpop.f32.mrf.mxu0  ;;  %v16131_v34 = vadd.f32 %v7304_v15, %v7018_v40  ;;  %v7020_v37 = vadd.f32 %v12433_v36, %v16023_v30 }
 0x525   : > { %v6918_v47 = vpop.f32.mrf.mxu1 }
 0x526   : > { %v7307_v56 = vpop.f32.mrf.mxu0  ;;  %v16134_v29 = vadd.f32 %v12483_v55, %v7020_v37  ;;  %v7019_v11 = vadd.f32 %v6918_v47, %v16027_v18 }
 0x527   : > { %v12436_v45 = vpop.f32.mrf.mxu1 }
 0x528   : > { %v12486_v7 = vpop.f32.mrf.mxu0  ;;  %v16137_v48 = vadd.f32 %v7307_v56, %v7019_v11  ;;  %v7022_v32 = vadd.f32 %v12436_v45, %v16031_v6 }
 0x529   : > { %v6930_v41 = vpop.f32.mrf.mxu1 }
 0x52a   : > { %v7319_v5 = vpop.f32.mrf.mxu0  ;;  %v16140_v46 = vadd.f32 %v12486_v7, %v7022_v32  ;;  %v7021_v31 = vadd.f32 %v6930_v41, %v16034_v61 }
 0x52b   : > { %v12437_v21 = vpop.f32.mrf.mxu1 }
 0x52c   : > { %v12487_v30 = vpop.f32.mrf.mxu0  ;;  %v16143_v19 = vadd.f32 %v7319_v5, %v7021_v31  ;;  %v7023_v2 = vadd.f32 %v12437_v21, %v16037_v9 }
 0x52d   : > { %v6933_v23 = vpop.f32.mrf.mxu1 }
 0x52e   : > { %v7322_v18 = vpop.f32.mrf.mxu0  ;;  %v16146_v22 = vadd.f32 %v12487_v30, %v7023_v2 }
 0x52f   : > { %v12440_v38 = vpop.f32.mrf.mxu1 }
 0x530   : > { %v12490_v62 = vpop.f32.mrf.mxu0  ;;  %v7025_v6 = vadd.f32 %v12440_v38, %v16042_v20 }
 0x531   : > { %v6945_v49 = vpop.f32.mrf.mxu1 }
 0x532   : > { %v7334_v50 = vpop.f32.mrf.mxu0  ;;  %v16149_v16 = vadd.f32 %v12490_v62, %v7025_v6 }
 0x533   : > { %v12441_v27 = vpop.f32.mrf.mxu1 }
 0x534   : > { %v12491_v61 = vpop.f32.mrf.mxu0 }
 0x535   : > { %v6947_v14 = vpop.f32.mrf.mxu1 }
 0x536   : > { %v7336_v4 = vpop.f32.mrf.mxu0  ;;  %v7024_v58 = vadd.f32 %v6947_v14, %v16047_v60 }
 0x537   : > { %v12444_v15 = vpop.f32.mrf.mxu1 }
 0x538   : > { %v12494_v9 = vpop.f32.mrf.mxu0  ;;  %v16152_v40 = vadd.f32 %v7336_v4, %v7024_v58 }
 0x539   : > { %v6959_v36 = vpop.f32.mrf.mxu1 }
 0x53a   : > { %v7348_v55 = vpop.f32.mrf.mxu0  ;;  %v7026_v37 = vadd.f32 %v6959_v36, %v16053_v12 }
 0x53b   : > { %v12445_v47 = vpop.f32.mrf.mxu1 }
 0x53c   : > { %v12495_v20 = vpop.f32.mrf.mxu0  ;;  %v16155_v56 = vadd.f32 %v7348_v55, %v7026_v37  ;;  %v7028_v11 = vadd.f32 %v12445_v47, %v16056_v25  ;;  %v16181_v55 = vld [vmem:[%s17499_s5] ss:$0 sm:$0xff] }
 0x53d   : > { %v6962_v45 = vpop.f32.mrf.mxu1 }
 0x53e   : > { %v7351_v7 = vpop.f32.mrf.mxu0  ;;  %v16158_v32 = vadd.f32 %v12495_v20, %v7028_v11  ;;  %v7027_v60 = vadd.f32 %v6962_v45, %v16059_v24 }
 0x53f   : > { %v12448_v41 = vpop.f32.mrf.mxu1 }
 0x540   : > { %v12498_v5 = vpop.f32.mrf.mxu0  ;;  %v16161_v31 = vadd.f32 %v7351_v7, %v7027_v60  ;;  %v7030_v21 = vadd.f32 %v12448_v41, %v16063_v54 }
 0x541   : > { %v6974_v30 = vpop.f32.mrf.mxu1 }
 0x542   : > { %v7363_v12 = vpop.f32.mrf.mxu0  ;;  %v16164_v2 = vadd.f32 %v12498_v5, %v7030_v21  ;;  %v7029_v23 = vadd.f32 %v6974_v30, %v16066_v51 }
 0x543   : > { %v12449_v18 = vpop.f32.mrf.mxu1 }
 0x544   : > { %v12499_v25 = vpop.f32.mrf.mxu0  ;;  %v16167_v38 = vadd.f32 %v7363_v12, %v7029_v23  ;;  %v7031_v62 = vadd.f32 %v12449_v18, %v16069_v33 }
 0x545   : > { %v6977_v6 = vpop.f32.mrf.mxu1 }
 0x546   : > { %v7366_v24 = vpop.f32.mrf.mxu0  ;;  %v16170_v49 = vadd.f32 %v12499_v25, %v7031_v62 }
 0x547   : > { %v12452_v50 = vpop.f32.mrf.mxu1 }
 0x548   : > { %v12502_v27 = vpop.f32.mrf.mxu0  ;;  %v7033_v54 = vadd.f32 %v12452_v50, %v16073_v57 }
 0x549   : > { %v6989_v61 = vpop.f32.mrf.mxu1 }
 0x54a   : > { %v7378_v14 = vpop.f32.mrf.mxu0  ;;  %v16173_v4 = vadd.f32 %v12502_v27, %v7033_v54 }
 0x54b   : > { %v12453_v58 = vpop.f32.mrf.mxu1 }
 0x54c   : > { %v12503_v51 = vpop.f32.mrf.mxu0 }
 0x54d   : > { %v6991_v15 = vpop.f32.mrf.mxu1 }
 0x54e   : > { %v16176_v9 = vadd.f32 %v6991_v15, %v16077_v63  ;;  %v16189_v63 = vld [vmem:[%s17500_s6 + $0x2] sm:$0x3] }
 0x54f   : > { %v12508_v36 = vpop.f32.mrf.mxu1  ;;  %11427 = vmatprep.mubr.msk.bf16.mxu0 %vm4160_vm2, %v16189_v63 }
 0x551   : > { %v7605_v33 = vpop.f32.mrf.mxu1 }
 0x552   : > { %v7780_v37 = vadd.f32 %v7605_v33, %v16082_v35 }
 0x553   : > { %v12509_v57 = vpop.f32.mrf.mxu1 }
 0x554   : > { %v7819_v47 = vadd.f32 %v16181_v55, %v7780_v37  ;;  %v7782_v20 = vadd.f32 %v12509_v57, %v16085_v53 }
 0x555   : > { %v7608_v11 = vpop.f32.mrf.mxu1 }
 0x556   : > { %v7851_v45 = vmax.f32 %v7819_v47, 0.0  ;;  %v7821_v7 = vadd.f32 %v16181_v55, %v7782_v20  ;;  %v7781_v60 = vadd.f32 %v7608_v11, %v16087_v3 }
 0x557   : > { %v12512_v35 = vpop.f32.mrf.mxu1 }
 0x558   : > { %7937 = vst.msk [vmem:[#allocation4 + $0x19] sm:$0xff] %vm4160_vm2, %v7851_v45  ;;  %v7853_v41 = vmax.f32 %v7821_v7, 0.0  ;;  %v7820_v53 = vadd.f32 %v16181_v55, %v7781_v60  ;;  %v7784_v5 = vadd.f32 %v12512_v35, %v16090_v0 }
 0x559   : > { %v7620_v21 = vpop.f32.mrf.mxu1 }
 0x55a   : > { %7939 = vst.msk [vmem:[#allocation4 + $0x31] sm:$0xff] %vm4160_vm2, %v7853_v41  ;;  %v7852_v30 = vmax.f32 %v7820_v53, 0.0  ;;  %v7823_v12 = vadd.f32 %v16181_v55, %v7784_v5  ;;  %v7783_v23 = vadd.f32 %v7620_v21, %v16093_v59 }
 0x55b   : > { %v12513_v3 = vpop.f32.mrf.mxu1 }
 0x55c   : > { %7938 = vst.msk [vmem:[#allocation4 + $0x21] sm:$0xff] %vm4160_vm2, %v7852_v30  ;;  %v7855_v18 = vmax.f32 %v7823_v12, 0.0  ;;  %v7822_v25 = vadd.f32 %v16181_v55, %v7783_v23  ;;  %v7785_v62 = vadd.f32 %v12513_v3, %v16096_v42 }
 0x55d   : > { %v7623_v6 = vpop.f32.mrf.mxu1 }
 0x55e   : > { %7941 = vst.msk [vmem:[#allocation4 + $0x49] sm:$0xff] %vm4160_vm2, %v7855_v18  ;;  %v7854_v0 = vmax.f32 %v7822_v25, 0.0  ;;  %v7824_v24 = vadd.f32 %v16181_v55, %v7785_v62 }
 0x55f   : > { %v12516_v50 = vpop.f32.mrf.mxu1  ;;  %v16216_v36 = vld [vmem:[#allocation4 + $0x18] sm:$0xff] }
 0x560   : > { %7940 = vst.msk [vmem:[#allocation4 + $0x39] sm:$0xff] %vm4160_vm2, %v7854_v0  ;;  %v7856_v27 = vmax.f32 %v7824_v24, 0.0  ;;  %v7787_v59 = vadd.f32 %v12516_v50, %v16099_v10 }
 0x561   : > { %v7635_v54 = vpop.f32.mrf.mxu1  ;;  %v16210_v58 = vld [vmem:[#allocation4 + $0x30] sm:$0xff] }
 0x562   : > { %7942 = vst.msk [vmem:[#allocation4 + $0x51] sm:$0xff] %vm4160_vm2, %v7856_v27  ;;  %v7826_v61 = vadd.f32 %v16181_v55, %v7787_v59 }
 0x563   : > { %v12517_v14 = vpop.f32.mrf.mxu1  ;;  %v16212_v42 = vld [vmem:[#allocation4 + $0x20] sm:$0xff]  ;;  %v16214_v51 = vld [vmem:[#allocation4 + $0x28] sm:$0xff] }
 0x564   : > { %v7858_v15 = vmax.f32 %v7826_v61, 0.0  ;;  %v16256_v54 = vld [vmem:[#allocation4 + $0x22] sm:$0xff]  ;;  %v16260_v14 = vld [vmem:[#allocation4 + $0x2a] sm:$0xff] }
 0x565   : > { %v7637_v37 = vpop.f32.mrf.mxu1  ;;  %v16237_v30 = vld [vmem:[#allocation4 + $0x48] sm:$0xff]  ;;  %18176 = vst [vmem:[#allocation42_spill] sm:$0xff] %v16256_v54  ;;  %18178 = vst [vmem:[#allocation50_spill] sm:$0xff] %v16260_v14 }
 0x566   : > { %7944 = vst.msk [vmem:[#allocation4 + $0x69] sm:$0xff] %vm4160_vm2, %v7858_v15  ;;  %v7786_v57 = vadd.f32 %v7637_v37, %v16103_v39  ;;  %v16254_v59 = vld [vmem:[#allocation4 + $0x42] sm:$0xff] }
 0x567   : > { %v12520_v47 = vpop.f32.mrf.mxu1  ;;  %v16224_v20 = vld [vmem:[#allocation4 + $0x40] sm:$0xff]  ;;  %v16226_v11 = vld [vmem:[#allocation4 + $0x38] sm:$0xff]  ;;  %18175 = vst [vmem:[#allocation47_spill] sm:$0xff] %v16254_v59 }
 0x568   : > { %v7825_v45 = vadd.f32 %v16181_v55, %v7786_v57  ;;  %v16247_v6 = vld [vmem:[#allocation4 + $0x3a] sm:$0xff]  ;;  %v16249_v24 = vld [vmem:[#allocation4 + $0x32] sm:$0xff] }
 0x569   : > { %v7649_v7 = vpop.f32.mrf.mxu1  ;;  %v16232_v53 = vld [vmem:[#allocation4 + $0x50] sm:$0xff]  ;;  %18173 = vst [vmem:[#allocation43_spill] sm:$0xff] %v16247_v6  ;;  %18174 = vst [vmem:[#allocation45_spill] sm:$0xff] %v16249_v24 }
 0x56a   : > { %v7857_v35 = vmax.f32 %v7825_v45, 0.0  ;;  %v7788_v41 = vadd.f32 %v7649_v7, %v16108_v28  ;;  %v16243_v25 = vld [vmem:[#allocation4 + $0x52] sm:$0xff]  ;;  %v16245_v62 = vld [vmem:[#allocation4 + $0x4a] sm:$0xff] }
 0x56b   : > { %v12521_v5 = vpop.f32.mrf.mxu1  ;;  %18171 = vst [vmem:[#allocation33_spill] sm:$0xff] %v16243_v25  ;;  %18172 = vst [vmem:[#allocation34_spill] sm:$0xff] %v16245_v62 }
 0x56c   : > { %7943 = vst.msk [vmem:[#allocation4 + $0x61] sm:$0xff] %vm4160_vm2, %v7857_v35  ;;  %v7827_v39 = vadd.f32 %v16181_v55, %v7788_v41  ;;  %v7790_v21 = vadd.f32 %v12521_v5, %v16111_v1 }
 0x56d   : > { %v7652_v12 = vpop.f32.mrf.mxu1 }
 0x56e   : > { %v7859_v3 = vmax.f32 %v7827_v39, 0.0  ;;  %v7829_v18 = vadd.f32 %v16181_v55, %v7790_v21  ;;  %v7789_v28 = vadd.f32 %v7652_v12, %v16113_v43  ;;  %v16258_v43 = vld [vmem:[#allocation4 + $0x1a] sm:$0xff] }
 0x56f   : > { %v12524_v0 = vpop.f32.mrf.mxu1  ;;  %18177 = vst [vmem:[#allocation41_spill] sm:$0xff] %v16258_v43 }
 0x570   : > { %7945 = vst.msk [vmem:[#allocation4 + $0x79] sm:$0xff] %vm4160_vm2, %v7859_v3  ;;  %v7861_v1 = vmax.f32 %v7829_v18, 0.0  ;;  %v7828_v50 = vadd.f32 %v16181_v55, %v7789_v28  ;;  %v7792_v27 = vadd.f32 %v12524_v0, %v16116_v8  ;;  %v16280_v3 = vld [vmem:[#allocation4 + $0x70] sm:$0xff]  ;;  %v16284_v18 = vld [vmem:[#allocation4 + $0x58] sm:$0xff] }
 0x571   : > { %v7664_v61 = vpop.f32.mrf.mxu1 }
 0x572   : > { %7947 = vst.msk [vmem:[#allocation4 + $0x91] sm:$0xff] %vm4160_vm2, %v7861_v1  ;;  %v7860_v57 = vmax.f32 %v7828_v50, 0.0  ;;  %v7831_v8 = vadd.f32 %v16181_v55, %v7792_v27  ;;  %v7791_v47 = vadd.f32 %v7664_v61, %v16119_v44  ;;  %v16292_v27 = vld [vmem:[#allocation4 + $0x89] sm:$0xff] }
 0x573   : > { %v12525_v7 = vpop.f32.mrf.mxu1  ;;  %v16271_v35 = vld [vmem:[#allocation4 + $0x60] sm:$0xff]  ;;  %v16273_v41 = vld [vmem:[#allocation4 + $0x68] sm:$0xff] }
 0x574   : > { %7946 = vst.msk [vmem:[#allocation4 + $0x81] sm:$0xff] %vm4160_vm2, %v7860_v57  ;;  %v7863_v39 = vmax.f32 %v7831_v8, 0.0  ;;  %v7830_v21 = vadd.f32 %v16181_v55, %v7791_v47  ;;  %v7793_v12 = vadd.f32 %v12525_v7, %v16122_v13  ;;  %v16298_v47 = vld [vmem:[#allocation4 + $0x62] sm:$0xff]  ;;  %v16300_v7 = vld [vmem:[#allocation4 + $0x6a] sm:$0xff] }
 0x575   : > { %v7667_v44 = vpop.f32.mrf.mxu1  ;;  %18180 = vst [vmem:[#allocation52_spill] sm:$0xff] %v16298_v47  ;;  %18181 = vst [vmem:[#allocation53_spill] sm:$0xff] %v16300_v7 }
 0x576   : > { %7949 = vst.msk [vmem:[#allocation4 + $0xa9] sm:$0xff] %vm4160_vm2, %v7863_v39  ;;  %v7862_v0 = vmax.f32 %v7830_v21, 0.0  ;;  %v7832_v1 = vadd.f32 %v16181_v55, %v7793_v12  ;;  %v16302_v39 = vld [vmem:[#allocation4 + $0x5a] sm:$0xff] }
 0x577   : > { %v12528_v50 = vpop.f32.mrf.mxu1  ;;  %v16294_v61 = vld [vmem:[#allocation4 + $0x72] sm:$0xff]  ;;  %18182 = vst [vmem:[#allocation54_spill] sm:$0xff] %v16302_v39 }
 0x578   : > { %18179 = vst [vmem:[#allocation49_spill] sm:$0xff] %v16294_v61  ;;  %7948 = vst.msk [vmem:[#allocation4 + $0x99] sm:$0xff] %vm4160_vm2, %v7862_v0  ;;  %v7864_v57 = vmax.f32 %v7832_v1, 0.0  ;;  %v7795_v8 = vadd.f32 %v12528_v50, %v16125_v17  ;;  %v16320_v15 = vld [vmem:[#allocation4 + $0x78] sm:$0xff] }
 0x579   : > { %v7679_v21 = vpop.f32.mrf.mxu1  ;;  %v16304_v12 = vld [vmem:[#allocation4 + $0x91] sm:$0xff] }
 0x57a   : > { %7950 = vst.msk [vmem:[#allocation4 + $0xb1] sm:$0xff] %vm4160_vm2, %v7864_v57  ;;  %v7834_v5 = vadd.f32 %v16181_v55, %v7795_v8  ;;  %v16312_v1 = vld [vmem:[#allocation4 + $0x90] sm:$0xff] }
 0x57b   : > { %v12529_v17 = vpop.f32.mrf.mxu1  ;;  %v16314_v50 = vld [vmem:[#allocation4 + $0x80] sm:$0xff]  ;;  %v16316_v45 = vld [vmem:[#allocation4 + $0x88] sm:$0xff] }
 0x57c   : > { %18183 = vst [vmem:[#allocation30_spill] sm:$0xff] %v16316_v45  ;;  %v7866_v37 = vmax.f32 %v7834_v5, 0.0  ;;  %v16322_v44 = vld [vmem:[#allocation4 + $0x7a] sm:$0xff]  ;;  %v16324_v57 = vld [vmem:[#allocation4 + $0x82] sm:$0xff] }
 0x57d   : > { %18184 = vst [vmem:[#allocation28_spill] sm:$0xff] %v16322_v44  ;;  %18185 = vst [vmem:[#allocation51_spill] sm:$0xff] %v16324_v57  ;;  %v7681_v17 = vpop.f32.mrf.mxu1  ;;  %v16343_v0 = vld [vmem:[#allocation4 + $0xa8] sm:$0xff]  ;;  %v8067_v44 = vld [vmem:[#allocation4 + $0xd1] sm:$0xff] }
 0x57e   : > { %7952 = vst.msk [vmem:[#allocation4 + $0xc9] sm:$0xff] %vm4160_vm2, %v7866_v37  ;;  %v7794_v10 = vadd.f32 %v7681_v17, %v16128_v26  ;;  %v16345_v37 = vld [vmem:[#allocation4 + $0x8a] sm:$0xff] }
 0x57f   : > { %v12532_v33 = vpop.f32.mrf.mxu1  ;;  %v16332_v21 = vld [vmem:[#allocation4 + $0xa0] sm:$0xff]  ;;  %v16334_v5 = vld [vmem:[#allocation4 + $0x98] sm:$0xff]  ;;  %18187 = vst [vmem:[#allocation9_spill] sm:$0xff] %v16345_v37 }
 0x580   : > { %v7833_v23 = vadd.f32 %v16181_v55, %v7794_v10  ;;  %v16339_v13 = vld [vmem:[#allocation4 + $0x92] sm:$0xff]  ;;  %v16354_v10 = vld [vmem:[#allocation4 + $0x9a] sm:$0xff] }
 0x581   : > { %18186 = vst [vmem:[#allocation36_spill] sm:$0xff] %v16339_v13  ;;  %v7693_v28 = vpop.f32.mrf.mxu1  ;;  %v16341_v8 = vld [vmem:[#allocation4 + $0xb0] sm:$0xff]  ;;  %18190 = vst [vmem:[#allocation6_spill] sm:$0xff] %v16354_v10 }
 0x582   : > { %v7865_v33 = vmax.f32 %v7833_v23, 0.0  ;;  %v7796_v17 = vadd.f32 %v7693_v28, %v16131_v34  ;;  %v16350_v43 = vld [vmem:[#allocation4 + $0xb2] sm:$0xff]  ;;  %v16352_v60 = vld [vmem:[#allocation4 + $0xaa] sm:$0xff]  ;;  %v16363_v34 = vld [vmem:[#allocation4 + $0xa2] sm:$0xff] }
 0x583   : > { %18188 = vst [vmem:[#allocation35_spill] sm:$0xff] %v16350_v43  ;;  %18189 = vst [vmem:[#allocation37_spill] sm:$0xff] %v16352_v60  ;;  %v12533_v54 = vpop.f32.mrf.mxu1  ;;  %v16412_v10 = vld [vmem:[#allocation4 + $0x71] sm:$0xff] }
 0x584   : > { %7951 = vst.msk [vmem:[#allocation4 + $0xc1] sm:$0xff] %vm4160_vm2, %v7865_v33  ;;  %v7835_v26 = vadd.f32 %v16181_v55, %v7796_v17  ;;  %v7798_v23 = vadd.f32 %v12533_v54, %v16134_v29  ;;  %18191 = vst [vmem:[#allocation56_spill] sm:$0xff] %v16363_v34 }
 0x585   : > { %v7696_v6 = vpop.f32.mrf.mxu1  ;;  %18199 = vst [vmem:[#allocation65_spill] sm:$0xff] %v16412_v10 }
 0x586   : > { %v7867_v62 = vmax.f32 %v7835_v26, 0.0  ;;  %v7837_v14 = vadd.f32 %v16181_v55, %v7798_v23  ;;  %v7797_v24 = vadd.f32 %v7696_v6, %v16137_v48 }
 0x587   : > { %v12536_v37 = vpop.f32.mrf.mxu1 }
 0x588   : > { %7953 = vst.msk [vmem:[#allocation4 + $0xd9] sm:$0xff] %vm4160_vm2, %v7867_v62  ;;  %v7869_v33 = vmax.f32 %v7837_v14, 0.0  ;;  %v7836_v29 = vadd.f32 %v16181_v55, %v7797_v24  ;;  %v7800_v54 = vadd.f32 %v12536_v37, %v16140_v46  ;;  %v16384_v24 = vld [vmem:[#allocation4 + $0xd0] sm:$0xff] }
 0x589   : > { %v7708_v17 = vpop.f32.mrf.mxu1 }
 0x58a   : > { %7955 = vst.msk [vmem:[#allocation4 + $0xf1] sm:$0xff] %vm4160_vm2, %v7869_v33  ;;  %v7868_v28 = vmax.f32 %v7836_v29, 0.0  ;;  %v7839_v13 = vadd.f32 %v16181_v55, %v7800_v54  ;;  %v7799_v26 = vadd.f32 %v7708_v17, %v16143_v19  ;;  %v16390_v19 = vld [vmem:[#allocation4 + $0xb8] sm:$0xff]  ;;  %v16400_v54 = vld [vmem:[#allocation4 + $0xa1] sm:$0xff] }
 0x58b   : > { %v12537_v57 = vpop.f32.mrf.mxu1  ;;  %v16377_v23 = vld [vmem:[#allocation4 + $0xc0] sm:$0xff]  ;;  %v16379_v48 = vld [vmem:[#allocation4 + $0xc8] sm:$0xff]  ;;  %18195 = vst [vmem:[#allocation58_spill] sm:$0xff] %v16400_v54 }
 0x58c   : > { %7954 = vst.msk [vmem:[#allocation4 + $0xe1] sm:$0xff] %vm4160_vm2, %v7868_v28  ;;  %v7871_v62 = vmax.f32 %v7839_v13, 0.0  ;;  %v7838_v6 = vadd.f32 %v16181_v55, %v7799_v26  ;;  %v7801_v46 = vadd.f32 %v12537_v57, %v16146_v22  ;;  %v16386_v14 = vld [vmem:[#allocation4 + $0xc2] sm:$0xff]  ;;  %v16388_v37 = vld [vmem:[#allocation4 + $0xba] sm:$0xff] }
 0x58d   : > { %18192 = vst [vmem:[#allocation10_spill] sm:$0xff] %v16386_v14  ;;  %18193 = vst [vmem:[#allocation7_spill] sm:$0xff] %v16388_v37  ;;  %v7711_v33 = vpop.f32.mrf.mxu1  ;;  %v16398_v57 = vld [vmem:[#allocation4 + $0xa9] sm:$0xff]  ;;  %v8055_v37 = vld [vmem:[#allocation4 + $0x71] sm:$0xff] }
 0x58e   : > { %7957 = vst.msk [vmem:[#allocation4 + $0x109] sm:$0xff] %vm4160_vm2, %v7871_v62  ;;  %v7870_v28 = vmax.f32 %v7838_v6, 0.0  ;;  %v7840_v13 = vadd.f32 %v16181_v55, %v7801_v46  ;;  %18194 = vst [vmem:[#allocation62_spill] sm:$0xff] %v16398_v57  ;;  %v16404_v33 = vld [vmem:[#allocation4 + $0x79] sm:$0xff]  ;;  %v16410_v46 = vld [vmem:[#allocation4 + $0xca] sm:$0xff] }
 0x58f   : > { %v12540_v17 = vpop.f32.mrf.mxu1  ;;  %v16402_v26 = vld [vmem:[#allocation4 + $0xd2] sm:$0xff]  ;;  %18197 = vst [vmem:[#allocation66_spill] sm:$0xff] %v16404_v33  ;;  %18198 = vst [vmem:[#allocation68_spill] sm:$0xff] %v16410_v46  ;;  %v8070_v33 = vld [vmem:[#allocation4 + $0xe9] sm:$0xff] }
 0x590   : > { %18196 = vst [vmem:[#allocation59_spill] sm:$0xff] %v16402_v26  ;;  %7956 = vst.msk [vmem:[#allocation4 + $0xf9] sm:$0xff] %vm4160_vm2, %v7870_v28  ;;  %v7872_v62 = vmax.f32 %v7840_v13, 0.0  ;;  %v7803_v6 = vadd.f32 %v12540_v17, %v16149_v16  ;;  %v8056_v28 = vld [vmem:[#allocation4 + $0x79] sm:$0xff] }
 0x591   : > { %v7723_v22 = vpop.f32.mrf.mxu1  ;;  %v16420_v13 = vld [vmem:[#allocation4 + $0xd8] sm:$0xff]  ;;  %v16424_v17 = vld [vmem:[#allocation4 + $0xf0] sm:$0xff]  ;;  %v8095_v10 = vpack.c.bf16 %v8056_v28, %v8055_v37 }
 0x592   : > { %7958 = vst.msk [vmem:[#allocation4 + $0x111] sm:$0xff] %vm4160_vm2, %v7872_v62  ;;  %v7842_v29 = vadd.f32 %v16181_v55, %v7803_v6  ;;  %v8071_v39 = vld [vmem:[#allocation4 + $0xf1] sm:$0xff]  ;;  %v16489_v61 = vld [vmem:[#allocation4 + $0xd9] sm:$0xff] }
 0x593   : > { %v12541_v22 = vpop.f32.mrf.mxu1  ;;  %v16426_v43 = vld [vmem:[#allocation4 + $0xe0] sm:$0xff]  ;;  %v16428_v60 = vld [vmem:[#allocation4 + $0xe8] sm:$0xff]  ;;  %v8139_v46 = vsel %vm4160_vm2, %v8095_v10, 0  ;;  %18213 = vst [vmem:[#allocation21_spill] sm:$0xff] %v16489_v61 }
 0x594   : > { %v7874_v59 = vmax.f32 %v7842_v29, 0.0  ;;  %v16430_v34 = vld [vmem:[#allocation4 + $0xe2] sm:$0xff]  ;;  %v16432_v62 = vld [vmem:[#allocation4 + $0xda] sm:$0xff] }
 0x595   : > { %18200 = vst [vmem:[#allocation63_spill] sm:$0xff] %v16430_v34  ;;  %18201 = vst [vmem:[#allocation70_spill] sm:$0xff] %v16432_v62  ;;  %v16436_v54 = vld [vmem:[#allocation4 + $0xe1] sm:$0xff]  ;;  %v7725_v57 = vpop.f32.mrf.mxu1  ;;  %v16442_v29 = vld [vmem:[#allocation4 + $0xe9] sm:$0xff] }
 0x596   : > { %18202 = vst [vmem:[#allocation72_spill] sm:$0xff] %v16436_v54  ;;  %7960 = vst.msk [vmem:[#allocation4 + $0x129] sm:$0xff] %vm4160_vm2, %v7874_v59  ;;  %v7802_v16 = vadd.f32 %v7725_v57, %v16152_v40  ;;  %v8069_v25 = vld [vmem:[#allocation4 + $0xe1] sm:$0xff]  ;;  %v16451_v37 = vld [vmem:[#allocation4 + $0x109] sm:$0xff] }
 0x597   : > { %18203 = vst [vmem:[#allocation73_spill] sm:$0xff] %v16442_v29  ;;  %v12544_v14 = vpop.f32.mrf.mxu1  ;;  %v8072_v6 = vld [vmem:[#allocation4 + $0xf9] sm:$0xff]  ;;  %v8053_v59 = vld [vmem:[#allocation4 + $0x61] sm:$0xff]  ;;  %v8102_v62 = vpack.c.bf16 %v8070_v33, %v8069_v25  ;;  %v16464_v54 = vld [vmem:[#allocation4 + $0x69] sm:$0xff] }
 0x598   : > { %v7841_v22 = vadd.f32 %v16181_v55, %v7802_v16  ;;  %v8103_v7 = vpack.c.bf16 %v8072_v6, %v8071_v39  ;;  %v16453_v57 = vld [vmem:[#allocation4 + $0xf2] sm:$0xff]  ;;  %v16458_v26 = vld [vmem:[#allocation4 + $0xfa] sm:$0xff]  ;;  %18208 = vst [vmem:[#allocation16_spill] sm:$0xff] %v16464_v54  ;;  %v16472_v25 = vld [vmem:[#allocation4 + $0xea] sm:$0xff] }
 0x599   : > { %v7737_v47 = vpop.f32.mrf.mxu1  ;;  %v16449_v40 = vld [vmem:[#allocation4 + $0x111] sm:$0xff]  ;;  %18204 = vst [vmem:[#allocation13_spill] sm:$0xff] %v16453_v57  ;;  %18205 = vst [vmem:[#allocation12_spill] sm:$0xff] %v16458_v26  ;;  %v16476_v10 = vld [vmem:[#allocation4 + $0xf9] sm:$0xff] }
 0x59a   : > { %v7873_v28 = vmax.f32 %v7841_v22, 0.0  ;;  %v7804_v14 = vadd.f32 %v7737_v47, %v16155_v56  ;;  %12752 = vmatprep.subr.msk.bf16.mxu0 %vm4160_vm2, %v8103_v7  ;;  %v16460_v16 = vld [vmem:[#allocation4 + $0x112] sm:$0xff]  ;;  %v16462_v39 = vld [vmem:[#allocation4 + $0x10a] sm:$0xff]  ;;  %18209 = vst [vmem:[#allocation15_spill] sm:$0xff] %v16472_v25  ;;  %v16474_v7 = vld [vmem:[#allocation4 + $0x102] sm:$0xff] }
 0x59b   : > { %18206 = vst [vmem:[#allocation11_spill] sm:$0xff] %v16460_v16  ;;  %18207 = vst [vmem:[#allocation14_spill] sm:$0xff] %v16462_v39  ;;  %v12545_v6 = vpop.f32.mrf.mxu1  ;;  %11412 = vmatpush3.bf16.xpose.msra.mxu0 %v8139_v46  ;;  %v8094_v46 = vpack.c.bf16 %v16464_v54, %v8053_v59  ;;  %v16487_v29 = vld [vmem:[#allocation4 + $0xf1] sm:$0xff]  ;;  %v8101_v59 = vpack.c.bf16 %v16489_v61, %v8067_v44  ;;  %v8046_v57 = vld [vmem:[#allocation4 + $0x29] sm:$0xff] }
 0x59c   : > { %7959 = vst.msk [vmem:[#allocation4 + $0x121] sm:$0xff] %vm4160_vm2, %v7873_v28  ;;  %v7843_v56 = vadd.f32 %v16181_v55, %v7804_v14  ;;  %v7806_v47 = vadd.f32 %v12545_v6, %v16158_v32  ;;  %12753 = vmatprep.subr.msk.bf16.mxu0 %vm4160_vm2, %v8102_v62  ;;  %18210 = vst [vmem:[#allocation18_spill] sm:$0xff] %v16474_v7  ;;  %v16496_v32 = vld [vmem:[#allocation4 + $0x39] sm:$0xff] }
 0x59d   : > { %18211 = vst [vmem:[#allocation19_spill] sm:$0xff] %v16476_v10  ;;  %v7740_v33 = vpop.f32.mrf.mxu1  ;;  %18212 = vst [vmem:[#allocation20_spill] sm:$0xff] %v16487_v29  ;;  %v16550_v10 = vld [vmem:[#allocation4 + $0x129] sm:$0xff] }
 0x59e   : > { %v7875_v14 = vmax.f32 %v7843_v56, 0.0  ;;  %v7845_v62 = vadd.f32 %v16181_v55, %v7806_v47  ;;  %v7805_v6 = vadd.f32 %v7740_v33, %v16161_v31  ;;  %18214 = vst [vmem:[#allocation23_spill] sm:$0xff] %v16496_v32  ;;  %v8136_v31 = vsel %vm4160_vm2, %v8094_v46, 0  ;;  %18228 = vst [vmem:[#allocation8_spill] sm:$0xff] %v16550_v10 }
 0x59f   : > { %v12548_v34 = vpop.f32.mrf.mxu1 }
 0x5a0   : > { %7961 = vst.msk [vmem:[#allocation4 + $0x139] sm:$0xff] %vm4160_vm2, %v7875_v14  ;;  %v7877_v28 = vmax.f32 %v7845_v62, 0.0  ;;  %v7844_v22 = vadd.f32 %v16181_v55, %v7805_v6  ;;  %v7808_v56 = vadd.f32 %v12548_v34, %v16164_v2  ;;  %v16503_v14 = vld [vmem:[#allocation4 + $0x59] sm:$0xff]  ;;  %v16505_v62 = vld [vmem:[#allocation4 + $0x31] sm:$0xff] }
 0x5a1   : > { %v7752_v47 = vpop.f32.mrf.mxu1  ;;  %18215 = vst [vmem:[#allocation22_spill] sm:$0xff] %v16503_v14  ;;  %18216 = vst [vmem:[#allocation24_spill] sm:$0xff] %v16505_v62  ;;  %v8051_v2 = vld [vmem:[#allocation4 + $0x51] sm:$0xff] }
 0x5a2   : > { %7963 = vst.msk [vmem:[#allocation4 + $0x151] sm:$0xff] %vm4160_vm2, %v7877_v28  ;;  %v7876_v33 = vmax.f32 %v7844_v22, 0.0  ;;  %v7847_v54 = vadd.f32 %v16181_v55, %v7808_v56  ;;  %v7807_v39 = vadd.f32 %v7752_v47, %v16167_v38  ;;  %v16517_v28 = vld [vmem:[#allocation4 + $0x130] sm:$0xff]  ;;  %v16519_v47 = vld [vmem:[#allocation4 + $0x118] sm:$0xff] }
 0x5a3   : > { %v12549_v6 = vpop.f32.mrf.mxu1  ;;  %11414 = vmatpush3.bf16.xpose.msra.mxu0 %v8136_v31  ;;  %v16507_v34 = vld [vmem:[#allocation4 + $0x120] sm:$0xff]  ;;  %v16509_v29 = vld [vmem:[#allocation4 + $0x128] sm:$0xff]  ;;  %18219 = vst [vmem:[#allocation39_spill] sm:$0xff] %v16517_v28  ;;  %18220 = vst [vmem:[#allocation32_spill] sm:$0xff] %v16519_v47 }
 0x5a4   : > { %18217 = vst [vmem:[#allocation26_spill] sm:$0xff] %v16507_v34  ;;  %18218 = vst [vmem:[#allocation31_spill] sm:$0xff] %v16509_v29  ;;  %v7879_v46 = vmax.f32 %v7847_v54, 0.0  ;;  %v7846_v38 = vadd.f32 %v16181_v55, %v7807_v39  ;;  %v7809_v44 = vadd.f32 %v12549_v6, %v16170_v49  ;;  %12754 = vmatprep.subr.msk.bf16.mxu0 %vm4160_vm2, %v8101_v59  ;;  %v8065_v39 = vld [vmem:[#allocation4 + $0xc1] sm:$0xff]  ;;  %v8060_v29 = vld [vmem:[#allocation4 + $0x99] sm:$0xff] }
 0x5a5   : > { %7962 = vst.msk [vmem:[#allocation4 + $0x141] sm:$0xff] %vm4160_vm2, %v7876_v33  ;;  %v7755_v56 = vpop.f32.mrf.mxu1  ;;  %v8093_v54 = vpack.c.bf16 %v16503_v14, %v8051_v2  ;;  %v16532_v62 = vld [vmem:[#allocation4 + $0x11a] sm:$0xff]  ;;  %v7380_v2 = vpop.f32.mrf.mxu0  ;;  %v16540_v14 = vld [vmem:[#allocation4 + $0xc9] sm:$0xff] }
 0x5a6   : > { %7965 = vst.msk [vmem:[#allocation4 + $0x169] sm:$0xff] %vm4160_vm2, %v7879_v46  ;;  %v7878_v22 = vmax.f32 %v7846_v38, 0.0  ;;  %v7848_v33 = vadd.f32 %v16181_v55, %v7809_v44  ;;  %v16530_v56 = vld [vmem:[#allocation4 + $0x122] sm:$0xff]  ;;  %18223 = vst [vmem:[#allocation48_spill] sm:$0xff] %v16532_v62  ;;  %v16536_v38 = vld [vmem:[#allocation4 + $0x12a] sm:$0xff] }
 0x5a7   : > { %v12552_v59 = vpop.f32.mrf.mxu1  ;;  %v16528_v6 = vld [vmem:[#allocation4 + $0x132] sm:$0xff]  ;;  %18222 = vst [vmem:[#allocation44_spill] sm:$0xff] %v16530_v56  ;;  %18224 = vst [vmem:[#allocation38_spill] sm:$0xff] %v16536_v38  ;;  %v16538_v44 = vld [vmem:[#allocation4 + $0x121] sm:$0xff] }
 0x5a8   : > { %18221 = vst [vmem:[#allocation46_spill] sm:$0xff] %v16528_v6  ;;  %7964 = vst.msk [vmem:[#allocation4 + $0x159] sm:$0xff] %vm4160_vm2, %v7878_v22  ;;  %v7880_v31 = vmax.f32 %v7848_v33, 0.0  ;;  %v7811_v46 = vadd.f32 %v12552_v59, %v16173_v4  ;;  %v8133_v22 = vsel %vm4160_vm2, %v8093_v54, 0  ;;  %v8100_v33 = vpack.c.bf16 %v16540_v14, %v8065_v39  ;;  %v8049_v4 = vld [vmem:[#allocation4 + $0x41] sm:$0xff]  ;;  %v16548_v59 = vld [vmem:[#allocation4 + $0x49] sm:$0xff] }
 0x5a9   : > { %18225 = vst [vmem:[#allocation29_spill] sm:$0xff] %v16538_v44  ;;  %v7767_v32 = vpop.f32.mrf.mxu1  ;;  %18226 = vst [vmem:[#allocation55_spill] sm:$0xff] %v16540_v14  ;;  %v16554_v16 = vld [vmem:[#allocation4 + $0x150] sm:$0xff]  ;;  %v7421_v39 = vadd.f32 %v7380_v2, %v16176_v9  ;;  %v16564_v14 = vld [vmem:[#allocation4 + $0x138] sm:$0xff]  ;;  %v8092_v38 = vpack.c.bf16 %v16548_v59, %v8049_v4 }
 0x5aa   : > { %7966 = vst.msk [vmem:[#allocation4 + $0x171] sm:$0xff] %vm4160_vm2, %v7880_v31  ;;  %v7850_v61 = vadd.f32 %v16181_v55, %v7811_v46  ;;  %18227 = vst [vmem:[#allocation5_spill] sm:$0xff] %v16548_v59  ;;  %v16572_v54 = vld [vmem:[#allocation4 + $0xb9] sm:$0xff]  ;;  %v8063_v9 = vld [vmem:[#allocation4 + $0xb1] sm:$0xff] }
 0x5ab   : > { %v12553_v7 = vpop.f32.mrf.mxu1  ;;  %11416 = vmatpush3.bf16.xpose.msra.mxu0 %v8133_v22  ;;  %18229 = vst [vmem:[#allocation61_spill] sm:$0xff] %v16564_v14  ;;  %18230 = vst [vmem:[#allocation57_spill] sm:$0xff] %v16572_v54  ;;  %v8099_v4 = vpack.c.bf16 %v16572_v54, %v8063_v9  ;;  %v8048_v59 = vld [vmem:[#allocation4 + $0x39] sm:$0xff]  ;;  %v8085_v56 = vld [vmem:[#allocation4 + $0x161] sm:$0xff] }
 0x5ac   : > { %v16556_v49 = vld [vmem:[#allocation4 + $0x140] sm:$0xff]  ;;  %v16558_v31 = vld [vmem:[#allocation4 + $0x148] sm:$0xff]  ;;  %v7882_v46 = vmax.f32 %v7850_v61, 0.0  ;;  %12755 = vmatprep.subr.msk.bf16.mxu0 %vm4160_vm2, %v8100_v33 }
 0x5ad   : > { %v7769_v22 = vpop.f32.mrf.mxu1  ;;  %v16585_v6 = vld [vmem:[#allocation4 + $0x168] sm:$0xff]  ;;  %v16602_v32 = vld [vmem:[#allocation4 + $0x13a] sm:$0xff] }
 0x5ae   : > { %7968 = vst.msk [vmem:[#allocation4 + $0x189] sm:$0xff] %vm4160_vm2, %v7882_v46  ;;  %v7810_v62 = vadd.f32 %v7769_v22, %v7421_v39  ;;  %v8130_v39 = vsel %vm4160_vm2, %v8092_v38, 0  ;;  %v8047_v22 = vld [vmem:[#allocation4 + $0x31] sm:$0xff]  ;;  %v16587_v47 = vld [vmem:[#allocation4 + $0x142] sm:$0xff]  ;;  %18236 = vst [vmem:[#allocation25_spill] sm:$0xff] %v16602_v32 }
 0x5af   : > { %v16574_v61 = vld [vmem:[#allocation4 + $0x160] sm:$0xff]  ;;  %v16576_v2 = vld [vmem:[#allocation4 + $0x158] sm:$0xff]  ;;  %18231 = vst [vmem:[#allocation64_spill] sm:$0xff] %v16587_v47  ;;  %v8062_v54 = vld [vmem:[#allocation4 + $0xa9] sm:$0xff] }
 0x5b0   : > { %v7849_v33 = vadd.f32 %v16181_v55, %v7810_v62  ;;  %v16596_v9 = vld [vmem:[#allocation4 + $0x15a] sm:$0xff]  ;;  %v16607_v25 = vld [vmem:[#allocation4 + $0x14a] sm:$0xff] }
 0x5b1   : > { %v8087_v44 = vld [vmem:[#allocation4 + $0x171] sm:$0xff]  ;;  %18234 = vst [vmem:[#allocation69_spill] sm:$0xff] %v16596_v9  ;;  %18238 = vst [vmem:[#allocation27_spill] sm:$0xff] %v16607_v25  ;;  %v8045_v14 = vld [vmem:[#allocation4 + $0x21] sm:$0xff] }
 0x5b2   : > { %v16579_v7 = vld [vmem:[#allocation4 + $0x170] sm:$0xff]  ;;  %v7881_v10 = vmax.f32 %v7849_v33, 0.0  ;;  %v8111_v46 = vpack.c.bf16 %v8087_v44, %v8087_v44  ;;  %v16645_v9 = vld [vmem:[#allocation4 + $0x141] sm:$0xff] }
 0x5b3   : > { %11418 = vmatpush3.bf16.xpose.msra.mxu0 %v8130_v39  ;;  %v16592_v62 = vld [vmem:[#allocation4 + $0x172] sm:$0xff]  ;;  %v16594_v38 = vld [vmem:[#allocation4 + $0x16a] sm:$0xff]  ;;  %18249 = vst [vmem:[#allocation83_spill] sm:$0xff] %v16645_v9 }
 0x5b4   : > { %7967 = vst.msk [vmem:[#allocation4 + $0x181] sm:$0xff] %vm4160_vm2, %v7881_v10  ;;  %12756 = vmatprep.subr.msk.bf16.mxu0 %vm4160_vm2, %v8099_v4  ;;  %v8187_v55 = vsel %vm4160_vm2, %v8111_v46, 0  ;;  %18232 = vst [vmem:[#allocation60_spill] sm:$0xff] %v16592_v62  ;;  %v8086_v33 = vld [vmem:[#allocation4 + $0x169] sm:$0xff]  ;;  %v16600_v39 = vld [vmem:[#allocation4 + $0x152] sm:$0xff]  ;;  %v8091_v10 = vpack.c.bf16 %v8048_v59, %v8047_v22  ;;  %v8090_v59 = vpack.c.bf16 %v8046_v57, %v8045_v14 }
 0x5b5   : > { %18233 = vst [vmem:[#allocation67_spill] sm:$0xff] %v16594_v38  ;;  %12555 = vmatpush3.bf16.xpose.msra.mxu1 %v8187_v55  ;;  %18235 = vst [vmem:[#allocation71_spill] sm:$0xff] %v16600_v39  ;;  %v16605_v4 = vld [vmem:[#allocation4 + $0x162] sm:$0xff]  ;;  %v8110_v44 = vpack.c.bf16 %v8086_v33, %v8085_v56  ;;  %v16624_v33 = vld [vmem:[#allocation4 + $0x179] sm:$0xff] }
 0x5b6   : > { %12556 = vmatprep.subr.bf16.mxu1 %v18163_v52  ;;  %18237 = vst [vmem:[#allocation17_spill] sm:$0xff] %v16605_v4  ;;  %v8061_v46 = vld [vmem:[#allocation4 + $0xa1] sm:$0xff]  ;;  %v8127_v22 = vsel %vm4160_vm2, %v8091_v10, 0  ;;  %18241 = vst [vmem:[#allocation75_spill] sm:$0xff] %v16624_v33  ;;  %v8084_v10 = vld [vmem:[#allocation4 + $0x159] sm:$0xff] }
 0x5b7   : > { %v8098_v26 = vpack.c.bf16 %v8062_v54, %v8061_v46  ;;  %v8184_v56 = vsel %vm4160_vm2, %v8110_v44, 0  ;;  %v16628_v55 = vld [vmem:[#allocation4 + $0x161] sm:$0xff]  ;;  %v16630_v54 = vld [vmem:[#allocation4 + $0x169] sm:$0xff]  ;;  %v16632_v46 = vld [vmem:[#allocation4 + $0x171] sm:$0xff] }
 0x5b8   : > { %18243 = vst [vmem:[#allocation77_spill] sm:$0xff] %v16628_v55  ;;  %18244 = vst [vmem:[#allocation78_spill] sm:$0xff] %v16630_v54  ;;  %v16639_v44 = vld [vmem:[#allocation4 + $0x159] sm:$0xff]  ;;  %v8083_v32 = vld [vmem:[#allocation4 + $0x151] sm:$0xff] }
 0x5b9   : > { %18245 = vst [vmem:[#allocation79_spill] sm:$0xff] %v16632_v46  ;;  %18247 = vst [vmem:[#allocation81_spill] sm:$0xff] %v16639_v44  ;;  %v8109_v25 = vpack.c.bf16 %v8084_v10, %v8083_v32  ;;  %v16643_v47 = vld [vmem:[#allocation4 + $0x151] sm:$0xff]  ;;  %v16651_v14 = vld [vmem:[#allocation4 + $0x139] sm:$0xff] }
 0x5ba   : > { %18248 = vst [vmem:[#allocation82_spill] sm:$0xff] %v16643_v47  ;;  %18250 = vst [vmem:[#allocation84_spill] sm:$0xff] %v16651_v14  ;;  %v16657_v32 = vld [vmem:[#allocation4 + $0x149] sm:$0xff]  ;;  %v8043_v10 = vld [vmem:[#allocation4 + $0x11] sm:$0xff] }
 0x5bb   : > { %11420 = vmatpush3.bf16.xpose.msra.mxu0 %v8127_v22  ;;  %v16618_v28 = vld [vmem:[#allocation4 + $0x188] sm:$0xff]  ;;  %v16620_v45 = vld [vmem:[#allocation4 + $0x180] sm:$0xff]  ;;  %18251 = vst [vmem:[#allocation85_spill] sm:$0xff] %v16657_v32  ;;  %v8181_v57 = vsel %vm4160_vm2, %v8109_v25, 0  ;;  %v18259_v14 = vld [vmem:[#allocation13_spill] sm:$0xff] }
 0x5bc   : > { %18239 = vst [vmem:[#allocation40_spill] sm:$0xff] %v16618_v28  ;;  %18240 = vst [vmem:[#allocation74_spill] sm:$0xff] %v16620_v45  ;;  %12757 = vmatprep.subr.msk.bf16.mxu0 %vm4160_vm2, %v8098_v26  ;;  %v16626_v34 = vld [vmem:[#allocation4 + $0x181] sm:$0xff]  ;;  %v16637_v26 = vld [vmem:[#allocation4 + $0x189] sm:$0xff]  ;;  %v8124_v28 = vsel %vm4160_vm2, %v8090_v59, 0 }
 0x5bd   : > { %18242 = vst [vmem:[#allocation76_spill] sm:$0xff] %v16626_v34  ;;  %12557 = vmatpush3.bf16.xpose.msra.mxu1 %v8184_v56  ;;  %18246 = vst [vmem:[#allocation80_spill] sm:$0xff] %v16637_v26  ;;  %v8097_v56 = vpack.c.bf16 %v8060_v29, %v16304_v12  ;;  %v8044_v34 = vld [vmem:[#allocation4 + $0x19] sm:$0xff]  ;;  %v16659_v26 = vld [vmem:[#allocation4 + $0x131] sm:$0xff] }
 0x5be   : > { %12558 = vmatprep.subr.bf16.mxu1 %v18163_v52  ;;  %18252 = vst [vmem:[#allocation86_spill] sm:$0xff] %v16659_v26  ;;  %v16665_v55 = vld [vmem:[#allocation4 + $0x182] sm:$0xff]  ;;  %v16670_v47 = vld [vmem:[#allocation4 + $0x18a] sm:$0xff]  ;;  %v8080_v26 = vld [vmem:[#allocation4 + $0x139] sm:$0xff] }
 0x5bf   : > { %18253 = vst [vmem:[#allocation87_spill] sm:$0xff] %v16665_v55  ;;  %v8081_v29 = vld [vmem:[#allocation4 + $0x141] sm:$0xff]  ;;  %v8082_v45 = vld [vmem:[#allocation4 + $0x149] sm:$0xff]  ;;  %18254 = vst [vmem:[#allocation88_spill] sm:$0xff] %v16670_v47 }
 0x5c0   : > { %v16672_v44 = vld [vmem:[#allocation4 + $0x81] sm:$0xff]  ;;  %v8108_v22 = vpack.c.bf16 %v8082_v45, %v8081_v29  ;;  %v8042_v9 = vld [vmem:[#allocation4 + $0x9] sm:$0xff]  ;;  %v8079_v59 = vld [vmem:[#allocation4 + $0x131] sm:$0xff] }
 0x5c1   : > { %18255 = vst [vmem:[#allocation89_spill] sm:$0xff] %v16672_v44  ;;  %v8041_v25 = vld [vmem:[#allocation4 + $0x1] sm:$0xff]  ;;  %v8107_v29 = vpack.c.bf16 %v8080_v26, %v8079_v59  ;;  %v18258_v55 = vld [vmem:[#allocation61_spill] sm:$0xff] }
 0x5c2   : > { %v16695_v26 = vld [vmem:[%s17500_s6] sm:$0x3]  ;;  %v18260_v46 = vld [vmem:[#allocation12_spill] sm:$0xff]  ;;  %v16788_v54 = vld [vmem:[%s17500_s6 + $0x4] sm:$0x3] }
 0x5c3   : > { %11422 = vmatpush3.bf16.xpose.msra.mxu0 %v8124_v28  ;;  %v8089_v28 = vpack.c.bf16 %v8044_v34, %v8043_v10  ;;  %v8178_v34 = vsel %vm4160_vm2, %v8108_v22, 0  ;;  %v8088_v10 = vpack.c.bf16 %v8042_v9, %v8041_v25  ;;  %v8077_v9 = vld [vmem:[#allocation4 + $0x121] sm:$0xff]  ;;  %v8023_v22 = vpack.c.bf16 %v16320_v15, %v16280_v3  ;;  %v8078_v25 = vld [vmem:[#allocation4 + $0x129] sm:$0xff] }
 0x5c4   : > { %12758 = vmatprep.subr.msk.bf16.mxu0 %vm4160_vm2, %v8097_v56  ;;  %v16682_v56 = vld [vmem:[#allocation4 + $0xf8] sm:$0xff] }
 0x5c5   : > { %12559 = vmatpush3.bf16.xpose.msra.mxu1 %v8181_v57  ;;  %v8121_v32 = vsel %vm4160_vm2, %v8089_v28, 0  ;;  %v8096_v57 = vpack.c.bf16 %v16292_v27, %v16672_v44  ;;  %v8118_v45 = vsel %vm4160_vm2, %v8088_v10, 0  ;;  %v8031_v28 = vpack.c.bf16 %v16682_v56, %v16424_v17  ;;  %v18281_v44 = vld [vmem:[#allocation35_spill] sm:$0xff] }
 0x5c6   : > { %12560 = vmatprep.subr.bf16.mxu1 %v18163_v52  ;;  %v8295_v59 = vsel %vm4160_vm2, %v8023_v22, 0 }
 0x5cb   : > { %11424 = vmatpush3.bf16.xpose.msra.mxu0 %v8121_v32  ;;  %v8175_v32 = vsel %vm4160_vm2, %v8107_v29, 0  ;;  %v8022_v29 = vpack.c.bf16 %v16273_v41, %v16271_v35 }
 0x5cc   : > { %12759 = vmatprep.subr.msk.bf16.mxu0 %vm4160_vm2, %v8096_v57  ;;  %v8106_v57 = vpack.c.bf16 %v8078_v25, %v8077_v9  ;;  %v8029_v9 = vpack.c.bf16 %v16420_v13, %v16384_v24  ;;  %v16715_v25 = vld [vmem:[#allocation4 + $0x101] sm:$0xff] }
 0x5cd   : > { %12561 = vmatpush3.bf16.xpose.msra.mxu1 %v8178_v34  ;;  %v8030_v34 = vpack.c.bf16 %v16428_v60, %v16426_v43 }
 0x5ce   : > { %12562 = vmatprep.subr.bf16.mxu1 %v18163_v52  ;;  %v8172_v10 = vsel %vm4160_vm2, %v8106_v57, 0  ;;  %v8021_v57 = vpack.c.bf16 %v16284_v18, %v16232_v53 }
 0x5d3   : > { %11426 = vmatpush3.bf16.xpose.msra.mxu0 %v8118_v45  ;;  %v8076_v45 = vld [vmem:[#allocation4 + $0x119] sm:$0xff] }
 0x5d4   : > { %12760 = vmatprep.subr.msk.bf16.mxu0 %vm4160_vm2, %v8031_v28  ;;  %v8105_v28 = vpack.c.bf16 %v8076_v45, %v16449_v40 }
 0x5d5   : > { %12563 = vmatpush3.bf16.xpose.msra.mxu1 %v8175_v32  ;;  %v8292_v32 = vsel %vm4160_vm2, %v8022_v29, 0  ;;  %v8020_v29 = vpack.c.bf16 %v16237_v30, %v16224_v20 }
 0x5d6   : > { %12564 = vmatprep.subr.bf16.mxu1 %v18163_v52  ;;  %v8169_v22 = vsel %vm4160_vm2, %v8105_v28, 0  ;;  %v8039_v28 = vpack.c.bf16 %v16579_v7, %v16579_v7 }
 0x5da   : > { %11428 = vmatmul.mubr.msk.bf16.vlgmr.msra.gmra.mxu0 %vm4160_vm2, %v16189_v63 }
 0x5db   : > { %11439 = vmatpush3.bf16.xpose.msra.mxu0 %v8295_v59  ;;  %11454 = vmatprep.mubr.msk.bf16.mxu0 %vm4160_vm2, %v16695_v26  ;;  %v8104_v59 = vpack.c.bf16 %v16451_v37, %v16715_v25 }
 0x5dc   : > { %12761 = vmatprep.subr.msk.bf16.mxu0 %vm4160_vm2, %v8030_v34  ;;  %v8289_v34 = vsel %vm4160_vm2, %v8021_v57, 0  ;;  %v8019_v57 = vpack.c.bf16 %v16226_v11, %v16210_v58 }
 0x5dd   : > { %12565 = vmatpush3.bf16.xpose.msra.mxu1 %v8172_v10  ;;  %v8028_v10 = vpack.c.bf16 %v16379_v48, %v16377_v23  ;;  %v8166_v45 = vsel %vm4160_vm2, %v8104_v59, 0  ;;  %v8038_v59 = vpack.c.bf16 %v16585_v6, %v16574_v61 }
 0x5de   : > { %12566 = vmatprep.subr.bf16.mxu1 %v18163_v52 }
 0x5e3   : > { %11441 = vmatpush3.bf16.xpose.msra.mxu0 %v8292_v32  ;;  %v8286_v32 = vsel %vm4160_vm2, %v8020_v29, 0  ;;  %v8037_v29 = vpack.c.bf16 %v16576_v2, %v16554_v16 }
 0x5e4   : > { %12762 = vmatprep.subr.msk.bf16.mxu0 %vm4160_vm2, %v8029_v9  ;;  %v8027_v9 = vpack.c.bf16 %v16390_v19, %v16341_v8 }
 0x5e5   : > { %12567 = vmatpush3.bf16.xpose.msra.mxu1 %v8169_v22  ;;  %v8343_v22 = vsel %vm4160_vm2, %v8039_v28, 0 }
 0x5e6   : > { %12568 = vmatprep.subr.bf16.mxu1 %v18163_v52 }
 0x5eb   : > { %11443 = vmatpush3.bf16.xpose.msra.mxu0 %v8289_v34  ;;  %v8283_v34 = vsel %vm4160_vm2, %v8019_v57, 0 }
 0x5ec   : > { %12763 = vmatprep.subr.msk.bf16.mxu0 %vm4160_vm2, %v8028_v10  ;;  %v8026_v10 = vpack.c.bf16 %v16343_v0, %v16332_v21 }
 0x5ed   : > { %12569 = vmatpush3.bf16.xpose.msra.mxu1 %v8166_v45  ;;  %v8018_v45 = vpack.c.bf16 %v16214_v51, %v16212_v42 }
 0x5ee   : > { %12574 = vmatprep.subr.bf16.mxu1 %v18163_v52 }
 0x5ef   : > { %v8280_v28 = vsel %vm4160_vm2, %v8018_v45, 0  ;;  %v18256_v45 = vld [vmem:[#allocation30_spill] sm:$0xff] }
 0x5f3   : > { %11445 = vmatpush3.bf16.xpose.msra.mxu0 %v8286_v32  ;;  %v8025_v32 = vpack.c.bf16 %v16334_v5, %v16312_v1 }
 0x5f4   : > { %12764 = vmatprep.subr.msk.bf16.mxu0 %vm4160_vm2, %v8027_v9  ;;  %12571 = vmatmul.mubr.msk.bf16.vlgmr.msra.gmra.mxu1 %vm4160_vm2, %v16189_v63  ;;  %v8340_v63 = vsel %vm4160_vm2, %v8038_v59, 0  ;;  %v7971_v9 = vld [vmem:[#allocation4 + $0x10] sm:$0xff]  ;;  %v8036_v59 = vpack.c.bf16 %v16558_v31, %v16556_v49 }
 0x5f5   : > { %12575 = vmatpush3.bf16.xpose.msra.mxu1 %v8343_v22  ;;  %12590 = vmatprep.mubr.msk.bf16.mxu1 %vm12870_vm4, %v18163_v52  ;;  %v8337_v22 = vsel %vm4160_vm2, %v8037_v29, 0  ;;  %v8017_v57 = vpack.c.bf16 %v16216_v36, %v7971_v9 }
 0x5f6   : > { %12576 = vmatprep.subr.bf16.mxu1 %v18163_v52  ;;  %v8334_v29 = vsel %vm4160_vm2, %v8036_v59, 0  ;;  %v18262_v59 = vld [vmem:[#allocation28_spill] sm:$0xff] }
 0x5fb   : > { %11447 = vmatpush3.bf16.xpose.msra.mxu0 %v8283_v34  ;;  %v7969_v34 = vld [vmem:[#allocation4] sm:$0xff] }
 0x5fc   : > { %12765 = vmatprep.subr.msk.bf16.mxu0 %vm4160_vm2, %v8026_v10  ;;  %v7970_v10 = vld [vmem:[#allocation4 + $0x8] sm:$0xff] }
 0x5fd   : > { %12577 = vmatpush3.bf16.xpose.msra.mxu1 %v8340_v63  ;;  %v8277_v63 = vsel %vm4160_vm2, %v8017_v57, 0  ;;  %v8488_v57 = vpack.c.bf16 %v18260_v46, %v18259_v14  ;;  %v16800_v14 = vld [vmem:[#allocation4 + $0x110] sm:$0xff] }
 0x5fe   : > { %12578 = vmatprep.subr.bf16.mxu1 %v18163_v52  ;;  %v18269_v46 = vld [vmem:[#allocation53_spill] sm:$0xff] }
 0x603   : > { %11449 = vmatpush3.bf16.xpose.msra.mxu0 %v8280_v28  ;;  %v8024_v28 = vpack.c.bf16 %v18256_v45, %v16314_v50 }
 0x604   : > { %12766 = vmatprep.subr.msk.bf16.mxu0 %vm4160_vm2, %v8025_v32  ;;  %v8016_v32 = vpack.c.bf16 %v7970_v10, %v7969_v34  ;;  %v18263_v10 = vld [vmem:[#allocation26_spill] sm:$0xff] }
 0x605   : > { %12579 = vmatpush3.bf16.xpose.msra.mxu1 %v8337_v22  ;;  %v18257_v22 = vld [vmem:[#allocation39_spill] sm:$0xff] }
 0x606   : > { %12580 = vmatprep.subr.bf16.mxu1 %v18163_v52  ;;  %v8274_v9 = vsel %vm4160_vm2, %v8016_v32, 0  ;;  %v8035_v47 = vpack.c.bf16 %v18258_v55, %v18257_v22  ;;  %v8496_v22 = vpack.c.bf16 %v16592_v62, %v16592_v62  ;;  %v18282_v55 = vld [vmem:[#allocation7_spill] sm:$0xff]  ;;  %v18283_v62 = vld [vmem:[#allocation56_spill] sm:$0xff] }
 0x60b   : > { %11451 = vmatpush3.bf16.xpose.msra.mxu0 %v8277_v63  ;;  %v8331_v63 = vsel %vm4160_vm2, %v8035_v47, 0 }
 0x60c   : > { %12767 = vmatprep.subr.msk.bf16.mxu0 %vm4160_vm2, %v8024_v28  ;;  %v18261_v28 = vld [vmem:[#allocation49_spill] sm:$0xff] }
 0x60d   : > { %12581 = vmatpush3.bf16.xpose.msra.mxu1 %v8334_v29  ;;  %v8480_v34 = vpack.c.bf16 %v18262_v59, %v18261_v28  ;;  %v18264_v29 = vld [vmem:[#allocation31_spill] sm:$0xff]  ;;  %v18268_v59 = vld [vmem:[#allocation52_spill] sm:$0xff] }
 0x60e   : > { %12582 = vmatprep.subr.bf16.mxu1 %v18163_v52  ;;  %v16783_v32 = vpack.c.bf16 %v18264_v29, %v18263_v10  ;;  %v8479_v33 = vpack.c.bf16 %v18269_v46, %v18268_v59  ;;  %v18273_v10 = vld [vmem:[#allocation70_spill] sm:$0xff]  ;;  %v18274_v59 = vld [vmem:[#allocation33_spill] sm:$0xff] }
 0x60f   : > { %v8524_v47 = vsel %vm4160_vm2, %v8480_v34, 0  ;;  %v18270_v34 = vld [vmem:[#allocation32_spill] sm:$0xff]  ;;  %v18275_v46 = vld [vmem:[#allocation54_spill] sm:$0xff] }
 0x610   : > { %18265 = vst [vmem:[#allocation30_spill] sm:$0xff] %v16783_v32  ;;  %v8328_v28 = vsel %vm4160_vm2, %v16783_v32, 0  ;;  %v16815_v32 = vld [vmem:[#allocation4 + $0x100] sm:$0xff]  ;;  %v8478_v29 = vpack.c.bf16 %v18275_v46, %v18274_v59  ;;  %v18280_v59 = vld [vmem:[#allocation34_spill] sm:$0xff] }
 0x613   : > { %11453 = vmatpush3.bf16.xpose.msra.mxu0 %v8274_v9  ;;  %v18266_v9 = vld [vmem:[#allocation63_spill] sm:$0xff] }
 0x614   : > { %12768 = vmatprep.subr.msk.bf16.mxu0 %vm4160_vm2, %v8488_v57  ;;  %v18267_v57 = vld [vmem:[#allocation15_spill] sm:$0xff] }
 0x615   : > { %12583 = vmatpush3.bf16.xpose.msra.mxu1 %v8331_v63  ;;  %v8487_v63 = vpack.c.bf16 %v18267_v57, %v18266_v9  ;;  %v16807_v9 = vpack.c.bf16 %v18270_v34, %v16800_v14  ;;  %v18272_v57 = vld [vmem:[#allocation59_spill] sm:$0xff]  ;;  %v8002_v34 = vld [vmem:[#allocation4 + $0x108] sm:$0xff] }
 0x616   : > { %12584 = vmatprep.subr.bf16.mxu1 %v18163_v52 }
 0x617   : > { %18271 = vst [vmem:[#allocation90_spill] sm:$0xff] %v16807_v9 }
 0x61a   : > { %11455 = vmatmul.mubr.msk.bf16.vlgmr.msra.gmra.mxu0 %vm4160_vm2, %v16695_v26 }
 0x61b   : > { %11466 = vmatpush3.bf16.xpose.msra.mxu0 %v8524_v47  ;;  %11481 = vmatprep.mubr.msk.bf16.mxu0 %vm4160_vm2, %v16788_v54  ;;  %v8521_v47 = vsel %vm4160_vm2, %v8479_v33, 0  ;;  %v16821_v33 = vpack.c.bf16 %v8002_v34, %v16815_v32 }
 0x61c   : > { %12769 = vmatprep.subr.msk.bf16.mxu0 %vm4160_vm2, %v8487_v63  ;;  %v8486_v63 = vpack.c.bf16 %v18273_v10, %v18272_v57  ;;  %v8518_v57 = vsel %vm4160_vm2, %v8478_v29, 0  ;;  %v18278_v10 = vld [vmem:[#allocation68_spill] sm:$0xff] }
 0x61d   : > { %12585 = vmatpush3.bf16.xpose.msra.mxu1 %v8328_v28  ;;  %v8325_v28 = vsel %vm4160_vm2, %v16807_v9, 0  ;;  %18276 = vst [vmem:[#allocation91_spill] sm:$0xff] %v16821_v33  ;;  %v18279_v9 = vld [vmem:[#allocation47_spill] sm:$0xff] }
 0x61e   : > { %12586 = vmatprep.subr.bf16.mxu1 %v18163_v52  ;;  %v8477_v46 = vpack.c.bf16 %v18280_v59, %v18279_v9 }
 0x620   : > { %v8515_v29 = vsel %vm4160_vm2, %v8477_v46, 0  ;;  %v8495_v46 = vpack.c.bf16 %v16594_v38, %v16605_v4  ;;  %v18287_v38 = vld [vmem:[#allocation6_spill] sm:$0xff] }
 0x623   : > { %11468 = vmatpush3.bf16.xpose.msra.mxu0 %v8521_v47  ;;  %v18277_v47 = vld [vmem:[#allocation10_spill] sm:$0xff] }
 0x624   : > { %12770 = vmatprep.subr.msk.bf16.mxu0 %vm4160_vm2, %v8486_v63  ;;  %v8485_v63 = vpack.c.bf16 %v18278_v10, %v18277_v47  ;;  %v8484_v47 = vpack.c.bf16 %v18282_v55, %v18281_v44 }
 0x625   : > { %12587 = vmatpush3.bf16.xpose.msra.mxu1 %v8325_v28  ;;  %v8322_v28 = vsel %vm4160_vm2, %v16821_v33, 0 }
 0x626   : > { %12588 = vmatprep.subr.bf16.mxu1 %v18163_v52 }
 0x62b   : > { %11470 = vmatpush3.bf16.xpose.msra.mxu0 %v8518_v57  ;;  %v8572_v57 = vsel %vm4160_vm2, %v8496_v22, 0  ;;  %v8569_v22 = vsel %vm4160_vm2, %v8495_v46, 0  ;;  %v8428_v46 = vld [vmem:[#allocation4 + $0x12] sm:$0xff] }
 0x62c   : > { %12771 = vmatprep.subr.msk.bf16.mxu0 %vm4160_vm2, %v8485_v63  ;;  %v12853_v63 = vld [vmem:[#allocation4 + $0x3a] sm:$0xff] }
 0x62d   : > { %12589 = vmatpush3.bf16.xpose.msra.mxu1 %v8322_v28  ;;  %v12854_v28 = vld [vmem:[#allocation4 + $0x32] sm:$0xff] }
 0x62e   : > { %12594 = vmatprep.subr.bf16.mxu1 %v18163_v52  ;;  %v8476_v33 = vpack.c.bf16 %v12853_v63, %v12854_v28  ;;  %v18285_v63 = vld [vmem:[#allocation69_spill] sm:$0xff] }
 0x62f   : > { %v8494_v28 = vpack.c.bf16 %v18285_v63, %v16600_v39  ;;  %v8426_v39 = vld [vmem:[#allocation4 + $0x2] sm:$0xff]  ;;  %v8427_v63 = vld [vmem:[#allocation4 + $0xa] sm:$0xff] }
 0x633   : > { %11472 = vmatpush3.bf16.xpose.msra.mxu0 %v8515_v29  ;;  %v8512_v29 = vsel %vm4160_vm2, %v8476_v33, 0  ;;  %v18286_v33 = vld [vmem:[#allocation36_spill] sm:$0xff] }
 0x634   : > { %12591 = vmatmul.mubr.msk.bf16.vlgmr.msra.gmra.mxu1 %vm4160_vm2, %v16695_v26  ;;  %12772 = vmatprep.subr.msk.bf16.mxu0 %vm4160_vm2, %v8484_v47  ;;  %v18284_v26 = vld [vmem:[#allocation37_spill] sm:$0xff]  ;;  %v12855_v47 = vld [vmem:[#allocation4 + $0x22] sm:$0xff]  ;;  %v8482_v55 = vpack.c.bf16 %v18287_v38, %v18286_v33 }
 0x635   : > { %12595 = vmatpush3.bf16.xpose.msra.mxu1 %v8572_v57  ;;  %12610 = vmatprep.mubr.msk.bf16.mxu1 %vm12870_vm4, %v18163_v52  ;;  %v8483_v44 = vpack.c.bf16 %v18284_v26, %v18283_v62  ;;  %v12856_v57 = vld [vmem:[#allocation4 + $0x2a] sm:$0xff]  ;;  %v18290_v26 = vld [vmem:[#allocation51_spill] sm:$0xff] }
 0x636   : > { %12596 = vmatprep.subr.bf16.mxu1 %v18163_v52  ;;  %v8475_v9 = vpack.c.bf16 %v12856_v57, %v12855_v47  ;;  %v18288_v47 = vld [vmem:[#allocation64_spill] sm:$0xff]  ;;  %v18289_v57 = vld [vmem:[#allocation27_spill] sm:$0xff]  ;;  %v18291_v38 = vld [vmem:[#allocation9_spill] sm:$0xff] }
 0x637   : > { %v8493_v62 = vpack.c.bf16 %v18289_v57, %v18288_v47  ;;  %v8720_v57 = vpack.c.bf16 %v16800_v14, %v8002_v34  ;;  %v18296_v14 = vpack.c.bf16 %v16312_v1, %v18256_v45  ;;  %v18299_v1 = vpack.c.bf16 %v16314_v50, %v16320_v15 }
 0x638   : > { %v8509_v4 = vsel %vm4160_vm2, %v8475_v9, 0  ;;  %v18304_v50 = vpack.c.bf16 %v16426_v43, %v16420_v13  ;;  %v18307_v43 = vpack.c.bf16 %v16384_v24, %v16379_v48  ;;  %v18310_v24 = vpack.c.bf16 %v16377_v23, %v16390_v19 }
 0x639   : > { %v8756_v34 = vsel %vm4160_vm2, %v18296_v14, 0  ;;  %v8753_v45 = vsel %vm4160_vm2, %v18299_v1, 0  ;;  %v18303_v14 = vpack.c.bf16 %v16280_v3, %v16273_v41  ;;  %v18314_v19 = vpack.c.bf16 %v16210_v58, %v16214_v51 }
 0x63a   : > { %v18318_v51 = vpack.c.bf16 %v16449_v40, %v16451_v37  ;;  %v18321_v37 = vld [vmem:[#allocation19_spill] sm:$0xff] }
 0x63b   : > { %11474 = vmatpush3.bf16.xpose.msra.mxu0 %v8512_v29  ;;  %v12857_v29 = vld [vmem:[#allocation4 + $0x1a] sm:$0xff]  ;;  %v8750_v15 = vsel %vm4160_vm2, %v18303_v14, 0  ;;  %v18326_v14 = vld [vmem:[#allocation73_spill] sm:$0xff] }
 0x63c   : > { %12773 = vmatprep.subr.msk.bf16.mxu0 %vm4160_vm2, %v8483_v44  ;;  %v8566_v44 = vsel %vm4160_vm2, %v8494_v28, 0  ;;  %v8473_v28 = vpack.c.bf16 %v8427_v63, %v8426_v39  ;;  %v18295_v39 = vld [vmem:[#allocation38_spill] sm:$0xff] }
 0x63d   : > { %12597 = vmatpush3.bf16.xpose.msra.mxu1 %v8569_v22  ;;  %v8474_v22 = vpack.c.bf16 %v12857_v29, %v8428_v46  ;;  %v18292_v46 = vld [vmem:[#allocation46_spill] sm:$0xff]  ;;  %v18293_v29 = vld [vmem:[#allocation25_spill] sm:$0xff] }
 0x63e   : > { %12598 = vmatprep.subr.bf16.mxu1 %v18163_v52  ;;  %v8492_v47 = vpack.c.bf16 %v18293_v29, %v18292_v46 }
 0x63f   : > { %v8506_v9 = vsel %vm4160_vm2, %v8474_v22, 0 }
 0x640   : > { %v8560_v22 = vsel %vm4160_vm2, %v8492_v47, 0  ;;  %v8719_v47 = vpack.c.bf16 %v16815_v32, %v16682_v56  ;;  %v18300_v56 = vpack.c.bf16 %v16424_v17, %v16428_v60  ;;  %v18305_v17 = vld [vmem:[#allocation40_spill] sm:$0xff] }
 0x643   : > { %11476 = vmatpush3.bf16.xpose.msra.mxu0 %v8509_v4  ;;  %v8481_v4 = vpack.c.bf16 %v18291_v38, %v18290_v26 }
 0x644   : > { %12774 = vmatprep.subr.msk.bf16.mxu0 %vm4160_vm2, %v8482_v55  ;;  %v8563_v55 = vsel %vm4160_vm2, %v8493_v62, 0  ;;  %v18294_v62 = vld [vmem:[#allocation44_spill] sm:$0xff] }
 0x645   : > { %12599 = vmatpush3.bf16.xpose.msra.mxu1 %v8566_v44  ;;  %v8503_v44 = vsel %vm4160_vm2, %v8473_v28, 0  ;;  %v8491_v63 = vpack.c.bf16 %v18295_v39, %v18294_v62 }
 0x646   : > { %12600 = vmatprep.subr.bf16.mxu1 %v18163_v52 }
 0x64b   : > { %11478 = vmatpush3.bf16.xpose.msra.mxu0 %v8506_v9  ;;  %v16880_v9 = vld [vmem:[%s17500_s6 + $0x6] sm:$0x3] }
 0x64c   : > { %12775 = vmatprep.subr.msk.bf16.mxu0 %vm4160_vm2, %v8481_v4  ;;  %v18297_v4 = vld [vmem:[#allocation11_spill] sm:$0xff] }
 0x64d   : > { %12601 = vmatpush3.bf16.xpose.msra.mxu1 %v8563_v55  ;;  %v18298_v55 = vld [vmem:[#allocation48_spill] sm:$0xff] }
 0x64e   : > { %12602 = vmatprep.subr.bf16.mxu1 %v18163_v52  ;;  %v8490_v28 = vpack.c.bf16 %v18298_v55, %v18297_v4 }
 0x650   : > { %v8554_v32 = vsel %vm4160_vm2, %v8490_v28, 0  ;;  %v18311_v28 = vpack.c.bf16 %v16224_v20, %v16226_v11  ;;  %v8738_v20 = vsel %vm4160_vm2, %v18314_v19, 0  ;;  %v18315_v11 = vpack.c.bf16 %v16332_v21, %v16334_v5 }
 0x651   : > { %v18319_v21 = vpack.c.bf16 %v16554_v16, %v16558_v31  ;;  %v8951_v16 = vpack.c.bf16 %v16715_v25, %v18321_v37 }
 0x652   : > { %v8741_v1 = vsel %vm4160_vm2, %v18311_v28, 0  ;;  %v18335_v28 = vld [vmem:[#allocation26_spill] sm:$0xff] }
 0x653   : > { %11480 = vmatpush3.bf16.xpose.msra.mxu0 %v8503_v44  ;;  %v18301_v44 = vld [vmem:[#allocation18_spill] sm:$0xff]  ;;  %v8792_v5 = vsel %vm4160_vm2, %v18319_v21, 0 }
 0x654   : > { %12776 = vmatprep.subr.msk.bf16.mxu0 %vm4160_vm2, %v8720_v57  ;;  %v8557_v57 = vsel %vm4160_vm2, %v8491_v63, 0 }
 0x655   : > { %12603 = vmatpush3.bf16.xpose.msra.mxu1 %v8560_v22  ;;  %v18302_v22 = vld [vmem:[#allocation14_spill] sm:$0xff] }
 0x656   : > { %12604 = vmatprep.subr.bf16.mxu1 %v18163_v52  ;;  %v8489_v63 = vpack.c.bf16 %v18302_v22, %v18301_v44 }
 0x658   : > { %v8551_v60 = vsel %vm4160_vm2, %v8489_v63, 0 }
 0x65a   : > { %11482 = vmatmul.mubr.msk.bf16.vlgmr.msra.gmra.mxu0 %vm4160_vm2, %v16788_v54 }
 0x65b   : > { %11493 = vmatpush3.bf16.xpose.msra.mxu0 %v8756_v34  ;;  %11508 = vmatprep.mubr.msk.bf16.mxu0 %vm4160_vm2, %v16880_v9  ;;  %v8728_v34 = vpack.c.bf16 %v18305_v17, %v18305_v17 }
 0x65c   : > { %12777 = vmatprep.subr.msk.bf16.mxu0 %vm4160_vm2, %v8719_v47  ;;  %v18306_v47 = vpack.c.bf16 %v16271_v35, %v16284_v18  ;;  %v16935_v35 = vld [vmem:[#allocation4 + $0x178] sm:$0xff] }
 0x65d   : > { %12605 = vmatpush3.bf16.xpose.msra.mxu1 %v8557_v57  ;;  %v8804_v3 = vsel %vm4160_vm2, %v8728_v34, 0  ;;  %v18308_v18 = vld [vmem:[#allocation74_spill] sm:$0xff] }
 0x65e   : > { %12606 = vmatprep.subr.bf16.mxu1 %v18163_v52  ;;  %v8747_v41 = vsel %vm4160_vm2, %v18306_v47, 0  ;;  %v8727_v13 = vpack.c.bf16 %v18308_v18, %v16935_v35 }
 0x660   : > { %v8801_v57 = vsel %vm4160_vm2, %v8727_v13, 0 }
 0x663   : > { %11495 = vmatpush3.bf16.xpose.msra.mxu0 %v8753_v45 }
 0x664   : > { %12778 = vmatprep.subr.msk.bf16.mxu0 %vm4160_vm2, %v18300_v56 }
 0x665   : > { %12607 = vmatpush3.bf16.xpose.msra.mxu1 %v8554_v32 }
 0x666   : > { %12608 = vmatprep.subr.bf16.mxu1 %v18163_v52 }
 0x66b   : > { %11497 = vmatpush3.bf16.xpose.msra.mxu0 %v8750_v15  ;;  %v18327_v15 = vld [vmem:[#allocation20_spill] sm:$0xff] }
 0x66c   : > { %12779 = vmatprep.subr.msk.bf16.mxu0 %vm4160_vm2, %v18304_v50  ;;  %v8950_v50 = vpack.c.bf16 %v18327_v15, %v18326_v14 }
 0x66d   : > { %12609 = vmatpush3.bf16.xpose.msra.mxu1 %v8551_v60  ;;  %v18329_v60 = vld [vmem:[#allocation31_spill] sm:$0xff] }
 0x66e   : > { %12614 = vmatprep.subr.bf16.mxu1 %v18163_v52 }
 0x673   : > { %11499 = vmatpush3.bf16.xpose.msra.mxu0 %v8747_v41  ;;  %v18331_v41 = vld [vmem:[#allocation16_spill] sm:$0xff] }
 0x674   : > { %12611 = vmatmul.mubr.msk.bf16.vlgmr.msra.gmra.mxu1 %vm4160_vm2, %v16788_v54  ;;  %12780 = vmatprep.subr.msk.bf16.mxu0 %vm4160_vm2, %v18307_v43  ;;  %v18309_v54 = vpack.c.bf16 %v16232_v53, %v16237_v30  ;;  %v18312_v53 = vpack.c.bf16 %v16341_v8, %v16343_v0  ;;  %v18313_v30 = vpack.c.bf16 %v16579_v7, %v16585_v6  ;;  %v18322_v7 = vld [vmem:[#allocation61_spill] sm:$0xff] }
 0x675   : > { %12615 = vmatpush3.bf16.xpose.msra.mxu1 %v8804_v3  ;;  %12630 = vmatprep.mubr.msk.bf16.mxu1 %vm12870_vm4, %v18163_v52  ;;  %v18316_v0 = vpack.c.bf16 %v16574_v61, %v16576_v2  ;;  %v18317_v6 = vpack.c.bf16 %v16212_v42, %v16216_v36  ;;  %v16991_v42 = vld [vmem:[%s17500_s6 + $0x8] sm:$0x3]  ;;  %v18320_v36 = vpack.c.bf16 %v16304_v12, %v16292_v27  ;;  %v18324_v27 = vld [vmem:[#allocation66_spill] sm:$0xff]  ;;  %v18325_v12 = vld [vmem:[#allocation89_spill] sm:$0xff] }
 0x676   : > { %12616 = vmatprep.subr.bf16.mxu1 %v18163_v52  ;;  %v8744_v48 = vsel %vm4160_vm2, %v18309_v54, 0  ;;  %v8798_v23 = vsel %vm4160_vm2, %v18313_v30, 0  ;;  %v18323_v61 = vpack.c.bf16 %v16556_v49, %v18322_v7  ;;  %v8943_v56 = vpack.c.bf16 %v18325_v12, %v18324_v27  ;;  %v18328_v49 = vld [vmem:[#allocation39_spill] sm:$0xff]  ;;  %v18332_v43 = vld [vmem:[#allocation65_spill] sm:$0xff] }
 0x677   : > { %v8795_v8 = vsel %vm4160_vm2, %v18316_v0, 0  ;;  %v8735_v58 = vsel %vm4160_vm2, %v18317_v6, 0  ;;  %v8988_v40 = vsel %vm4160_vm2, %v18320_v36, 0  ;;  %v18330_v34 = vpack.c.bf16 %v18328_v49, %v18329_v60  ;;  %v18333_v54 = vld [vmem:[#allocation21_spill] sm:$0xff]  ;;  %v18340_v6 = vld [vmem:[#allocation55_spill] sm:$0xff] }
 0x678   : > { %v8789_v2 = vsel %vm4160_vm2, %v18323_v61, 0  ;;  %v8985_v63 = vsel %vm4160_vm2, %v8943_v56, 0  ;;  %v8942_v3 = vpack.c.bf16 %v18332_v43, %v18331_v41  ;;  %v18341_v36 = vld [vmem:[#allocation5_spill] sm:$0xff]  ;;  %v17059_v7 = vld [vmem:[#allocation4 + $0xc1] sm:$0xff]  ;;  %v18346_v41 = vld [vmem:[#allocation78_spill] sm:$0xff] }
 0x679   : > { %v8786_v47 = vsel %vm4160_vm2, %v18330_v34, 0  ;;  %v18342_v61 = vld [vmem:[#allocation75_spill] sm:$0xff] }
 0x67a   : > { %v8982_v13 = vsel %vm4160_vm2, %v8942_v3, 0  ;;  %v17068_v49 = vld [vmem:[#allocation4 + $0x41] sm:$0xff] }
 0x67b   : > { %11501 = vmatpush3.bf16.xpose.msra.mxu0 %v8744_v48  ;;  %v18334_v48 = vld [vmem:[#allocation72_spill] sm:$0xff]  ;;  %v18345_v60 = vld [vmem:[#allocation23_spill] sm:$0xff] }
 0x67c   : > { %12781 = vmatprep.subr.msk.bf16.mxu0 %vm4160_vm2, %v18310_v24  ;;  %v8949_v24 = vpack.c.bf16 %v18334_v48, %v18333_v54  ;;  %v8939_v34 = vpack.c.bf16 %v17068_v49, %v18345_v60  ;;  %v18347_v3 = vld [vmem:[#allocation79_spill] sm:$0xff] }
 0x67d   : > { %12617 = vmatpush3.bf16.xpose.msra.mxu1 %v8801_v57  ;;  %v17029_v57 = vld [vmem:[#allocation4 + $0x61] sm:$0xff] }
 0x67e   : > { %12618 = vmatprep.subr.bf16.mxu1 %v18163_v52  ;;  %v8973_v54 = vsel %vm4160_vm2, %v8939_v34, 0 }
 0x683   : > { %11503 = vmatpush3.bf16.xpose.msra.mxu0 %v8741_v1  ;;  %v18336_v1 = vld [vmem:[#allocation32_spill] sm:$0xff] }
 0x684   : > { %12782 = vmatprep.subr.msk.bf16.mxu0 %vm4160_vm2, %v18312_v53  ;;  %v18337_v53 = vpack.c.bf16 %v18335_v28, %v18336_v1  ;;  %v8892_v1 = vld [vmem:[#allocation4 + $0x29] sm:$0xff] }
 0x685   : > { %12619 = vmatpush3.bf16.xpose.msra.mxu1 %v8798_v23  ;;  %v18338_v23 = vld [vmem:[#allocation22_spill] sm:$0xff] }
 0x686   : > { %12620 = vmatprep.subr.bf16.mxu1 %v18163_v52  ;;  %v8783_v30 = vsel %vm4160_vm2, %v18337_v53, 0  ;;  %v8941_v19 = vpack.c.bf16 %v17029_v57, %v18338_v23 }
 0x68b   : > { %11505 = vmatpush3.bf16.xpose.msra.mxu0 %v8738_v20  ;;  %v17039_v20 = vld [vmem:[#allocation4 + $0xd1] sm:$0xff] }
 0x68c   : > { %12783 = vmatprep.subr.msk.bf16.mxu0 %vm4160_vm2, %v18315_v11  ;;  %v18339_v11 = vld [vmem:[#allocation80_spill] sm:$0xff] }
 0x68d   : > { %12621 = vmatpush3.bf16.xpose.msra.mxu1 %v8795_v8  ;;  %v8960_v0 = vpack.c.bf16 %v18339_v11, %v18339_v11  ;;  %v8979_v8 = vsel %vm4160_vm2, %v8941_v19, 0  ;;  %v17083_v19 = vld [vmem:[#allocation4 + $0x99] sm:$0xff] }
 0x68e   : > { %12622 = vmatprep.subr.bf16.mxu1 %v18163_v52 }
 0x68f   : > { %v9036_v21 = vsel %vm4160_vm2, %v8960_v0, 0  ;;  %v18349_v0 = vld [vmem:[#allocation81_spill] sm:$0xff] }
 0x693   : > { %11507 = vmatpush3.bf16.xpose.msra.mxu0 %v8735_v58  ;;  %v8948_v58 = vpack.c.bf16 %v17039_v20, %v18340_v6 }
 0x694   : > { %12784 = vmatprep.subr.msk.bf16.mxu0 %vm4160_vm2, %v18318_v51  ;;  %v17046_v51 = vld [vmem:[#allocation4 + $0x51] sm:$0xff] }
 0x695   : > { %12623 = vmatpush3.bf16.xpose.msra.mxu1 %v8792_v5 }
 0x696   : > { %12624 = vmatprep.subr.bf16.mxu1 %v18163_v52 }
 0x69a   : > { %11509 = vmatmul.mubr.msk.bf16.vlgmr.msra.gmra.mxu0 %vm4160_vm2, %v16880_v9  ;;  %v17001_v31 = vpop.f32.mrf.mxu0 }
 0x69b   : > { %11520 = vmatpush3.bf16.xpose.msra.mxu0 %v8988_v40  ;;  %11535 = vmatprep.mubr.msk.bf16.mxu0 %vm4160_vm2, %v16991_v42  ;;  %v8940_v40 = vpack.c.bf16 %v17046_v51, %v18341_v36 }
 0x69c   : > { %12785 = vmatprep.subr.msk.bf16.mxu0 %vm4160_vm2, %v8951_v16  ;;  %v17010_v45 = vpop.f32.mrf.mxu0 }
 0x69d   : > { %12625 = vmatpush3.bf16.xpose.msra.mxu1 %v8789_v2  ;;  %v8976_v56 = vsel %vm4160_vm2, %v8940_v40, 0  ;;  %v8891_v40 = vld [vmem:[#allocation4 + $0x21] sm:$0xff] }
 0x69e   : > { %12626 = vmatprep.subr.bf16.mxu1 %v18163_v52  ;;  %v8227_v25 = vpop.f32.mrf.mxu0 }
 0x69f   : > { %v18344_v25 = vld [vmem:[#allocation57_spill] sm:$0xff] }
 0x6a0   : > { %v8228_v32 = vpop.f32.mrf.mxu0 }
 0x6a1   : > { %v8947_v32 = vpack.c.bf16 %v17059_v7, %v18344_v25  ;;  %v18352_v25 = vld [vmem:[#allocation82_spill] sm:$0xff] }
 0x6a3   : > { %11522 = vmatpush3.bf16.xpose.msra.mxu0 %v8985_v63 }
 0x6a4   : > { %12786 = vmatprep.subr.msk.bf16.mxu0 %vm4160_vm2, %v8950_v50 }
 0x6a5   : > { %12627 = vmatpush3.bf16.xpose.msra.mxu1 %v8786_v47  ;;  %v17073_v47 = vld [vmem:[#allocation4 + $0xb1] sm:$0xff] }
 0x6a6   : > { %12628 = vmatprep.subr.bf16.mxu1 %v18163_v52 }
 0x6ab   : > { %11524 = vmatpush3.bf16.xpose.msra.mxu0 %v8982_v13  ;;  %v8958_v13 = vpack.c.bf16 %v18347_v3, %v18346_v41 }
 0x6ac   : > { %12787 = vmatprep.subr.msk.bf16.mxu0 %vm4160_vm2, %v8949_v24  ;;  %v12858_v24 = vld [vmem:[#allocation4 + $0xa9] sm:$0xff] }
 0x6ad   : > { %12629 = vmatpush3.bf16.xpose.msra.mxu1 %v8783_v30  ;;  %v8946_v28 = vpack.c.bf16 %v17073_v47, %v12858_v24  ;;  %v9030_v53 = vsel %vm4160_vm2, %v8958_v13, 0  ;;  %v18348_v30 = vld [vmem:[#allocation24_spill] sm:$0xff] }
 0x6ae   : > { %12634 = vmatprep.subr.bf16.mxu1 %v18163_v52  ;;  %v8938_v23 = vpack.c.bf16 %v18348_v30, %v8892_v1  ;;  %v18354_v13 = vld [vmem:[#allocation84_spill] sm:$0xff] }
 0x6b3   : > { %11526 = vmatpush3.bf16.xpose.msra.mxu0 %v8979_v8  ;;  %v18350_v8 = vld [vmem:[#allocation77_spill] sm:$0xff] }
 0x6b4   : > { %12631 = vmatmul.mubr.msk.bf16.vlgmr.msra.gmra.mxu1 %vm4160_vm2, %v16880_v9  ;;  %12788 = vmatprep.subr.msk.bf16.mxu0 %vm4160_vm2, %v8948_v58  ;;  %v17052_v5 = vpop.f32.mrf.mxu1  ;;  %v18343_v9 = vld [vmem:[#allocation76_spill] sm:$0xff]  ;;  %v8957_v6 = vpack.c.bf16 %v18350_v8, %v18349_v0  ;;  %v8970_v58 = vsel %vm4160_vm2, %v8938_v23, 0 }
 0x6b5   : > { %12635 = vmatpush3.bf16.xpose.msra.mxu1 %v9036_v21  ;;  %12650 = vmatprep.mubr.msk.bf16.mxu1 %vm12870_vm4, %v18163_v52  ;;  %v8959_v2 = vpack.c.bf16 %v18343_v9, %v18342_v61  ;;  %v12859_v21 = vld [vmem:[#allocation4 + $0xa1] sm:$0xff] }
 0x6b6   : > { %12636 = vmatprep.subr.bf16.mxu1 %v18163_v52  ;;  %v12572_v16 = vpop.f32.mrf.mxu1  ;;  %v8945_v36 = vpack.c.bf16 %v12859_v21, %v17083_v19 }
 0x6b7   : > { %v9033_v50 = vsel %vm4160_vm2, %v8959_v2, 0  ;;  %v9027_v16 = vsel %vm4160_vm2, %v8957_v6, 0  ;;  %v8890_v2 = vld [vmem:[#allocation4 + $0x19] sm:$0xff]  ;;  %v18357_v6 = vld [vmem:[#allocation12_spill] sm:$0xff] }
 0x6b8   : > { %v8267_v12 = vpop.f32.mrf.mxu1 }
 0x6b9   : > { %v8937_v12 = vpack.c.bf16 %v8891_v40, %v8890_v2  ;;  %v18361_v2 = vld [vmem:[#allocation28_spill] sm:$0xff] }
 0x6ba   : > { %v12573_v63 = vpop.f32.mrf.mxu1 }
 0x6bb   : > { %11528 = vmatpush3.bf16.xpose.msra.mxu0 %v8976_v56  ;;  %v18351_v56 = vld [vmem:[#allocation85_spill] sm:$0xff]  ;;  %v8967_v63 = vsel %vm4160_vm2, %v8937_v12, 0  ;;  %v18362_v12 = vpack.c.bf16 %v18290_v26, %v18361_v2  ;;  %v18374_v2 = vld [vmem:[#allocation52_spill] sm:$0xff] }
 0x6bc   : > { %12789 = vmatprep.subr.msk.bf16.mxu0 %vm4160_vm2, %v8947_v32  ;;  %v8956_v32 = vpack.c.bf16 %v18352_v25, %v18351_v56  ;;  %v18368_v26 = vld [vmem:[#allocation53_spill] sm:$0xff] }
 0x6bd   : > { %12637 = vmatpush3.bf16.xpose.msra.mxu1 %v9033_v50  ;;  %v18353_v50 = vpack.c.bf16 %v18297_v4, %v18302_v22  ;;  %v18356_v4 = vpack.c.bf16 %v18286_v33, %v18291_v38  ;;  %v18359_v33 = vld [vmem:[#allocation8_spill] sm:$0xff] }
 0x6be   : > { %12638 = vmatprep.subr.bf16.mxu1 %v18163_v52  ;;  %v9024_v34 = vsel %vm4160_vm2, %v8956_v32, 0  ;;  %v18363_v32 = vld [vmem:[#allocation13_spill] sm:$0xff] }
 0x6bf   : > { %v9220_v22 = vsel %vm4160_vm2, %v18356_v4, 0  ;;  %v18367_v4 = vld [vmem:[#allocation49_spill] sm:$0xff] }
 0x6c3   : > { %11530 = vmatpush3.bf16.xpose.msra.mxu0 %v8973_v54  ;;  %v18355_v54 = vld [vmem:[#allocation83_spill] sm:$0xff] }
 0x6c4   : > { %12790 = vmatprep.subr.msk.bf16.mxu0 %vm4160_vm2, %v8946_v28  ;;  %v8955_v24 = vpack.c.bf16 %v18355_v54, %v18354_v13  ;;  %v17106_v28 = vld [vmem:[%s17500_s6 + $0xa] sm:$0x3] }
 0x6c5   : > { %12639 = vmatpush3.bf16.xpose.msra.mxu1 %v9030_v53 }
 0x6c6   : > { %12640 = vmatprep.subr.bf16.mxu1 %v18163_v52  ;;  %v9021_v21 = vsel %vm4160_vm2, %v8955_v24, 0  ;;  %v18366_v24 = vld [vmem:[#allocation29_spill] sm:$0xff] }
 0x6cb   : > { %11532 = vmatpush3.bf16.xpose.msra.mxu0 %v8970_v58  ;;  %v18358_v58 = vpack.c.bf16 %v18301_v44, %v18357_v6  ;;  %v9217_v44 = vsel %vm4160_vm2, %v18362_v12, 0  ;;  %v18370_v6 = vld [vmem:[#allocation63_spill] sm:$0xff]  ;;  %v18375_v12 = vld [vmem:[#allocation54_spill] sm:$0xff] }
 0x6cc   : > { %12791 = vmatprep.subr.msk.bf16.mxu0 %vm4160_vm2, %v8945_v36 }
 0x6cd   : > { %12641 = vmatpush3.bf16.xpose.msra.mxu1 %v9027_v16 }
 0x6ce   : > { %12642 = vmatprep.subr.bf16.mxu1 %v18163_v52 }
 0x6d3   : > { %11534 = vmatpush3.bf16.xpose.msra.mxu0 %v8967_v63  ;;  %v18364_v63 = vld [vmem:[#allocation15_spill] sm:$0xff] }
 0x6d4   : > { %12792 = vmatprep.subr.msk.bf16.mxu0 %vm4160_vm2, %v18353_v50  ;;  %v18365_v50 = vpack.c.bf16 %v18363_v32, %v18364_v63 }
 0x6d5   : > { %12643 = vmatpush3.bf16.xpose.msra.mxu1 %v9024_v34  ;;  %v17140_v34 = vld [vmem:[#allocation4 + $0x119] sm:$0xff] }
 0x6d6   : > { %12644 = vmatprep.subr.bf16.mxu1 %v18163_v52 }
 0x6da   : > { %v8379_v1 = vpop.f32.mrf.mxu0  ;;  %11536 = vmatmul.mubr.msk.bf16.vlgmr.msra.gmra.mxu0 %vm4160_vm2, %v16991_v42 }
 0x6db   : > { %v17115_v53 = vadd.f32 %v8379_v1, %v17001_v31  ;;  %11547 = vmatpush3.bf16.xpose.msra.mxu0 %v9220_v22  ;;  %11562 = vmatprep.mubr.msk.bf16.mxu0 %vm4160_vm2, %v17106_v28  ;;  %v18360_v31 = vld [vmem:[#allocation86_spill] sm:$0xff]  ;;  %v8953_v1 = vpack.c.bf16 %v18366_v24, %v17140_v34  ;;  %v18369_v22 = vpack.c.bf16 %v18367_v4, %v18368_v26 }
 0x6dc   : > { %v8381_v23 = vpop.f32.mrf.mxu0  ;;  %12793 = vmatprep.subr.msk.bf16.mxu0 %vm4160_vm2, %v18358_v58  ;;  %v8954_v40 = vpack.c.bf16 %v18360_v31, %v18359_v33  ;;  %v18371_v58 = vld [vmem:[#allocation70_spill] sm:$0xff] }
 0x6dd   : > { %v17125_v36 = vadd.f32 %v8381_v23, %v17010_v45  ;;  %12645 = vmatpush3.bf16.xpose.msra.mxu1 %v9021_v21  ;;  %v9214_v23 = vsel %vm4160_vm2, %v18369_v22, 0  ;;  %v18372_v21 = vpack.c.bf16 %v18370_v6, %v18371_v58  ;;  %v17170_v26 = vld [vmem:[#allocation4 + $0x17a] sm:$0xff]  ;;  %v18380_v6 = vld [vmem:[#allocation33_spill] sm:$0xff] }
 0x6de   : > { %12646 = vmatprep.subr.bf16.mxu1 %v18163_v52  ;;  %v8383_v38 = vpop.f32.mrf.mxu0  ;;  %v9018_v45 = vsel %vm4160_vm2, %v8954_v40, 0  ;;  %v18373_v40 = vld [vmem:[#allocation88_spill] sm:$0xff]  ;;  %v18381_v58 = vpack.c.bf16 %v18380_v6, %v18280_v59  ;;  %v18388_v59 = vld [vmem:[#allocation35_spill] sm:$0xff] }
 0x6df   : > { %v9015_v38 = vsel %vm4160_vm2, %v8953_v1, 0 }
 0x6e0   : > { %v8384_v16 = vpop.f32.mrf.mxu0 }
 0x6e1   : > { %v9192_v16 = vpack.c.bf16 %v18373_v40, %v18373_v40 }
 0x6e3   : > { %11549 = vmatpush3.bf16.xpose.msra.mxu0 %v9217_v44  ;;  %v18376_v44 = vpack.c.bf16 %v18374_v2, %v18375_v12  ;;  %v9268_v1 = vsel %vm4160_vm2, %v9192_v16, 0  ;;  %v18383_v16 = vld [vmem:[#allocation7_spill] sm:$0xff] }
 0x6e4   : > { %12794 = vmatprep.subr.msk.bf16.mxu0 %vm4160_vm2, %v18365_v50  ;;  %v18377_v50 = vld [vmem:[#allocation59_spill] sm:$0xff] }
 0x6e5   : > { %12647 = vmatpush3.bf16.xpose.msra.mxu1 %v9018_v45  ;;  %v9211_v32 = vsel %vm4160_vm2, %v18376_v44, 0  ;;  %v18378_v45 = vpack.c.bf16 %v18377_v50, %v18278_v10  ;;  %v18385_v44 = vld [vmem:[#allocation47_spill] sm:$0xff] }
 0x6e6   : > { %12648 = vmatprep.subr.bf16.mxu1 %v18163_v52 }
 0x6eb   : > { %11551 = vmatpush3.bf16.xpose.msra.mxu0 %v9214_v23 }
 0x6ec   : > { %12795 = vmatprep.subr.msk.bf16.mxu0 %vm4160_vm2, %v18372_v21  ;;  %v9208_v21 = vsel %vm4160_vm2, %v18381_v58, 0 }
 0x6ed   : > { %12649 = vmatpush3.bf16.xpose.msra.mxu1 %v9015_v38  ;;  %v18382_v38 = vld [vmem:[#allocation10_spill] sm:$0xff] }
 0x6ee   : > { %12654 = vmatprep.subr.bf16.mxu1 %v18163_v52  ;;  %v18384_v2 = vpack.c.bf16 %v18382_v38, %v18383_v16  ;;  %v18397_v16 = vld [vmem:[#allocation56_spill] sm:$0xff] }
 0x6f3   : > { %11553 = vmatpush3.bf16.xpose.msra.mxu0 %v9211_v32  ;;  %v18386_v32 = vld [vmem:[#allocation43_spill] sm:$0xff] }
 0x6f4   : > { %v8420_v63 = vpop.f32.mrf.mxu1  ;;  %12651 = vmatmul.mubr.msk.bf16.vlgmr.msra.gmra.mxu1 %vm4160_vm2, %v16991_v42  ;;  %12796 = vmatprep.subr.msk.bf16.mxu0 %vm4160_vm2, %v18378_v45  ;;  %v18379_v42 = vld [vmem:[#allocation87_spill] sm:$0xff]  ;;  %v18389_v45 = vld [vmem:[#allocation37_spill] sm:$0xff] }
 0x6f5   : > { %v17168_v4 = vadd.f32 %v8420_v63, %v17052_v5  ;;  %12655 = vmatpush3.bf16.xpose.msra.mxu1 %v9268_v1  ;;  %12670 = vmatprep.mubr.msk.bf16.mxu1 %vm12870_vm4, %v18163_v52  ;;  %v9191_v23 = vpack.c.bf16 %v18379_v42, %v17170_v26  ;;  %v18387_v63 = vpack.c.bf16 %v18385_v44, %v18386_v32  ;;  %v18400_v44 = vld [vmem:[#allocation17_spill] sm:$0xff] }
 0x6f6   : > { %12656 = vmatprep.subr.bf16.mxu1 %v18163_v52  ;;  %v12592_v22 = vpop.f32.mrf.mxu1  ;;  %v18390_v1 = vpack.c.bf16 %v18388_v59, %v18389_v45  ;;  %v18401_v32 = vld [vmem:[#allocation69_spill] sm:$0xff]  ;;  %v18403_v59 = vld [vmem:[#allocation42_spill] sm:$0xff] }
 0x6f7   : > { %v9265_v12 = vsel %vm4160_vm2, %v9191_v23, 0  ;;  %v9205_v50 = vsel %vm4160_vm2, %v18387_v63, 0  ;;  %v18391_v22 = vld [vmem:[#allocation60_spill] sm:$0xff]  ;;  %v18394_v23 = vld [vmem:[#allocation45_spill] sm:$0xff]  ;;  %v18402_v63 = vpack.c.bf16 %v18400_v44, %v18401_v32 }
 0x6f8   : > { %v8423_v10 = vpop.f32.mrf.mxu1  ;;  %v18404_v45 = vld [vmem:[#allocation41_spill] sm:$0xff] }
 0x6f9   : > { %v18392_v10 = vld [vmem:[#allocation67_spill] sm:$0xff] }
 0x6fa   : > { %v12593_v5 = vpop.f32.mrf.mxu1  ;;  %v18393_v6 = vpack.c.bf16 %v18391_v22, %v18392_v10  ;;  %v9368_v10 = vld [vmem:[#allocation4 + $0xa0] sm:$0xff] }
 0x6fb   : > { %11555 = vmatpush3.bf16.xpose.msra.mxu0 %v9208_v21  ;;  %v18395_v21 = vld [vmem:[#allocation50_spill] sm:$0xff] }
 0x6fc   : > { %12797 = vmatprep.subr.msk.bf16.mxu0 %vm4160_vm2, %v18384_v2  ;;  %v9262_v58 = vsel %vm4160_vm2, %v18393_v6, 0  ;;  %v18396_v5 = vpack.c.bf16 %v18394_v23, %v18395_v21  ;;  %v18398_v2 = vld [vmem:[#allocation6_spill] sm:$0xff]  ;;  %v18408_v23 = vld [vmem:[#allocation27_spill] sm:$0xff] }
 0x6fd   : > { %12657 = vmatpush3.bf16.xpose.msra.mxu1 %v9265_v12  ;;  %v18399_v12 = vpack.c.bf16 %v18397_v16, %v18398_v2  ;;  %v18406_v6 = vld [vmem:[#allocation30_spill] sm:$0xff]  ;;  %v17227_v2 = vld [vmem:[%s17500_s6 + $0xc] sm:$0x3] }
 0x6fe   : > { %12658 = vmatprep.subr.bf16.mxu1 %v18163_v52  ;;  %v9202_v38 = vsel %vm4160_vm2, %v18396_v5, 0 }
 0x703   : > { %11557 = vmatpush3.bf16.xpose.msra.mxu0 %v9205_v50  ;;  %v9259_v50 = vsel %vm4160_vm2, %v18402_v63, 0  ;;  %v9367_v63 = vld [vmem:[#allocation4 + $0x98] sm:$0xff] }
 0x704   : > { %12798 = vmatprep.subr.msk.bf16.mxu0 %vm4160_vm2, %v18390_v1  ;;  %v18405_v1 = vpack.c.bf16 %v18403_v59, %v18404_v45  ;;  %v18410_v59 = vld [vmem:[#allocation90_spill] sm:$0xff]  ;;  %v18411_v45 = vld [vmem:[#allocation64_spill] sm:$0xff] }
 0x705   : > { %12659 = vmatpush3.bf16.xpose.msra.mxu1 %v9262_v58  ;;  %v18407_v58 = vld [vmem:[#allocation71_spill] sm:$0xff] }
 0x706   : > { %12660 = vmatprep.subr.bf16.mxu1 %v18163_v52  ;;  %v9199_v22 = vsel %vm4160_vm2, %v18405_v1, 0  ;;  %v18409_v21 = vpack.c.bf16 %v18407_v58, %v18408_v23  ;;  %v18412_v1 = vpack.c.bf16 %v18411_v45, %v18293_v29  ;;  %v18414_v29 = vpack.c.bf16 %v18292_v46, %v18295_v39  ;;  %v9363_v45 = vld [vmem:[#allocation4 + $0x78] sm:$0xff]  ;;  %v9362_v39 = vld [vmem:[#allocation4 + $0x70] sm:$0xff] }
 0x708   : > { %v9256_v5 = vsel %vm4160_vm2, %v18409_v21, 0 }
 0x70b   : > { %11559 = vmatpush3.bf16.xpose.msra.mxu0 %v9202_v38  ;;  %v9369_v38 = vld [vmem:[#allocation4 + $0xa8] sm:$0xff] }
 0x70c   : > { %12799 = vmatprep.subr.msk.bf16.mxu0 %vm4160_vm2, %v18399_v12  ;;  %v9408_v16 = vpack.c.bf16 %v9369_v38, %v9368_v10  ;;  %v9365_v38 = vld [vmem:[#allocation4 + $0x88] sm:$0xff] }
 0x70d   : > { %12661 = vmatpush3.bf16.xpose.msra.mxu1 %v9259_v50 }
 0x70e   : > { %12662 = vmatprep.subr.bf16.mxu1 %v18163_v52  ;;  %v9452_v44 = vsel %vm4160_vm2, %v9408_v16, 0  ;;  %v18413_v16 = vld [vmem:[#allocation91_spill] sm:$0xff] }
 0x713   : > { %11561 = vmatpush3.bf16.xpose.msra.mxu0 %v9199_v22  ;;  %v9253_v22 = vsel %vm4160_vm2, %v18412_v1, 0  ;;  %v9400_v1 = vld [vmem:[#allocation4 + $0x1a0] sm:$0xff] }
 0x714   : > { %12800 = vmatprep.subr.msk.bf16.mxu0 %vm4160_vm2, %v18406_v6 }
 0x715   : > { %12663 = vmatpush3.bf16.xpose.msra.mxu1 %v9256_v5  ;;  %v9364_v5 = vld [vmem:[#allocation4 + $0x80] sm:$0xff] }
 0x716   : > { %12664 = vmatprep.subr.bf16.mxu1 %v18163_v52 }
 0x71a   : > { %v8608_v12 = vpop.f32.mrf.mxu0  ;;  %11563 = vmatmul.mubr.msk.bf16.vlgmr.msra.gmra.mxu0 %vm4160_vm2, %v17106_v28 }
 0x71b   : > { %v17233_v32 = vadd.f32 %v8608_v12, %v17115_v53  ;;  %11574 = vmatpush3.bf16.xpose.msra.mxu0 %v9452_v44  ;;  %11589 = vmatprep.mubr.msk.bf16.mxu0 %vm4160_vm2, %v17227_v2  ;;  %v9366_v53 = vld [vmem:[#allocation4 + $0x90] sm:$0xff]  ;;  %v9406_v12 = vpack.c.bf16 %v9365_v38, %v9364_v5  ;;  %v9379_v44 = vld [vmem:[#allocation4 + $0xf8] sm:$0xff] }
 0x71c   : > { %v8610_v50 = vpop.f32.mrf.mxu0  ;;  %12801 = vmatprep.subr.msk.bf16.mxu0 %vm4160_vm2, %v18410_v59  ;;  %v9407_v6 = vpack.c.bf16 %v9367_v63, %v9366_v53  ;;  %v9378_v63 = vld [vmem:[#allocation4 + $0xf0] sm:$0xff]  ;;  %v9405_v53 = vpack.c.bf16 %v9363_v45, %v9362_v39  ;;  %v9359_v39 = vld [vmem:[#allocation4 + $0x58] sm:$0xff] }
 0x71d   : > { %v17244_v10 = vadd.f32 %v8610_v50, %v17125_v36  ;;  %12665 = vmatpush3.bf16.xpose.msra.mxu1 %v9253_v22  ;;  %v9250_v36 = vsel %vm4160_vm2, %v18414_v29, 0  ;;  %v9446_v50 = vsel %vm4160_vm2, %v9406_v12, 0  ;;  %v9413_v59 = vpack.c.bf16 %v9379_v44, %v9378_v63  ;;  %v9361_v29 = vld [vmem:[#allocation4 + $0x68] sm:$0xff]  ;;  %v9399_v12 = vld [vmem:[#allocation4 + $0x198] sm:$0xff] }
 0x71e   : > { %12666 = vmatprep.subr.bf16.mxu1 %v18163_v52  ;;  %v8612_v58 = vpop.f32.mrf.mxu0  ;;  %v9449_v21 = vsel %vm4160_vm2, %v9407_v6, 0  ;;  %v18415_v22 = vpack.c.bf16 %v18294_v62, %v18298_v55  ;;  %v9424_v6 = vpack.c.bf16 %v9400_v1, %v9400_v1  ;;  %v9398_v55 = vld [vmem:[#allocation4 + $0x190] sm:$0xff] }
 0x71f   : > { %v9376_v58 = vld [vmem:[#allocation4 + $0xe0] sm:$0xff]  ;;  %v9374_v1 = vld [vmem:[#allocation4 + $0xd0] sm:$0xff] }
 0x720   : > { %v8613_v23 = vpop.f32.mrf.mxu0  ;;  %v9247_v46 = vsel %vm4160_vm2, %v18415_v22, 0  ;;  %v9500_v38 = vsel %vm4160_vm2, %v9424_v6, 0 }
 0x721   : > { %v9377_v23 = vld [vmem:[#allocation4 + $0xe8] sm:$0xff] }
 0x722   : > { %v9412_v5 = vpack.c.bf16 %v9377_v23, %v9376_v58  ;;  %v9372_v58 = vld [vmem:[#allocation4 + $0xc0] sm:$0xff]  ;;  %v9373_v23 = vld [vmem:[#allocation4 + $0xc8] sm:$0xff] }
 0x723   : > { %11576 = vmatpush3.bf16.xpose.msra.mxu0 %v9449_v21  ;;  %v9443_v21 = vsel %vm4160_vm2, %v9405_v53, 0 }
 0x724   : > { %12802 = vmatprep.subr.msk.bf16.mxu0 %vm4160_vm2, %v18413_v16  ;;  %v9360_v16 = vld [vmem:[#allocation4 + $0x60] sm:$0xff] }
 0x725   : > { %12667 = vmatpush3.bf16.xpose.msra.mxu1 %v9250_v36  ;;  %v9404_v44 = vpack.c.bf16 %v9361_v29, %v9360_v16  ;;  %v18416_v16 = vpack.c.bf16 %v18305_v17, %v18308_v18  ;;  %v9354_v18 = vld [vmem:[#allocation4 + $0x30] sm:$0xff] }
 0x726   : > { %12668 = vmatprep.subr.bf16.mxu1 %v18163_v52 }
 0x727   : > { %v9494_v29 = vsel %vm4160_vm2, %v18416_v16, 0 }
 0x72b   : > { %11578 = vmatpush3.bf16.xpose.msra.mxu0 %v9446_v50  ;;  %v9375_v50 = vld [vmem:[#allocation4 + $0xd8] sm:$0xff] }
 0x72c   : > { %12803 = vmatprep.subr.msk.bf16.mxu0 %vm4160_vm2, %v9413_v59  ;;  %v9423_v59 = vpack.c.bf16 %v9399_v12, %v9398_v55  ;;  %v9411_v22 = vpack.c.bf16 %v9375_v50, %v9374_v1  ;;  %v9394_v55 = vld [vmem:[#allocation4 + $0x170] sm:$0xff]  ;;  %v9355_v1 = vld [vmem:[#allocation4 + $0x38] sm:$0xff] }
 0x72d   : > { %12669 = vmatpush3.bf16.xpose.msra.mxu1 %v9247_v46  ;;  %v9421_v50 = vpack.c.bf16 %v16935_v35, %v9394_v55  ;;  %v18417_v35 = vpack.c.bf16 %v18359_v33, %v18366_v24  ;;  %v18418_v33 = vld [vmem:[#allocation62_spill] sm:$0xff] }
 0x72e   : > { %12674 = vmatprep.subr.bf16.mxu1 %v18163_v52  ;;  %v9497_v53 = vsel %vm4160_vm2, %v9423_v59, 0  ;;  %v18419_v24 = vld [vmem:[#allocation58_spill] sm:$0xff] }
 0x72f   : > { %v9491_v17 = vsel %vm4160_vm2, %v9421_v50, 0  ;;  %v18420_v16 = vpack.c.bf16 %v18418_v33, %v18419_v24  ;;  %v9598_v50 = vld [vmem:[#allocation4 + $0x91] sm:$0xff]  ;;  %v18422_v24 = vpack.c.bf16 %v18324_v27, %v18332_v43  ;;  %v9593_v27 = vld [vmem:[#allocation4 + $0x69] sm:$0xff] }
 0x730   : > { %v9636_v43 = vpack.c.bf16 %v9593_v27, %v17029_v57  ;;  %v9845_v27 = vld [vmem:[#allocation4 + $0x10a] sm:$0xff] }
 0x733   : > { %11580 = vmatpush3.bf16.xpose.msra.mxu0 %v9443_v21 }
 0x734   : > { %v8649_v36 = vpop.f32.mrf.mxu1  ;;  %12671 = vmatmul.mubr.msk.bf16.vlgmr.msra.gmra.mxu1 %vm4160_vm2, %v17106_v28  ;;  %12804 = vmatprep.subr.msk.bf16.mxu0 %vm4160_vm2, %v9412_v5  ;;  %v9440_v28 = vsel %vm4160_vm2, %v9404_v44, 0  ;;  %v9410_v5 = vpack.c.bf16 %v9373_v23, %v9372_v58  ;;  %v9370_v44 = vld [vmem:[#allocation4 + $0xb0] sm:$0xff] }
 0x735   : > { %v17268_v62 = vadd.f32 %v8649_v36, %v17168_v4  ;;  %12675 = vmatpush3.bf16.xpose.msra.mxu1 %v9500_v38  ;;  %12690 = vmatprep.mubr.msk.bf16.mxu1 %vm12870_vm4, %v18163_v52  ;;  %v9358_v4 = vld [vmem:[#allocation4 + $0x50] sm:$0xff]  ;;  %v9356_v38 = vld [vmem:[#allocation4 + $0x40] sm:$0xff]  ;;  %v9357_v36 = vld [vmem:[#allocation4 + $0x48] sm:$0xff] }
 0x736   : > { %12676 = vmatprep.subr.bf16.mxu1 %v18163_v52  ;;  %v12612_v63 = vpop.f32.mrf.mxu1  ;;  %v9403_v6 = vpack.c.bf16 %v9359_v39, %v9358_v4  ;;  %v9402_v12 = vpack.c.bf16 %v9357_v36, %v9356_v38  ;;  %v9614_v58 = vld [vmem:[#allocation4 + $0x111] sm:$0xff] }
 0x737   : > { %v9371_v63 = vld [vmem:[#allocation4 + $0xb8] sm:$0xff]  ;;  %v9390_v23 = vld [vmem:[#allocation4 + $0x150] sm:$0xff]  ;;  %v9647_v36 = vpack.c.bf16 %v17140_v34, %v9614_v58  ;;  %v9639_v34 = vpack.c.bf16 %v17083_v19, %v9598_v50 }
 0x738   : > { %v8652_v45 = vpop.f32.mrf.mxu1  ;;  %v9437_v21 = vsel %vm4160_vm2, %v9403_v6, 0  ;;  %v9434_v59 = vsel %vm4160_vm2, %v9402_v12, 0  ;;  %v9391_v6 = vld [vmem:[#allocation4 + $0x158] sm:$0xff] }
 0x739   : > { %v9409_v45 = vpack.c.bf16 %v9371_v63, %v9370_v44 }
 0x73a   : > { %v12613_v46 = vpop.f32.mrf.mxu1 }
 0x73b   : > { %11582 = vmatpush3.bf16.xpose.msra.mxu0 %v9440_v28  ;;  %v9392_v28 = vld [vmem:[#allocation4 + $0x160] sm:$0xff]  ;;  %v9393_v46 = vld [vmem:[#allocation4 + $0x168] sm:$0xff] }
 0x73c   : > { %12805 = vmatprep.subr.msk.bf16.mxu0 %vm4160_vm2, %v9411_v22  ;;  %v9401_v22 = vpack.c.bf16 %v9355_v1, %v9354_v18  ;;  %v9420_v4 = vpack.c.bf16 %v9393_v46, %v9392_v28  ;;  %v9612_v1 = vld [vmem:[#allocation4 + $0x101] sm:$0xff] }
 0x73d   : > { %12677 = vmatpush3.bf16.xpose.msra.mxu1 %v9497_v53 }
 0x73e   : > { %12678 = vmatprep.subr.bf16.mxu1 %v18163_v52  ;;  %v9431_v39 = vsel %vm4160_vm2, %v9401_v22, 0  ;;  %v9488_v53 = vsel %vm4160_vm2, %v9420_v4, 0  ;;  %v9681_v22 = vsel %vm4160_vm2, %v9639_v34, 0  ;;  %v9596_v4 = vld [vmem:[#allocation4 + $0x81] sm:$0xff] }
 0x743   : > { %11584 = vmatpush3.bf16.xpose.msra.mxu0 %v9437_v21  ;;  %v9419_v21 = vpack.c.bf16 %v9391_v6, %v9390_v23  ;;  %v9632_v23 = vld [vmem:[#allocation4 + $0x1a1] sm:$0xff] }
 0x744   : > { %12806 = vmatprep.subr.msk.bf16.mxu0 %vm4160_vm2, %v9410_v5  ;;  %v17299_v5 = vld [vmem:[%s17500_s6 + $0xe] sm:$0x3]  ;;  %v9656_v33 = vpack.c.bf16 %v9632_v23, %v9632_v23 }
 0x745   : > { %12679 = vmatpush3.bf16.xpose.msra.mxu1 %v9494_v29  ;;  %v9684_v29 = vsel %vm4160_vm2, %v18420_v16, 0  ;;  %v9485_v44 = vsel %vm4160_vm2, %v9419_v21, 0  ;;  %v18421_v21 = vpack.c.bf16 %v18321_v37, %v18327_v15  ;;  %v9675_v16 = vsel %vm4160_vm2, %v18422_v24, 0 }
 0x746   : > { %12680 = vmatprep.subr.bf16.mxu1 %v18163_v52  ;;  %v18423_v37 = vpack.c.bf16 %v18326_v14, %v18334_v48  ;;  %v9672_v14 = vsel %vm4160_vm2, %v9636_v43, 0 }
 0x74b   : > { %11586 = vmatpush3.bf16.xpose.msra.mxu0 %v9434_v59  ;;  %v9388_v59 = vld [vmem:[#allocation4 + $0x140] sm:$0xff] }
 0x74c   : > { %12807 = vmatprep.subr.msk.bf16.mxu0 %vm4160_vm2, %v9409_v45  ;;  %v9389_v45 = vld [vmem:[#allocation4 + $0x148] sm:$0xff] }
 0x74d   : > { %12681 = vmatpush3.bf16.xpose.msra.mxu1 %v9491_v17  ;;  %v9613_v17 = vld [vmem:[#allocation4 + $0x109] sm:$0xff]  ;;  %v9418_v18 = vpack.c.bf16 %v9389_v45, %v9388_v59 }
 0x74e   : > { %12682 = vmatprep.subr.bf16.mxu1 %v18163_v52  ;;  %v9646_v46 = vpack.c.bf16 %v9613_v17, %v9612_v1  ;;  %v9605_v1 = vld [vmem:[#allocation4 + $0xc9] sm:$0xff] }
 0x753   : > { %11588 = vmatpush3.bf16.xpose.msra.mxu0 %v9431_v39  ;;  %v9482_v39 = vsel %vm4160_vm2, %v9418_v18, 0  ;;  %v9642_v18 = vpack.c.bf16 %v9605_v1, %v17059_v7  ;;  %v18425_v7 = vpack.c.bf16 %v18342_v61, %v18347_v3  ;;  %v18427_v61 = vpack.c.bf16 %v18346_v41, %v18350_v8  ;;  %v9864_v1 = vld [vmem:[#allocation4 + $0x1a2] sm:$0xff] }
 0x754   : > { %12808 = vmatprep.subr.msk.bf16.mxu0 %vm4160_vm2, %v18417_v35  ;;  %v9387_v35 = vld [vmem:[#allocation4 + $0x138] sm:$0xff] }
 0x755   : > { %12683 = vmatpush3.bf16.xpose.msra.mxu1 %v9488_v53  ;;  %v9386_v53 = vld [vmem:[#allocation4 + $0x130] sm:$0xff]  ;;  %v9720_v3 = vsel %vm4160_vm2, %v18427_v61, 0 }
 0x756   : > { %12684 = vmatprep.subr.bf16.mxu1 %v18163_v52  ;;  %v9417_v6 = vpack.c.bf16 %v9387_v35, %v9386_v53  ;;  %v9832_v53 = vld [vmem:[#allocation4 + $0xa2] sm:$0xff]  ;;  %v9838_v61 = vld [vmem:[#allocation4 + $0xd2] sm:$0xff] }
 0x75a   : > { %v8840_v38 = vpop.f32.mrf.mxu0  ;;  %11590 = vmatmul.mubr.msk.bf16.vlgmr.msra.gmra.mxu0 %vm4160_vm2, %v17227_v2 }
 0x75b   : > { %v17309_v55 = vadd.f32 %v8840_v38, %v17233_v32  ;;  %11601 = vmatpush3.bf16.xpose.msra.mxu0 %v9684_v29  ;;  %11616 = vmatprep.mubr.msk.bf16.mxu0 %vm4160_vm2, %v17299_v5  ;;  %v9479_v38 = vsel %vm4160_vm2, %v9417_v6, 0  ;;  %v9732_v29 = vsel %vm4160_vm2, %v9656_v33, 0  ;;  %v9831_v33 = vld [vmem:[#allocation4 + $0x9a] sm:$0xff] }
 0x75c   : > { %v8842_v12 = vpop.f32.mrf.mxu0  ;;  %12809 = vmatprep.subr.msk.bf16.mxu0 %vm4160_vm2, %v9647_v36  ;;  %v9630_v36 = vld [vmem:[#allocation4 + $0x191] sm:$0xff] }
 0x75d   : > { %v17316_v63 = vadd.f32 %v8842_v12, %v17244_v10  ;;  %12685 = vmatpush3.bf16.xpose.msra.mxu1 %v9485_v44  ;;  %v9597_v10 = vld [vmem:[#allocation4 + $0x89] sm:$0xff]  ;;  %v9631_v12 = vld [vmem:[#allocation4 + $0x199] sm:$0xff] }
 0x75e   : > { %12686 = vmatprep.subr.bf16.mxu1 %v18163_v52  ;;  %v8844_v32 = vpop.f32.mrf.mxu0  ;;  %v9638_v19 = vpack.c.bf16 %v9597_v10, %v9596_v4  ;;  %v9655_v50 = vpack.c.bf16 %v9631_v12, %v9630_v36 }
 0x75f   : > { %v9591_v32 = vld [vmem:[#allocation4 + $0x59] sm:$0xff] }
 0x760   : > { %v8845_v28 = vpop.f32.mrf.mxu0  ;;  %v9678_v58 = vsel %vm4160_vm2, %v9638_v19, 0  ;;  %v9635_v57 = vpack.c.bf16 %v9591_v32, %v17046_v51  ;;  %v9603_v51 = vld [vmem:[#allocation4 + $0xb9] sm:$0xff] }
 0x761   : > { %v9589_v28 = vld [vmem:[#allocation4 + $0x49] sm:$0xff]  ;;  %v9641_v10 = vpack.c.bf16 %v9603_v51, %v17073_v47 }
 0x762   : > { %v9669_v17 = vsel %vm4160_vm2, %v9635_v57, 0  ;;  %v9833_v47 = vld [vmem:[#allocation4 + $0xaa] sm:$0xff]  ;;  %v9827_v57 = vld [vmem:[#allocation4 + $0x7a] sm:$0xff] }
 0x763   : > { %11603 = vmatpush3.bf16.xpose.msra.mxu0 %v9681_v22  ;;  %v9872_v6 = vpack.c.bf16 %v9833_v47, %v9832_v53 }
 0x764   : > { %12810 = vmatprep.subr.msk.bf16.mxu0 %vm4160_vm2, %v9646_v46  ;;  %v9634_v46 = vpack.c.bf16 %v9589_v28, %v17068_v49  ;;  %v9849_v49 = vld [vmem:[#allocation4 + $0x12a] sm:$0xff]  ;;  %v9888_v28 = vpack.c.bf16 %v9864_v1, %v9864_v1 }
 0x765   : > { %12687 = vmatpush3.bf16.xpose.msra.mxu1 %v9482_v39  ;;  %v18426_v39 = vpack.c.bf16 %v18345_v60, %v18348_v30  ;;  %v17385_v60 = vld [vmem:[%s17500_s6 + $0x10] sm:$0x3]  ;;  %v9846_v30 = vld [vmem:[#allocation4 + $0x112] sm:$0xff]  ;;  %v9916_v41 = vsel %vm4160_vm2, %v9872_v6, 0  ;;  %v9823_v6 = vld [vmem:[#allocation4 + $0x5a] sm:$0xff] }
 0x766   : > { %12688 = vmatprep.subr.bf16.mxu1 %v18163_v52  ;;  %v9666_v4 = vsel %vm4160_vm2, %v9634_v46, 0 }
 0x767   : > { %v9663_v35 = vsel %vm4160_vm2, %v18426_v39, 0 }
 0x76b   : > { %11605 = vmatpush3.bf16.xpose.msra.mxu0 %v9678_v58  ;;  %v9847_v58 = vld [vmem:[#allocation4 + $0x11a] sm:$0xff] }
 0x76c   : > { %12811 = vmatprep.subr.msk.bf16.mxu0 %vm4160_vm2, %v18421_v21  ;;  %v9879_v8 = vpack.c.bf16 %v9847_v58, %v9846_v30  ;;  %v9822_v58 = vld [vmem:[#allocation4 + $0x52] sm:$0xff] }
 0x76d   : > { %12689 = vmatpush3.bf16.xpose.msra.mxu1 %v9479_v38  ;;  %v9830_v38 = vld [vmem:[#allocation4 + $0x92] sm:$0xff]  ;;  %v9867_v30 = vpack.c.bf16 %v9823_v6, %v9822_v58 }
 0x76e   : > { %12694 = vmatprep.subr.bf16.mxu1 %v18163_v52  ;;  %v9871_v12 = vpack.c.bf16 %v9831_v33, %v9830_v38  ;;  %v9821_v33 = vld [vmem:[#allocation4 + $0x4a] sm:$0xff] }
 0x773   : > { %11607 = vmatpush3.bf16.xpose.msra.mxu0 %v9675_v16  ;;  %v18428_v16 = vpack.c.bf16 %v18349_v0, %v18352_v25  ;;  %v9844_v0 = vld [vmem:[#allocation4 + $0x102] sm:$0xff]  ;;  %v9913_v25 = vsel %vm4160_vm2, %v9871_v12, 0  ;;  %v9835_v12 = vld [vmem:[#allocation4 + $0xba] sm:$0xff] }
 0x774   : > { %v8881_v44 = vpop.f32.mrf.mxu1  ;;  %12691 = vmatmul.mubr.msk.bf16.vlgmr.msra.gmra.mxu1 %vm4160_vm2, %v17227_v2  ;;  %12812 = vmatprep.subr.msk.bf16.mxu0 %vm4160_vm2, %v18423_v37  ;;  %v9607_v2 = vld [vmem:[#allocation4 + $0xd9] sm:$0xff]  ;;  %v12871_v37 = vmov 0  }
 0x775   : > { %v17343_v15 = vadd.f32 %v8881_v44, %v17268_v62  ;;  %12695 = vmatpush3.bf16.xpose.msra.mxu1 %v9732_v29  ;;  %12710 = vmatprep.mubr.msk.bf16.mxu1 %vm12870_vm4, %v18163_v52  ;;  %v9643_v48 = vpack.c.bf16 %v9607_v2, %v17039_v20  ;;  %v9729_v62 = vsel %vm4160_vm2, %v9655_v50, 0  ;;  %v18424_v20 = vpack.c.bf16 %v18339_v11, %v18343_v9  ;;  %v9848_v9 = vld [vmem:[#allocation4 + $0x122] sm:$0xff] }
 0x776   : > { %12696 = vmatprep.subr.bf16.mxu1 %v18163_v52  ;;  %v12632_v59 = vpop.f32.mrf.mxu1  ;;  %v9723_v11 = vsel %vm4160_vm2, %v18425_v7, 0  ;;  %v9880_v19 = vpack.c.bf16 %v9849_v49, %v9848_v9  ;;  %v9717_v29 = vsel %vm4160_vm2, %v18428_v16, 0  ;;  %12852 = vset.pattern.permute.xlu0 %v12871_v37  ;;  %v9878_v50 = vpack.c.bf16 %v9845_v27, %v9844_v0  ;;  %v9862_v7 = vld [vmem:[#allocation4 + $0x192] sm:$0xff]  ;;  %v9825_v9 = vld [vmem:[#allocation4 + $0x6a] sm:$0xff] }
 0x777   : > { %v9726_v22 = vsel %vm4160_vm2, %v18424_v20, 0  ;;  %v18429_v59 = vpack.c.bf16 %v18351_v56, %v18355_v54  ;;  %v18430_v56 = vpack.c.bf16 %v18354_v13, %v18360_v31  ;;  %v9840_v20 = vld [vmem:[#allocation4 + $0xe2] sm:$0xff]  ;;  %v9834_v27 = vld [vmem:[#allocation4 + $0xb2] sm:$0xff] }
 0x778   : > { %v8884_v45 = vpop.f32.mrf.mxu1  ;;  %v9873_v0 = vpack.c.bf16 %v9835_v12, %v9834_v27 }
 0x779   : > { %v9714_v2 = vsel %vm4160_vm2, %v18429_v59, 0  ;;  %v9829_v45 = vld [vmem:[#allocation4 + $0x8a] sm:$0xff]  ;;  %v9711_v54 = vsel %vm4160_vm2, %v18430_v56, 0  ;;  %v9856_v59 = vld [vmem:[#allocation4 + $0x162] sm:$0xff] }
 0x77a   : > { %v12633_v34 = vpop.f32.mrf.mxu1 }
 0x77b   : > { %11609 = vmatpush3.bf16.xpose.msra.mxu0 %v9672_v14 }
 0x77c   : > { %12813 = vmatprep.subr.msk.bf16.mxu0 %vm4160_vm2, %v9643_v48  ;;  %v9842_v48 = vld [vmem:[#allocation4 + $0xf2] sm:$0xff] }
 0x77d   : > { %12697 = vmatpush3.bf16.xpose.msra.mxu1 %v9729_v62  ;;  %v9843_v62 = vld [vmem:[#allocation4 + $0xfa] sm:$0xff] }
 0x77e   : > { %12698 = vmatprep.subr.bf16.mxu1 %v18163_v52  ;;  %v9877_v32 = vpack.c.bf16 %v9843_v62, %v9842_v48  ;;  %v9855_v48 = vld [vmem:[#allocation4 + $0x15a] sm:$0xff] }
 0x783   : > { %11611 = vmatpush3.bf16.xpose.msra.mxu0 %v9669_v17  ;;  %v9826_v17 = vld [vmem:[#allocation4 + $0x72] sm:$0xff] }
 0x784   : > { %12814 = vmatprep.subr.msk.bf16.mxu0 %vm4160_vm2, %v9642_v18  ;;  %v9869_v18 = vpack.c.bf16 %v9827_v57, %v9826_v17 }
 0x785   : > { %12699 = vmatpush3.bf16.xpose.msra.mxu1 %v9726_v22  ;;  %v9841_v22 = vld [vmem:[#allocation4 + $0xea] sm:$0xff] }
 0x786   : > { %12700 = vmatprep.subr.bf16.mxu1 %v18163_v52  ;;  %v9907_v46 = vsel %vm4160_vm2, %v9869_v18, 0  ;;  %v9876_v51 = vpack.c.bf16 %v9841_v22, %v9840_v20  ;;  %v9853_v18 = vld [vmem:[#allocation4 + $0x14a] sm:$0xff] }
 0x78b   : > { %11613 = vmatpush3.bf16.xpose.msra.mxu0 %v9666_v4  ;;  %v9964_v4 = vsel %vm4160_vm2, %v9888_v28, 0 }
 0x78c   : > { %12815 = vmatprep.subr.msk.bf16.mxu0 %vm4160_vm2, %v9641_v10  ;;  %v9824_v10 = vld [vmem:[#allocation4 + $0x62] sm:$0xff] }
 0x78d   : > { %12701 = vmatpush3.bf16.xpose.msra.mxu1 %v9723_v11  ;;  %v9863_v11 = vld [vmem:[#allocation4 + $0x19a] sm:$0xff]  ;;  %v9868_v49 = vpack.c.bf16 %v9825_v9, %v9824_v10 }
 0x78e   : > { %12702 = vmatprep.subr.bf16.mxu1 %v18163_v52  ;;  %v9887_v39 = vpack.c.bf16 %v9863_v11, %v9862_v7 }
 0x790   : > { %v9961_v53 = vsel %vm4160_vm2, %v9887_v39, 0 }
 0x793   : > { %11615 = vmatpush3.bf16.xpose.msra.mxu0 %v9663_v35 }
 0x794   : > { %12816 = vmatprep.subr.msk.bf16.mxu0 %vm4160_vm2, %v9880_v19  ;;  %v9839_v19 = vld [vmem:[#allocation4 + $0xda] sm:$0xff] }
 0x795   : > { %12703 = vmatpush3.bf16.xpose.msra.mxu1 %v9720_v3  ;;  %v9875_v3 = vpack.c.bf16 %v9839_v19, %v9838_v61 }
 0x796   : > { %12704 = vmatprep.subr.bf16.mxu1 %v18163_v52 }
 0x79a   : > { %v9072_v23 = vpop.f32.mrf.mxu0  ;;  %11617 = vmatmul.mubr.msk.bf16.vlgmr.msra.gmra.mxu0 %vm4160_vm2, %v17299_v5 }
 0x79b   : > { %v17391_v21 = vadd.f32 %v9072_v23, %v17309_v55  ;;  %11628 = vmatpush3.bf16.xpose.msra.mxu0 %v9916_v41  ;;  %11643 = vmatprep.mubr.msk.bf16.mxu0 %vm4160_vm2, %v17385_v60  ;;  %v10050_v55 = vld [vmem:[%s17501_s7] sm:$0xf]  ;;  %v9837_v41 = vld [vmem:[#allocation4 + $0xca] sm:$0xff] }
 0x79c   : > { %v9074_v24 = vpop.f32.mrf.mxu0  ;;  %12817 = vmatprep.subr.msk.bf16.mxu0 %vm4160_vm2, %v9879_v8  ;;  %10053 = vperm.xlu0 %12852, %v10050_v55   ;;  %v9836_v23 = vld [vmem:[#allocation4 + $0xc2] sm:$0xff]  ;;  %v9901_v8 = vsel %vm4160_vm2, %v9867_v30, 0 }
 0x79d   : > { %v17401_v36 = vadd.f32 %v9074_v24, %v17316_v63  ;;  %12705 = vmatpush3.bf16.xpose.msra.mxu1 %v9717_v29  ;;  %v9828_v63 = vld [vmem:[#allocation4 + $0x82] sm:$0xff]  ;;  %v9874_v38 = vpack.c.bf16 %v9837_v41, %v9836_v23  ;;  %v18431_v24 = vpack.c.bf16 %v18373_v40, %v18379_v42  ;;  %v9857_v42 = vld [vmem:[#allocation4 + $0x16a] sm:$0xff] }
 0x79e   : > { %12706 = vmatprep.subr.bf16.mxu1 %v18163_v52  ;;  %v9076_v44 = vpop.f32.mrf.mxu0  ;;  %v9870_v14 = vpack.c.bf16 %v9829_v45, %v9828_v63  ;;  %v9820_v29 = vld [vmem:[#allocation4 + $0x42] sm:$0xff] }
 0x79f   : > { %v9958_v16 = vsel %vm4160_vm2, %v18431_v24, 0  ;;  %v9866_v55 = vpack.c.bf16 %v9821_v33, %v9820_v29  ;;  %v9858_v44 = vld [vmem:[#allocation4 + $0x172] sm:$0xff] }
 0x7a0   : > { %v9077_v43 = vpop.f32.mrf.mxu0  ;;  %v9910_v34 = vsel %vm4160_vm2, %v9870_v14, 0  ;;  %v9885_v37 = vpack.c.bf16 %v17170_v26, %v9858_v44  ;;  %v9854_v14 = vld [vmem:[#allocation4 + $0x152] sm:$0xff] }
 0x7a1   : > { %v9898_v43 = vsel %vm4160_vm2, %v9866_v55, 0  ;;  %v9883_v62 = vpack.c.bf16 %v9855_v48, %v9854_v14 }
 0x7a2   : > { %v9955_v40 = vsel %vm4160_vm2, %v9885_v37, 0 }
 0x7a3   : > { %11630 = vmatpush3.bf16.xpose.msra.mxu0 %v9913_v25  ;;  %v9818_v25 = vld [vmem:[#allocation4 + $0x32] sm:$0xff]  ;;  %v9949_v1 = vsel %vm4160_vm2, %v9883_v62, 0 }
 0x7a4   : > { %12818 = vmatprep.subr.msk.bf16.mxu0 %vm4160_vm2, %v9878_v50  ;;  %v9819_v50 = vld [vmem:[#allocation4 + $0x3a] sm:$0xff] }
 0x7a5   : > { %12707 = vmatpush3.bf16.xpose.msra.mxu1 %v9714_v2  ;;  %v9865_v63 = vpack.c.bf16 %v9819_v50, %v9818_v25  ;;  %v9884_v2 = vpack.c.bf16 %v9857_v42, %v9856_v59 }
 0x7a6   : > { %12708 = vmatprep.subr.bf16.mxu1 %v18163_v52 }
 0x7a7   : > { %v9895_v26 = vsel %vm4160_vm2, %v9865_v63, 0  ;;  %v9952_v45 = vsel %vm4160_vm2, %v9884_v2, 0 }
 0x7ab   : > { %11632 = vmatpush3.bf16.xpose.msra.mxu0 %v9910_v34 }
 0x7ac   : > { %12819 = vmatprep.subr.msk.bf16.mxu0 %vm4160_vm2, %v9877_v32 }
 0x7ad   : > { %12709 = vmatpush3.bf16.xpose.msra.mxu1 %v9711_v54  ;;  %v9852_v54 = vld [vmem:[#allocation4 + $0x142] sm:$0xff] }
 0x7ae   : > { %12714 = vmatprep.subr.bf16.mxu1 %v18163_v52  ;;  %v9882_v28 = vpack.c.bf16 %v9853_v18, %v9852_v54 }
 0x7b0   : > { %v9946_v22 = vsel %vm4160_vm2, %v9882_v28, 0 }
 0x7b3   : > { %11634 = vmatpush3.bf16.xpose.msra.mxu0 %v9907_v46  ;;  %v9851_v46 = vld [vmem:[#allocation4 + $0x13a] sm:$0xff] }
 0x7b4   : > { %v9113_v13 = vpop.f32.mrf.mxu1  ;;  %12711 = vmatmul.mubr.msk.bf16.vlgmr.msra.gmra.mxu1 %vm4160_vm2, %v17299_v5  ;;  %12820 = vmatprep.subr.msk.bf16.mxu0 %vm4160_vm2, %v9876_v51  ;;  %v9904_v5 = vsel %vm4160_vm2, %v9868_v49, 0 }
 0x7b5   : > { %v17427_v31 = vadd.f32 %v9113_v13, %v17343_v15  ;;  %12715 = vmatpush3.bf16.xpose.msra.mxu1 %v9964_v4  ;;  %12730 = vmatprep.mubr.msk.bf16.mxu1 %vm12870_vm4, %v18163_v52 }
 0x7b6   : > { %12716 = vmatprep.subr.bf16.mxu1 %v18163_v52  ;;  %v12652_v35 = vpop.f32.mrf.mxu1 }
 0x7b8   : > { %v9116_v47 = vpop.f32.mrf.mxu1 }
 0x7ba   : > { %v12653_v15 = vpop.f32.mrf.mxu1 }
 0x7bb   : > { %11636 = vmatpush3.bf16.xpose.msra.mxu0 %v9904_v5 }
 0x7bc   : > { %12821 = vmatprep.subr.msk.bf16.mxu0 %vm4160_vm2, %v9875_v3 }
 0x7bd   : > { %12717 = vmatpush3.bf16.xpose.msra.mxu1 %v9961_v53 }
 0x7be   : > { %12718 = vmatprep.subr.bf16.mxu1 %v18163_v52 }
 0x7c3   : > { %11638 = vmatpush3.bf16.xpose.msra.mxu0 %v9901_v8 }
 0x7c4   : > { %12822 = vmatprep.subr.msk.bf16.mxu0 %vm4160_vm2, %v9874_v38 }
 0x7c5   : > { %12719 = vmatpush3.bf16.xpose.msra.mxu1 %v9958_v16 }
 0x7c6   : > { %12720 = vmatprep.subr.bf16.mxu1 %v18163_v52 }
 0x7cb   : > { %11640 = vmatpush3.bf16.xpose.msra.mxu0 %v9898_v43 }
 0x7cc   : > { %12823 = vmatprep.subr.msk.bf16.mxu0 %vm4160_vm2, %v9873_v0 }
 0x7cd   : > { %12721 = vmatpush3.bf16.xpose.msra.mxu1 %v9955_v40 }
 0x7ce   : > { %12722 = vmatprep.subr.bf16.mxu1 %v18163_v52 }
 0x7d3   : > { %11642 = vmatpush3.bf16.xpose.msra.mxu0 %v9895_v26 }
 0x7d5   : > { %12723 = vmatpush3.bf16.xpose.msra.mxu1 %v9952_v45 }
 0x7d6   : > { %12724 = vmatprep.subr.bf16.mxu1 %v18163_v52 }
 0x7da   : > { %v9304_v34 = vpop.f32.mrf.mxu0  ;;  %11644 = vmatmul.mubr.msk.bf16.vlgmr.msra.gmra.mxu0 %vm4160_vm2, %v17385_v60 }
 0x7db   : > { %v9351_v32 = vadd.f32 %v9304_v34, %v17391_v21  ;;  %v9850_v21 = vld [vmem:[#allocation4 + $0x132] sm:$0xff] }
 0x7dc   : > { %v9306_v57 = vpop.f32.mrf.mxu0  ;;  %v9881_v51 = vpack.c.bf16 %v9851_v46, %v9850_v21 }
 0x7dd   : > { %v9352_v56 = vadd.f32 %v9306_v57, %v17401_v36  ;;  %12725 = vmatpush3.bf16.xpose.msra.mxu1 %v9949_v1 }
 0x7de   : > { %12726 = vmatprep.subr.bf16.mxu1 %v18163_v52  ;;  %v9308_v17 = vpop.f32.mrf.mxu0  ;;  %v9943_v4 = vsel %vm4160_vm2, %v9881_v51, 0 }
 0x7e0   : > { %v9309_v20 = vpop.f32.mrf.mxu0 }
 0x7e5   : > { %12727 = vmatpush3.bf16.xpose.msra.mxu1 %v9946_v22 }
 0x7e6   : > { %12728 = vmatprep.subr.bf16.mxu1 %v18163_v52 }
 0x7ed   : > { %12729 = vmatpush3.bf16.xpose.msra.mxu1 %v9943_v4 }
 0x7f4   : > { %v9345_v36 = vpop.f32.mrf.mxu1  ;;  %12731 = vmatmul.mubr.msk.bf16.vlgmr.msra.gmra.mxu1 %vm4160_vm2, %v17385_v60 }
 0x7f5   : > { %v9353_v10 = vadd.f32 %v9345_v36, %v17427_v31 }
 0x7f6   : > { %v12672_v7 = vpop.f32.mrf.mxu1 }
 0x7f8   : > { %v9348_v11 = vpop.f32.mrf.mxu1 }
 0x7fa   : > { %v12673_v13 = vpop.f32.mrf.mxu1 }
 0x817   : > { %v10054_v24 = vpop.permute.xlu0 %10053 }
 0x81a   : > { %v9536_v9 = vpop.f32.mrf.mxu0 }
 0x81b   : > { %v9583_v49 = vadd.f32 %v9536_v9, %v9351_v32 }
 0x81c   : > { %v9538_v39 = vpop.f32.mrf.mxu0 }
 0x81d   : > { %v9584_v35 = vadd.f32 %v9538_v39, %v9352_v56 }
 0x81e   : > { %v9540_v19 = vpop.f32.mrf.mxu0 }
 0x820   : > { %v9541_v52 = vpop.f32.mrf.mxu0 }
 0x834   : > { %v9577_v47 = vpop.f32.mrf.mxu1 }
 0x835   : > { %v9585_v61 = vadd.f32 %v9577_v47, %v9353_v10 }
 0x836   : > { %v12692_v5 = vpop.f32.mrf.mxu1 }
 0x838   : > { %v9580_v3 = vpop.f32.mrf.mxu1 }
 0x83a   : > { %v12693_v53 = vpop.f32.mrf.mxu1 }
 0x85a   : > { %v9768_v15 = vpop.f32.mrf.mxu0 }
 0x85b   : > { %v9815_v38 = vadd.f32 %v9768_v15, %v9583_v49 }
 0x85c   : > { %v9770_v6 = vpop.f32.mrf.mxu0 }
 0x85d   : > { %v9816_v60 = vadd.f32 %v9770_v6, %v9584_v35 }
 0x85e   : > { %v9772_v58 = vpop.f32.mrf.mxu0 }
 0x860   : > { %v9773_v31 = vpop.f32.mrf.mxu0 }
 0x874   : > { %v9809_v30 = vpop.f32.mrf.mxu1 }
 0x875   : > { %v9817_v50 = vadd.f32 %v9809_v30, %v9585_v61 }
 0x876   : > { %v12712_v23 = vpop.f32.mrf.mxu1 }
 0x878   : > { %v9812_v41 = vpop.f32.mrf.mxu1 }
 0x87a   : > { %v12713_v8 = vpop.f32.mrf.mxu1 }
 0x89a   : > { %v10000_v33 = vpop.f32.mrf.mxu0 }
 0x89b   : > { %v10047_v16 = vadd.f32 %v10000_v33, %v9815_v38 }
 0x89c   : > { %v10002_v29 = vpop.f32.mrf.mxu0 }
 0x89d   : > { %v10048_v55 = vadd.f32 %v10002_v29, %v9816_v60  ;;  %v10056_v12 = vadd.f32 %v10054_v24, %v10047_v16 }
 0x89e   : > { %v10004_v44 = vpop.f32.mrf.mxu0 }
 0x89f   : > { %v10057_v37 = vadd.f32 %v10054_v24, %v10048_v55  ;;  %v10059_v27 = vmax.f32 %v10056_v12, 0.0 }
 0x8a0   : > { %v10005_v43 = vpop.f32.mrf.mxu0 }
 0x8a1   : > { %v10060_v0 = vmax.f32 %v10057_v37, 0.0  ;;  %10075 = vrot.lane.b32.xlu0 %v10059_v27, %s12872_s19  ;;  %10065 = vrot.lane.b32.xlu1 %v10059_v27, %s12873_s20  ;;  %10063 = vst.msk [vmem:[%s17467_s18] sm:$0xf] %vm10062_vm5, %v10059_v27 }
 0x8a3   : > { %v10086_v25 = vcombine.low %v10059_v27, %v10060_v0 }
 0x8a5   : > { %10080 = vrot.lane.b32.xlu0 %v10059_v27, %s12874_s28  ;;  %10070 = vrot.lane.b32.xlu1 %v10059_v27, %s12875_s21 }
 0x8a9   : > { %10109 = vrot.lane.b32.xlu0 %v10060_v0, %s12876_s22  ;;  %10105 = vrot.lane.b32.xlu1 %v10060_v0, %s12877_s23 }
 0x8ad   : > { %10113 = vrot.lane.b32.xlu1 %v10060_v0, %s12878_s24  ;;  %10087 = vrot.lane.b32.xlu0 %v10086_v25, %s12879_s25 }
 0x8b1   : > { %10095 = vrot.lane.b32.xlu1 %v10060_v0, %s12880_s26 }
 0x8b4   : > { %v10041_v40 = vpop.f32.mrf.mxu1 }
 0x8b5   : > { %v10049_v42 = vadd.f32 %v10041_v40, %v9817_v50 }
 0x8b6   : > { %v12732_v63 = vpop.f32.mrf.mxu1 }
 0x8b7   : > { %v10058_v59 = vadd.f32 %v10054_v24, %v10049_v42 }
 0x8b8   : > { %v10044_v2 = vpop.f32.mrf.mxu1 }
 0x8b9   : > { %v10061_v26 = vmax.f32 %v10058_v59, 0.0 }
 0x8ba   : > { %v12733_v45 = vpop.f32.mrf.mxu1 }
 0x8bb   : > { %10118 = vrot.lane.b32.xlu1 %v10061_v26, %s12881_s29  ;;  %10126 = vrot.lane.b32.xlu0 %v10061_v26, %s12882_s30 }
 0x8bf   : > { %10122 = vrot.lane.b32.xlu1 %v10061_v26, %s12883_s9  ;;  %10130 = vrot.lane.b32.xlu0 %v10061_v26, %s12884_s10 }
 0x8c3   : > { %10100 = vrot.lane.b32.xlu1 %v10060_v0, %s12885_s11  ;;  %10134 = vrot.lane.b32.xlu0 %v10061_v26, %s12886_s12 }
 0x913   : > { %v10076_v14 = vpop.permute.xlu0 %10075  ;;  %v10066_v48 = vpop.permute.xlu1 %10065 }
 0x914   : > { %10069 = vst.msk [vmem:[%s17467_s18] sm:$0xf] %vm10068_vm6, %v10066_v48 }
 0x917   : > { %v10081_v62 = vpop.permute.xlu0 %10080  ;;  %v10071_v34 = vpop.permute.xlu1 %10070 }
 0x918   : > { %10074 = vst.msk [vmem:[%s17467_s18] sm:$0xf] %vm10073_vm7, %v10071_v34 }
 0x919   : > { %10079 = vst.msk [vmem:[%s17467_s18] sm:$0xf] %vm10078_vm8, %v10076_v14 }
 0x91a   : > { %10084 = vst.msk [vmem:[%s17467_s18] sm:$0xf] %vm10083_vm9, %v10081_v62 }
 0x91b   : > { %v10110_v32 = vpop.permute.xlu0 %10109  ;;  %v10106_v57 = vpop.permute.xlu1 %10105 }
 0x91c   : > { %10108 = vst.msk [vmem:[%s17467_s18 + $0x4] sm:$0xf] %vm10062_vm5, %v10106_v57 }
 0x91d   : > { %10112 = vst.msk [vmem:[%s17467_s18 + $0x4] sm:$0xf] %vm10068_vm6, %v10110_v32 }
 0x91f   : > { %v10114_v1 = vpop.permute.xlu1 %10113  ;;  %v10088_v56 = vpop.permute.xlu0 %10087 }
 0x920   : > { %10116 = vst.msk [vmem:[%s17467_s18 + $0x4] sm:$0xf] %vm10073_vm7, %v10114_v1  ;;  %v10089_v54 = vrot.slane %v10088_v56, 4 }
 0x922   : > { %v10091_v17 = vsel %vm10090_vm10, %v10088_v56, %v10089_v54 }
 0x923   : > { %10094 = vst.msk [vmem:[%s17467_s18] sm:$0xf] %vm10093_vm11, %v10091_v17  ;;  %v10096_v18 = vpop.permute.xlu1 %10095 }
 0x924   : > { %10099 = vst.msk [vmem:[%s17467_s18] sm:$0xf] %vm10098_vm12, %v10096_v18 }
 0x92d   : > { %v10119_v28 = vpop.permute.xlu1 %10118  ;;  %v10127_v20 = vpop.permute.xlu0 %10126 }
 0x92e   : > { %10121 = vst.msk [vmem:[%s17467_s18 + $0x4] sm:$0xf] %vm10078_vm8, %v10119_v28 }
 0x931   : > { %v10123_v22 = vpop.permute.xlu1 %10122  ;;  %v10131_v46 = vpop.permute.xlu0 %10130 }
 0x932   : > { %10125 = vst.msk [vmem:[%s17467_s18 + $0x4] sm:$0xf] %vm10083_vm9, %v10123_v22 }
 0x933   : > { %10129 = vst.msk [vmem:[%s17467_s18 + $0x4] sm:$0xf] %vm10093_vm11, %v10127_v20 }
 0x934   : > { %10133 = vst.msk [vmem:[%s17467_s18 + $0x4] sm:$0xf] %vm10098_vm12, %v10131_v46 }
 0x935   : > { %v10101_v21 = vpop.permute.xlu1 %10100  ;;  %v10135_v51 = vpop.permute.xlu0 %10134 }
 0x936   : > { %10104 = vst.msk [vmem:[%s17467_s18] sm:$0xf] %vm10103_vm13, %v10101_v21  ;;  %10137 = vst.msk [vmem:[%s17467_s18 + $0x4] sm:$0xf] %vm10103_vm13, %v10135_v51 }
 0x937 PF: > { %s18_s27 = sadd.s32 1, %s12866_s27  }
 0x938   : > { %p15_p4 = scmp.ge.s32.totalorder %s18_s27, 4  }
 0x93a   :  { %17 = sbr.rel (!%p15_p4) target bundleno = 1 (0x1), region = 109 }

</bundles_post_ra>
